<compile_context>
chip_gen: v6e
topology: v6e:2x2x1
jax: 0.10.0
libtpu: 0.0.40
codegen_flags: <defaults>
</compile_context>

<pallas_src>
import jax
import jax.numpy as jnp
from jax import lax
from jax.experimental import pallas as pl
from jax.experimental.pallas import tpu as pltpu

BN_EPS = 1e-5  # torch.nn.BatchNorm2d default


def _make_fused_kernel(n_layers, N, H, W, K, dilation, Cp):
    """Build the fused (conv+bn+relu) x n_layers kernel.

    Kernel ref order (variadic):
      x_ref, [w_ref, gamma_ref, beta_ref] * n_layers, o_ref, pad_scratch
    """
    pad = dilation * (K - 1) // 2
    Hp, Wp = H + 2 * pad, W + 2 * pad
    HW = H * W
    inv_cnt = 1.0 / float(N * HW)

    def kernel(*refs):
        x_ref = refs[0]
        prm = refs[1:1 + 3 * n_layers]
        o_ref = refs[1 + 3 * n_layers]
        xp = refs[2 + 3 * n_layers]                 # shared (N, Hp, Wp, Cp) scratch

        # ---- zero ONLY the halo, once. Every layer rewrites the interior and all
        #      layers use the same lane-padded Cp, so the halo stays zero. ----
        if pad > 0:
            xp[:, 0:pad, :, :] = jnp.zeros((N, pad, Wp, Cp), jnp.float32)
            xp[:, pad + H:Hp, :, :] = jnp.zeros((N, pad, Wp, Cp), jnp.float32)
            xp[:, pad:pad + H, 0:pad, :] = jnp.zeros((N, H, pad, Cp), jnp.float32)
            xp[:, pad:pad + H, pad + W:Wp, :] = jnp.zeros((N, H, pad, Cp), jnp.float32)

        cur = x_ref[...]                            # (N, H, W, Cp) f32, lane-dense
        for l in range(n_layers):
            w_ref, g_ref, bt_ref = prm[3 * l:3 * l + 3]

            # 'same' padding: only the interior is (re)written each layer.
            xp[:, pad:pad + H, pad:pad + W, :] = cur

            # ---- conv as K*K accumulated MXU matmuls (no im2col temp) ----
            acc = jnp.zeros((N * HW, Cp), jnp.float32)
            for kh in range(K):
                for kw in range(K):
                    h0 = kh * dilation
                    w0 = kw * dilation
                    kidx = kh * K + kw
                    tap = xp[:, h0:h0 + H, w0:w0 + W, :].reshape(N * HW, Cp)
                    acc = acc + jnp.dot(
                        tap, w_ref[kidx * Cp:(kidx + 1) * Cp, :],
                        preferred_element_type=jnp.float32)
            # NOTE: conv bias is intentionally omitted -- it cancels exactly under
            # train-mode BatchNorm (mean subtraction).

            # ---- BatchNorm2d (train-mode batch stats), numerically-safe two-pass
            #      variance, folded into scale/shift, fused ReLU ----
            mean = jnp.sum(acc, axis=0, keepdims=True) * inv_cnt        # (1, Cp)
            diff = acc - mean
            var = jnp.sum(diff * diff, axis=0, keepdims=True) * inv_cnt  # biased
            scale = g_ref[...] * lax.rsqrt(var + BN_EPS)
            shift = bt_ref[...] - mean * scale
            act = jnp.maximum(acc * scale + shift, 0.0)
            # Lane-padded channels: acc==0 -> mean=var=0 -> scale=shift=0 -> act=0,
            # so zeros propagate exactly to the next layer / the output.

            if l == n_layers - 1:
                o_ref[...] = act.astype(o_ref.dtype)    # lane-dense (N*HW, Cp) store
            else:
                cur = act.reshape(N, H, W, Cp)

    return kernel


def conv_bnorms2d_forward(x_nchw, params, *, dilation=1):
    """Equivalent of ConvBNorms2d.forward. Input/output are NCHW like PyTorch."""
    x = jnp.transpose(x_nchw, (0, 2, 3, 1)).astype(jnp.float32)   # NCHW -> NHWC
    N, H, W, Cin = x.shape
    n_layers = len(params)
    K = params[0][0].shape[0]
    chans = [Cin] + [p[0].shape[3] for p in params]
    Cout = chans[-1]
    # One uniform lane-dense channel count for every layer.
    Cp = pl.cdiv(max(chans), 128) * 128
    pad = dilation * (K - 1) // 2
    Hp, Wp = H + 2 * pad, W + 2 * pad
    HW = H * W

    # Lane-dense input: zero-pad channels to Cp (zeros are exact no-ops in the conv).
    x_p = jnp.pad(x, ((0, 0), (0, 0), (0, 0), (0, Cp - Cin)))

    flat_inputs = [x_p]
    in_specs = [pl.BlockSpec((N, H, W, Cp), lambda i: (0, 0, 0, 0))]
    for l, (w, b, g, bt) in enumerate(params):
        ci, co = chans[l], chans[l + 1]
        # HWIO -> (K*K*Cp, Cp); both channel dims zero-padded to Cp.
        w_p = jnp.pad(w, ((0, 0), (0, 0), (0, Cp - ci), (0, Cp - co)))
        w_p = w_p.reshape(K * K * Cp, Cp)
        g_p = jnp.pad(g.reshape(1, co), ((0, 0), (0, Cp - co)))
        bt_p = jnp.pad(bt.reshape(1, co), ((0, 0), (0, Cp - co)))
        # Conv bias `b` is NOT passed: it cancels exactly under train-mode BN.
        flat_inputs += [w_p, g_p, bt_p]
        in_specs += [
            pl.BlockSpec((K * K * Cp, Cp), lambda i: (0, 0)),
            pl.BlockSpec((1, Cp), lambda i: (0, 0)),
            pl.BlockSpec((1, Cp), lambda i: (0, 0)),
        ]

    kernel = _make_fused_kernel(n_layers, N, H, W, K, dilation, Cp)

    # Explicit VMEM budget (v5e default scoped limit is 16 MiB; v7x physical 64 MiB).
    act_bytes = N * HW * Cp * 4
    w_bytes = n_layers * (K * K * Cp * Cp * 4)
    scratch_bytes = N * Hp * Wp * Cp * 4
    vmem_est = 2 * act_bytes + 2 * act_bytes + 2 * w_bytes + scratch_bytes + 6 * act_bytes
    vmem_limit = int(min(max(vmem_est, 32 << 20), 60 << 20))

    out = pl.pallas_call(
        kernel,
        out_shape=jax.ShapeDtypeStruct((N * HW, Cp), jnp.float32),
        grid=(1,),
        in_specs=in_specs,
        out_specs=pl.BlockSpec((N * HW, Cp), lambda i: (0, 0)),
        scratch_shapes=[pltpu.VMEM((N, Hp, Wp, Cp), jnp.float32)],   # ONE shared pad buffer
        compiler_params=pltpu.CompilerParams(
            dimension_semantics=("arbitrary",),
            vmem_limit_bytes=vmem_limit),
    )(*flat_inputs)

    out = out[:, :Cout].reshape(N, H, W, Cout)        # drop lane padding (fuses)
    return jnp.transpose(out, (0, 3, 1, 2))           # NHWC -> NCHW


def init_params(key, in_channels, out_channels, kernel_size, n_layers):
    """Deterministic synthetic parameters; shapes match the module's __init__."""
    params = []
    cin = in_channels
    for _ in range(n_layers):
        key, k_w, k_b, k_g, k_bt = jax.random.split(key, 5)
        fan_in = cin * kernel_size * kernel_size
        w = jax.random.normal(
            k_w, (kernel_size, kernel_size, cin, out_channels), jnp.float32
        ) / jnp.sqrt(float(fan_in))
        b = 0.1 * jax.random.normal(k_b, (out_channels,), jnp.float32)
        gamma = 1.0 + 0.1 * jax.random.normal(k_g, (out_channels,), jnp.float32)
        beta = 0.1 * jax.random.normal(k_bt, (out_channels,), jnp.float32)
        params.append((w, b, gamma, beta))
        cin = out_channels
    return params


def reference_forward(x_nchw, params, *, dilation=1):
    """Pure-JAX reference mirroring PyTorch Conv2d/BatchNorm2d(train)/ReLU."""
    x = x_nchw
    for (w, b, gamma, beta) in params:
        k = w.shape[0]
        pad = dilation * (k - 1) // 2
        y = lax.conv_general_dilated(
            x, w, window_strides=(1, 1),
            padding=((pad, pad), (pad, pad)),
            rhs_dilation=(dilation, dilation),
            dimension_numbers=("NCHW", "HWIO", "NCHW"))
        y = y + b.reshape(1, -1, 1, 1)
        mean = jnp.mean(y, axis=(0, 2, 3), keepdims=True)
        var = jnp.mean((y - mean) ** 2, axis=(0, 2, 3), keepdims=True)
        y = (y - mean) * lax.rsqrt(var + BN_EPS)
        y = y * gamma.reshape(1, -1, 1, 1) + beta.reshape(1, -1, 1, 1)
        x = jnp.maximum(y, 0.0)
    return x


if __name__ == "__main__":
    # ConvBNorms2d(in_channels=4, out_channels=8, kernel_size=3, n_layers=2)
    N, CIN, COUT, H, W = 2, 4, 8, 16, 16
    KSIZE, NLAYERS, DILATION = 3, 2, 1

    key = jax.random.PRNGKey(0)
    key, k_x = jax.random.split(key)
    x = jax.random.normal(k_x, (N, CIN, H, W), jnp.float32)   # NCHW, like PyTorch
    params = init_params(key, CIN, COUT, KSIZE, NLAYERS)

    out = conv_bnorms2d_forward(x, params, dilation=DILATION)
    out = jax.block_until_ready(out)

    ref = jax.block_until_ready(reference_forward(x, params, dilation=DILATION))
    assert out.shape == (N, COUT, H, W), out.shape
    assert jnp.allclose(out, ref, atol=2e-3, rtol=2e-3), \
        float(jnp.max(jnp.abs(out - ref)))

    print("KERNEL_OK")
</pallas_src>

<mosaic_0001>
module attributes {stable_mosaic.version = 11 : i64} {
  func.func @kernel(%arg0: i32, %arg1: memref<2x16x16x128xf32, #tpu.memory_space<vmem>>, %arg2: memref<1152x128xf32, #tpu.memory_space<vmem>>, %arg3: memref<1x128xf32, #tpu.memory_space<vmem>>, %arg4: memref<1x128xf32, #tpu.memory_space<vmem>>, %arg5: memref<1152x128xf32, #tpu.memory_space<vmem>>, %arg6: memref<1x128xf32, #tpu.memory_space<vmem>>, %arg7: memref<1x128xf32, #tpu.memory_space<vmem>>, %arg8: memref<512x128xf32, #tpu.memory_space<vmem>>, %arg9: memref<2x18x18x128xf32, #tpu.memory_space<vmem>>) attributes {dimension_semantics = [#tpu.dimension_semantics<arbitrary>], iteration_bounds = array<i64: 1>, scalar_prefetch = 0 : i64, scratch_operands = 1 : i64, tpu.core_type = #tpu.core_type<tc>, window_params = [{pipeline_mode = #tpu.pipeline_mode<synchronous>, transform_indices = @transform_0, window_bounds = array<i64: 2, 16, 16, 128>}, {pipeline_mode = #tpu.pipeline_mode<synchronous>, transform_indices = @transform_1, window_bounds = array<i64: 1152, 128>}, {pipeline_mode = #tpu.pipeline_mode<synchronous>, transform_indices = @transform_2, window_bounds = array<i64: 1, 128>}, {pipeline_mode = #tpu.pipeline_mode<synchronous>, transform_indices = @transform_3, window_bounds = array<i64: 1, 128>}, {pipeline_mode = #tpu.pipeline_mode<synchronous>, transform_indices = @transform_4, window_bounds = array<i64: 1152, 128>}, {pipeline_mode = #tpu.pipeline_mode<synchronous>, transform_indices = @transform_5, window_bounds = array<i64: 1, 128>}, {pipeline_mode = #tpu.pipeline_mode<synchronous>, transform_indices = @transform_6, window_bounds = array<i64: 1, 128>}, {pipeline_mode = #tpu.pipeline_mode<synchronous>, transform_indices = @transform_7, window_bounds = array<i64: 512, 128>}]} {
    %cst = arith.constant 0.000000e+00 : f32
    %0 = vector.broadcast %cst : f32 to vector<2x1x18x128xf32>
    %c0 = arith.constant 0 : index
    %c0_0 = arith.constant 0 : index
    %c0_1 = arith.constant 0 : index
    %c0_2 = arith.constant 0 : index
    %1 = vector.load %arg9[%c0, %c0_0, %c0_1, %c0_2] : memref<2x18x18x128xf32, #tpu.memory_space<vmem>>, vector<2x1x18x128xf32>
    tpu.vector_store %arg9[%c0, %c0_0, %c0_1, %c0_2], %0 {strides = array<i32>} : memref<2x18x18x128xf32, #tpu.memory_space<vmem>>, vector<2x1x18x128xf32>,
    %cst_3 = arith.constant 0.000000e+00 : f32
    %2 = vector.broadcast %cst_3 : f32 to vector<2x1x18x128xf32>
    %c0_4 = arith.constant 0 : index
    %c17 = arith.constant 17 : index
    %c0_5 = arith.constant 0 : index
    %c0_6 = arith.constant 0 : index
    %3 = vector.load %arg9[%c0_4, %c17, %c0_5, %c0_6] : memref<2x18x18x128xf32, #tpu.memory_space<vmem>>, vector<2x1x18x128xf32>
    tpu.vector_store %arg9[%c0_4, %c17, %c0_5, %c0_6], %2 {strides = array<i32>} : memref<2x18x18x128xf32, #tpu.memory_space<vmem>>, vector<2x1x18x128xf32>,
    %cst_7 = arith.constant 0.000000e+00 : f32
    %4 = vector.broadcast %cst_7 : f32 to vector<2x16x1x128xf32>
    %c0_8 = arith.constant 0 : index
    %c1 = arith.constant 1 : index
    %c0_9 = arith.constant 0 : index
    %c0_10 = arith.constant 0 : index
    %5 = vector.load %arg9[%c0_8, %c1, %c0_9, %c0_10] : memref<2x18x18x128xf32, #tpu.memory_space<vmem>>, vector<2x16x1x128xf32>
    tpu.vector_store %arg9[%c0_8, %c1, %c0_9, %c0_10], %4 {strides = array<i32>} : memref<2x18x18x128xf32, #tpu.memory_space<vmem>>, vector<2x16x1x128xf32>,
    %cst_11 = arith.constant 0.000000e+00 : f32
    %6 = vector.broadcast %cst_11 : f32 to vector<2x16x1x128xf32>
    %c0_12 = arith.constant 0 : index
    %c1_13 = arith.constant 1 : index
    %c17_14 = arith.constant 17 : index
    %c0_15 = arith.constant 0 : index
    %7 = vector.load %arg9[%c0_12, %c1_13, %c17_14, %c0_15] : memref<2x18x18x128xf32, #tpu.memory_space<vmem>>, vector<2x16x1x128xf32>
    tpu.vector_store %arg9[%c0_12, %c1_13, %c17_14, %c0_15], %6 {strides = array<i32>} : memref<2x18x18x128xf32, #tpu.memory_space<vmem>>, vector<2x16x1x128xf32>,
    %c0_16 = arith.constant 0 : index
    %c0_17 = arith.constant 0 : index
    %c0_18 = arith.constant 0 : index
    %c0_19 = arith.constant 0 : index
    %8 = vector.load %arg1[%c0_16, %c0_17, %c0_18, %c0_19] : memref<2x16x16x128xf32, #tpu.memory_space<vmem>>, vector<2x16x16x128xf32>
    %c0_20 = arith.constant 0 : index
    %c1_21 = arith.constant 1 : index
    %c1_22 = arith.constant 1 : index
    %c0_23 = arith.constant 0 : index
    %9 = vector.load %arg9[%c0_20, %c1_21, %c1_22, %c0_23] : memref<2x18x18x128xf32, #tpu.memory_space<vmem>>, vector<2x16x16x128xf32>
    tpu.vector_store %arg9[%c0_20, %c1_21, %c1_22, %c0_23], %8 {strides = array<i32>} : memref<2x18x18x128xf32, #tpu.memory_space<vmem>>, vector<2x16x16x128xf32>,
    %cst_24 = arith.constant 0.000000e+00 : f32
    %10 = vector.broadcast %cst_24 : f32 to vector<512x128xf32>
    %c0_25 = arith.constant 0 : index
    %c0_26 = arith.constant 0 : index
    %c0_27 = arith.constant 0 : index
    %c0_28 = arith.constant 0 : index
    %11 = vector.load %arg9[%c0_25, %c0_26, %c0_27, %c0_28] : memref<2x18x18x128xf32, #tpu.memory_space<vmem>>, vector<2x16x16x128xf32>
    %12 = vector.shape_cast %11 : vector<2x16x16x128xf32> to vector<512x128xf32>
    %c0_29 = arith.constant 0 : index
    %c0_30 = arith.constant 0 : index
    %13 = vector.load %arg2[%c0_29, %c0_30] : memref<1152x128xf32, #tpu.memory_space<vmem>>, vector<128x128xf32>
    %cst_31 = arith.constant dense<0.000000e+00> : vector<512x128xf32>
    %14 = tpu.matmul %12, %13, %cst_31 {dimension_numbers = #tpu.dot_dimension_numbers<[1], [0], [0], [1], [0, 0, 1, 1], [], []>} : vector<512x128xf32>, vector<128x128xf32>, vector<512x128xf32> -> vector<512x128xf32>
    %15 = arith.addf %10, %14 : vector<512x128xf32>
    %c0_32 = arith.constant 0 : index
    %c0_33 = arith.constant 0 : index
    %c1_34 = arith.constant 1 : index
    %c0_35 = arith.constant 0 : index
    %16 = vector.load %arg9[%c0_32, %c0_33, %c1_34, %c0_35] : memref<2x18x18x128xf32, #tpu.memory_space<vmem>>, vector<2x16x16x128xf32>
    %17 = vector.shape_cast %16 : vector<2x16x16x128xf32> to vector<512x128xf32>
    %c128 = arith.constant 128 : index
    %c0_36 = arith.constant 0 : index
    %18 = vector.load %arg2[%c128, %c0_36] : memref<1152x128xf32, #tpu.memory_space<vmem>>, vector<128x128xf32>
    %cst_37 = arith.constant dense<0.000000e+00> : vector<512x128xf32>
    %19 = tpu.matmul %17, %18, %cst_37 {dimension_numbers = #tpu.dot_dimension_numbers<[1], [0], [0], [1], [0, 0, 1, 1], [], []>} : vector<512x128xf32>, vector<128x128xf32>, vector<512x128xf32> -> vector<512x128xf32>
    %20 = arith.addf %15, %19 : vector<512x128xf32>
    %c0_38 = arith.constant 0 : index
    %c0_39 = arith.constant 0 : index
    %c2 = arith.constant 2 : index
    %c0_40 = arith.constant 0 : index
    %21 = vector.load %arg9[%c0_38, %c0_39, %c2, %c0_40] : memref<2x18x18x128xf32, #tpu.memory_space<vmem>>, vector<2x16x16x128xf32>
    %22 = vector.shape_cast %21 : vector<2x16x16x128xf32> to vector<512x128xf32>
    %c256 = arith.constant 256 : index
    %c0_41 = arith.constant 0 : index
    %23 = vector.load %arg2[%c256, %c0_41] : memref<1152x128xf32, #tpu.memory_space<vmem>>, vector<128x128xf32>
    %cst_42 = arith.constant dense<0.000000e+00> : vector<512x128xf32>
    %24 = tpu.matmul %22, %23, %cst_42 {dimension_numbers = #tpu.dot_dimension_numbers<[1], [0], [0], [1], [0, 0, 1, 1], [], []>} : vector<512x128xf32>, vector<128x128xf32>, vector<512x128xf32> -> vector<512x128xf32>
    %25 = arith.addf %20, %24 : vector<512x128xf32>
    %c0_43 = arith.constant 0 : index
    %c1_44 = arith.constant 1 : index
    %c0_45 = arith.constant 0 : index
    %c0_46 = arith.constant 0 : index
    %26 = vector.load %arg9[%c0_43, %c1_44, %c0_45, %c0_46] : memref<2x18x18x128xf32, #tpu.memory_space<vmem>>, vector<2x16x16x128xf32>
    %27 = vector.shape_cast %26 : vector<2x16x16x128xf32> to vector<512x128xf32>
    %c384 = arith.constant 384 : index
    %c0_47 = arith.constant 0 : index
    %28 = vector.load %arg2[%c384, %c0_47] : memref<1152x128xf32, #tpu.memory_space<vmem>>, vector<128x128xf32>
    %cst_48 = arith.constant dense<0.000000e+00> : vector<512x128xf32>
    %29 = tpu.matmul %27, %28, %cst_48 {dimension_numbers = #tpu.dot_dimension_numbers<[1], [0], [0], [1], [0, 0, 1, 1], [], []>} : vector<512x128xf32>, vector<128x128xf32>, vector<512x128xf32> -> vector<512x128xf32>
    %30 = arith.addf %25, %29 : vector<512x128xf32>
    %c0_49 = arith.constant 0 : index
    %c1_50 = arith.constant 1 : index
    %c1_51 = arith.constant 1 : index
    %c0_52 = arith.constant 0 : index
    %31 = vector.load %arg9[%c0_49, %c1_50, %c1_51, %c0_52] : memref<2x18x18x128xf32, #tpu.memory_space<vmem>>, vector<2x16x16x128xf32>
    %32 = vector.shape_cast %31 : vector<2x16x16x128xf32> to vector<512x128xf32>
    %c512 = arith.constant 512 : index
    %c0_53 = arith.constant 0 : index
    %33 = vector.load %arg2[%c512, %c0_53] : memref<1152x128xf32, #tpu.memory_space<vmem>>, vector<128x128xf32>
    %cst_54 = arith.constant dense<0.000000e+00> : vector<512x128xf32>
    %34 = tpu.matmul %32, %33, %cst_54 {dimension_numbers = #tpu.dot_dimension_numbers<[1], [0], [0], [1], [0, 0, 1, 1], [], []>} : vector<512x128xf32>, vector<128x128xf32>, vector<512x128xf32> -> vector<512x128xf32>
    %35 = arith.addf %30, %34 : vector<512x128xf32>
    %c0_55 = arith.constant 0 : index
    %c1_56 = arith.constant 1 : index
    %c2_57 = arith.constant 2 : index
    %c0_58 = arith.constant 0 : index
    %36 = vector.load %arg9[%c0_55, %c1_56, %c2_57, %c0_58] : memref<2x18x18x128xf32, #tpu.memory_space<vmem>>, vector<2x16x16x128xf32>
    %37 = vector.shape_cast %36 : vector<2x16x16x128xf32> to vector<512x128xf32>
    %c640 = arith.constant 640 : index
    %c0_59 = arith.constant 0 : index
    %38 = vector.load %arg2[%c640, %c0_59] : memref<1152x128xf32, #tpu.memory_space<vmem>>, vector<128x128xf32>
    %cst_60 = arith.constant dense<0.000000e+00> : vector<512x128xf32>
    %39 = tpu.matmul %37, %38, %cst_60 {dimension_numbers = #tpu.dot_dimension_numbers<[1], [0], [0], [1], [0, 0, 1, 1], [], []>} : vector<512x128xf32>, vector<128x128xf32>, vector<512x128xf32> -> vector<512x128xf32>
    %40 = arith.addf %35, %39 : vector<512x128xf32>
    %c0_61 = arith.constant 0 : index
    %c2_62 = arith.constant 2 : index
    %c0_63 = arith.constant 0 : index
    %c0_64 = arith.constant 0 : index
    %41 = vector.load %arg9[%c0_61, %c2_62, %c0_63, %c0_64] : memref<2x18x18x128xf32, #tpu.memory_space<vmem>>, vector<2x16x16x128xf32>
    %42 = vector.shape_cast %41 : vector<2x16x16x128xf32> to vector<512x128xf32>
    %c768 = arith.constant 768 : index
    %c0_65 = arith.constant 0 : index
    %43 = vector.load %arg2[%c768, %c0_65] : memref<1152x128xf32, #tpu.memory_space<vmem>>, vector<128x128xf32>
    %cst_66 = arith.constant dense<0.000000e+00> : vector<512x128xf32>
    %44 = tpu.matmul %42, %43, %cst_66 {dimension_numbers = #tpu.dot_dimension_numbers<[1], [0], [0], [1], [0, 0, 1, 1], [], []>} : vector<512x128xf32>, vector<128x128xf32>, vector<512x128xf32> -> vector<512x128xf32>
    %45 = arith.addf %40, %44 : vector<512x128xf32>
    %c0_67 = arith.constant 0 : index
    %c2_68 = arith.constant 2 : index
    %c1_69 = arith.constant 1 : index
    %c0_70 = arith.constant 0 : index
    %46 = vector.load %arg9[%c0_67, %c2_68, %c1_69, %c0_70] : memref<2x18x18x128xf32, #tpu.memory_space<vmem>>, vector<2x16x16x128xf32>
    %47 = vector.shape_cast %46 : vector<2x16x16x128xf32> to vector<512x128xf32>
    %c896 = arith.constant 896 : index
    %c0_71 = arith.constant 0 : index
    %48 = vector.load %arg2[%c896, %c0_71] : memref<1152x128xf32, #tpu.memory_space<vmem>>, vector<128x128xf32>
    %cst_72 = arith.constant dense<0.000000e+00> : vector<512x128xf32>
    %49 = tpu.matmul %47, %48, %cst_72 {dimension_numbers = #tpu.dot_dimension_numbers<[1], [0], [0], [1], [0, 0, 1, 1], [], []>} : vector<512x128xf32>, vector<128x128xf32>, vector<512x128xf32> -> vector<512x128xf32>
    %50 = arith.addf %45, %49 : vector<512x128xf32>
    %c0_73 = arith.constant 0 : index
    %c2_74 = arith.constant 2 : index
    %c2_75 = arith.constant 2 : index
    %c0_76 = arith.constant 0 : index
    %51 = vector.load %arg9[%c0_73, %c2_74, %c2_75, %c0_76] : memref<2x18x18x128xf32, #tpu.memory_space<vmem>>, vector<2x16x16x128xf32>
    %52 = vector.shape_cast %51 : vector<2x16x16x128xf32> to vector<512x128xf32>
    %c1024 = arith.constant 1024 : index
    %c0_77 = arith.constant 0 : index
    %53 = vector.load %arg2[%c1024, %c0_77] : memref<1152x128xf32, #tpu.memory_space<vmem>>, vector<128x128xf32>
    %cst_78 = arith.constant dense<0.000000e+00> : vector<512x128xf32>
    %54 = tpu.matmul %52, %53, %cst_78 {dimension_numbers = #tpu.dot_dimension_numbers<[1], [0], [0], [1], [0, 0, 1, 1], [], []>} : vector<512x128xf32>, vector<128x128xf32>, vector<512x128xf32> -> vector<512x128xf32>
    %55 = arith.addf %50, %54 : vector<512x128xf32>
    %cst_79 = arith.constant dense<0.000000e+00> : vector<128xf32>
    %56 = vector.multi_reduction <add>, %55, %cst_79 [0] : vector<512x128xf32> to vector<128xf32>
    %57 = vector.shape_cast %56 : vector<128xf32> to vector<1x128xf32>
    %cst_80 = arith.constant 0.001953125 : f32
    %58 = vector.broadcast %cst_80 : f32 to vector<1x128xf32>
    %59 = arith.mulf %57, %58 : vector<1x128xf32>
    %60 = vector.broadcast %59 : vector<1x128xf32> to vector<512x128xf32>
    %61 = arith.subf %55, %60 : vector<512x128xf32>
    %62 = arith.mulf %61, %61 : vector<512x128xf32>
    %cst_81 = arith.constant dense<0.000000e+00> : vector<128xf32>
    %63 = vector.multi_reduction <add>, %62, %cst_81 [0] : vector<512x128xf32> to vector<128xf32>
    %64 = vector.shape_cast %63 : vector<128xf32> to vector<1x128xf32>
    %cst_82 = arith.constant 0.001953125 : f32
    %65 = vector.broadcast %cst_82 : f32 to vector<1x128xf32>
    %66 = arith.mulf %64, %65 : vector<1x128xf32>
    %c0_83 = arith.constant 0 : index
    %c0_84 = arith.constant 0 : index
    %67 = vector.load %arg3[%c0_83, %c0_84] : memref<1x128xf32, #tpu.memory_space<vmem>>, vector<1x128xf32>
    %cst_85 = arith.constant 9.99999974E-6 : f32
    %68 = vector.broadcast %cst_85 : f32 to vector<1x128xf32>
    %69 = arith.addf %66, %68 : vector<1x128xf32>
    %70 = math.rsqrt %69 : vector<1x128xf32>
    %71 = arith.mulf %67, %70 : vector<1x128xf32>
    %c0_86 = arith.constant 0 : index
    %c0_87 = arith.constant 0 : index
    %72 = vector.load %arg4[%c0_86, %c0_87] : memref<1x128xf32, #tpu.memory_space<vmem>>, vector<1x128xf32>
    %73 = arith.mulf %59, %71 : vector<1x128xf32>
    %74 = arith.subf %72, %73 : vector<1x128xf32>
    %75 = vector.broadcast %71 : vector<1x128xf32> to vector<512x128xf32>
    %76 = arith.mulf %55, %75 : vector<512x128xf32>
    %77 = vector.broadcast %74 : vector<1x128xf32> to vector<512x128xf32>
    %78 = arith.addf %76, %77 : vector<512x128xf32>
    %cst_88 = arith.constant 0.000000e+00 : f32
    %79 = vector.broadcast %cst_88 : f32 to vector<512x128xf32>
    %80 = arith.maximumf %78, %79 : vector<512x128xf32>
    %81 = vector.shape_cast %80 : vector<512x128xf32> to vector<2x16x16x128xf32>
    %c0_89 = arith.constant 0 : index
    %c1_90 = arith.constant 1 : index
    %c1_91 = arith.constant 1 : index
    %c0_92 = arith.constant 0 : index
    %82 = vector.load %arg9[%c0_89, %c1_90, %c1_91, %c0_92] : memref<2x18x18x128xf32, #tpu.memory_space<vmem>>, vector<2x16x16x128xf32>
    tpu.vector_store %arg9[%c0_89, %c1_90, %c1_91, %c0_92], %81 {strides = array<i32>} : memref<2x18x18x128xf32, #tpu.memory_space<vmem>>, vector<2x16x16x128xf32>,
    %cst_93 = arith.constant 0.000000e+00 : f32
    %83 = vector.broadcast %cst_93 : f32 to vector<512x128xf32>
    %c0_94 = arith.constant 0 : index
    %c0_95 = arith.constant 0 : index
    %c0_96 = arith.constant 0 : index
    %c0_97 = arith.constant 0 : index
    %84 = vector.load %arg9[%c0_94, %c0_95, %c0_96, %c0_97] : memref<2x18x18x128xf32, #tpu.memory_space<vmem>>, vector<2x16x16x128xf32>
    %85 = vector.shape_cast %84 : vector<2x16x16x128xf32> to vector<512x128xf32>
    %c0_98 = arith.constant 0 : index
    %c0_99 = arith.constant 0 : index
    %86 = vector.load %arg5[%c0_98, %c0_99] : memref<1152x128xf32, #tpu.memory_space<vmem>>, vector<128x128xf32>
    %cst_100 = arith.constant dense<0.000000e+00> : vector<512x128xf32>
    %87 = tpu.matmul %85, %86, %cst_100 {dimension_numbers = #tpu.dot_dimension_numbers<[1], [0], [0], [1], [0, 0, 1, 1], [], []>} : vector<512x128xf32>, vector<128x128xf32>, vector<512x128xf32> -> vector<512x128xf32>
    %88 = arith.addf %83, %87 : vector<512x128xf32>
    %c0_101 = arith.constant 0 : index
    %c0_102 = arith.constant 0 : index
    %c1_103 = arith.constant 1 : index
    %c0_104 = arith.constant 0 : index
    %89 = vector.load %arg9[%c0_101, %c0_102, %c1_103, %c0_104] : memref<2x18x18x128xf32, #tpu.memory_space<vmem>>, vector<2x16x16x128xf32>
    %90 = vector.shape_cast %89 : vector<2x16x16x128xf32> to vector<512x128xf32>
    %c128_105 = arith.constant 128 : index
    %c0_106 = arith.constant 0 : index
    %91 = vector.load %arg5[%c128_105, %c0_106] : memref<1152x128xf32, #tpu.memory_space<vmem>>, vector<128x128xf32>
    %cst_107 = arith.constant dense<0.000000e+00> : vector<512x128xf32>
    %92 = tpu.matmul %90, %91, %cst_107 {dimension_numbers = #tpu.dot_dimension_numbers<[1], [0], [0], [1], [0, 0, 1, 1], [], []>} : vector<512x128xf32>, vector<128x128xf32>, vector<512x128xf32> -> vector<512x128xf32>
    %93 = arith.addf %88, %92 : vector<512x128xf32>
    %c0_108 = arith.constant 0 : index
    %c0_109 = arith.constant 0 : index
    %c2_110 = arith.constant 2 : index
    %c0_111 = arith.constant 0 : index
    %94 = vector.load %arg9[%c0_108, %c0_109, %c2_110, %c0_111] : memref<2x18x18x128xf32, #tpu.memory_space<vmem>>, vector<2x16x16x128xf32>
    %95 = vector.shape_cast %94 : vector<2x16x16x128xf32> to vector<512x128xf32>
    %c256_112 = arith.constant 256 : index
    %c0_113 = arith.constant 0 : index
    %96 = vector.load %arg5[%c256_112, %c0_113] : memref<1152x128xf32, #tpu.memory_space<vmem>>, vector<128x128xf32>
    %cst_114 = arith.constant dense<0.000000e+00> : vector<512x128xf32>
    %97 = tpu.matmul %95, %96, %cst_114 {dimension_numbers = #tpu.dot_dimension_numbers<[1], [0], [0], [1], [0, 0, 1, 1], [], []>} : vector<512x128xf32>, vector<128x128xf32>, vector<512x128xf32> -> vector<512x128xf32>
    %98 = arith.addf %93, %97 : vector<512x128xf32>
    %c0_115 = arith.constant 0 : index
    %c1_116 = arith.constant 1 : index
    %c0_117 = arith.constant 0 : index
    %c0_118 = arith.constant 0 : index
    %99 = vector.load %arg9[%c0_115, %c1_116, %c0_117, %c0_118] : memref<2x18x18x128xf32, #tpu.memory_space<vmem>>, vector<2x16x16x128xf32>
    %100 = vector.shape_cast %99 : vector<2x16x16x128xf32> to vector<512x128xf32>
    %c384_119 = arith.constant 384 : index
    %c0_120 = arith.constant 0 : index
    %101 = vector.load %arg5[%c384_119, %c0_120] : memref<1152x128xf32, #tpu.memory_space<vmem>>, vector<128x128xf32>
    %cst_121 = arith.constant dense<0.000000e+00> : vector<512x128xf32>
    %102 = tpu.matmul %100, %101, %cst_121 {dimension_numbers = #tpu.dot_dimension_numbers<[1], [0], [0], [1], [0, 0, 1, 1], [], []>} : vector<512x128xf32>, vector<128x128xf32>, vector<512x128xf32> -> vector<512x128xf32>
    %103 = arith.addf %98, %102 : vector<512x128xf32>
    %c0_122 = arith.constant 0 : index
    %c1_123 = arith.constant 1 : index
    %c1_124 = arith.constant 1 : index
    %c0_125 = arith.constant 0 : index
    %104 = vector.load %arg9[%c0_122, %c1_123, %c1_124, %c0_125] : memref<2x18x18x128xf32, #tpu.memory_space<vmem>>, vector<2x16x16x128xf32>
    %105 = vector.shape_cast %104 : vector<2x16x16x128xf32> to vector<512x128xf32>
    %c512_126 = arith.constant 512 : index
    %c0_127 = arith.constant 0 : index
    %106 = vector.load %arg5[%c512_126, %c0_127] : memref<1152x128xf32, #tpu.memory_space<vmem>>, vector<128x128xf32>
    %cst_128 = arith.constant dense<0.000000e+00> : vector<512x128xf32>
    %107 = tpu.matmul %105, %106, %cst_128 {dimension_numbers = #tpu.dot_dimension_numbers<[1], [0], [0], [1], [0, 0, 1, 1], [], []>} : vector<512x128xf32>, vector<128x128xf32>, vector<512x128xf32> -> vector<512x128xf32>
    %108 = arith.addf %103, %107 : vector<512x128xf32>
    %c0_129 = arith.constant 0 : index
    %c1_130 = arith.constant 1 : index
    %c2_131 = arith.constant 2 : index
    %c0_132 = arith.constant 0 : index
    %109 = vector.load %arg9[%c0_129, %c1_130, %c2_131, %c0_132] : memref<2x18x18x128xf32, #tpu.memory_space<vmem>>, vector<2x16x16x128xf32>
    %110 = vector.shape_cast %109 : vector<2x16x16x128xf32> to vector<512x128xf32>
    %c640_133 = arith.constant 640 : index
    %c0_134 = arith.constant 0 : index
    %111 = vector.load %arg5[%c640_133, %c0_134] : memref<1152x128xf32, #tpu.memory_space<vmem>>, vector<128x128xf32>
    %cst_135 = arith.constant dense<0.000000e+00> : vector<512x128xf32>
    %112 = tpu.matmul %110, %111, %cst_135 {dimension_numbers = #tpu.dot_dimension_numbers<[1], [0], [0], [1], [0, 0, 1, 1], [], []>} : vector<512x128xf32>, vector<128x128xf32>, vector<512x128xf32> -> vector<512x128xf32>
    %113 = arith.addf %108, %112 : vector<512x128xf32>
    %c0_136 = arith.constant 0 : index
    %c2_137 = arith.constant 2 : index
    %c0_138 = arith.constant 0 : index
    %c0_139 = arith.constant 0 : index
    %114 = vector.load %arg9[%c0_136, %c2_137, %c0_138, %c0_139] : memref<2x18x18x128xf32, #tpu.memory_space<vmem>>, vector<2x16x16x128xf32>
    %115 = vector.shape_cast %114 : vector<2x16x16x128xf32> to vector<512x128xf32>
    %c768_140 = arith.constant 768 : index
    %c0_141 = arith.constant 0 : index
    %116 = vector.load %arg5[%c768_140, %c0_141] : memref<1152x128xf32, #tpu.memory_space<vmem>>, vector<128x128xf32>
    %cst_142 = arith.constant dense<0.000000e+00> : vector<512x128xf32>
    %117 = tpu.matmul %115, %116, %cst_142 {dimension_numbers = #tpu.dot_dimension_numbers<[1], [0], [0], [1], [0, 0, 1, 1], [], []>} : vector<512x128xf32>, vector<128x128xf32>, vector<512x128xf32> -> vector<512x128xf32>
    %118 = arith.addf %113, %117 : vector<512x128xf32>
    %c0_143 = arith.constant 0 : index
    %c2_144 = arith.constant 2 : index
    %c1_145 = arith.constant 1 : index
    %c0_146 = arith.constant 0 : index
    %119 = vector.load %arg9[%c0_143, %c2_144, %c1_145, %c0_146] : memref<2x18x18x128xf32, #tpu.memory_space<vmem>>, vector<2x16x16x128xf32>
    %120 = vector.shape_cast %119 : vector<2x16x16x128xf32> to vector<512x128xf32>
    %c896_147 = arith.constant 896 : index
    %c0_148 = arith.constant 0 : index
    %121 = vector.load %arg5[%c896_147, %c0_148] : memref<1152x128xf32, #tpu.memory_space<vmem>>, vector<128x128xf32>
    %cst_149 = arith.constant dense<0.000000e+00> : vector<512x128xf32>
    %122 = tpu.matmul %120, %121, %cst_149 {dimension_numbers = #tpu.dot_dimension_numbers<[1], [0], [0], [1], [0, 0, 1, 1], [], []>} : vector<512x128xf32>, vector<128x128xf32>, vector<512x128xf32> -> vector<512x128xf32>
    %123 = arith.addf %118, %122 : vector<512x128xf32>
    %c0_150 = arith.constant 0 : index
    %c2_151 = arith.constant 2 : index
    %c2_152 = arith.constant 2 : index
    %c0_153 = arith.constant 0 : index
    %124 = vector.load %arg9[%c0_150, %c2_151, %c2_152, %c0_153] : memref<2x18x18x128xf32, #tpu.memory_space<vmem>>, vector<2x16x16x128xf32>
    %125 = vector.shape_cast %124 : vector<2x16x16x128xf32> to vector<512x128xf32>
    %c1024_154 = arith.constant 1024 : index
    %c0_155 = arith.constant 0 : index
    %126 = vector.load %arg5[%c1024_154, %c0_155] : memref<1152x128xf32, #tpu.memory_space<vmem>>, vector<128x128xf32>
    %cst_156 = arith.constant dense<0.000000e+00> : vector<512x128xf32>
    %127 = tpu.matmul %125, %126, %cst_156 {dimension_numbers = #tpu.dot_dimension_numbers<[1], [0], [0], [1], [0, 0, 1, 1], [], []>} : vector<512x128xf32>, vector<128x128xf32>, vector<512x128xf32> -> vector<512x128xf32>
    %128 = arith.addf %123, %127 : vector<512x128xf32>
    %cst_157 = arith.constant dense<0.000000e+00> : vector<128xf32>
    %129 = vector.multi_reduction <add>, %128, %cst_157 [0] : vector<512x128xf32> to vector<128xf32>
    %130 = vector.shape_cast %129 : vector<128xf32> to vector<1x128xf32>
    %cst_158 = arith.constant 0.001953125 : f32
    %131 = vector.broadcast %cst_158 : f32 to vector<1x128xf32>
    %132 = arith.mulf %130, %131 : vector<1x128xf32>
    %133 = vector.broadcast %132 : vector<1x128xf32> to vector<512x128xf32>
    %134 = arith.subf %128, %133 : vector<512x128xf32>
    %135 = arith.mulf %134, %134 : vector<512x128xf32>
    %cst_159 = arith.constant dense<0.000000e+00> : vector<128xf32>
    %136 = vector.multi_reduction <add>, %135, %cst_159 [0] : vector<512x128xf32> to vector<128xf32>
    %137 = vector.shape_cast %136 : vector<128xf32> to vector<1x128xf32>
    %cst_160 = arith.constant 0.001953125 : f32
    %138 = vector.broadcast %cst_160 : f32 to vector<1x128xf32>
    %139 = arith.mulf %137, %138 : vector<1x128xf32>
    %c0_161 = arith.constant 0 : index
    %c0_162 = arith.constant 0 : index
    %140 = vector.load %arg6[%c0_161, %c0_162] : memref<1x128xf32, #tpu.memory_space<vmem>>, vector<1x128xf32>
    %cst_163 = arith.constant 9.99999974E-6 : f32
    %141 = vector.broadcast %cst_163 : f32 to vector<1x128xf32>
    %142 = arith.addf %139, %141 : vector<1x128xf32>
    %143 = math.rsqrt %142 : vector<1x128xf32>
    %144 = arith.mulf %140, %143 : vector<1x128xf32>
    %c0_164 = arith.constant 0 : index
    %c0_165 = arith.constant 0 : index
    %145 = vector.load %arg7[%c0_164, %c0_165] : memref<1x128xf32, #tpu.memory_space<vmem>>, vector<1x128xf32>
    %146 = arith.mulf %132, %144 : vector<1x128xf32>
    %147 = arith.subf %145, %146 : vector<1x128xf32>
    %148 = vector.broadcast %144 : vector<1x128xf32> to vector<512x128xf32>
    %149 = arith.mulf %128, %148 : vector<512x128xf32>
    %150 = vector.broadcast %147 : vector<1x128xf32> to vector<512x128xf32>
    %151 = arith.addf %149, %150 : vector<512x128xf32>
    %cst_166 = arith.constant 0.000000e+00 : f32
    %152 = vector.broadcast %cst_166 : f32 to vector<512x128xf32>
    %153 = arith.maximumf %151, %152 : vector<512x128xf32>
    %c0_167 = arith.constant 0 : index
    %c0_168 = arith.constant 0 : index
    %154 = vector.load %arg8[%c0_167, %c0_168] : memref<512x128xf32, #tpu.memory_space<vmem>>, vector<512x128xf32>
    tpu.vector_store %arg8[%c0_167, %c0_168], %153 {strides = array<i32>} : memref<512x128xf32, #tpu.memory_space<vmem>>, vector<512x128xf32>,
    return
  }
  func.func @transform_0(%arg0: i32) -> (i32, i32, i32, i32) {
    %c0_i32 = arith.constant 0 : i32
    %c0_i32_0 = arith.constant 0 : i32
    %c0_i32_1 = arith.constant 0 : i32
    %c0_i32_2 = arith.constant 0 : i32
    %c0_i32_3 = arith.constant 0 : i32
    return %c0_i32, %c0_i32_0, %c0_i32_1, %c0_i32_2 : i32, i32, i32, i32
  }
  func.func @transform_1(%arg0: i32) -> (i32, i32) {
    %c0_i32 = arith.constant 0 : i32
    %c0_i32_0 = arith.constant 0 : i32
    %c0_i32_1 = arith.constant 0 : i32
    return %c0_i32, %c0_i32_0 : i32, i32
  }
  func.func @transform_2(%arg0: i32) -> (i32, i32) {
    %c0_i32 = arith.constant 0 : i32
    %c0_i32_0 = arith.constant 0 : i32
    %c0_i32_1 = arith.constant 0 : i32
    return %c0_i32, %c0_i32_0 : i32, i32
  }
  func.func @transform_3(%arg0: i32) -> (i32, i32) {
    %c0_i32 = arith.constant 0 : i32
    %c0_i32_0 = arith.constant 0 : i32
    %c0_i32_1 = arith.constant 0 : i32
    return %c0_i32, %c0_i32_0 : i32, i32
  }
  func.func @transform_4(%arg0: i32) -> (i32, i32) {
    %c0_i32 = arith.constant 0 : i32
    %c0_i32_0 = arith.constant 0 : i32
    %c0_i32_1 = arith.constant 0 : i32
    return %c0_i32, %c0_i32_0 : i32, i32
  }
  func.func @transform_5(%arg0: i32) -> (i32, i32) {
    %c0_i32 = arith.constant 0 : i32
    %c0_i32_0 = arith.constant 0 : i32
    %c0_i32_1 = arith.constant 0 : i32
    return %c0_i32, %c0_i32_0 : i32, i32
  }
  func.func @transform_6(%arg0: i32) -> (i32, i32) {
    %c0_i32 = arith.constant 0 : i32
    %c0_i32_0 = arith.constant 0 : i32
    %c0_i32_1 = arith.constant 0 : i32
    return %c0_i32, %c0_i32_0 : i32, i32
  }
  func.func @transform_7(%arg0: i32) -> (i32, i32) {
    %c0_i32 = arith.constant 0 : i32
    %c0_i32_0 = arith.constant 0 : i32
    %c0_i32_1 = arith.constant 0 : i32
    return %c0_i32, %c0_i32_0 : i32, i32
  }
}

</mosaic_0001>

<bundles_post_ra>
// kernel: tpu_custom_call.1
= control target key start
LH: loop header
LB: loop body
LE: loop exit
PB: predicated region body
PF: predicated region fallthrough
CT: control target
= control target key end

     0   :  { %12 = vsyncpa [#allocation4], 0  ;;  %s19543_s0 = inlined_call_operand.hbm [shape: f32[2,16,16,128], index: 0, kind: input, shape index: {}]   ;;  %s19544_s1 = inlined_call_operand.hbm [shape: f32[1152,128], index: 1, kind: input, shape index: {}]   ;;  %s19545_s2 = inlined_call_operand.vmem [shape: f32[1,128], index: 2, kind: input, shape index: {}]   ;;  %s19546_s3 = inlined_call_operand.vmem [shape: f32[1,128], index: 3, kind: input, shape index: {}]   ;;  %s19547_s4 = inlined_call_operand.hbm [shape: f32[1152,128], index: 4, kind: input, shape index: {}]   ;;  %s19548_s5 = inlined_call_operand.vmem [shape: f32[1,128], index: 5, kind: input, shape index: {}]   ;;  %s19549_s6 = inlined_call_operand.vmem [shape: f32[1,128], index: 6, kind: input, shape index: {}]   ;;  %s19550_s7 = inlined_call_operand.hbm [shape: f32[512,128], index: 7, kind: output, shape index: {}]  }
   0x1   :  { %13 = vsyncpa [#allocation7], 0 }
   0x2   :  { %14 = vsyncpa [#allocation5], 0  ;;  %s14491_s24 = smov [#allocation6]   ;;  %s14492_s26 = smov [#allocation3]  }
   0x3   :  { %s32_s25 = sshll.u32 %s14491_s24, 4  ;;  %s20_s27 = sshll.u32 %s14492_s26, 4  ;;  %s33_s25 = int_to_ptr.vmem [resolvable:$true] %s32_s25  ;;  %s21_s27 = int_to_ptr.vmem [resolvable:$true] %s20_s27 }
   0x4   :  { %s14413_s28 = scalar_lea.vmem %s33_s25, 18432  ;;  %p14418_p1 = scmp.lt.s32.totalorder %s33_s25, %s33_s25 }
   0x5   :  { %p14414_p0 = scmp.ne.s32.totalorder %s33_s25, %s14413_s28  ;;  %p14419_p2 = scmp.lt.s32.totalorder %s14413_s28, %s14413_s28 }
   0x7   :  { %p14420_p3 = por %p14419_p2, %p14418_p1 }
   0x9   :  { %p14421_p4 = pnand %p14420_p3, %p14414_p0 }
   0xb   :  { %14424 = shalt.err (!%p14421_p4)
}
   0xc   :  { %s14493_s29 = smov 128   ;;  %s14494_s30 = smov 8  }
   0xd   :  { %38 = dma.hbm_to_vmem [thread:$0]  %s19544_s1, 18432, %s33_s25, [#allocation7], %s14493_s29, %s14493_s29, %s14494_s30  }
   0xe   :  { %s14433_s10 = scalar_lea.vmem %s21_s27, 8192  ;;  %p14438_p6 = scmp.lt.s32.totalorder %s21_s27, %s21_s27 }
   0xf   :  { %p14434_p5 = scmp.ne.s32.totalorder %s21_s27, %s14433_s10  ;;  %p14439_p7 = scmp.lt.s32.totalorder %s14433_s10, %s14433_s10 }
  0x11   :  { %p14440_p8 = por %p14439_p7, %p14438_p6 }
  0x13   :  { %p14441_p9 = pnand %p14440_p8, %p14434_p5 }
  0x15   :  { %14444 = shalt.err (!%p14441_p9)
}
  0x16   :  { %26 = dma.hbm_to_vmem [thread:$0]  %s19543_s0, 8192, %s21_s27, [#allocation4], %s14493_s29, %s14493_s29, %s14494_s30  }
  0x17   :  { %s14495_s13 = smov [#allocation8]  }
  0x18   :  { %s48_s14 = sshll.u32 %s14495_s13, 4  ;;  %s49_s14 = int_to_ptr.vmem [resolvable:$true] %s48_s14 }
  0x19   :  { %s14453_s15 = scalar_lea.vmem %s49_s14, 18432  ;;  %p14458_p11 = scmp.lt.s32.totalorder %s49_s14, %s49_s14 }
  0x1a   :  { %p14454_p10 = scmp.ne.s32.totalorder %s49_s14, %s14453_s15  ;;  %p14459_p12 = scmp.lt.s32.totalorder %s14453_s15, %s14453_s15 }
  0x1c   :  { %p14460_p13 = por %p14459_p12, %p14458_p11 }
  0x1e   :  { %p14461_p0 = pnand %p14460_p13, %p14454_p10 }
  0x20   :  { %14464 = shalt.err (!%p14461_p0)
}
  0x21   :  { %54 = dma.hbm_to_vmem [thread:$0]  %s19547_s4, 18432, %s49_s14, [#allocation7], %s14493_s29, %s14493_s29, %s14494_s30  }
  0x22   :  { %14485 = dma.done.wait [#allocation4], 8192  }
  0x23   :  { %14486 = vsyncadd [#allocation4], 4294959104 }
  0x24   :  { %14487 = dma.done.wait [#allocation7], 36864  }
  0x25   :  { %14488 = vsyncadd [#allocation7], 4294930432  ;;  %v19551_v0 = vmov 0.0   ;;  %v433_v1 = vld [vmem:[#allocation6 + $0xf8] sm:$0xff]  ;;  %v432_v3 = vld [vmem:[#allocation6 + $0xf0] sm:$0xff] }
  0x26   :  { %68 = vst [vmem:[#allocation2] sm:$0xff] %v19551_v0  ;;  %69 = vst [vmem:[#allocation2 + $0x8] sm:$0xff] %v19551_v0  ;;  %12245 = vmatprep.mubr.f32.mxu1 %v19551_v0  ;;  %v353_v2 = vld [vmem:[#allocation6 + $0x78] sm:$0xff]  ;;  %12085 = vmatprep.subr.mxu0 %v433_v1  ;;  %v352_v4 = vld [vmem:[#allocation6 + $0x70] sm:$0xff] }
  0x27   :  { %70 = vst [vmem:[#allocation2 + $0x10] sm:$0x3] %v19551_v0  ;;  %71 = vst [vmem:[#allocation2 + $0x1b0] sm:$0xff] %v19551_v0  ;;  %12213 = vmatprep.subr.mxu1 %v353_v2  ;;  %12086 = vmatpush3.msra.mxu0 %v433_v1  ;;  %v431_v5 = vld [vmem:[#allocation6 + $0xe8] sm:$0xff]  ;;  %v430_v7 = vld [vmem:[#allocation6 + $0xe0] sm:$0xff] }
  0x28   :  { %72 = vst [vmem:[#allocation2 + $0x1b8] sm:$0xff] %v19551_v0  ;;  %73 = vst [vmem:[#allocation2 + $0x1c0] sm:$0x3] %v19551_v0  ;;  %12214 = vmatpush3.msra.mxu1 %v353_v2  ;;  %v351_v6 = vld [vmem:[#allocation6 + $0x68] sm:$0xff]  ;;  %12087 = vmatprep.subr.mxu0 %v432_v3  ;;  %v350_v8 = vld [vmem:[#allocation6 + $0x60] sm:$0xff] }
  0x29   :  { %75 = vst [vmem:[#allocation2 + $0x198] sm:$0xff] %v19551_v0  ;;  %76 = vst [vmem:[#allocation2 + $0x1a0] sm:$0xff] %v19551_v0  ;;  %12215 = vmatprep.subr.mxu1 %v352_v4  ;;  %12088 = vmatpush3.msra.mxu0 %v432_v3  ;;  %v429_v9 = vld [vmem:[#allocation6 + $0xd8] sm:$0xff]  ;;  %v428_v11 = vld [vmem:[#allocation6 + $0xd0] sm:$0xff] }
  0x2a   :  { %77 = vst [vmem:[#allocation2 + $0x1a8] sm:$0x3] %v19551_v0  ;;  %78 = vst [vmem:[#allocation2 + $0x348] sm:$0xff] %v19551_v0  ;;  %12216 = vmatpush3.msra.mxu1 %v352_v4  ;;  %12089 = vmatprep.subr.mxu0 %v431_v5  ;;  %v349_v10 = vld [vmem:[#allocation6 + $0x58] sm:$0xff]  ;;  %v348_v12 = vld [vmem:[#allocation6 + $0x50] sm:$0xff] }
  0x2b   :  { %79 = vst [vmem:[#allocation2 + $0x350] sm:$0xff] %v19551_v0  ;;  %80 = vst [vmem:[#allocation2 + $0x358] sm:$0x3] %v19551_v0  ;;  %12217 = vmatprep.subr.mxu1 %v351_v6  ;;  %12090 = vmatpush3.msra.mxu0 %v431_v5  ;;  %v427_v13 = vld [vmem:[#allocation6 + $0xc8] sm:$0xff]  ;;  %v426_v15 = vld [vmem:[#allocation6 + $0xc0] sm:$0xff] }
  0x2c   :  { %82 = vst [vmem:[#allocation2 + $0x18] sm:$0x1] %v19551_v0  ;;  %83 = vst [vmem:[#allocation2 + $0x30] sm:$0x1] %v19551_v0  ;;  %12218 = vmatpush3.msra.mxu1 %v351_v6  ;;  %12091 = vmatprep.subr.mxu0 %v430_v7  ;;  %v347_v14 = vld [vmem:[#allocation6 + $0x48] sm:$0xff]  ;;  %v346_v16 = vld [vmem:[#allocation6 + $0x40] sm:$0xff] }
  0x2d   :  { %84 = vst [vmem:[#allocation2 + $0x48] sm:$0x1] %v19551_v0  ;;  %85 = vst [vmem:[#allocation2 + $0x60] sm:$0x1] %v19551_v0  ;;  %12219 = vmatprep.subr.mxu1 %v350_v8  ;;  %12092 = vmatpush3.msra.mxu0 %v430_v7  ;;  %v14633_v17 = vld [vmem:[#allocation3] sm:$0xff]  ;;  %v425_v18 = vld [vmem:[#allocation6 + $0xb8] sm:$0xff] }
  0x2e   :  { %86 = vst [vmem:[#allocation2 + $0x78] sm:$0x1] %v19551_v0  ;;  %87 = vst [vmem:[#allocation2 + $0x90] sm:$0x1] %v19551_v0  ;;  %12220 = vmatpush3.msra.mxu1 %v350_v8  ;;  %12093 = vmatprep.subr.mxu0 %v429_v9  ;;  %v14636_v19 = vld [vmem:[#allocation3 + $0x8] sm:$0xff]  ;;  %v14638_v20 = vld [vmem:[#allocation3 + $0x10] sm:$0xff] }
  0x2f   :  { %88 = vst [vmem:[#allocation2 + $0xa8] sm:$0x1] %v19551_v0  ;;  %89 = vst [vmem:[#allocation2 + $0xc0] sm:$0x1] %v19551_v0  ;;  %12221 = vmatprep.subr.mxu1 %v349_v10  ;;  %12094 = vmatpush3.msra.mxu0 %v429_v9  ;;  %v14640_v21 = vld [vmem:[#allocation3 + $0x18] sm:$0xff]  ;;  %v14645_v23 = vld [vmem:[#allocation3 + $0x20] sm:$0xff] }
  0x30   :  { %90 = vst [vmem:[#allocation2 + $0xd8] sm:$0x1] %v19551_v0  ;;  %91 = vst [vmem:[#allocation2 + $0xf0] sm:$0x1] %v19551_v0  ;;  %12222 = vmatpush3.msra.mxu1 %v349_v10  ;;  %12095 = vmatprep.subr.mxu0 %v428_v11  ;;  %v345_v22 = vld [vmem:[#allocation6 + $0x38] sm:$0xff]  ;;  %v14647_v24 = vld [vmem:[#allocation3 + $0x28] sm:$0xff] }
  0x31   :  { %92 = vst [vmem:[#allocation2 + $0x108] sm:$0x1] %v19551_v0  ;;  %93 = vst [vmem:[#allocation2 + $0x120] sm:$0x1] %v19551_v0  ;;  %12223 = vmatprep.subr.mxu1 %v348_v12  ;;  %12096 = vmatpush3.msra.mxu0 %v428_v11  ;;  %v424_v25 = vld [vmem:[#allocation6 + $0xb0] sm:$0xff]  ;;  %v14653_v28 = vld [vmem:[#allocation3 + $0x38] sm:$0xff] }
  0x32   :  { %94 = vst [vmem:[#allocation2 + $0x138] sm:$0x1] %v19551_v0  ;;  %95 = vst [vmem:[#allocation2 + $0x150] sm:$0x1] %v19551_v0  ;;  %12224 = vmatpush3.msra.mxu1 %v348_v12  ;;  %12097 = vmatprep.subr.mxu0 %v427_v13  ;;  %v344_v26 = vld [vmem:[#allocation6 + $0x30] sm:$0xff]  ;;  %v14657_v29 = vld [vmem:[#allocation3 + $0x40] sm:$0xff] }
  0x33   :  { %96 = vst [vmem:[#allocation2 + $0x168] sm:$0x1] %v19551_v0  ;;  %97 = vst [vmem:[#allocation2 + $0x180] sm:$0x1] %v19551_v0  ;;  %12225 = vmatprep.subr.mxu1 %v347_v14  ;;  %12098 = vmatpush3.msra.mxu0 %v427_v13  ;;  %v14651_v27 = vld [vmem:[#allocation3 + $0x30] sm:$0xff]  ;;  %v14659_v30 = vld [vmem:[#allocation3 + $0x48] sm:$0xff] }
  0x34   :  { %98 = vst [vmem:[#allocation2 + $0x1c8] sm:$0x1] %v19551_v0  ;;  %99 = vst [vmem:[#allocation2 + $0x1e0] sm:$0x1] %v19551_v0  ;;  %12226 = vmatpush3.msra.mxu1 %v347_v14  ;;  %12099 = vmatprep.subr.mxu0 %v426_v15  ;;  %v14661_v31 = vld [vmem:[#allocation3 + $0x50] sm:$0xff]  ;;  %v423_v32 = vld [vmem:[#allocation6 + $0xa8] sm:$0xff] }
  0x35   :  { %100 = vst [vmem:[#allocation2 + $0x1f8] sm:$0x1] %v19551_v0  ;;  %101 = vst [vmem:[#allocation2 + $0x210] sm:$0x1] %v19551_v0  ;;  %12227 = vmatprep.subr.mxu1 %v346_v16  ;;  %12100 = vmatpush3.msra.mxu0 %v426_v15  ;;  %v14666_v33 = vld [vmem:[#allocation3 + $0x58] sm:$0xff]  ;;  %v14668_v34 = vld [vmem:[#allocation3 + $0x60] sm:$0xff] }
  0x36   :  { %102 = vst [vmem:[#allocation2 + $0x228] sm:$0x1] %v19551_v0  ;;  %103 = vst [vmem:[#allocation2 + $0x240] sm:$0x1] %v19551_v0  ;;  %12228 = vmatpush3.msra.mxu1 %v346_v16  ;;  %12101 = vmatprep.subr.mxu0 %v425_v18  ;;  %v14672_v35 = vld [vmem:[#allocation3 + $0x68] sm:$0xff]  ;;  %v14674_v36 = vld [vmem:[#allocation3 + $0x70] sm:$0xff] }
  0x37   :  { %104 = vst [vmem:[#allocation2 + $0x258] sm:$0x1] %v19551_v0  ;;  %105 = vst [vmem:[#allocation2 + $0x270] sm:$0x1] %v19551_v0  ;;  %12229 = vmatprep.subr.mxu1 %v345_v22  ;;  %v14676_v37 = vld [vmem:[#allocation3 + $0x78] sm:$0xff]  ;;  %12102 = vmatpush3.msra.mxu0 %v425_v18  ;;  %v343_v38 = vld [vmem:[#allocation6 + $0x28] sm:$0xff] }
  0x38   :  { %106 = vst [vmem:[#allocation2 + $0x288] sm:$0x1] %v19551_v0  ;;  %107 = vst [vmem:[#allocation2 + $0x2a0] sm:$0x1] %v19551_v0  ;;  %12230 = vmatpush3.msra.mxu1 %v345_v22  ;;  %v14681_v39 = vld [vmem:[#allocation3 + $0x80] sm:$0xff]  ;;  %v14683_v40 = vld [vmem:[#allocation3 + $0x88] sm:$0xff]  ;;  %12103 = vmatprep.subr.mxu0 %v424_v25 }
  0x39   :  { %108 = vst [vmem:[#allocation2 + $0x2b8] sm:$0x1] %v19551_v0  ;;  %109 = vst [vmem:[#allocation2 + $0x2d0] sm:$0x1] %v19551_v0  ;;  %12231 = vmatprep.subr.mxu1 %v344_v26  ;;  %v14687_v41 = vld [vmem:[#allocation3 + $0x90] sm:$0xff]  ;;  %v14689_v42 = vld [vmem:[#allocation3 + $0x98] sm:$0xff]  ;;  %12104 = vmatpush3.msra.mxu0 %v424_v25 }
  0x3a   :  { %110 = vst [vmem:[#allocation2 + $0x2e8] sm:$0x1] %v19551_v0  ;;  %111 = vst [vmem:[#allocation2 + $0x300] sm:$0x1] %v19551_v0  ;;  %12232 = vmatpush3.msra.mxu1 %v344_v26  ;;  %v422_v43 = vld [vmem:[#allocation6 + $0xa0] sm:$0xff]  ;;  %12105 = vmatprep.subr.mxu0 %v423_v32  ;;  %v421_v45 = vld [vmem:[#allocation6 + $0x98] sm:$0xff] }
  0x3b   :  { %112 = vst [vmem:[#allocation2 + $0x318] sm:$0x1] %v19551_v0  ;;  %113 = vst [vmem:[#allocation2 + $0x330] sm:$0x1] %v19551_v0  ;;  %v342_v44 = vld [vmem:[#allocation6 + $0x20] sm:$0xff]  ;;  %12233 = vmatprep.subr.mxu1 %v343_v38  ;;  %12106 = vmatpush3.msra.mxu0 %v423_v32  ;;  %v341_v46 = vld [vmem:[#allocation6 + $0x18] sm:$0xff] }
  0x3c   :  { %114 = vst [vmem:[#allocation2 + $0x29] sm:$0x1] %v19551_v0  ;;  %115 = vst [vmem:[#allocation2 + $0x41] sm:$0x1] %v19551_v0  ;;  %12234 = vmatpush3.msra.mxu1 %v343_v38  ;;  %v14693_v47 = vld [vmem:[#allocation3 + $0xa0] sm:$0xff]  ;;  %12107 = vmatprep.subr.mxu0 %v422_v43  ;;  %v420_v48 = vld [vmem:[#allocation6 + $0x90] sm:$0xff] }
  0x3d   :  { %116 = vst [vmem:[#allocation2 + $0x59] sm:$0x1] %v19551_v0  ;;  %117 = vst [vmem:[#allocation2 + $0x71] sm:$0x1] %v19551_v0  ;;  %12235 = vmatprep.subr.mxu1 %v342_v44  ;;  %12108 = vmatpush3.msra.mxu0 %v422_v43  ;;  %v340_v49 = vld [vmem:[#allocation6 + $0x10] sm:$0xff]  ;;  %v14696_v50 = vld [vmem:[#allocation3 + $0xa8] sm:$0xff] }
  0x3e   :  { %118 = vst [vmem:[#allocation2 + $0x89] sm:$0x1] %v19551_v0  ;;  %119 = vst [vmem:[#allocation2 + $0xa1] sm:$0x1] %v19551_v0  ;;  %12236 = vmatpush3.msra.mxu1 %v342_v44  ;;  %12109 = vmatprep.subr.mxu0 %v421_v45  ;;  %v419_v51 = vld [vmem:[#allocation6 + $0x88] sm:$0xff]  ;;  %v14699_v53 = vld [vmem:[#allocation3 + $0xb0] sm:$0xff] }
  0x3f   :  { %120 = vst [vmem:[#allocation2 + $0xb9] sm:$0x1] %v19551_v0  ;;  %121 = vst [vmem:[#allocation2 + $0xd1] sm:$0x1] %v19551_v0  ;;  %12237 = vmatprep.subr.mxu1 %v341_v46  ;;  %12110 = vmatpush3.msra.mxu0 %v421_v45  ;;  %v339_v52 = vld [vmem:[#allocation6 + $0x8] sm:$0xff]  ;;  %v418_v54 = vld [vmem:[#allocation6 + $0x80] sm:$0xff] }
  0x40   :  { %122 = vst [vmem:[#allocation2 + $0xe9] sm:$0x1] %v19551_v0  ;;  %123 = vst [vmem:[#allocation2 + $0x101] sm:$0x1] %v19551_v0  ;;  %12238 = vmatpush3.msra.mxu1 %v341_v46  ;;  %12111 = vmatprep.subr.mxu0 %v420_v48  ;;  %v14702_v55 = vld [vmem:[#allocation3 + $0xb8] sm:$0xff]  ;;  %v338_v56 = vld [vmem:[#allocation6] sm:$0xff] }
  0x41   :  { %124 = vst [vmem:[#allocation2 + $0x119] sm:$0x1] %v19551_v0  ;;  %125 = vst [vmem:[#allocation2 + $0x131] sm:$0x1] %v19551_v0  ;;  %12239 = vmatprep.subr.mxu1 %v340_v49  ;;  %12112 = vmatpush3.msra.mxu0 %v420_v48  ;;  %v14705_v57 = vld [vmem:[#allocation3 + $0xc0] sm:$0xff]  ;;  %v14707_v58 = vld [vmem:[#allocation3 + $0xc8] sm:$0xff] }
  0x42   :  { %126 = vst [vmem:[#allocation2 + $0x149] sm:$0x1] %v19551_v0  ;;  %127 = vst [vmem:[#allocation2 + $0x161] sm:$0x1] %v19551_v0  ;;  %12240 = vmatpush3.msra.mxu1 %v340_v49  ;;  %12113 = vmatprep.subr.mxu0 %v419_v51  ;;  %v354_v59 = vld [vmem:[#allocation2 + $0x1] sm:$0xff]  ;;  %v14711_v60 = vld [vmem:[#allocation3 + $0xd0] sm:$0xff] }
  0x43   :  { %128 = vst [vmem:[#allocation2 + $0x179] sm:$0x1] %v19551_v0  ;;  %129 = vst [vmem:[#allocation2 + $0x191] sm:$0x1] %v19551_v0  ;;  %12241 = vmatprep.subr.mxu1 %v339_v52  ;;  %v14713_v61 = vld [vmem:[#allocation3 + $0xd8] sm:$0xff]  ;;  %12114 = vmatpush3.msra.mxu0 %v419_v51  ;;  %v355_v62 = vld [vmem:[#allocation2 + $0x9] sm:$0xff] }
  0x44   :  { %130 = vst [vmem:[#allocation2 + $0x1d9] sm:$0x1] %v19551_v0  ;;  %131 = vst [vmem:[#allocation2 + $0x1f1] sm:$0x1] %v19551_v0  ;;  %12242 = vmatpush3.msra.mxu1 %v339_v52  ;;  %v14717_v63 = vld [vmem:[#allocation3 + $0xe0] sm:$0xff]  ;;  %v14719_v1 = vld [vmem:[#allocation3 + $0xe8] sm:$0xff]  ;;  %12115 = vmatprep.subr.mxu0 %v418_v54 }
  0x45   :  { %132 = vst [vmem:[#allocation2 + $0x209] sm:$0x1] %v19551_v0  ;;  %133 = vst [vmem:[#allocation2 + $0x221] sm:$0x1] %v19551_v0  ;;  %12243 = vmatprep.subr.mxu1 %v338_v56  ;;  %v1283_v2 = vld [vmem:[#allocation6 + $0x178] sm:$0xff]  ;;  %12116 = vmatpush3.msra.mxu0 %v418_v54  ;;  %v1282_v3 = vld [vmem:[#allocation6 + $0x170] sm:$0xff] }
  0x46   :  { %134 = vst [vmem:[#allocation2 + $0x239] sm:$0x1] %v19551_v0  ;;  %135 = vst [vmem:[#allocation2 + $0x251] sm:$0x1] %v19551_v0  ;;  %12117 = vmatprep.mubr.f32.mxu0 %v354_v59  ;;  %v14723_v4 = vld [vmem:[#allocation3 + $0x100] sm:$0xff]  ;;  %v14725_v5 = vld [vmem:[#allocation3 + $0x108] sm:$0xff]  ;;  %12244 = vmatpush3.msra.mxu1 %v338_v56 }
  0x47   :  { %136 = vst [vmem:[#allocation2 + $0x269] sm:$0x1] %v19551_v0  ;;  %137 = vst [vmem:[#allocation2 + $0x281] sm:$0x1] %v19551_v0  ;;  %12118 = vmatmul.mubr.f32.vlgmr.msra.gmra.mxu0 %v355_v62  ;;  %v14731_v7 = vld [vmem:[#allocation3 + $0x110] sm:$0xff]  ;;  %v14733_v8 = vld [vmem:[#allocation3 + $0x118] sm:$0xff]  ;;  %12246 = vmatmul.mubr.f32.vlgmr.msra.gmra.mxu1 %v19551_v0 }
  0x48   :  { %138 = vst [vmem:[#allocation2 + $0x299] sm:$0x1] %v19551_v0  ;;  %139 = vst [vmem:[#allocation2 + $0x2b1] sm:$0x1] %v19551_v0  ;;  %12341 = vmatprep.subr.mxu0 %v1283_v2  ;;  %v14738_v9 = vld [vmem:[#allocation3 + $0x120] sm:$0xff]  ;;  %v14740_v10 = vld [vmem:[#allocation3 + $0x128] sm:$0xff]  ;;  %12120 = vmatprep.mubr.f32.mxu0 %v14633_v17 }
  0x49   :  { %140 = vst [vmem:[#allocation2 + $0x2c9] sm:$0x1] %v19551_v0  ;;  %141 = vst [vmem:[#allocation2 + $0x2e1] sm:$0x1] %v19551_v0  ;;  %12342 = vmatpush3.msra.mxu0 %v1283_v2  ;;  %v14747_v12 = vld [vmem:[#allocation3 + $0x130] sm:$0xff]  ;;  %v14749_v13 = vld [vmem:[#allocation3 + $0x138] sm:$0xff] }
  0x4a   :  { %142 = vst [vmem:[#allocation2 + $0x2f9] sm:$0x1] %v19551_v0  ;;  %143 = vst [vmem:[#allocation2 + $0x311] sm:$0x1] %v19551_v0  ;;  %12343 = vmatprep.subr.mxu0 %v1282_v3  ;;  %v1281_v15 = vld [vmem:[#allocation6 + $0x168] sm:$0xff]  ;;  %v14757_v16 = vld [vmem:[#allocation3 + $0x140] sm:$0xff] }
  0x4b   :  { %144 = vst [vmem:[#allocation2 + $0x329] sm:$0x1] %v19551_v0  ;;  %145 = vst [vmem:[#allocation2 + $0x341] sm:$0x1] %v19551_v0  ;;  %12121 = vmatmul.mubr.f32.gmra.mxu0 %v14636_v19  ;;  %v14768_v22 = vld [vmem:[#allocation3 + $0x150] sm:$0xff]  ;;  %v1280_v26 = vld [vmem:[#allocation6 + $0x160] sm:$0xff] }
  0x4c   :  { %210 = vst [vmem:[#allocation2 + $0x19] sm:$0xff] %v14633_v17  ;;  %211 = vst [vmem:[#allocation2 + $0x21] sm:$0xff] %v14636_v19  ;;  %12123 = vmatprep.mubr.f32.mxu0 %v14638_v20  ;;  %v14762_v17 = vld [vmem:[#allocation3 + $0x148] sm:$0xff]  ;;  %12344 = vmatpush3.msra.mxu0 %v1282_v3  ;;  %v14770_v19 = vld [vmem:[#allocation3 + $0x158] sm:$0xff] }
  0x4d   :  { %212 = vst [vmem:[#allocation2 + $0x31] sm:$0xff] %v14638_v20  ;;  %213 = vst [vmem:[#allocation2 + $0x39] sm:$0xff] %v14640_v21  ;;  %12345 = vmatprep.subr.mxu0 %v1281_v15  ;;  %v14776_v20 = vld [vmem:[#allocation3 + $0x160] sm:$0xff]  ;;  %v14780_v32 = vld [vmem:[#allocation3 + $0x168] sm:$0xff] }
  0x4e   :  { %214 = vst [vmem:[#allocation2 + $0x49] sm:$0xff] %v14645_v23  ;;  %215 = vst [vmem:[#allocation2 + $0x51] sm:$0xff] %v14647_v24  ;;  %v14785_v38 = vld [vmem:[#allocation3 + $0x170] sm:$0xff]  ;;  %12346 = vmatpush3.msra.mxu0 %v1281_v15  ;;  %v1812_v45 = vld [vmem:[#allocation6 + $0x1f8] sm:$0xff] }
  0x4f   :  { %216 = vst [vmem:[#allocation2 + $0x61] sm:$0xff] %v14651_v27  ;;  %217 = vst [vmem:[#allocation2 + $0x69] sm:$0xff] %v14653_v28  ;;  %12124 = vmatmul.mubr.f32.gmra.mxu0 %v14640_v21  ;;  %v14791_v21 = vld [vmem:[#allocation3 + $0x178] sm:$0xff]  ;;  %12347 = vmatprep.subr.mxu0 %v1280_v26  ;;  %v14800_v48 = vld [vmem:[#allocation3 + $0x188] sm:$0xff] }
  0x50   :  { %218 = vst [vmem:[#allocation2 + $0x79] sm:$0xff] %v14657_v29  ;;  %219 = vst [vmem:[#allocation2 + $0x81] sm:$0xff] %v14659_v30  ;;  %12126 = vmatprep.mubr.f32.mxu0 %v14645_v23  ;;  %v14796_v23 = vld [vmem:[#allocation3 + $0x180] sm:$0xff]  ;;  %v1279_v46 = vld [vmem:[#allocation6 + $0x158] sm:$0xff]  ;;  %12469 = vmatprep.subr.mxu1 %v1812_v45 }
  0x51   :  { %220 = vst [vmem:[#allocation2 + $0x91] sm:$0xff] %v14661_v31  ;;  %221 = vst [vmem:[#allocation2 + $0x99] sm:$0xff] %v14666_v33  ;;  %v1811_v49 = vld [vmem:[#allocation6 + $0x1f0] sm:$0xff]  ;;  %12348 = vmatpush3.msra.mxu0 %v1280_v26  ;;  %12470 = vmatpush3.msra.mxu1 %v1812_v45  ;;  %v14817_v56 = vld [vmem:[#allocation3 + $0x1a0] sm:$0xff] }
  0x52   :  { %222 = vst [vmem:[#allocation2 + $0xa9] sm:$0xff] %v14668_v34  ;;  %223 = vst [vmem:[#allocation2 + $0xb1] sm:$0xff] %v14672_v35  ;;  %v14805_v51 = vld [vmem:[#allocation3 + $0x190] sm:$0xff]  ;;  %12349 = vmatprep.subr.mxu0 %v1279_v46  ;;  %12471 = vmatprep.subr.mxu1 %v1811_v49  ;;  %v1810_v59 = vld [vmem:[#allocation6 + $0x1e8] sm:$0xff] }
  0x53   :  { %224 = vst [vmem:[#allocation2 + $0xc1] sm:$0xff] %v14674_v36  ;;  %225 = vst [vmem:[#allocation2 + $0xc9] sm:$0xff] %v14676_v37  ;;  %v14727_v6 = vld [vmem:[#allocation2 + $0x18] sm:$0xff]  ;;  %v14743_v11 = vld [vmem:[#allocation2 + $0x20] sm:$0xff]  ;;  %12127 = vmatmul.mubr.f32.gmra.mxu0 %v14647_v24  ;;  %12472 = vmatpush3.msra.mxu1 %v1811_v49 }
  0x54   :  { %226 = vst [vmem:[#allocation2 + $0xd9] sm:$0xff] %v14681_v39  ;;  %227 = vst [vmem:[#allocation2 + $0xe1] sm:$0xff] %v14683_v40  ;;  %12248 = vmatprep.mubr.f32.mxu1 %v14727_v6  ;;  %v14752_v14 = vld [vmem:[#allocation2 + $0x30] sm:$0xff]  ;;  %v14765_v18 = vld [vmem:[#allocation2 + $0x38] sm:$0xff]  ;;  %12129 = vmatprep.mubr.f32.mxu0 %v14651_v27 }
  0x55   :  { %228 = vst [vmem:[#allocation2 + $0xf1] sm:$0xff] %v14687_v41  ;;  %229 = vst [vmem:[#allocation2 + $0xf9] sm:$0xff] %v14689_v42  ;;  %12249 = vmatmul.mubr.f32.gmra.mxu1 %v14743_v11  ;;  %v14772_v25 = vld [vmem:[#allocation2 + $0x48] sm:$0xff]  ;;  %v14788_v43 = vld [vmem:[#allocation2 + $0x50] sm:$0xff]  ;;  %12350 = vmatpush3.msra.mxu0 %v1279_v46 }
  0x56   :  { %230 = vst [vmem:[#allocation2 + $0x109] sm:$0xff] %v14693_v47  ;;  %231 = vst [vmem:[#allocation2 + $0x111] sm:$0xff] %v14696_v50  ;;  %12251 = vmatprep.mubr.f32.mxu1 %v14752_v14  ;;  %v14793_v44 = vld [vmem:[#allocation2 + $0x60] sm:$0xff]  ;;  %v14808_v52 = vld [vmem:[#allocation2 + $0x68] sm:$0xff]  ;;  %12473 = vmatprep.subr.mxu1 %v1810_v59 }
  0x57   :  { %232 = vst [vmem:[#allocation2 + $0x121] sm:$0xff] %v14699_v53  ;;  %233 = vst [vmem:[#allocation2 + $0x129] sm:$0xff] %v14702_v55  ;;  %v14811_v24 = vld [vmem:[#allocation3 + $0x198] sm:$0xff]  ;;  %12130 = vmatmul.mubr.f32.gmra.mxu0 %v14653_v28  ;;  %v1278_v27 = vld [vmem:[#allocation6 + $0x150] sm:$0xff]  ;;  %12474 = vmatpush3.msra.mxu1 %v1810_v59 }
  0x58   :  { %234 = vst [vmem:[#allocation2 + $0x139] sm:$0xff] %v14705_v57  ;;  %235 = vst [vmem:[#allocation2 + $0x141] sm:$0xff] %v14707_v58  ;;  %v14813_v54 = vld [vmem:[#allocation2 + $0x78] sm:$0xff]  ;;  %12132 = vmatprep.mubr.f32.mxu0 %v14657_v29  ;;  %v14822_v62 = vld [vmem:[#allocation3 + $0x1a8] sm:$0xff]  ;;  %12351 = vmatprep.subr.mxu0 %v1278_v27 }
  0x59   :  { %236 = vst [vmem:[#allocation2 + $0x151] sm:$0xff] %v14711_v60  ;;  %237 = vst [vmem:[#allocation2 + $0x159] sm:$0xff] %v14713_v61  ;;  %12252 = vmatmul.mubr.f32.gmra.mxu1 %v14765_v18  ;;  %v14825_v2 = vld [vmem:[#allocation2 + $0x80] sm:$0xff]  ;;  %v14828_v28 = vld [vmem:[#allocation3 + $0x1b0] sm:$0xff]  ;;  %12352 = vmatpush3.msra.mxu0 %v1278_v27 }
  0x5a   :  { %238 = vst [vmem:[#allocation2 + $0x169] sm:$0xff] %v14717_v63  ;;  %239 = vst [vmem:[#allocation2 + $0x171] sm:$0xff] %v14719_v1  ;;  %12254 = vmatprep.mubr.f32.mxu1 %v14772_v25  ;;  %v14830_v3 = vld [vmem:[#allocation2 + $0x90] sm:$0xff]  ;;  %v14833_v29 = vld [vmem:[#allocation3 + $0x1b8] sm:$0xff] }
  0x5b   :  { %242 = vst [vmem:[#allocation2 + $0x1c9] sm:$0xff] %v14723_v4  ;;  %243 = vst [vmem:[#allocation2 + $0x1d1] sm:$0xff] %v14725_v5  ;;  %12133 = vmatmul.mubr.f32.gmra.mxu0 %v14659_v30  ;;  %v1277_v15 = vld [vmem:[#allocation6 + $0x148] sm:$0xff]  ;;  %v1809_v26 = vld [vmem:[#allocation6 + $0x1e0] sm:$0xff] }
  0x5c   :  { %244 = vst [vmem:[#allocation2 + $0x1e1] sm:$0xff] %v14731_v7  ;;  %245 = vst [vmem:[#allocation2 + $0x1e9] sm:$0xff] %v14733_v8  ;;  %12135 = vmatprep.mubr.f32.mxu0 %v14661_v31  ;;  %v14839_v45 = vld [vmem:[#allocation3 + $0x1c0] sm:$0xff]  ;;  %v14841_v46 = vld [vmem:[#allocation3 + $0x1c8] sm:$0xff]  ;;  %12353 = vmatprep.subr.mxu0 %v1277_v15 }
  0x5d   :  { %246 = vst [vmem:[#allocation2 + $0x1f9] sm:$0xff] %v14738_v9  ;;  %247 = vst [vmem:[#allocation2 + $0x201] sm:$0xff] %v14740_v10  ;;  %12255 = vmatmul.mubr.f32.gmra.mxu1 %v14788_v43  ;;  %v14844_v49 = vld [vmem:[#allocation2 + $0x98] sm:$0xff]  ;;  %v14848_v30 = vld [vmem:[#allocation2 + $0xa8] sm:$0xff]  ;;  %12475 = vmatprep.subr.mxu1 %v1809_v26 }
  0x5e   :  { %248 = vst [vmem:[#allocation2 + $0x211] sm:$0xff] %v14747_v12  ;;  %249 = vst [vmem:[#allocation2 + $0x219] sm:$0xff] %v14749_v13  ;;  %12257 = vmatprep.mubr.f32.mxu1 %v14793_v44  ;;  %v14850_v0 = vld [vmem:[#allocation3 + $0x1d0] sm:$0xff]  ;;  %v14852_v31 = vld [vmem:[#allocation3 + $0x1d8] sm:$0xff]  ;;  %12354 = vmatpush3.msra.mxu0 %v1277_v15 }
  0x5f   :  { %250 = vst [vmem:[#allocation2 + $0x229] sm:$0xff] %v14757_v16  ;;  %251 = vst [vmem:[#allocation2 + $0x231] sm:$0xff] %v14762_v17  ;;  %12136 = vmatmul.mubr.f32.gmra.mxu0 %v14666_v33  ;;  %v1808_v27 = vld [vmem:[#allocation6 + $0x1d8] sm:$0xff]  ;;  %v14861_v59 = vld [vmem:[#allocation3 + $0x1e8] sm:$0xff]  ;;  %12476 = vmatpush3.msra.mxu1 %v1809_v26 }
  0x60   :  { %252 = vst [vmem:[#allocation2 + $0x241] sm:$0xff] %v14768_v22  ;;  %253 = vst [vmem:[#allocation2 + $0x249] sm:$0xff] %v14770_v19  ;;  %12138 = vmatprep.mubr.f32.mxu0 %v14668_v34  ;;  %v14868_v33 = vld [vmem:[#allocation2 + $0xc0] sm:$0xff]  ;;  %v1275_v34 = vld [vmem:[#allocation6 + $0x138] sm:$0xff]  ;;  %12477 = vmatprep.subr.mxu1 %v1808_v27 }
  0x61   :  { %254 = vst [vmem:[#allocation2 + $0x259] sm:$0xff] %v14776_v20  ;;  %255 = vst [vmem:[#allocation2 + $0x261] sm:$0xff] %v14780_v32  ;;  %12258 = vmatmul.mubr.f32.gmra.mxu1 %v14808_v52  ;;  %v14874_v15 = vld [vmem:[#allocation2 + $0xc8] sm:$0xff]  ;;  %v1274_v26 = vld [vmem:[#allocation6 + $0x130] sm:$0xff] }
  0x62   :  { %256 = vst [vmem:[#allocation2 + $0x271] sm:$0xff] %v14785_v38  ;;  %257 = vst [vmem:[#allocation2 + $0x279] sm:$0xff] %v14791_v21  ;;  %12260 = vmatprep.mubr.f32.mxu1 %v14813_v54  ;;  %12478 = vmatpush3.msra.mxu1 %v1808_v27  ;;  %v14892_v27 = vld [vmem:[#allocation2 + $0x108] sm:$0xff] }
  0x63   :  { %258 = vst [vmem:[#allocation2 + $0x289] sm:$0xff] %v14796_v23  ;;  %259 = vst [vmem:[#allocation2 + $0x291] sm:$0xff] %v14800_v48  ;;  %12139 = vmatmul.mubr.f32.gmra.mxu0 %v14672_v35  ;;  %v1806_v35 = vld [vmem:[#allocation6 + $0x1c8] sm:$0xff] }
  0x64   :  { %260 = vst [vmem:[#allocation2 + $0x2a1] sm:$0xff] %v14805_v51  ;;  %19707 = vst [vmem:[#allocation13_spill] sm:$0xff] %v14813_v54  ;;  %v14864_v54 = vld [vmem:[#allocation2 + $0xb0] sm:$0xff]  ;;  %12141 = vmatprep.mubr.f32.mxu0 %v14674_v36  ;;  %v14882_v36 = vld [vmem:[#allocation2 + $0xe0] sm:$0xff] }
  0x65   :  { %261 = vst [vmem:[#allocation2 + $0x2a9] sm:$0xff] %v14811_v24  ;;  %262 = vst [vmem:[#allocation2 + $0x2b9] sm:$0xff] %v14817_v56  ;;  %12261 = vmatmul.mubr.f32.gmra.mxu1 %v14825_v2 }
  0x66   :  { %19708 = vst [vmem:[#allocation14_spill] sm:$0xff] %v14825_v2  ;;  %263 = vst [vmem:[#allocation2 + $0x2c1] sm:$0xff] %v14822_v62  ;;  %12263 = vmatprep.mubr.f32.mxu1 %v14830_v3  ;;  %v1276_v2 = vld [vmem:[#allocation6 + $0x140] sm:$0xff] }
  0x67   :  { %19709 = vst [vmem:[#allocation15_spill] sm:$0xff] %v14830_v3  ;;  %264 = vst [vmem:[#allocation2 + $0x2d1] sm:$0xff] %v14828_v28  ;;  %v14859_v3 = vld [vmem:[#allocation3 + $0x1e0] sm:$0xff]  ;;  %12355 = vmatprep.subr.mxu0 %v1276_v2  ;;  %12142 = vmatmul.mubr.f32.gmra.mxu0 %v14676_v37 }
  0x68   :  { %265 = vst [vmem:[#allocation2 + $0x2d9] sm:$0xff] %v14833_v29  ;;  %19710 = vst [vmem:[#allocation16_spill] sm:$0xff] %v14844_v49  ;;  %12356 = vmatpush3.msra.mxu0 %v1276_v2  ;;  %12144 = vmatprep.mubr.f32.mxu0 %v14681_v39  ;;  %v1273_v2 = vld [vmem:[#allocation6 + $0x128] sm:$0xff]  ;;  %v1805_v37 = vld [vmem:[#allocation6 + $0x1c0] sm:$0xff] }
  0x69   :  { %266 = vst [vmem:[#allocation2 + $0x2e9] sm:$0xff] %v14839_v45  ;;  %267 = vst [vmem:[#allocation2 + $0x2f1] sm:$0xff] %v14841_v46  ;;  %12264 = vmatmul.mubr.f32.gmra.mxu1 %v14844_v49  ;;  %v14876_v49 = vld [vmem:[#allocation2 + $0xd8] sm:$0xff]  ;;  %12357 = vmatprep.subr.mxu0 %v1275_v34 }
  0x6a   :  { %19711 = vst [vmem:[#allocation17_spill] sm:$0xff] %v14848_v30  ;;  %268 = vst [vmem:[#allocation2 + $0x301] sm:$0xff] %v14850_v0  ;;  %12266 = vmatprep.mubr.f32.mxu1 %v14848_v30  ;;  %v1807_v30 = vld [vmem:[#allocation6 + $0x1d0] sm:$0xff]  ;;  %12358 = vmatpush3.msra.mxu0 %v1275_v34  ;;  %v14890_v39 = vld [vmem:[#allocation2 + $0xf8] sm:$0xff] }
  0x6b   :  { %269 = vst [vmem:[#allocation2 + $0x309] sm:$0xff] %v14852_v31  ;;  %270 = vst [vmem:[#allocation2 + $0x319] sm:$0xff] %v14859_v3  ;;  %12479 = vmatprep.subr.mxu1 %v1807_v30  ;;  %12359 = vmatprep.subr.mxu0 %v1274_v26  ;;  %v14900_v34 = vld [vmem:[#allocation2 + $0x120] sm:$0xff] }
  0x6c   :  { %271 = vst [vmem:[#allocation2 + $0x321] sm:$0xff] %v14861_v59  ;;  %19712 = vst [vmem:[#allocation18_spill] sm:$0xff] %v14868_v33  ;;  %12480 = vmatpush3.msra.mxu1 %v1807_v30  ;;  %12145 = vmatmul.mubr.f32.gmra.mxu0 %v14683_v40  ;;  %v1272_v30 = vld [vmem:[#allocation6 + $0x120] sm:$0xff]  ;;  %v1804_v40 = vld [vmem:[#allocation6 + $0x1b8] sm:$0xff] }
  0x6d   :  { %12267 = vmatmul.mubr.f32.gmra.mxu1 %v14864_v54  ;;  %12481 = vmatprep.subr.mxu1 %v1806_v35 }
  0x6e   :  { %12269 = vmatprep.mubr.f32.mxu1 %v14868_v33  ;;  %v14884_v33 = vld [vmem:[#allocation2 + $0xf0] sm:$0xff]  ;;  %12147 = vmatprep.mubr.f32.mxu0 %v14687_v41 }
  0x6f   :  { %12360 = vmatpush3.msra.mxu0 %v1274_v26  ;;  %12482 = vmatpush3.msra.mxu1 %v1806_v35  ;;  %v14898_v41 = vld [vmem:[#allocation2 + $0x110] sm:$0xff]  ;;  %v1271_v26 = vld [vmem:[#allocation6 + $0x118] sm:$0xff] }
  0x70   :  { %12361 = vmatprep.subr.mxu0 %v1273_v2  ;;  %12148 = vmatmul.mubr.f32.gmra.mxu0 %v14689_v42  ;;  %v1803_v42 = vld [vmem:[#allocation6 + $0x1b0] sm:$0xff]  ;;  %v14908_v35 = vld [vmem:[#allocation2 + $0x138] sm:$0xff] }
  0x71   :  { %12270 = vmatmul.mubr.f32.gmra.mxu1 %v14874_v15  ;;  %12483 = vmatprep.subr.mxu1 %v1805_v37  ;;  %19713 = vst [vmem:[#allocation19_spill] sm:$0xff] %v14908_v35 }
  0x72   :  { %12272 = vmatprep.mubr.f32.mxu1 %v14876_v49  ;;  %12150 = vmatprep.mubr.f32.mxu0 %v14693_v47  ;;  %v14906_v47 = vld [vmem:[#allocation2 + $0x128] sm:$0xff] }
  0x73   :  { %12362 = vmatpush3.msra.mxu0 %v1273_v2  ;;  %12484 = vmatpush3.msra.mxu1 %v1805_v37  ;;  %v1270_v2 = vld [vmem:[#allocation6 + $0x110] sm:$0xff] }
  0x74   :  { %12363 = vmatprep.subr.mxu0 %v1272_v30  ;;  %12151 = vmatmul.mubr.f32.gmra.mxu0 %v14696_v50  ;;  %v1802_v50 = vld [vmem:[#allocation6 + $0x1a8] sm:$0xff]  ;;  %v14916_v37 = vld [vmem:[#allocation2 + $0x150] sm:$0xff] }
  0x75   :  { %12273 = vmatmul.mubr.f32.gmra.mxu1 %v14882_v36  ;;  %12485 = vmatprep.subr.mxu1 %v1804_v40 }
  0x76   :  { %12275 = vmatprep.mubr.f32.mxu1 %v14884_v33  ;;  %12153 = vmatprep.mubr.f32.mxu0 %v14699_v53  ;;  %v14914_v53 = vld [vmem:[#allocation2 + $0x140] sm:$0xff] }
  0x77   :  { %12364 = vmatpush3.msra.mxu0 %v1272_v30  ;;  %12486 = vmatpush3.msra.mxu1 %v1804_v40  ;;  %v1269_v30 = vld [vmem:[#allocation6 + $0x108] sm:$0xff]  ;;  %v14922_v40 = vld [vmem:[#allocation2 + $0x158] sm:$0xff] }
  0x78   :  { %12365 = vmatprep.subr.mxu0 %v1271_v26  ;;  %12154 = vmatmul.mubr.f32.gmra.mxu0 %v14702_v55  ;;  %v1801_v55 = vld [vmem:[#allocation6 + $0x1a0] sm:$0xff] }
  0x79   :  { %12276 = vmatmul.mubr.f32.gmra.mxu1 %v14890_v39  ;;  %12487 = vmatprep.subr.mxu1 %v1803_v42 }
  0x7a   :  { %12278 = vmatprep.mubr.f32.mxu1 %v14892_v27  ;;  %12156 = vmatprep.mubr.f32.mxu0 %v14705_v57  ;;  %v176_v57 = vld [vmem:[#allocation3 + $0xf0] sm:$0xff] }
  0x7b   :  { %12366 = vmatpush3.msra.mxu0 %v1271_v26  ;;  %12488 = vmatpush3.msra.mxu1 %v1803_v42  ;;  %240 = vst [vmem:[#allocation2 + $0x181] sm:$0xff] %v176_v57  ;;  %v177_v26 = vld [vmem:[#allocation3 + $0xf8] sm:$0xff]  ;;  %v14930_v42 = vld [vmem:[#allocation2 + $0x170] sm:$0xff] }
  0x7c   :  { %12367 = vmatprep.subr.mxu0 %v1270_v2  ;;  %12157 = vmatmul.mubr.f32.gmra.mxu0 %v14707_v58  ;;  %241 = vst [vmem:[#allocation2 + $0x189] sm:$0xff] %v177_v26  ;;  %v1268_v58 = vld [vmem:[#allocation6 + $0x100] sm:$0xff]  ;;  %v1799_v57 = vld [vmem:[#allocation6 + $0x190] sm:$0xff]  ;;  %v14937_v26 = vld [vmem:[#allocation2 + $0x1c8] sm:$0xff] }
  0x7d   :  { %12279 = vmatmul.mubr.f32.gmra.mxu1 %v14898_v41  ;;  %12489 = vmatprep.subr.mxu1 %v1802_v50 }
  0x7e   :  { %12281 = vmatprep.mubr.f32.mxu1 %v14900_v34  ;;  %12159 = vmatprep.mubr.f32.mxu0 %v14711_v60  ;;  %v1800_v60 = vld [vmem:[#allocation6 + $0x198] sm:$0xff] }
  0x7f   :  { %12368 = vmatpush3.msra.mxu0 %v1270_v2  ;;  %12490 = vmatpush3.msra.mxu1 %v1802_v50  ;;  %v386_v2 = vld [vmem:[#allocation2 + $0x1b1] sm:$0xff] }
  0x80   :  { %12369 = vmatprep.subr.mxu0 %v1269_v30  ;;  %12160 = vmatmul.mubr.f32.gmra.mxu0 %v14713_v61  ;;  %v14933_v50 = vld [vmem:[#allocation6 + $0x278] sm:$0xff] }
  0x81   :  { %12282 = vmatmul.mubr.f32.gmra.mxu1 %v14906_v47  ;;  %12491 = vmatprep.subr.mxu1 %v1801_v55  ;;  %v387_v61 = vld [vmem:[#allocation2 + $0x1b9] sm:$0xff] }
  0x82   :  { %12284 = vmatprep.mubr.f32.mxu1 %v14908_v35  ;;  %v14924_v35 = vld [vmem:[#allocation2 + $0x168] sm:$0xff]  ;;  %12162 = vmatprep.mubr.f32.mxu0 %v14717_v63  ;;  %v19714_v63 = vmov 0.0  }
  0x83   :  { %12370 = vmatpush3.msra.mxu0 %v1269_v30  ;;  %12492 = vmatpush3.msra.mxu1 %v1801_v55  ;;  %v1798_v30 = vld [vmem:[#allocation6 + $0x188] sm:$0xff]  ;;  %v14945_v55 = vld [vmem:[#allocation2 + $0x1e0] sm:$0xff] }
  0x84   :  { %12371 = vmatprep.subr.mxu0 %v1268_v58  ;;  %12163 = vmatmul.mubr.f32.gmra.mxu0 %v14719_v1  ;;  %v14943_v1 = vld [vmem:[#allocation2 + $0x1d0] sm:$0xff] }
  0x85   :  { %12285 = vmatmul.mubr.f32.gmra.mxu1 %v14914_v53  ;;  %12493 = vmatprep.subr.mxu1 %v1800_v60 }
  0x86   :  { %12287 = vmatprep.mubr.f32.mxu1 %v14916_v37  ;;  %12165 = vmatprep.mubr.f32.mxu0 %v386_v2  ;;  %v14961_v2 = vld [vmem:[#allocation2 + $0x210] sm:$0xff] }
  0x87   :  { %12372 = vmatpush3.msra.mxu0 %v1268_v58  ;;  %12494 = vmatpush3.msra.mxu1 %v1800_v60  ;;  %v1797_v58 = vld [vmem:[#allocation6 + $0x180] sm:$0xff]  ;;  %v14951_v60 = vld [vmem:[#allocation2 + $0x1e8] sm:$0xff] }
  0x88   :  { %12597 = vmatprep.subr.mxu0 %v14933_v50  ;;  %12166 = vmatmul.mubr.f32.gmra.mxu0 %v387_v61  ;;  %v15009_v61 = vld [vmem:[#allocation2 + $0x2a0] sm:$0xff] }
  0x89   :  { %12288 = vmatmul.mubr.f32.gmra.mxu1 %v14922_v40  ;;  %12495 = vmatprep.subr.mxu1 %v1799_v57 }
  0x8a   :  { %12290 = vmatprep.mubr.f32.mxu1 %v14924_v35  ;;  %12168 = vmatprep.mubr.f32.mxu0 %v14723_v4  ;;  %v14953_v4 = vld [vmem:[#allocation2 + $0x1f8] sm:$0xff] }
  0x8b   :  { %12496 = vmatpush3.msra.mxu1 %v1799_v57  ;;  %v209_v57 = vld [vmem:[#allocation3 + $0x1f8] sm:$0xff] }
  0x8c   :  { %12497 = vmatprep.subr.mxu1 %v1798_v30  ;;  %12169 = vmatmul.mubr.f32.gmra.mxu0 %v14725_v5  ;;  %v14959_v5 = vld [vmem:[#allocation2 + $0x200] sm:$0xff]  ;;  %273 = vst [vmem:[#allocation2 + $0x339] sm:$0xff] %v209_v57 }
  0x8d   :  { %12291 = vmatmul.mubr.f32.gmra.mxu1 %v14930_v42  ;;  %12171 = vmatprep.mubr.f32.mxu0 %v14731_v7  ;;  %v14967_v7 = vld [vmem:[#allocation2 + $0x218] sm:$0xff]  ;;  %v15084_v57 = vld [vmem:[#allocation2 + $0x62] sm:$0xff] }
  0x8e   :  { %12293 = vmatprep.mubr.f32.mxu1 %v19714_v63  ;;  %12498 = vmatpush3.msra.mxu1 %v1798_v30  ;;  %v15060_v30 = vld [vmem:[#allocation2 + $0x1a] sm:$0xff]  ;;  %19715 = vst [vmem:[#allocation20_spill] sm:$0xff] %v15084_v57 }
  0x8f   :  { %12499 = vmatprep.subr.mxu1 %v1797_v58 }
  0x90   :  { %12500 = vmatpush3.msra.mxu1 %v1797_v58  ;;  %12172 = vmatmul.mubr.f32.gmra.mxu0 %v14733_v8  ;;  %v14969_v8 = vld [vmem:[#allocation2 + $0x228] sm:$0xff]  ;;  %v2869_v58 = vld [vmem:[#allocation6 + $0x2f0] sm:$0xff] }
  0x91   :  { %12294 = vmatmul.mubr.f32.gmra.mxu1 %v19714_v63  ;;  %12174 = vmatprep.mubr.f32.mxu0 %v14738_v9  ;;  %v14975_v9 = vld [vmem:[#allocation2 + $0x230] sm:$0xff] }
  0x92   :  { %12296 = vmatprep.mubr.f32.mxu1 %v14937_v26  ;;  %v1205_v63 = vld [vmem:[#allocation2 + $0xa] sm:$0xff] }
  0x94   :  { %12175 = vmatmul.mubr.f32.gmra.mxu0 %v14740_v10  ;;  %v14977_v10 = vld [vmem:[#allocation2 + $0x240] sm:$0xff] }
  0x95   :  { %12297 = vmatmul.mubr.f32.gmra.mxu1 %v14943_v1  ;;  %12177 = vmatprep.mubr.f32.mxu0 %v14747_v12  ;;  %v14983_v12 = vld [vmem:[#allocation2 + $0x248] sm:$0xff] }
  0x96   :  { %12299 = vmatprep.mubr.f32.mxu1 %v14945_v55 }
  0x98   :  { %12178 = vmatmul.mubr.f32.gmra.mxu0 %v14749_v13  ;;  %v14985_v13 = vld [vmem:[#allocation2 + $0x258] sm:$0xff] }
  0x99   :  { %12300 = vmatmul.mubr.f32.gmra.mxu1 %v14951_v60  ;;  %12180 = vmatprep.mubr.f32.mxu0 %v14757_v16  ;;  %v14991_v16 = vld [vmem:[#allocation2 + $0x260] sm:$0xff] }
  0x9a   :  { %12302 = vmatprep.mubr.f32.mxu1 %v14953_v4 }
  0x9c   :  { %12181 = vmatmul.mubr.f32.gmra.mxu0 %v14762_v17  ;;  %v14993_v17 = vld [vmem:[#allocation2 + $0x270] sm:$0xff] }
  0x9d   :  { %12303 = vmatmul.mubr.f32.gmra.mxu1 %v14959_v5  ;;  %12183 = vmatprep.mubr.f32.mxu0 %v14768_v22  ;;  %v14999_v22 = vld [vmem:[#allocation2 + $0x278] sm:$0xff] }
  0x9e   :  { %12305 = vmatprep.mubr.f32.mxu1 %v14961_v2 }
  0xa0   :  { %12184 = vmatmul.mubr.f32.gmra.mxu0 %v14770_v19  ;;  %v15001_v19 = vld [vmem:[#allocation2 + $0x288] sm:$0xff] }
  0xa1   :  { %12306 = vmatmul.mubr.f32.gmra.mxu1 %v14967_v7  ;;  %12186 = vmatprep.mubr.f32.mxu0 %v14776_v20  ;;  %v15007_v20 = vld [vmem:[#allocation2 + $0x290] sm:$0xff] }
  0xa2   :  { %12308 = vmatprep.mubr.f32.mxu1 %v14969_v8 }
  0xa4   :  { %12187 = vmatmul.mubr.f32.gmra.mxu0 %v14780_v32  ;;  %v2870_v32 = vld [vmem:[#allocation6 + $0x2f8] sm:$0xff] }
  0xa5   :  { %12309 = vmatmul.mubr.f32.gmra.mxu1 %v14975_v9  ;;  %12189 = vmatprep.mubr.f32.mxu0 %v14785_v38  ;;  %v15015_v38 = vld [vmem:[#allocation2 + $0x2a8] sm:$0xff] }
  0xa6   :  { %12311 = vmatprep.mubr.f32.mxu1 %v14977_v10  ;;  %12725 = vmatprep.subr.mxu1 %v2870_v32 }
  0xa8   :  { %12190 = vmatmul.mubr.f32.gmra.mxu0 %v14791_v21  ;;  %v15017_v21 = vld [vmem:[#allocation2 + $0x2b8] sm:$0xff] }
  0xa9   :  { %12312 = vmatmul.mubr.f32.gmra.mxu1 %v14983_v12  ;;  %12192 = vmatprep.mubr.f32.mxu0 %v14796_v23  ;;  %v15023_v23 = vld [vmem:[#allocation2 + $0x2c0] sm:$0xff] }
  0xaa   :  { %12314 = vmatprep.mubr.f32.mxu1 %v14985_v13 }
  0xac   :  { %12193 = vmatmul.mubr.f32.gmra.mxu0 %v14800_v48  ;;  %v15025_v48 = vld [vmem:[#allocation2 + $0x2d0] sm:$0xff] }
  0xad   :  { %12315 = vmatmul.mubr.f32.gmra.mxu1 %v14991_v16  ;;  %12195 = vmatprep.mubr.f32.mxu0 %v14805_v51  ;;  %v15031_v51 = vld [vmem:[#allocation2 + $0x2d8] sm:$0xff] }
  0xae   :  { %12317 = vmatprep.mubr.f32.mxu1 %v14993_v17 }
  0xb0   :  { %12196 = vmatmul.mubr.f32.gmra.mxu0 %v14811_v24  ;;  %v15033_v24 = vld [vmem:[#allocation2 + $0x2e8] sm:$0xff] }
  0xb1   :  { %12318 = vmatmul.mubr.f32.gmra.mxu1 %v14999_v22  ;;  %12198 = vmatprep.mubr.f32.mxu0 %v14817_v56  ;;  %v15039_v56 = vld [vmem:[#allocation2 + $0x2f0] sm:$0xff] }
  0xb2   :  { %12320 = vmatprep.mubr.f32.mxu1 %v15001_v19 }
  0xb4   :  { %12199 = vmatmul.mubr.f32.gmra.mxu0 %v14822_v62  ;;  %v15041_v62 = vld [vmem:[#allocation2 + $0x300] sm:$0xff] }
  0xb5   :  { %12321 = vmatmul.mubr.f32.gmra.mxu1 %v15007_v20  ;;  %12201 = vmatprep.mubr.f32.mxu0 %v14828_v28  ;;  %v208_v28 = vld [vmem:[#allocation3 + $0x1f0] sm:$0xff] }
  0xb6   :  { %12323 = vmatprep.mubr.f32.mxu1 %v15009_v61  ;;  %272 = vst [vmem:[#allocation2 + $0x331] sm:$0xff] %v208_v28  ;;  %v15076_v28 = vld [vmem:[#allocation2 + $0x4a] sm:$0xff] }
  0xb8   :  { %12202 = vmatmul.mubr.f32.gmra.mxu0 %v14833_v29  ;;  %v15047_v29 = vld [vmem:[#allocation2 + $0x308] sm:$0xff] }
  0xb9   :  { %12324 = vmatmul.mubr.f32.gmra.mxu1 %v15015_v38  ;;  %12204 = vmatprep.mubr.f32.mxu0 %v14839_v45  ;;  %v15049_v45 = vld [vmem:[#allocation2 + $0x318] sm:$0xff] }
  0xba   :  { %12326 = vmatprep.mubr.f32.mxu1 %v15017_v21 }
  0xbc   :  { %12205 = vmatmul.mubr.f32.gmra.mxu0 %v14841_v46  ;;  %v15055_v46 = vld [vmem:[#allocation2 + $0x320] sm:$0xff] }
  0xbd   :  { %12327 = vmatmul.mubr.f32.gmra.mxu1 %v15023_v23  ;;  %12207 = vmatprep.mubr.f32.mxu0 %v14850_v0  ;;  %v1204_v0 = vld [vmem:[#allocation2 + $0x2] sm:$0xff] }
  0xbe   :  { %12329 = vmatprep.mubr.f32.mxu1 %v15025_v48 }
  0xc0   :  { %12208 = vmatmul.mubr.f32.gmra.mxu0 %v14852_v31  ;;  %v2340_v31 = vld [vmem:[#allocation6 + $0x270] sm:$0xff] }
  0xc1   :  { %12330 = vmatmul.mubr.f32.gmra.mxu1 %v15031_v51  ;;  %12210 = vmatprep.mubr.f32.mxu0 %v14859_v3  ;;  %v15064_v3 = vld [vmem:[#allocation2 + $0x22] sm:$0xff] }
  0xc2   :  { %12332 = vmatprep.mubr.f32.mxu1 %v15033_v24 }
  0xc4   :  { %12211 = vmatmul.mubr.f32.gmra.mxu0 %v14861_v59  ;;  %v15068_v59 = vld [vmem:[#allocation2 + $0x32] sm:$0xff] }
  0xc5   :  { %12333 = vmatmul.mubr.f32.gmra.mxu1 %v15039_v56  ;;  %12373 = vmatprep.mubr.f32.mxu0 %v1204_v0  ;;  %v2866_v0 = vld [vmem:[#allocation6 + $0x2d8] sm:$0xff] }
  0xc6   :  { %12335 = vmatprep.mubr.f32.mxu1 %v15041_v62 }
  0xc8   :  { %12374 = vmatmul.mubr.f32.vlgmr.msra.gmra.mxu0 %v1205_v63  ;;  %v19717_v63 = vld [vmem:[#allocation13_spill] sm:$0xff] }
  0xc9   :  { %12336 = vmatmul.mubr.f32.gmra.mxu1 %v15047_v29  ;;  %12598 = vmatpush3.msra.mxu0 %v14933_v50  ;;  %v2868_v50 = vld [vmem:[#allocation6 + $0x2e8] sm:$0xff] }
  0xca   :  { %12338 = vmatprep.mubr.f32.mxu1 %v15049_v45  ;;  %12376 = vmatprep.mubr.f32.mxu0 %v15060_v30 }
  0xcb   :  { %12599 = vmatprep.subr.mxu0 %v2340_v31 }
  0xcc   :  { %12377 = vmatmul.mubr.f32.gmra.mxu0 %v15064_v3 }
  0xcd   :  { %12339 = vmatmul.mubr.f32.gmra.mxu1 %v15055_v46  ;;  %12379 = vmatprep.mubr.f32.mxu0 %v15068_v59 }
  0xce   :  { %12501 = vmatprep.mubr.f32.mxu1 %v14727_v6  ;;  %v2339_v6 = vld [vmem:[#allocation6 + $0x268] sm:$0xff]  ;;  %12600 = vmatpush3.msra.mxu0 %v2340_v31  ;;  %v15092_v31 = vld [vmem:[#allocation2 + $0x7a] sm:$0xff] }
  0xcf   :  { %12601 = vmatprep.subr.mxu0 %v2339_v6  ;;  %19718 = vst [vmem:[#allocation13_spill] sm:$0xff] %v15092_v31 }
  0xd0   :  { %12602 = vmatpush3.msra.mxu0 %v2339_v6  ;;  %v2865_v6 = vld [vmem:[#allocation6 + $0x2d0] sm:$0xff] }
  0xd1   :  { %12502 = vmatmul.mubr.f32.vlgmr.msra.gmra.mxu1 %v14743_v11  ;;  %v15073_v11 = vld [vmem:[#allocation2 + $0x3a] sm:$0xff] }
  0xd2   :  { %12504 = vmatprep.mubr.f32.mxu1 %v14752_v14  ;;  %12726 = vmatpush3.msra.mxu1 %v2870_v32  ;;  %v2338_v14 = vld [vmem:[#allocation6 + $0x260] sm:$0xff] }
  0xd3   :  { %12727 = vmatprep.subr.mxu1 %v2869_v58  ;;  %12380 = vmatmul.mubr.f32.gmra.mxu0 %v15073_v11  ;;  %v2867_v32 = vld [vmem:[#allocation6 + $0x2e0] sm:$0xff] }
  0xd4   :  { %12728 = vmatpush3.msra.mxu1 %v2869_v58  ;;  %12382 = vmatprep.mubr.f32.mxu0 %v15076_v28  ;;  %v19719_v58 = vld [vmem:[#allocation14_spill] sm:$0xff] }
  0xd5   :  { %12505 = vmatmul.mubr.f32.gmra.mxu1 %v14765_v18  ;;  %12729 = vmatprep.subr.mxu1 %v2868_v50  ;;  %v15081_v18 = vld [vmem:[#allocation2 + $0x52] sm:$0xff] }
  0xd6   :  { %12507 = vmatprep.mubr.f32.mxu1 %v14772_v25  ;;  %12603 = vmatprep.subr.mxu0 %v2338_v14  ;;  %v2337_v25 = vld [vmem:[#allocation6 + $0x258] sm:$0xff] }
  0xd7   :  { %12730 = vmatpush3.msra.mxu1 %v2868_v50  ;;  %12383 = vmatmul.mubr.f32.gmra.mxu0 %v15081_v18  ;;  %v19720_v50 = vld [vmem:[#allocation15_spill] sm:$0xff] }
  0xd8   :  { %12731 = vmatprep.subr.mxu1 %v2867_v32  ;;  %12385 = vmatprep.mubr.f32.mxu0 %v15084_v57  ;;  %v15100_v57 = vld [vmem:[#allocation2 + $0x92] sm:$0xff] }
  0xd9   :  { %12508 = vmatmul.mubr.f32.gmra.mxu1 %v14788_v43  ;;  %v15089_v43 = vld [vmem:[#allocation2 + $0x6a] sm:$0xff]  ;;  %12604 = vmatpush3.msra.mxu0 %v2338_v14  ;;  %19721 = vst [vmem:[#allocation14_spill] sm:$0xff] %v15100_v57 }
  0xda   :  { %12510 = vmatprep.mubr.f32.mxu1 %v14793_v44  ;;  %19716 = vst [vmem:[#allocation21_spill] sm:$0xff] %v15089_v43  ;;  %12605 = vmatprep.subr.mxu0 %v2337_v25  ;;  %v2336_v44 = vld [vmem:[#allocation6 + $0x250] sm:$0xff]  ;;  %v2335_v14 = vld [vmem:[#allocation6 + $0x248] sm:$0xff] }
  0xdb   :  { %12732 = vmatpush3.msra.mxu1 %v2867_v32  ;;  %12386 = vmatmul.mubr.f32.gmra.mxu0 %v15089_v43  ;;  %v19722_v32 = vld [vmem:[#allocation16_spill] sm:$0xff]  ;;  %v15108_v43 = vld [vmem:[#allocation2 + $0xaa] sm:$0xff] }
  0xdc   :  { %12733 = vmatprep.subr.mxu1 %v2866_v0  ;;  %12388 = vmatprep.mubr.f32.mxu0 %v15092_v31  ;;  %v19723_v31 = vld [vmem:[#allocation17_spill] sm:$0xff] }
  0xdd   :  { %12511 = vmatmul.mubr.f32.gmra.mxu1 %v14808_v52  ;;  %v15097_v52 = vld [vmem:[#allocation2 + $0x82] sm:$0xff]  ;;  %12606 = vmatpush3.msra.mxu0 %v2337_v25 }
  0xde   :  { %12513 = vmatprep.mubr.f32.mxu1 %v19717_v63  ;;  %12607 = vmatprep.subr.mxu0 %v2336_v44  ;;  %v15105_v63 = vld [vmem:[#allocation2 + $0x9a] sm:$0xff] }
  0xdf   :  { %12734 = vmatpush3.msra.mxu1 %v2866_v0  ;;  %12389 = vmatmul.mubr.f32.gmra.mxu0 %v15097_v52  ;;  %v2334_v25 = vld [vmem:[#allocation6 + $0x240] sm:$0xff]  ;;  %v15113_v0 = vld [vmem:[#allocation2 + $0xb2] sm:$0xff] }
  0xe0   :  { %12735 = vmatprep.subr.mxu1 %v2865_v6  ;;  %12391 = vmatprep.mubr.f32.mxu0 %v15100_v57  ;;  %v15116_v57 = vld [vmem:[#allocation2 + $0xc2] sm:$0xff] }
  0xe1   :  { %12514 = vmatmul.mubr.f32.gmra.mxu1 %v19719_v58  ;;  %v2864_v58 = vld [vmem:[#allocation6 + $0x2c8] sm:$0xff]  ;;  %12608 = vmatpush3.msra.mxu0 %v2336_v44  ;;  %v2862_v44 = vld [vmem:[#allocation6 + $0x2b8] sm:$0xff] }
  0xe2   :  { %12516 = vmatprep.mubr.f32.mxu1 %v19720_v50  ;;  %12609 = vmatprep.subr.mxu0 %v2335_v14  ;;  %v2863_v50 = vld [vmem:[#allocation6 + $0x2c0] sm:$0xff] }
  0xe3   :  { %12736 = vmatpush3.msra.mxu1 %v2865_v6  ;;  %12392 = vmatmul.mubr.f32.gmra.mxu0 %v15105_v63  ;;  %v15124_v6 = vld [vmem:[#allocation2 + $0xda] sm:$0xff] }
  0xe4   :  { %12737 = vmatprep.subr.mxu1 %v2864_v58  ;;  %12394 = vmatprep.mubr.f32.mxu0 %v15108_v43 }
  0xe5   :  { %12517 = vmatmul.mubr.f32.gmra.mxu1 %v19722_v32  ;;  %v19724_v32 = vld [vmem:[#allocation18_spill] sm:$0xff]  ;;  %12610 = vmatpush3.msra.mxu0 %v2335_v14  ;;  %v2332_v14 = vld [vmem:[#allocation6 + $0x230] sm:$0xff] }
  0xe6   :  { %12519 = vmatprep.mubr.f32.mxu1 %v19723_v31  ;;  %12611 = vmatprep.subr.mxu0 %v2334_v25  ;;  %v2333_v31 = vld [vmem:[#allocation6 + $0x238] sm:$0xff] }
  0xe7   :  { %12738 = vmatpush3.msra.mxu1 %v2864_v58  ;;  %12395 = vmatmul.mubr.f32.gmra.mxu0 %v15113_v0  ;;  %v2861_v58 = vld [vmem:[#allocation6 + $0x2b0] sm:$0xff] }
  0xe8   :  { %12739 = vmatprep.subr.mxu1 %v2863_v50  ;;  %12397 = vmatprep.mubr.f32.mxu0 %v15116_v57 }
  0xe9   :  { %12520 = vmatmul.mubr.f32.gmra.mxu1 %v14864_v54  ;;  %v15121_v54 = vld [vmem:[#allocation2 + $0xca] sm:$0xff]  ;;  %12612 = vmatpush3.msra.mxu0 %v2334_v25 }
  0xea   :  { %12522 = vmatprep.mubr.f32.mxu1 %v19724_v32  ;;  %12613 = vmatprep.subr.mxu0 %v2333_v31  ;;  %v15132_v32 = vld [vmem:[#allocation2 + $0xf2] sm:$0xff]  ;;  %v2860_v25 = vld [vmem:[#allocation6 + $0x2a8] sm:$0xff] }
  0xeb   :  { %12740 = vmatpush3.msra.mxu1 %v2863_v50  ;;  %12398 = vmatmul.mubr.f32.gmra.mxu0 %v15121_v54  ;;  %v1226_v50 = vld [vmem:[#allocation2 + $0x10a] sm:$0xff] }
  0xec   :  { %12741 = vmatprep.subr.mxu1 %v2862_v44  ;;  %12400 = vmatprep.mubr.f32.mxu0 %v15124_v6 }
  0xed   :  { %12523 = vmatmul.mubr.f32.gmra.mxu1 %v14874_v15  ;;  %v15129_v15 = vld [vmem:[#allocation2 + $0xe2] sm:$0xff]  ;;  %12614 = vmatpush3.msra.mxu0 %v2333_v31  ;;  %v1227_v31 = vld [vmem:[#allocation2 + $0x112] sm:$0xff] }
  0xee   :  { %12525 = vmatprep.mubr.f32.mxu1 %v14876_v49  ;;  %12615 = vmatprep.subr.mxu0 %v2332_v14  ;;  %v2331_v49 = vld [vmem:[#allocation6 + $0x228] sm:$0xff] }
  0xef   :  { %12742 = vmatpush3.msra.mxu1 %v2862_v44  ;;  %12401 = vmatmul.mubr.f32.gmra.mxu0 %v15129_v15  ;;  %v1228_v44 = vld [vmem:[#allocation2 + $0x122] sm:$0xff] }
  0xf0   :  { %12743 = vmatprep.subr.mxu1 %v2861_v58  ;;  %12403 = vmatprep.mubr.f32.mxu0 %v15132_v32 }
  0xf1   :  { %12526 = vmatmul.mubr.f32.gmra.mxu1 %v14882_v36  ;;  %v15137_v36 = vld [vmem:[#allocation2 + $0xfa] sm:$0xff]  ;;  %12616 = vmatpush3.msra.mxu0 %v2332_v14  ;;  %v1229_v14 = vld [vmem:[#allocation2 + $0x12a] sm:$0xff] }
  0xf2   :  { %12528 = vmatprep.mubr.f32.mxu1 %v14884_v33  ;;  %19725 = vst [vmem:[#allocation15_spill] sm:$0xff] %v15137_v36  ;;  %12617 = vmatprep.subr.mxu0 %v2331_v49  ;;  %v2330_v33 = vld [vmem:[#allocation6 + $0x220] sm:$0xff] }
  0xf3   :  { %12744 = vmatpush3.msra.mxu1 %v2861_v58  ;;  %12404 = vmatmul.mubr.f32.gmra.mxu0 %v15137_v36  ;;  %v2858_v58 = vld [vmem:[#allocation6 + $0x298] sm:$0xff]  ;;  %v19726_v36 = vld [vmem:[#allocation19_spill] sm:$0xff] }
  0xf4   :  { %12745 = vmatprep.subr.mxu1 %v2860_v25  ;;  %12406 = vmatprep.mubr.f32.mxu0 %v1226_v50  ;;  %v1233_v50 = vld [vmem:[#allocation2 + $0x15a] sm:$0xff] }
  0xf5   :  { %12529 = vmatmul.mubr.f32.gmra.mxu1 %v14890_v39  ;;  %v2859_v39 = vld [vmem:[#allocation6 + $0x2a0] sm:$0xff]  ;;  %12618 = vmatpush3.msra.mxu0 %v2331_v49 }
  0xf6   :  { %12531 = vmatprep.mubr.f32.mxu1 %v14892_v27  ;;  %12619 = vmatprep.subr.mxu0 %v2330_v33  ;;  %v2329_v27 = vld [vmem:[#allocation6 + $0x218] sm:$0xff]  ;;  %v1231_v49 = vld [vmem:[#allocation2 + $0x142] sm:$0xff] }
  0xf7   :  { %12746 = vmatpush3.msra.mxu1 %v2860_v25  ;;  %12407 = vmatmul.mubr.f32.gmra.mxu0 %v1227_v31  ;;  %v2857_v25 = vld [vmem:[#allocation6 + $0x290] sm:$0xff]  ;;  %v1763_v31 = vld [vmem:[#allocation2 + $0x180] sm:$0xff] }
  0xf8   :  { %12747 = vmatprep.subr.mxu1 %v2859_v39  ;;  %12409 = vmatprep.mubr.f32.mxu0 %v1228_v44  ;;  %v2855_v44 = vld [vmem:[#allocation6 + $0x280] sm:$0xff] }
  0xf9   :  { %12532 = vmatmul.mubr.f32.gmra.mxu1 %v14898_v41  ;;  %v1230_v41 = vld [vmem:[#allocation2 + $0x13a] sm:$0xff]  ;;  %12620 = vmatpush3.msra.mxu0 %v2330_v33  ;;  %v2856_v33 = vld [vmem:[#allocation6 + $0x288] sm:$0xff] }
  0xfa   :  { %12534 = vmatprep.mubr.f32.mxu1 %v14900_v34  ;;  %12621 = vmatprep.subr.mxu0 %v2329_v27  ;;  %v2328_v34 = vld [vmem:[#allocation6 + $0x210] sm:$0xff] }
  0xfb   :  { %12748 = vmatpush3.msra.mxu1 %v2859_v39  ;;  %12410 = vmatmul.mubr.f32.gmra.mxu0 %v1229_v14  ;;  %v1235_v39 = vld [vmem:[#allocation2 + $0x172] sm:$0xff]  ;;  %v1237_v14 = vld [vmem:[#allocation2 + $0x1ba] sm:$0xff] }
  0xfc   :  { %12749 = vmatprep.subr.mxu1 %v2858_v58  ;;  %12412 = vmatprep.mubr.f32.mxu0 %v1230_v41 }
  0xfd   :  { %12535 = vmatmul.mubr.f32.gmra.mxu1 %v14906_v47  ;;  %v1232_v47 = vld [vmem:[#allocation2 + $0x152] sm:$0xff]  ;;  %12622 = vmatpush3.msra.mxu0 %v2329_v27 }
  0xfe   :  { %12537 = vmatprep.mubr.f32.mxu1 %v19726_v36  ;;  %12623 = vmatprep.subr.mxu0 %v2328_v34  ;;  %v2327_v36 = vld [vmem:[#allocation6 + $0x208] sm:$0xff]  ;;  %v1236_v27 = vld [vmem:[#allocation2 + $0x1b2] sm:$0xff] }
  0xff   :  { %12750 = vmatpush3.msra.mxu1 %v2858_v58  ;;  %12413 = vmatmul.mubr.f32.gmra.mxu0 %v1231_v49  ;;  %v1238_v58 = vld [vmem:[#allocation2 + $0x1ca] sm:$0xff] }
 0x100   :  { %12751 = vmatprep.subr.mxu1 %v2857_v25  ;;  %12415 = vmatprep.mubr.f32.mxu0 %v1232_v47  ;;  %v1240_v47 = vld [vmem:[#allocation2 + $0x1e2] sm:$0xff] }
 0x101   :  { %12538 = vmatmul.mubr.f32.gmra.mxu1 %v14914_v53  ;;  %v1234_v53 = vld [vmem:[#allocation2 + $0x16a] sm:$0xff]  ;;  %12624 = vmatpush3.msra.mxu0 %v2328_v34  ;;  %v1239_v34 = vld [vmem:[#allocation2 + $0x1d2] sm:$0xff] }
 0x102   :  { %12540 = vmatprep.mubr.f32.mxu1 %v14916_v37  ;;  %12625 = vmatprep.subr.mxu0 %v2327_v36  ;;  %v2326_v37 = vld [vmem:[#allocation6 + $0x200] sm:$0xff] }
 0x103   :  { %12752 = vmatpush3.msra.mxu1 %v2857_v25  ;;  %12416 = vmatmul.mubr.f32.gmra.mxu0 %v1233_v50 }
 0x104   :  { %12753 = vmatprep.subr.mxu1 %v2856_v33  ;;  %12418 = vmatprep.mubr.f32.mxu0 %v1234_v53  ;;  %v1241_v53 = vld [vmem:[#allocation2 + $0x1ea] sm:$0xff] }
 0x105   :  { %12541 = vmatmul.mubr.f32.gmra.mxu1 %v14922_v40  ;;  %v1764_v40 = vld [vmem:[#allocation2 + $0x188] sm:$0xff]  ;;  %12626 = vmatpush3.msra.mxu0 %v2327_v36 }
 0x106   :  { %12543 = vmatprep.mubr.f32.mxu1 %v14924_v35  ;;  %12627 = vmatprep.subr.mxu0 %v2326_v37  ;;  %v15150_v35 = vld [vmem:[#allocation6 + $0x378] sm:$0xff] }
 0x107   :  { %12754 = vmatpush3.msra.mxu1 %v2856_v33  ;;  %12419 = vmatmul.mubr.f32.gmra.mxu0 %v1235_v39  ;;  %v12247_v41 = vpop.f32.mrf.mxu1 }
 0x108   :  { %12755 = vmatprep.subr.mxu1 %v2855_v44  ;;  %12421 = vmatprep.mubr.f32.mxu0 %v1236_v27  ;;  %v1243_v27 = vld [vmem:[#allocation2 + $0x202] sm:$0xff] }
 0x109   :  { %12544 = vmatmul.mubr.f32.gmra.mxu1 %v14930_v42  ;;  %12628 = vmatpush3.msra.mxu0 %v2326_v37  ;;  %v12119_v42 = vpop.f32.mrf.mxu0  ;;  %v885_v36 = vpop.f32.mrf.mxu1  ;;  %v1242_v37 = vld [vmem:[#allocation2 + $0x1fa] sm:$0xff] }
 0x10a   :  { %12546 = vmatprep.mubr.f32.mxu1 %v1763_v31  ;;  %12853 = vmatprep.subr.mxu0 %v15150_v35  ;;  %v15155_v49 = vadd.f32 %v12247_v41, %v12119_v42 }
 0x10b   :  { %12756 = vmatpush3.msra.mxu1 %v2855_v44  ;;  %12422 = vmatmul.mubr.f32.gmra.mxu0 %v1237_v14  ;;  %v500_v25 = vpop.f32.mrf.mxu0 }
 0x10c   :  { %12424 = vmatprep.mubr.f32.mxu0 %v1238_v58  ;;  %v1244_v58 = vld [vmem:[#allocation2 + $0x212] sm:$0xff] }
 0x10d   :  { %12547 = vmatmul.mubr.f32.gmra.mxu1 %v1764_v40  ;;  %v12122_v50 = vpop.f32.mrf.mxu0 }
 0x10e   :  { %12549 = vmatprep.mubr.f32.mxu1 %v14937_v26  ;;  %v15158_v26 = vadd.f32 %v885_v36, %v500_v25  ;;  %v1245_v25 = vld [vmem:[#allocation2 + $0x21a] sm:$0xff]  ;;  %v1246_v36 = vld [vmem:[#allocation2 + $0x22a] sm:$0xff] }
 0x10f   :  { %12425 = vmatmul.mubr.f32.gmra.mxu0 %v1239_v34 }
 0x110   :  { %12427 = vmatprep.mubr.f32.mxu0 %v1240_v47 }
 0x111   :  { %12550 = vmatmul.mubr.f32.gmra.mxu1 %v14943_v1  ;;  %v510_v1 = vpop.f32.mrf.mxu0 }
 0x112   :  { %12552 = vmatprep.mubr.f32.mxu1 %v14945_v55 }
 0x113   :  { %v12125_v55 = vpop.f32.mrf.mxu0  ;;  %12428 = vmatmul.mubr.f32.gmra.mxu0 %v1241_v53 }
 0x114   :  { %12430 = vmatprep.mubr.f32.mxu0 %v1242_v37 }
 0x115   :  { %v12250_v33 = vpop.f32.mrf.mxu1  ;;  %12553 = vmatmul.mubr.f32.gmra.mxu1 %v14951_v60  ;;  %v520_v60 = vpop.f32.mrf.mxu0 }
 0x116   :  { %v15161_v31 = vadd.f32 %v12250_v33, %v12122_v50  ;;  %12555 = vmatprep.mubr.f32.mxu1 %v14953_v4 }
 0x117   :  { %v895_v39 = vpop.f32.mrf.mxu1  ;;  %v12128_v4 = vpop.f32.mrf.mxu0  ;;  %12431 = vmatmul.mubr.f32.gmra.mxu0 %v1243_v27 }
 0x118   :  { %v15164_v44 = vadd.f32 %v895_v39, %v510_v1  ;;  %12433 = vmatprep.mubr.f32.mxu0 %v1244_v58  ;;  %v1247_v1 = vld [vmem:[#allocation2 + $0x232] sm:$0xff]  ;;  %v1248_v39 = vld [vmem:[#allocation2 + $0x242] sm:$0xff] }
 0x119   :  { %v12253_v40 = vpop.f32.mrf.mxu1  ;;  %12556 = vmatmul.mubr.f32.gmra.mxu1 %v14959_v5  ;;  %v530_v5 = vpop.f32.mrf.mxu0 }
 0x11a   :  { %v15167_v14 = vadd.f32 %v12253_v40, %v12125_v55  ;;  %12558 = vmatprep.mubr.f32.mxu1 %v14961_v2 }
 0x11b   :  { %v905_v42 = vpop.f32.mrf.mxu1  ;;  %v12131_v2 = vpop.f32.mrf.mxu0  ;;  %12434 = vmatmul.mubr.f32.gmra.mxu0 %v1245_v25 }
 0x11c   :  { %v15170_v41 = vadd.f32 %v905_v42, %v520_v60  ;;  %12436 = vmatprep.mubr.f32.mxu0 %v1246_v36  ;;  %v1249_v60 = vld [vmem:[#allocation2 + $0x24a] sm:$0xff]  ;;  %v1250_v42 = vld [vmem:[#allocation2 + $0x25a] sm:$0xff] }
 0x11d   :  { %v12256_v34 = vpop.f32.mrf.mxu1  ;;  %12559 = vmatmul.mubr.f32.gmra.mxu1 %v14967_v7  ;;  %v540_v7 = vpop.f32.mrf.mxu0 }
 0x11e   :  { %v15173_v47 = vadd.f32 %v12256_v34, %v12128_v4  ;;  %12561 = vmatprep.mubr.f32.mxu1 %v14969_v8 }
 0x11f   :  { %v915_v50 = vpop.f32.mrf.mxu1  ;;  %v12134_v8 = vpop.f32.mrf.mxu0  ;;  %12437 = vmatmul.mubr.f32.gmra.mxu0 %v1247_v1 }
 0x120   :  { %v15176_v33 = vadd.f32 %v915_v50, %v530_v5  ;;  %12439 = vmatprep.mubr.f32.mxu0 %v1248_v39  ;;  %v1251_v5 = vld [vmem:[#allocation2 + $0x262] sm:$0xff]  ;;  %v1252_v50 = vld [vmem:[#allocation2 + $0x272] sm:$0xff] }
 0x121   :  { %v12259_v53 = vpop.f32.mrf.mxu1  ;;  %12562 = vmatmul.mubr.f32.gmra.mxu1 %v14975_v9  ;;  %v550_v9 = vpop.f32.mrf.mxu0 }
 0x122   :  { %v15179_v37 = vadd.f32 %v12259_v53, %v12131_v2  ;;  %12564 = vmatprep.mubr.f32.mxu1 %v14977_v10 }
 0x123   :  { %v925_v55 = vpop.f32.mrf.mxu1  ;;  %v12137_v10 = vpop.f32.mrf.mxu0  ;;  %12440 = vmatmul.mubr.f32.gmra.mxu0 %v1249_v60 }
 0x124   :  { %v15182_v40 = vadd.f32 %v925_v55, %v540_v7  ;;  %12442 = vmatprep.mubr.f32.mxu0 %v1250_v42  ;;  %v1253_v7 = vld [vmem:[#allocation2 + $0x27a] sm:$0xff]  ;;  %v1254_v55 = vld [vmem:[#allocation2 + $0x28a] sm:$0xff] }
 0x125   :  { %v12262_v27 = vpop.f32.mrf.mxu1  ;;  %12565 = vmatmul.mubr.f32.gmra.mxu1 %v14983_v12  ;;  %v560_v12 = vpop.f32.mrf.mxu0 }
 0x126   :  { %v15185_v58 = vadd.f32 %v12262_v27, %v12134_v8  ;;  %12567 = vmatprep.mubr.f32.mxu1 %v14985_v13 }
 0x127   :  { %v935_v4 = vpop.f32.mrf.mxu1  ;;  %v12140_v13 = vpop.f32.mrf.mxu0  ;;  %12443 = vmatmul.mubr.f32.gmra.mxu0 %v1251_v5 }
 0x128   :  { %v15188_v34 = vadd.f32 %v935_v4, %v550_v9  ;;  %12445 = vmatprep.mubr.f32.mxu0 %v1252_v50  ;;  %v1255_v9 = vld [vmem:[#allocation2 + $0x292] sm:$0xff]  ;;  %v1256_v4 = vld [vmem:[#allocation2 + $0x2a2] sm:$0xff] }
 0x129   :  { %v12265_v25 = vpop.f32.mrf.mxu1  ;;  %12568 = vmatmul.mubr.f32.gmra.mxu1 %v14991_v16  ;;  %v570_v16 = vpop.f32.mrf.mxu0 }
 0x12a   :  { %v15191_v36 = vadd.f32 %v12265_v25, %v12137_v10  ;;  %12570 = vmatprep.mubr.f32.mxu1 %v14993_v17  ;;  %v15206_v10 = vld [vmem:[#allocation6 + $0x3f8] sm:$0xff] }
 0x12b   :  { %v945_v2 = vpop.f32.mrf.mxu1  ;;  %v12143_v17 = vpop.f32.mrf.mxu0  ;;  %12446 = vmatmul.mubr.f32.gmra.mxu0 %v1253_v7  ;;  %12981 = vmatprep.subr.mxu1 %v15206_v10 }
 0x12c   :  { %v15194_v53 = vadd.f32 %v945_v2, %v560_v12  ;;  %12448 = vmatprep.mubr.f32.mxu0 %v1254_v55  ;;  %v1259_v55 = vld [vmem:[#allocation2 + $0x2c2] sm:$0xff] }
 0x12d   :  { %v12268_v1 = vpop.f32.mrf.mxu1  ;;  %12571 = vmatmul.mubr.f32.gmra.mxu1 %v14999_v22  ;;  %v580_v22 = vpop.f32.mrf.mxu0 }
 0x12e   :  { %v15197_v39 = vadd.f32 %v12268_v1, %v12140_v13  ;;  %12573 = vmatprep.mubr.f32.mxu1 %v15001_v19 }
 0x12f   :  { %v955_v8 = vpop.f32.mrf.mxu1  ;;  %v12146_v5 = vpop.f32.mrf.mxu0  ;;  %12449 = vmatmul.mubr.f32.gmra.mxu0 %v1255_v9 }
 0x130   :  { %v15200_v27 = vadd.f32 %v955_v8, %v570_v16  ;;  %12451 = vmatprep.mubr.f32.mxu0 %v1256_v4  ;;  %v1261_v4 = vld [vmem:[#allocation2 + $0x2da] sm:$0xff] }
 0x131   :  { %v12271_v60 = vpop.f32.mrf.mxu1  ;;  %12574 = vmatmul.mubr.f32.gmra.mxu1 %v15007_v20  ;;  %v1257_v20 = vld [vmem:[#allocation2 + $0x2aa] sm:$0xff]  ;;  %v590_v2 = vpop.f32.mrf.mxu0 }
 0x132   :  { %v15203_v42 = vadd.f32 %v12271_v60, %v12143_v17  ;;  %12576 = vmatprep.mubr.f32.mxu1 %v15009_v61  ;;  %v1258_v61 = vld [vmem:[#allocation2 + $0x2ba] sm:$0xff]  ;;  %v1260_v17 = vld [vmem:[#allocation2 + $0x2d2] sm:$0xff] }
 0x133   :  { %v965_v19 = vpop.f32.mrf.mxu1  ;;  %v12149_v7 = vpop.f32.mrf.mxu0  ;;  %12452 = vmatmul.mubr.f32.gmra.mxu0 %v1257_v20 }
 0x134   :  { %v15209_v25 = vadd.f32 %v965_v19, %v580_v22  ;;  %12454 = vmatprep.mubr.f32.mxu0 %v1258_v61  ;;  %v1263_v61 = vld [vmem:[#allocation2 + $0x2f2] sm:$0xff] }
 0x135   :  { %v12274_v12 = vpop.f32.mrf.mxu1  ;;  %12577 = vmatmul.mubr.f32.gmra.mxu1 %v15015_v38  ;;  %v600_v38 = vpop.f32.mrf.mxu0 }
 0x136   :  { %v15212_v50 = vadd.f32 %v12274_v12, %v12146_v5  ;;  %12579 = vmatprep.mubr.f32.mxu1 %v15017_v21  ;;  %v1262_v5 = vld [vmem:[#allocation2 + $0x2ea] sm:$0xff] }
 0x137   :  { %v975_v13 = vpop.f32.mrf.mxu1  ;;  %v12152_v21 = vpop.f32.mrf.mxu0  ;;  %12455 = vmatmul.mubr.f32.gmra.mxu0 %v1259_v55 }
 0x138   :  { %v15215_v1 = vadd.f32 %v975_v13, %v590_v2  ;;  %12457 = vmatprep.mubr.f32.mxu0 %v1260_v17  ;;  %v1265_v17 = vld [vmem:[#allocation2 + $0x30a] sm:$0xff] }
 0x139   :  { %v12277_v16 = vpop.f32.mrf.mxu1  ;;  %12580 = vmatmul.mubr.f32.gmra.mxu1 %v15023_v23  ;;  %v610_v23 = vpop.f32.mrf.mxu0 }
 0x13a   :  { %v15218_v8 = vadd.f32 %v12277_v16, %v12149_v7  ;;  %12582 = vmatprep.mubr.f32.mxu1 %v15025_v48  ;;  %v1264_v7 = vld [vmem:[#allocation2 + $0x302] sm:$0xff] }
 0x13b   :  { %v985_v60 = vpop.f32.mrf.mxu1  ;;  %v12155_v48 = vpop.f32.mrf.mxu0  ;;  %12458 = vmatmul.mubr.f32.gmra.mxu0 %v1261_v4  ;;  %v1795_v4 = vld [vmem:[#allocation2 + $0x330] sm:$0xff] }
 0x13c   :  { %v15221_v9 = vadd.f32 %v985_v60, %v600_v38  ;;  %12460 = vmatprep.mubr.f32.mxu0 %v1262_v5 }
 0x13d   :  { %v12280_v22 = vpop.f32.mrf.mxu1  ;;  %12583 = vmatmul.mubr.f32.gmra.mxu1 %v15031_v51  ;;  %v620_v51 = vpop.f32.mrf.mxu0 }
 0x13e   :  { %v15224_v19 = vadd.f32 %v12280_v22, %v12152_v21  ;;  %12585 = vmatprep.mubr.f32.mxu1 %v15033_v24  ;;  %v1266_v21 = vld [vmem:[#allocation2 + $0x31a] sm:$0xff] }
 0x13f   :  { %v995_v12 = vpop.f32.mrf.mxu1  ;;  %v12158_v24 = vpop.f32.mrf.mxu0  ;;  %12461 = vmatmul.mubr.f32.gmra.mxu0 %v1263_v61  ;;  %v2262_v61 = vld [vmem:[#allocation2 + $0x19] sm:$0xff] }
 0x140   :  { %v15227_v20 = vadd.f32 %v995_v12, %v610_v23  ;;  %12463 = vmatprep.mubr.f32.mxu0 %v1264_v7  ;;  %v1267_v12 = vld [vmem:[#allocation2 + $0x322] sm:$0xff] }
 0x141   :  { %v12283_v2 = vpop.f32.mrf.mxu1  ;;  %12586 = vmatmul.mubr.f32.gmra.mxu1 %v15039_v56  ;;  %v630_v56 = vpop.f32.mrf.mxu0 }
 0x142   :  { %v15230_v13 = vadd.f32 %v12283_v2, %v12155_v48  ;;  %12588 = vmatprep.mubr.f32.mxu1 %v15041_v62  ;;  %v1796_v2 = vld [vmem:[#allocation2 + $0x338] sm:$0xff] }
 0x143   :  { %v1005_v16 = vpop.f32.mrf.mxu1  ;;  %v12161_v23 = vpop.f32.mrf.mxu0  ;;  %12464 = vmatmul.mubr.f32.gmra.mxu0 %v1265_v17 }
 0x144   :  { %v15233_v55 = vadd.f32 %v1005_v16, %v620_v51  ;;  %12466 = vmatprep.mubr.f32.mxu0 %v1266_v21 }
 0x145   :  { %v12286_v38 = vpop.f32.mrf.mxu1  ;;  %12589 = vmatmul.mubr.f32.gmra.mxu1 %v15047_v29  ;;  %v640_v48 = vpop.f32.mrf.mxu0 }
 0x146   :  { %v15236_v60 = vadd.f32 %v12286_v38, %v12158_v24  ;;  %12591 = vmatprep.mubr.f32.mxu1 %v15049_v45  ;;  %v2263_v24 = vld [vmem:[#allocation2 + $0x21] sm:$0xff] }
 0x147   :  { %v1015_v22 = vpop.f32.mrf.mxu1  ;;  %v12164_v7 = vpop.f32.mrf.mxu0  ;;  %12467 = vmatmul.mubr.f32.gmra.mxu0 %v1267_v12  ;;  %v3928_v12 = vld [vmem:[#allocation6 + $0x3f0] sm:$0xff] }
 0x148   :  { %v15239_v62 = vadd.f32 %v1015_v22, %v630_v56  ;;  %12629 = vmatprep.mubr.f32.mxu0 %v2262_v61  ;;  %v2264_v56 = vld [vmem:[#allocation2 + $0x31] sm:$0xff] }
 0x149   :  { %v12289_v5 = vpop.f32.mrf.mxu1  ;;  %12592 = vmatmul.mubr.f32.gmra.mxu1 %v15055_v46  ;;  %v650_v46 = vpop.f32.mrf.mxu0 }
 0x14a   :  { %v15242_v29 = vadd.f32 %v12289_v5, %v12161_v23  ;;  %12594 = vmatprep.mubr.f32.mxu1 %v1795_v4  ;;  %v3399_v4 = vld [vmem:[#allocation6 + $0x370] sm:$0xff]  ;;  %v2265_v5 = vld [vmem:[#allocation2 + $0x39] sm:$0xff] }
 0x14b   :  { %v1025_v51 = vpop.f32.mrf.mxu1  ;;  %v12167_v22 = vpop.f32.mrf.mxu0  ;;  %12630 = vmatmul.mubr.f32.vlgmr.msra.gmra.mxu0 %v2263_v24  ;;  %v3927_v24 = vld [vmem:[#allocation6 + $0x3e8] sm:$0xff] }
 0x14c   :  { %v15244_v45 = vadd.f32 %v1025_v51, %v640_v48  ;;  %12854 = vmatpush3.msra.mxu0 %v15150_v35  ;;  %12632 = vmatprep.mubr.f32.mxu0 %v2264_v56  ;;  %v3398_v35 = vld [vmem:[#allocation6 + $0x368] sm:$0xff] }
 0x14d   :  { %v12292_v16 = vpop.f32.mrf.mxu1  ;;  %12595 = vmatmul.mubr.f32.gmra.mxu1 %v1796_v2  ;;  %v660_v2 = vpop.f32.mrf.mxu0  ;;  %12855 = vmatprep.subr.mxu0 %v3399_v4 }
 0x14e   :  { %v15246_v38 = vadd.f32 %v12292_v16, %v12164_v7  ;;  %12757 = vmatprep.mubr.f32.mxu1 %v15060_v30  ;;  %v2266_v30 = vld [vmem:[#allocation2 + $0x49] sm:$0xff]  ;;  %v2267_v16 = vld [vmem:[#allocation2 + $0x51] sm:$0xff]  ;;  %12856 = vmatpush3.msra.mxu0 %v3399_v4 }
 0x14f   :  { %v1035_v17 = vpop.f32.mrf.mxu1  ;;  %v12170_v7 = vpop.f32.mrf.mxu0  ;;  %12633 = vmatmul.mubr.f32.gmra.mxu0 %v2265_v5  ;;  %12857 = vmatprep.subr.mxu0 %v3398_v35  ;;  %v2269_v5 = vld [vmem:[#allocation2 + $0x69] sm:$0xff]  ;;  %v19727_v4 = vld [vmem:[#allocation20_spill] sm:$0xff] }
 0x150   :  { %v15249_v21 = vadd.f32 %v1035_v17, %v650_v46  ;;  %12635 = vmatprep.mubr.f32.mxu0 %v2266_v30  ;;  %v2268_v17 = vld [vmem:[#allocation2 + $0x61] sm:$0xff]  ;;  %12858 = vmatpush3.msra.mxu0 %v3398_v35  ;;  %v2272_v35 = vld [vmem:[#allocation2 + $0x91] sm:$0xff] }
 0x151   :  { %v12295_v23 = vpop.f32.mrf.mxu1  ;;  %12758 = vmatmul.mubr.f32.vlgmr.msra.gmra.mxu1 %v15064_v3 }
 0x152   :  { %v15253_v48 = vadd.f32 %v12295_v23, %v12167_v22  ;;  %12760 = vmatprep.mubr.f32.mxu1 %v15068_v59  ;;  %12982 = vmatpush3.msra.mxu1 %v15206_v10  ;;  %v670_v59 = vpop.f32.mrf.mxu0  ;;  %v3397_v23 = vld [vmem:[#allocation6 + $0x360] sm:$0xff] }
 0x153   :  { %v1045_v61 = vpop.f32.mrf.mxu1  ;;  %12983 = vmatprep.subr.mxu1 %v3928_v12  ;;  %12636 = vmatmul.mubr.f32.gmra.mxu0 %v2267_v16  ;;  %v3396_v16 = vld [vmem:[#allocation6 + $0x358] sm:$0xff] }
 0x154   :  { %v15257_v51 = vadd.f32 %v1045_v61, %v660_v2  ;;  %12984 = vmatpush3.msra.mxu1 %v3928_v12  ;;  %v12173_v22 = vpop.f32.mrf.mxu0  ;;  %12638 = vmatprep.mubr.f32.mxu0 %v2268_v17  ;;  %v3926_v2 = vld [vmem:[#allocation6 + $0x3e0] sm:$0xff] }
 0x155   :  { %v12298_v3 = vpop.f32.mrf.mxu1  ;;  %12761 = vmatmul.mubr.f32.gmra.mxu1 %v15073_v11  ;;  %12985 = vmatprep.subr.mxu1 %v3927_v24  ;;  %v2270_v61 = vld [vmem:[#allocation2 + $0x79] sm:$0xff]  ;;  %v2271_v17 = vld [vmem:[#allocation2 + $0x81] sm:$0xff] }
 0x156   :  { %v15260_v46 = vadd.f32 %v12298_v3, %v12170_v7  ;;  %12763 = vmatprep.mubr.f32.mxu1 %v15076_v28  ;;  %v680_v28 = vpop.f32.mrf.mxu0  ;;  %12859 = vmatprep.subr.mxu0 %v3397_v23 }
 0x157   :  { %v1055_v10 = vpop.f32.mrf.mxu1  ;;  %12986 = vmatpush3.msra.mxu1 %v3927_v24  ;;  %12639 = vmatmul.mubr.f32.gmra.mxu0 %v2269_v5 }
 0x158   :  { %v15263_v56 = vadd.f32 %v1055_v10, %v670_v59  ;;  %v12176_v3 = vpop.f32.mrf.mxu0  ;;  %12987 = vmatprep.subr.mxu1 %v3926_v2  ;;  %v19728_v59 = vld [vmem:[#allocation21_spill] sm:$0xff]  ;;  %12641 = vmatprep.mubr.f32.mxu0 %v2270_v61  ;;  %v3925_v10 = vld [vmem:[#allocation6 + $0x3d8] sm:$0xff] }
 0x159   :  { %v12301_v11 = vpop.f32.mrf.mxu1  ;;  %12764 = vmatmul.mubr.f32.gmra.mxu1 %v15081_v18  ;;  %12860 = vmatpush3.msra.mxu0 %v3397_v23  ;;  %v2273_v61 = vld [vmem:[#allocation2 + $0x99] sm:$0xff]  ;;  %v2274_v23 = vld [vmem:[#allocation2 + $0xa9] sm:$0xff] }
 0x15a   :  { %v15266_v30 = vadd.f32 %v12301_v11, %v12173_v22  ;;  %12766 = vmatprep.mubr.f32.mxu1 %v19727_v4  ;;  %v690_v11 = vpop.f32.mrf.mxu0  ;;  %v19730_v4 = vld [vmem:[#allocation13_spill] sm:$0xff]  ;;  %12861 = vmatprep.subr.mxu0 %v3396_v16 }
 0x15b   :  { %v1065_v12 = vpop.f32.mrf.mxu1  ;;  %12988 = vmatpush3.msra.mxu1 %v3926_v2  ;;  %12642 = vmatmul.mubr.f32.gmra.mxu0 %v2271_v17 }
 0x15c   :  { %v15269_v7 = vadd.f32 %v1065_v12, %v680_v28  ;;  %v12179_v5 = vpop.f32.mrf.mxu0  ;;  %v3395_v12 = vld [vmem:[#allocation6 + $0x350] sm:$0xff]  ;;  %12989 = vmatprep.subr.mxu1 %v3925_v10  ;;  %12644 = vmatprep.mubr.f32.mxu0 %v2272_v35 }
 0x15d   :  { %v12304_v18 = vpop.f32.mrf.mxu1  ;;  %12767 = vmatmul.mubr.f32.gmra.mxu1 %v19728_v59  ;;  %12862 = vmatpush3.msra.mxu0 %v3396_v16  ;;  %v2275_v35 = vld [vmem:[#allocation2 + $0xb1] sm:$0xff]  ;;  %v2276_v16 = vld [vmem:[#allocation2 + $0xc1] sm:$0xff] }
 0x15e   :  { %v15272_v22 = vadd.f32 %v12304_v18, %v12176_v3  ;;  %12769 = vmatprep.mubr.f32.mxu1 %v19730_v4  ;;  %v3924_v3 = vld [vmem:[#allocation6 + $0x3d0] sm:$0xff]  ;;  %v700_v4 = vpop.f32.mrf.mxu0  ;;  %12863 = vmatprep.subr.mxu0 %v3395_v12 }
 0x15f   :  { %v1075_v24 = vpop.f32.mrf.mxu1  ;;  %12990 = vmatpush3.msra.mxu1 %v3925_v10  ;;  %12645 = vmatmul.mubr.f32.gmra.mxu0 %v2273_v61 }
 0x160   :  { %19729 = vst [vmem:[#allocation16_spill] sm:$0xff] %v15272_v22  ;;  %v15275_v28 = vadd.f32 %v1075_v24, %v690_v11  ;;  %v19731_v22 = vld [vmem:[#allocation14_spill] sm:$0xff]  ;;  %v12182_v17 = vpop.f32.mrf.mxu0  ;;  %12991 = vmatprep.subr.mxu1 %v3924_v3  ;;  %12647 = vmatprep.mubr.f32.mxu0 %v2274_v23 }
 0x161   :  { %v12307_v59 = vpop.f32.mrf.mxu1  ;;  %12770 = vmatmul.mubr.f32.gmra.mxu1 %v15097_v52  ;;  %v3394_v24 = vld [vmem:[#allocation6 + $0x348] sm:$0xff]  ;;  %12864 = vmatpush3.msra.mxu0 %v3395_v12  ;;  %v2278_v12 = vld [vmem:[#allocation2 + $0xd9] sm:$0xff] }
 0x162   :  { %v15278_v18 = vadd.f32 %v12307_v59, %v12179_v5  ;;  %12772 = vmatprep.mubr.f32.mxu1 %v19731_v22  ;;  %v3923_v5 = vld [vmem:[#allocation6 + $0x3c8] sm:$0xff]  ;;  %v710_v22 = vpop.f32.mrf.mxu0  ;;  %12865 = vmatprep.subr.mxu0 %v3394_v24 }
 0x163   :  { %v1085_v2 = vpop.f32.mrf.mxu1  ;;  %12992 = vmatpush3.msra.mxu1 %v3924_v3  ;;  %12648 = vmatmul.mubr.f32.gmra.mxu0 %v2275_v35  ;;  %v2277_v23 = vld [vmem:[#allocation2 + $0xc9] sm:$0xff] }
 0x164   :  { %v15281_v11 = vadd.f32 %v1085_v2, %v700_v4  ;;  %v12185_v61 = vpop.f32.mrf.mxu0  ;;  %v3393_v2 = vld [vmem:[#allocation6 + $0x340] sm:$0xff]  ;;  %12993 = vmatprep.subr.mxu1 %v3923_v5  ;;  %12650 = vmatprep.mubr.f32.mxu0 %v2276_v16 }
 0x165   :  { %v12310_v52 = vpop.f32.mrf.mxu1  ;;  %12773 = vmatmul.mubr.f32.gmra.mxu1 %v15105_v63  ;;  %12866 = vmatpush3.msra.mxu0 %v3394_v24  ;;  %v2279_v16 = vld [vmem:[#allocation2 + $0xe1] sm:$0xff]  ;;  %v2280_v24 = vld [vmem:[#allocation2 + $0xf1] sm:$0xff] }
 0x166   :  { %v15284_v59 = vadd.f32 %v12310_v52, %v12182_v17  ;;  %12775 = vmatprep.mubr.f32.mxu1 %v15108_v43  ;;  %v3922_v17 = vld [vmem:[#allocation6 + $0x3c0] sm:$0xff]  ;;  %v720_v43 = vpop.f32.mrf.mxu0  ;;  %12867 = vmatprep.subr.mxu0 %v3393_v2 }
 0x167   :  { %v1095_v10 = vpop.f32.mrf.mxu1  ;;  %12994 = vmatpush3.msra.mxu1 %v3923_v5  ;;  %12651 = vmatmul.mubr.f32.gmra.mxu0 %v2277_v23 }
 0x168   :  { %v15287_v4 = vadd.f32 %v1095_v10, %v710_v22  ;;  %v12188_v35 = vpop.f32.mrf.mxu0  ;;  %v3392_v10 = vld [vmem:[#allocation6 + $0x338] sm:$0xff]  ;;  %12995 = vmatprep.subr.mxu1 %v3922_v17  ;;  %12653 = vmatprep.mubr.f32.mxu0 %v2278_v12 }
 0x169   :  { %v12313_v63 = vpop.f32.mrf.mxu1  ;;  %12776 = vmatmul.mubr.f32.gmra.mxu1 %v15113_v0  ;;  %12868 = vmatpush3.msra.mxu0 %v3393_v2  ;;  %v2281_v12 = vld [vmem:[#allocation2 + $0xf9] sm:$0xff]  ;;  %v2282_v2 = vld [vmem:[#allocation2 + $0x109] sm:$0xff] }
 0x16a   :  { %v15290_v52 = vadd.f32 %v12313_v63, %v12185_v61  ;;  %12778 = vmatprep.mubr.f32.mxu1 %v15116_v57  ;;  %v3921_v61 = vld [vmem:[#allocation6 + $0x3b8] sm:$0xff]  ;;  %v730_v57 = vpop.f32.mrf.mxu0  ;;  %12869 = vmatprep.subr.mxu0 %v3392_v10 }
 0x16b   :  { %v1105_v3 = vpop.f32.mrf.mxu1  ;;  %12996 = vmatpush3.msra.mxu1 %v3922_v17  ;;  %12654 = vmatmul.mubr.f32.gmra.mxu0 %v2279_v16 }
 0x16c   :  { %v15293_v22 = vadd.f32 %v1105_v3, %v720_v43  ;;  %v12191_v23 = vpop.f32.mrf.mxu0  ;;  %v3391_v3 = vld [vmem:[#allocation6 + $0x330] sm:$0xff]  ;;  %12997 = vmatprep.subr.mxu1 %v3921_v61  ;;  %12656 = vmatprep.mubr.f32.mxu0 %v2280_v24 }
 0x16d   :  { %v12316_v0 = vpop.f32.mrf.mxu1  ;;  %12779 = vmatmul.mubr.f32.gmra.mxu1 %v15121_v54  ;;  %12870 = vmatpush3.msra.mxu0 %v3392_v10  ;;  %v19737_v24 = vld [vmem:[#allocation15_spill] sm:$0xff] }
 0x16e   :  { %19732 = vst [vmem:[#allocation17_spill] sm:$0xff] %v15293_v22  ;;  %v15296_v63 = vadd.f32 %v12316_v0, %v12188_v35  ;;  %12781 = vmatprep.mubr.f32.mxu1 %v15124_v6  ;;  %v3920_v35 = vld [vmem:[#allocation6 + $0x3b0] sm:$0xff]  ;;  %v740_v6 = vpop.f32.mrf.mxu0  ;;  %12871 = vmatprep.subr.mxu0 %v3391_v3 }
 0x16f   :  { %v1115_v5 = vpop.f32.mrf.mxu1  ;;  %12998 = vmatpush3.msra.mxu1 %v3921_v61  ;;  %12657 = vmatmul.mubr.f32.gmra.mxu0 %v2281_v12  ;;  %v2812_v10 = vld [vmem:[#allocation2 + $0x112] sm:$0xff] }
 0x170   :  { %19733 = vst [vmem:[#allocation18_spill] sm:$0xff] %v15296_v63  ;;  %v15299_v43 = vadd.f32 %v1115_v5, %v730_v57  ;;  %v2811_v57 = vld [vmem:[#allocation2 + $0x10a] sm:$0xff]  ;;  %v12194_v5 = vpop.f32.mrf.mxu0  ;;  %12999 = vmatprep.subr.mxu1 %v3920_v35  ;;  %12659 = vmatprep.mubr.f32.mxu0 %v2282_v2  ;;  %v2284_v63 = vld [vmem:[#allocation2 + $0x121] sm:$0xff] }
 0x171   :  { %v12319_v54 = vpop.f32.mrf.mxu1  ;;  %12782 = vmatmul.mubr.f32.gmra.mxu1 %v15129_v15  ;;  %12872 = vmatpush3.msra.mxu0 %v3391_v3  ;;  %v2814_v3 = vld [vmem:[#allocation2 + $0x12a] sm:$0xff] }
 0x172   :  { %19734 = vst [vmem:[#allocation19_spill] sm:$0xff] %v15299_v43  ;;  %v15302_v0 = vadd.f32 %v12319_v54, %v12191_v23  ;;  %12784 = vmatprep.mubr.f32.mxu1 %v15132_v32  ;;  %v3390_v43 = vld [vmem:[#allocation6 + $0x328] sm:$0xff]  ;;  %v2283_v23 = vld [vmem:[#allocation2 + $0x111] sm:$0xff]  ;;  %v750_v32 = vpop.f32.mrf.mxu0  ;;  %13000 = vmatpush3.msra.mxu1 %v3920_v35  ;;  %v2815_v35 = vld [vmem:[#allocation2 + $0x13a] sm:$0xff] }
 0x173   :  { %v1125_v17 = vpop.f32.mrf.mxu1  ;;  %v3919_v54 = vld [vmem:[#allocation6 + $0x3a8] sm:$0xff]  ;;  %12873 = vmatprep.subr.mxu0 %v3390_v43  ;;  %12660 = vmatmul.mubr.f32.gmra.mxu0 %v2283_v23 }
 0x174   :  { %19735 = vst [vmem:[#allocation20_spill] sm:$0xff] %v15302_v0  ;;  %v15305_v16 = vadd.f32 %v1125_v17, %v740_v6  ;;  %v2813_v6 = vld [vmem:[#allocation2 + $0x122] sm:$0xff]  ;;  %v12197_v17 = vpop.f32.mrf.mxu0  ;;  %13001 = vmatprep.subr.mxu1 %v3919_v54  ;;  %12662 = vmatprep.mubr.f32.mxu0 %v2284_v63 }
 0x175   :  { %v12322_v15 = vpop.f32.mrf.mxu1  ;;  %12785 = vmatmul.mubr.f32.gmra.mxu1 %v19737_v24  ;;  %12874 = vmatpush3.msra.mxu0 %v3390_v43  ;;  %v2816_v43 = vld [vmem:[#allocation2 + $0x142] sm:$0xff] }
 0x176   :  { %19736 = vst [vmem:[#allocation21_spill] sm:$0xff] %v15305_v16  ;;  %v15308_v0 = vadd.f32 %v12322_v15, %v12194_v5  ;;  %12787 = vmatprep.mubr.f32.mxu1 %v2811_v57  ;;  %v3389_v16 = vld [vmem:[#allocation6 + $0x320] sm:$0xff]  ;;  %v2285_v5 = vld [vmem:[#allocation2 + $0x129] sm:$0xff]  ;;  %v760_v57 = vpop.f32.mrf.mxu0  ;;  %13002 = vmatpush3.msra.mxu1 %v3919_v54  ;;  %v2817_v54 = vld [vmem:[#allocation2 + $0x152] sm:$0xff] }
 0x177   :  { %v1135_v61 = vpop.f32.mrf.mxu1  ;;  %v3918_v15 = vld [vmem:[#allocation6 + $0x3a0] sm:$0xff]  ;;  %12875 = vmatprep.subr.mxu0 %v3389_v16  ;;  %12663 = vmatmul.mubr.f32.gmra.mxu0 %v2285_v5 }
 0x178   :  { %19738 = vst [vmem:[#allocation13_spill] sm:$0xff] %v15308_v0  ;;  %v15310_v12 = vadd.f32 %v1135_v61, %v750_v32  ;;  %v2286_v0 = vld [vmem:[#allocation2 + $0x139] sm:$0xff]  ;;  %v12200_v23 = vpop.f32.mrf.mxu0  ;;  %13003 = vmatprep.subr.mxu1 %v3918_v15  ;;  %12876 = vmatpush3.msra.mxu0 %v3389_v16 }
 0x179   :  { %v12325_v2 = vpop.f32.mrf.mxu1  ;;  %12788 = vmatmul.mubr.f32.gmra.mxu1 %v2812_v10  ;;  %v3388_v61 = vld [vmem:[#allocation6 + $0x318] sm:$0xff]  ;;  %12665 = vmatprep.mubr.f32.mxu0 %v2286_v0  ;;  %v2287_v10 = vld [vmem:[#allocation2 + $0x141] sm:$0xff] }
 0x17a   :  { %19739 = vst [vmem:[#allocation14_spill] sm:$0xff] %v15310_v12  ;;  %v15312_v24 = vadd.f32 %v12325_v2, %v12197_v17  ;;  %12790 = vmatprep.mubr.f32.mxu1 %v2813_v6  ;;  %v3917_v17 = vld [vmem:[#allocation6 + $0x398] sm:$0xff]  ;;  %v770_v6 = vpop.f32.mrf.mxu0  ;;  %12877 = vmatprep.subr.mxu0 %v3388_v61 }
 0x17b   :  { %v1145_v22 = vpop.f32.mrf.mxu1  ;;  %13004 = vmatpush3.msra.mxu1 %v3918_v15  ;;  %12666 = vmatmul.mubr.f32.gmra.mxu0 %v2287_v10  ;;  %v2818_v16 = vld [vmem:[#allocation2 + $0x15a] sm:$0xff]  ;;  %v2819_v15 = vld [vmem:[#allocation2 + $0x16a] sm:$0xff] }
 0x17c   :  { %19740 = vst [vmem:[#allocation15_spill] sm:$0xff] %v15312_v24  ;;  %v15314_v32 = vadd.f32 %v1145_v22, %v760_v57  ;;  %v2288_v24 = vld [vmem:[#allocation2 + $0x151] sm:$0xff]  ;;  %v12203_v5 = vpop.f32.mrf.mxu0  ;;  %13005 = vmatprep.subr.mxu1 %v3917_v17  ;;  %12878 = vmatpush3.msra.mxu0 %v3388_v61 }
 0x17d   :  { %v12328_v63 = vpop.f32.mrf.mxu1  ;;  %12791 = vmatmul.mubr.f32.gmra.mxu1 %v2814_v3  ;;  %v3387_v57 = vld [vmem:[#allocation6 + $0x310] sm:$0xff]  ;;  %12668 = vmatprep.mubr.f32.mxu0 %v2288_v24  ;;  %v2289_v3 = vld [vmem:[#allocation2 + $0x159] sm:$0xff] }
 0x17e   :  { %19741 = vst [vmem:[#allocation22_spill] sm:$0xff] %v15314_v32  ;;  %v15316_v2 = vadd.f32 %v12328_v63, %v12200_v23  ;;  %12793 = vmatprep.mubr.f32.mxu1 %v2815_v35  ;;  %v3916_v23 = vld [vmem:[#allocation6 + $0x390] sm:$0xff]  ;;  %v780_v35 = vpop.f32.mrf.mxu0  ;;  %12879 = vmatprep.subr.mxu0 %v3387_v57 }
 0x17f   :  { %v1155_v12 = vpop.f32.mrf.mxu1  ;;  %13006 = vmatpush3.msra.mxu1 %v3917_v17  ;;  %12669 = vmatmul.mubr.f32.gmra.mxu0 %v2289_v3  ;;  %v2820_v61 = vld [vmem:[#allocation2 + $0x172] sm:$0xff]  ;;  %v2821_v17 = vld [vmem:[#allocation2 + $0x182] sm:$0xff] }
 0x180   :  { %19742 = vst [vmem:[#allocation23_spill] sm:$0xff] %v15316_v2  ;;  %v15318_v22 = vadd.f32 %v1155_v12, %v770_v6  ;;  %v2290_v2 = vld [vmem:[#allocation2 + $0x169] sm:$0xff]  ;;  %v12206_v10 = vpop.f32.mrf.mxu0  ;;  %13007 = vmatprep.subr.mxu1 %v3916_v23  ;;  %12880 = vmatpush3.msra.mxu0 %v3387_v57 }
 0x181   :  { %v12331_v0 = vpop.f32.mrf.mxu1  ;;  %12794 = vmatmul.mubr.f32.gmra.mxu1 %v2816_v43  ;;  %v3386_v6 = vld [vmem:[#allocation6 + $0x308] sm:$0xff]  ;;  %12671 = vmatprep.mubr.f32.mxu0 %v2290_v2  ;;  %v2291_v43 = vld [vmem:[#allocation2 + $0x171] sm:$0xff] }
 0x182   :  { %19743 = vst [vmem:[#allocation24_spill] sm:$0xff] %v15318_v22  ;;  %v15320_v63 = vadd.f32 %v12331_v0, %v12203_v5  ;;  %12796 = vmatprep.mubr.f32.mxu1 %v2817_v54  ;;  %v3915_v5 = vld [vmem:[#allocation6 + $0x388] sm:$0xff]  ;;  %v790_v54 = vpop.f32.mrf.mxu0  ;;  %12881 = vmatprep.subr.mxu0 %v3386_v6 }
 0x183   :  { %v1165_v32 = vpop.f32.mrf.mxu1  ;;  %13008 = vmatpush3.msra.mxu1 %v3916_v23  ;;  %12672 = vmatmul.mubr.f32.gmra.mxu0 %v2291_v43  ;;  %v2822_v57 = vld [vmem:[#allocation2 + $0x18a] sm:$0xff] }
 0x184   :  { %19744 = vst [vmem:[#allocation25_spill] sm:$0xff] %v15320_v63  ;;  %v15322_v12 = vadd.f32 %v1165_v32, %v780_v35  ;;  %v2292_v63 = vld [vmem:[#allocation2 + $0x181] sm:$0xff]  ;;  %v12209_v3 = vpop.f32.mrf.mxu0  ;;  %13009 = vmatprep.subr.mxu1 %v3915_v5  ;;  %12882 = vmatpush3.msra.mxu0 %v3386_v6  ;;  %v2823_v23 = vld [vmem:[#allocation2 + $0x1ca] sm:$0xff]  ;;  %v2824_v6 = vld [vmem:[#allocation2 + $0x1d2] sm:$0xff] }
 0x185   :  { %v12334_v24 = vpop.f32.mrf.mxu1  ;;  %12797 = vmatmul.mubr.f32.gmra.mxu1 %v2818_v16  ;;  %v3385_v35 = vld [vmem:[#allocation6 + $0x300] sm:$0xff]  ;;  %12674 = vmatprep.mubr.f32.mxu0 %v2292_v63  ;;  %v2293_v16 = vld [vmem:[#allocation2 + $0x189] sm:$0xff] }
 0x186   :  { %19745 = vst [vmem:[#allocation26_spill] sm:$0xff] %v15322_v12  ;;  %v15324_v0 = vadd.f32 %v12334_v24, %v12206_v10  ;;  %12799 = vmatprep.mubr.f32.mxu1 %v2819_v15  ;;  %v3914_v10 = vld [vmem:[#allocation6 + $0x380] sm:$0xff]  ;;  %v800_v15 = vpop.f32.mrf.mxu0  ;;  %12883 = vmatprep.subr.mxu0 %v3385_v35 }
 0x187   :  { %v1175_v22 = vpop.f32.mrf.mxu1  ;;  %13010 = vmatpush3.msra.mxu1 %v3915_v5  ;;  %12675 = vmatmul.mubr.f32.gmra.mxu0 %v2293_v16  ;;  %v2825_v5 = vld [vmem:[#allocation2 + $0x1e2] sm:$0xff] }
 0x188   :  { %19746 = vst [vmem:[#allocation27_spill] sm:$0xff] %v15324_v0  ;;  %v15326_v32 = vadd.f32 %v1175_v22, %v790_v54  ;;  %v2294_v0 = vld [vmem:[#allocation2 + $0x1c9] sm:$0xff]  ;;  %v12212_v43 = vpop.f32.mrf.mxu0  ;;  %13011 = vmatprep.subr.mxu1 %v3914_v10  ;;  %v15332_v54 = vld [vmem:[#allocation6 + $0x478] sm:$0xff]  ;;  %12884 = vmatpush3.msra.mxu0 %v3385_v35 }
 0x189   :  { %v12337_v2 = vpop.f32.mrf.mxu1  ;;  %12800 = vmatmul.mubr.f32.gmra.mxu1 %v2820_v61  ;;  %12677 = vmatprep.mubr.f32.mxu0 %v2294_v0  ;;  %v2295_v61 = vld [vmem:[#allocation2 + $0x1d1] sm:$0xff] }
 0x18a   :  { %v15328_v24 = vadd.f32 %v12337_v2, %v12209_v3  ;;  %12802 = vmatprep.mubr.f32.mxu1 %v2821_v17  ;;  %v810_v17 = vpop.f32.mrf.mxu0  ;;  %v2296_v2 = vld [vmem:[#allocation2 + $0x1e1] sm:$0xff]  ;;  %13109 = vmatprep.subr.mxu0 %v15332_v54 }
 0x18b   :  { %v1185_v12 = vpop.f32.mrf.mxu1  ;;  %13012 = vmatpush3.msra.mxu1 %v3914_v10  ;;  %12678 = vmatmul.mubr.f32.gmra.mxu0 %v2295_v61  ;;  %v2827_v10 = vld [vmem:[#allocation2 + $0x1fa] sm:$0xff] }
 0x18c   :  { %19747 = vst [vmem:[#allocation28_spill] sm:$0xff] %v15328_v24  ;;  %v15330_v22 = vadd.f32 %v1185_v12, %v800_v15  ;;  %v12375_v16 = vpop.f32.mrf.mxu0  ;;  %12680 = vmatprep.mubr.f32.mxu0 %v2296_v2 }
 0x18d   :  { %v12340_v63 = vpop.f32.mrf.mxu1  ;;  %12803 = vmatmul.mubr.f32.gmra.mxu1 %v2822_v57  ;;  %v1670_v15 = vadd.f32 %v12375_v16, %v15155_v49  ;;  %v2297_v57 = vld [vmem:[#allocation2 + $0x1e9] sm:$0xff]  ;;  %v2300_v16 = vld [vmem:[#allocation2 + $0x211] sm:$0xff] }
 0x18e   :  { %19748 = vst [vmem:[#allocation29_spill] sm:$0xff] %v15330_v22  ;;  %v15334_v3 = vadd.f32 %v12340_v63, %v12212_v43  ;;  %12805 = vmatprep.mubr.f32.mxu1 %v2823_v23  ;;  %v1350_v43 = vpop.f32.mrf.mxu0  ;;  %v2826_v23 = vld [vmem:[#allocation2 + $0x1ea] sm:$0xff]  ;;  %v2298_v63 = vld [vmem:[#allocation2 + $0x1f9] sm:$0xff] }
 0x18f   :  { %v1195_v24 = vpop.f32.mrf.mxu1  ;;  %v1669_v35 = vadd.f32 %v1350_v43, %v15158_v26  ;;  %12681 = vmatmul.mubr.f32.gmra.mxu0 %v2297_v57  ;;  %v2829_v43 = vld [vmem:[#allocation2 + $0x212] sm:$0xff] }
 0x190   :  { %19749 = vst [vmem:[#allocation30_spill] sm:$0xff] %v15334_v3  ;;  %v15337_v12 = vadd.f32 %v1195_v24, %v810_v17  ;;  %v12378_v24 = vpop.f32.mrf.mxu0  ;;  %12683 = vmatprep.mubr.f32.mxu0 %v2298_v63 }
 0x191   :  { %v12503_v0 = vpop.f32.mrf.mxu1  ;;  %12806 = vmatmul.mubr.f32.gmra.mxu1 %v2824_v6  ;;  %v1672_v61 = vadd.f32 %v12378_v24, %v15161_v31  ;;  %v2299_v6 = vld [vmem:[#allocation2 + $0x201] sm:$0xff] }
 0x192   :  { %12808 = vmatprep.mubr.f32.mxu1 %v2825_v5  ;;  %v15341_v3 = vadd.f32 %v12503_v0, %v1670_v15  ;;  %v1360_v2 = vpop.f32.mrf.mxu0  ;;  %v2828_v5 = vld [vmem:[#allocation2 + $0x202] sm:$0xff] }
 0x193   :  { %v1879_v22 = vpop.f32.mrf.mxu1  ;;  %v1671_v26 = vadd.f32 %v1360_v2, %v15164_v44  ;;  %12684 = vmatmul.mubr.f32.gmra.mxu0 %v2299_v6 }
 0x194   :  { %19750 = vst [vmem:[#allocation31_spill] sm:$0xff] %v15341_v3  ;;  %v15344_v17 = vadd.f32 %v1879_v22, %v1669_v35  ;;  %v12381_v3 = vpop.f32.mrf.mxu0  ;;  %12686 = vmatprep.mubr.f32.mxu0 %v2300_v16  ;;  %v2830_v35 = vld [vmem:[#allocation2 + $0x21a] sm:$0xff] }
 0x195   :  { %v12506_v49 = vpop.f32.mrf.mxu1  ;;  %12809 = vmatmul.mubr.f32.gmra.mxu1 %v2826_v23  ;;  %v1674_v31 = vadd.f32 %v12381_v3, %v15167_v14  ;;  %v2301_v23 = vld [vmem:[#allocation2 + $0x219] sm:$0xff] }
 0x196   :  { %12811 = vmatprep.mubr.f32.mxu1 %v2827_v10  ;;  %v15347_v15 = vadd.f32 %v12506_v49, %v1672_v61  ;;  %v1370_v63 = vpop.f32.mrf.mxu0  ;;  %v2302_v10 = vld [vmem:[#allocation2 + $0x229] sm:$0xff] }
 0x197   :  { %v1889_v0 = vpop.f32.mrf.mxu1  ;;  %v1673_v44 = vadd.f32 %v1370_v63, %v15170_v41  ;;  %v2831_v49 = vld [vmem:[#allocation2 + $0x22a] sm:$0xff]  ;;  %12687 = vmatmul.mubr.f32.gmra.mxu0 %v2301_v23 }
 0x198   :  { %v15350_v22 = vadd.f32 %v1889_v0, %v1671_v26  ;;  %v12384_v2 = vpop.f32.mrf.mxu0  ;;  %12689 = vmatprep.mubr.f32.mxu0 %v2302_v10  ;;  %v2832_v26 = vld [vmem:[#allocation2 + $0x232] sm:$0xff]  ;;  %v2304_v0 = vld [vmem:[#allocation2 + $0x241] sm:$0xff] }
 0x199   :  { %v12509_v57 = vpop.f32.mrf.mxu1  ;;  %12812 = vmatmul.mubr.f32.gmra.mxu1 %v2828_v5  ;;  %v1676_v14 = vadd.f32 %v12384_v2, %v15173_v47  ;;  %v2303_v5 = vld [vmem:[#allocation2 + $0x231] sm:$0xff] }
 0x19a   :  { %12814 = vmatprep.mubr.f32.mxu1 %v2829_v43  ;;  %v15353_v24 = vadd.f32 %v12509_v57, %v1674_v31  ;;  %v1380_v16 = vpop.f32.mrf.mxu0  ;;  %v2833_v57 = vld [vmem:[#allocation2 + $0x242] sm:$0xff] }
 0x19b   :  { %v1899_v61 = vpop.f32.mrf.mxu1  ;;  %v1675_v41 = vadd.f32 %v1380_v16, %v15176_v33  ;;  %12690 = vmatmul.mubr.f32.gmra.mxu0 %v2303_v5 }
 0x19c   :  { %v15356_v3 = vadd.f32 %v1899_v61, %v1673_v44  ;;  %v12387_v63 = vpop.f32.mrf.mxu0  ;;  %12692 = vmatprep.mubr.f32.mxu0 %v2304_v0  ;;  %v2834_v61 = vld [vmem:[#allocation2 + $0x24a] sm:$0xff] }
 0x19d   :  { %v12512_v6 = vpop.f32.mrf.mxu1  ;;  %12815 = vmatmul.mubr.f32.gmra.mxu1 %v2830_v35  ;;  %v1678_v47 = vadd.f32 %v12387_v63, %v15179_v37  ;;  %v2305_v35 = vld [vmem:[#allocation2 + $0x249] sm:$0xff] }
 0x19e   :  { %12817 = vmatprep.mubr.f32.mxu1 %v2831_v49  ;;  %v15359_v43 = vadd.f32 %v12512_v6, %v1676_v14  ;;  %v1390_v10 = vpop.f32.mrf.mxu0  ;;  %v2306_v49 = vld [vmem:[#allocation2 + $0x259] sm:$0xff] }
 0x19f   :  { %v1909_v31 = vpop.f32.mrf.mxu1  ;;  %v1677_v33 = vadd.f32 %v1390_v10, %v15182_v40  ;;  %v2835_v6 = vld [vmem:[#allocation2 + $0x25a] sm:$0xff]  ;;  %12693 = vmatmul.mubr.f32.gmra.mxu0 %v2305_v35 }
 0x1a0   :  { %v15362_v23 = vadd.f32 %v1909_v31, %v1675_v41  ;;  %v12390_v16 = vpop.f32.mrf.mxu0  ;;  %12695 = vmatprep.mubr.f32.mxu0 %v2306_v49  ;;  %v2836_v31 = vld [vmem:[#allocation2 + $0x262] sm:$0xff] }
 0x1a1   :  { %v12515_v44 = vpop.f32.mrf.mxu1  ;;  %12818 = vmatmul.mubr.f32.gmra.mxu1 %v2832_v26  ;;  %v1680_v37 = vadd.f32 %v12390_v16, %v15185_v58  ;;  %v2307_v26 = vld [vmem:[#allocation2 + $0x261] sm:$0xff] }
 0x1a2   :  { %12820 = vmatprep.mubr.f32.mxu1 %v2833_v57  ;;  %v15365_v2 = vadd.f32 %v12515_v44, %v1678_v47  ;;  %v1400_v0 = vpop.f32.mrf.mxu0  ;;  %v2308_v57 = vld [vmem:[#allocation2 + $0x271] sm:$0xff] }
 0x1a3   :  { %v1919_v14 = vpop.f32.mrf.mxu1  ;;  %v1679_v40 = vadd.f32 %v1400_v0, %v15188_v34  ;;  %v2837_v44 = vld [vmem:[#allocation2 + $0x272] sm:$0xff]  ;;  %12696 = vmatmul.mubr.f32.gmra.mxu0 %v2307_v26 }
 0x1a4   :  { %v15368_v5 = vadd.f32 %v1919_v14, %v1677_v33  ;;  %v12393_v10 = vpop.f32.mrf.mxu0  ;;  %12698 = vmatprep.mubr.f32.mxu0 %v2308_v57  ;;  %v2838_v14 = vld [vmem:[#allocation2 + $0x27a] sm:$0xff] }
 0x1a5   :  { %v12518_v41 = vpop.f32.mrf.mxu1  ;;  %12821 = vmatmul.mubr.f32.gmra.mxu1 %v2834_v61  ;;  %v1682_v58 = vadd.f32 %v12393_v10, %v15191_v36  ;;  %v2309_v61 = vld [vmem:[#allocation2 + $0x279] sm:$0xff] }
 0x1a6   :  { %12823 = vmatprep.mubr.f32.mxu1 %v2835_v6  ;;  %v15371_v63 = vadd.f32 %v12518_v41, %v1680_v37  ;;  %v1410_v49 = vpop.f32.mrf.mxu0  ;;  %v2310_v6 = vld [vmem:[#allocation2 + $0x289] sm:$0xff] }
 0x1a7   :  { %v1929_v47 = vpop.f32.mrf.mxu1  ;;  %v1681_v34 = vadd.f32 %v1410_v49, %v15194_v53  ;;  %v2839_v41 = vld [vmem:[#allocation2 + $0x28a] sm:$0xff]  ;;  %12699 = vmatmul.mubr.f32.gmra.mxu0 %v2309_v61 }
 0x1a8   :  { %v15374_v35 = vadd.f32 %v1929_v47, %v1679_v40  ;;  %v12396_v0 = vpop.f32.mrf.mxu0  ;;  %12701 = vmatprep.mubr.f32.mxu0 %v2310_v6  ;;  %v2840_v47 = vld [vmem:[#allocation2 + $0x292] sm:$0xff] }
 0x1a9   :  { %v12521_v33 = vpop.f32.mrf.mxu1  ;;  %12824 = vmatmul.mubr.f32.gmra.mxu1 %v2836_v31  ;;  %v1684_v36 = vadd.f32 %v12396_v0, %v15197_v39  ;;  %v2311_v31 = vld [vmem:[#allocation2 + $0x291] sm:$0xff] }
 0x1aa   :  { %12826 = vmatprep.mubr.f32.mxu1 %v2837_v44  ;;  %v15377_v16 = vadd.f32 %v12521_v33, %v1682_v58  ;;  %v1420_v57 = vpop.f32.mrf.mxu0  ;;  %v2312_v44 = vld [vmem:[#allocation2 + $0x2a1] sm:$0xff] }
 0x1ab   :  { %v1939_v37 = vpop.f32.mrf.mxu1  ;;  %v1683_v53 = vadd.f32 %v1420_v57, %v15200_v27  ;;  %v2841_v33 = vld [vmem:[#allocation2 + $0x2a2] sm:$0xff]  ;;  %12702 = vmatmul.mubr.f32.gmra.mxu0 %v2311_v31 }
 0x1ac   :  { %v15380_v26 = vadd.f32 %v1939_v37, %v1681_v34  ;;  %v12399_v49 = vpop.f32.mrf.mxu0  ;;  %12704 = vmatprep.mubr.f32.mxu0 %v2312_v44  ;;  %v2842_v37 = vld [vmem:[#allocation2 + $0x2aa] sm:$0xff] }
 0x1ad   :  { %v12524_v40 = vpop.f32.mrf.mxu1  ;;  %12827 = vmatmul.mubr.f32.gmra.mxu1 %v2838_v14  ;;  %v1686_v39 = vadd.f32 %v12399_v49, %v15203_v42  ;;  %v2313_v14 = vld [vmem:[#allocation2 + $0x2a9] sm:$0xff] }
 0x1ae   :  { %12829 = vmatprep.mubr.f32.mxu1 %v2839_v41  ;;  %v15383_v10 = vadd.f32 %v12524_v40, %v1684_v36  ;;  %v1430_v6 = vpop.f32.mrf.mxu0  ;;  %v2314_v41 = vld [vmem:[#allocation2 + $0x2b9] sm:$0xff] }
 0x1af   :  { %v1949_v58 = vpop.f32.mrf.mxu1  ;;  %v1685_v27 = vadd.f32 %v1430_v6, %v15209_v25  ;;  %v2843_v40 = vld [vmem:[#allocation2 + $0x2ba] sm:$0xff]  ;;  %12705 = vmatmul.mubr.f32.gmra.mxu0 %v2313_v14 }
 0x1b0   :  { %v15386_v61 = vadd.f32 %v1949_v58, %v1683_v53  ;;  %v12402_v57 = vpop.f32.mrf.mxu0  ;;  %12707 = vmatprep.mubr.f32.mxu0 %v2314_v41  ;;  %v2844_v58 = vld [vmem:[#allocation2 + $0x2c2] sm:$0xff] }
 0x1b1   :  { %v12527_v34 = vpop.f32.mrf.mxu1  ;;  %12830 = vmatmul.mubr.f32.gmra.mxu1 %v2840_v47  ;;  %v1688_v42 = vadd.f32 %v12402_v57, %v15212_v50  ;;  %v2315_v47 = vld [vmem:[#allocation2 + $0x2c1] sm:$0xff] }
 0x1b2   :  { %12832 = vmatprep.mubr.f32.mxu1 %v2841_v33  ;;  %v15389_v0 = vadd.f32 %v12527_v34, %v1686_v39  ;;  %v1440_v44 = vpop.f32.mrf.mxu0  ;;  %v2316_v33 = vld [vmem:[#allocation2 + $0x2d1] sm:$0xff] }
 0x1b3   :  { %v1959_v36 = vpop.f32.mrf.mxu1  ;;  %v1687_v25 = vadd.f32 %v1440_v44, %v15215_v1  ;;  %v2845_v34 = vld [vmem:[#allocation2 + $0x2d2] sm:$0xff]  ;;  %12708 = vmatmul.mubr.f32.gmra.mxu0 %v2315_v47 }
 0x1b4   :  { %v15392_v31 = vadd.f32 %v1959_v36, %v1685_v27  ;;  %v12405_v6 = vpop.f32.mrf.mxu0  ;;  %12710 = vmatprep.mubr.f32.mxu0 %v2316_v33  ;;  %v2846_v36 = vld [vmem:[#allocation2 + $0x2da] sm:$0xff] }
 0x1b5   :  { %v12530_v53 = vpop.f32.mrf.mxu1  ;;  %12833 = vmatmul.mubr.f32.gmra.mxu1 %v2842_v37  ;;  %v1690_v50 = vadd.f32 %v12405_v6, %v15218_v8  ;;  %v2317_v37 = vld [vmem:[#allocation2 + $0x2d9] sm:$0xff] }
 0x1b6   :  { %12835 = vmatprep.mubr.f32.mxu1 %v2843_v40  ;;  %v15395_v49 = vadd.f32 %v12530_v53, %v1688_v42  ;;  %v1450_v41 = vpop.f32.mrf.mxu0  ;;  %v2318_v40 = vld [vmem:[#allocation2 + $0x2e9] sm:$0xff] }
 0x1b7   :  { %v1969_v39 = vpop.f32.mrf.mxu1  ;;  %v1689_v1 = vadd.f32 %v1450_v41, %v15221_v9  ;;  %v2847_v53 = vld [vmem:[#allocation2 + $0x2ea] sm:$0xff]  ;;  %12711 = vmatmul.mubr.f32.gmra.mxu0 %v2317_v37 }
 0x1b8   :  { %v15398_v14 = vadd.f32 %v1969_v39, %v1687_v25  ;;  %v12408_v44 = vpop.f32.mrf.mxu0  ;;  %12713 = vmatprep.mubr.f32.mxu0 %v2318_v40  ;;  %v2848_v39 = vld [vmem:[#allocation2 + $0x2f2] sm:$0xff] }
 0x1b9   :  { %v12533_v27 = vpop.f32.mrf.mxu1  ;;  %12836 = vmatmul.mubr.f32.gmra.mxu1 %v2844_v58  ;;  %v1692_v8 = vadd.f32 %v12408_v44, %v15224_v19  ;;  %v2319_v58 = vld [vmem:[#allocation2 + $0x2f1] sm:$0xff] }
 0x1ba   :  { %12838 = vmatprep.mubr.f32.mxu1 %v2845_v34  ;;  %v15401_v57 = vadd.f32 %v12533_v27, %v1690_v50  ;;  %v1460_v33 = vpop.f32.mrf.mxu0  ;;  %v2320_v34 = vld [vmem:[#allocation2 + $0x301] sm:$0xff] }
 0x1bb   :  { %v1979_v42 = vpop.f32.mrf.mxu1  ;;  %v1691_v9 = vadd.f32 %v1460_v33, %v15227_v20  ;;  %v2849_v27 = vld [vmem:[#allocation2 + $0x302] sm:$0xff]  ;;  %12714 = vmatmul.mubr.f32.gmra.mxu0 %v2319_v58 }
 0x1bc   :  { %v15404_v47 = vadd.f32 %v1979_v42, %v1689_v1  ;;  %v12411_v41 = vpop.f32.mrf.mxu0  ;;  %12716 = vmatprep.mubr.f32.mxu0 %v2320_v34  ;;  %v2850_v42 = vld [vmem:[#allocation2 + $0x30a] sm:$0xff] }
 0x1bd   :  { %v12536_v25 = vpop.f32.mrf.mxu1  ;;  %12839 = vmatmul.mubr.f32.gmra.mxu1 %v2846_v36  ;;  %v1694_v19 = vadd.f32 %v12411_v41, %v15230_v13  ;;  %v2321_v36 = vld [vmem:[#allocation2 + $0x309] sm:$0xff] }
 0x1be   :  { %12841 = vmatprep.mubr.f32.mxu1 %v2847_v53  ;;  %v15407_v6 = vadd.f32 %v12536_v25, %v1692_v8  ;;  %v1470_v40 = vpop.f32.mrf.mxu0  ;;  %v2322_v53 = vld [vmem:[#allocation2 + $0x319] sm:$0xff] }
 0x1bf   :  { %v1989_v50 = vpop.f32.mrf.mxu1  ;;  %v1693_v20 = vadd.f32 %v1470_v40, %v15233_v55  ;;  %v2851_v25 = vld [vmem:[#allocation2 + $0x31a] sm:$0xff]  ;;  %12717 = vmatmul.mubr.f32.gmra.mxu0 %v2321_v36 }
 0x1c0   :  { %v15410_v37 = vadd.f32 %v1989_v50, %v1691_v9  ;;  %v12414_v33 = vpop.f32.mrf.mxu0  ;;  %12719 = vmatprep.mubr.f32.mxu0 %v2322_v53  ;;  %v2852_v50 = vld [vmem:[#allocation2 + $0x322] sm:$0xff] }
 0x1c1   :  { %v12539_v1 = vpop.f32.mrf.mxu1  ;;  %12842 = vmatmul.mubr.f32.gmra.mxu1 %v2848_v39  ;;  %v1696_v13 = vadd.f32 %v12414_v33, %v15236_v60  ;;  %v2323_v39 = vld [vmem:[#allocation2 + $0x321] sm:$0xff] }
 0x1c2   :  { %12844 = vmatprep.mubr.f32.mxu1 %v2849_v27  ;;  %v15413_v44 = vadd.f32 %v12539_v1, %v1694_v19  ;;  %v1480_v34 = vpop.f32.mrf.mxu0  ;;  %v2324_v27 = vld [vmem:[#allocation2 + $0x331] sm:$0xff] }
 0x1c3   :  { %v1999_v8 = vpop.f32.mrf.mxu1  ;;  %v1695_v55 = vadd.f32 %v1480_v34, %v15239_v62  ;;  %v2853_v1 = vld [vmem:[#allocation2 + $0x332] sm:$0xff]  ;;  %12720 = vmatmul.mubr.f32.gmra.mxu0 %v2323_v39 }
 0x1c4   :  { %v15416_v58 = vadd.f32 %v1999_v8, %v1693_v20  ;;  %v12417_v40 = vpop.f32.mrf.mxu0  ;;  %12722 = vmatprep.mubr.f32.mxu0 %v2324_v27  ;;  %v2854_v8 = vld [vmem:[#allocation2 + $0x33a] sm:$0xff] }
 0x1c5   :  { %v12542_v9 = vpop.f32.mrf.mxu1  ;;  %12845 = vmatmul.mubr.f32.gmra.mxu1 %v2850_v42  ;;  %v1698_v60 = vadd.f32 %v12417_v40, %v15242_v29  ;;  %v2325_v42 = vld [vmem:[#allocation2 + $0x339] sm:$0xff] }
 0x1c6   :  { %12847 = vmatprep.mubr.f32.mxu1 %v2851_v25  ;;  %v15419_v41 = vadd.f32 %v12542_v9, %v1696_v13  ;;  %v1490_v53 = vpop.f32.mrf.mxu0  ;;  %v3321_v25 = vld [vmem:[#allocation2 + $0x30] sm:$0xff] }
 0x1c7   :  { %v2009_v19 = vpop.f32.mrf.mxu1  ;;  %v1697_v62 = vadd.f32 %v1490_v53, %v15244_v45  ;;  %v3850_v9 = vld [vmem:[#allocation2 + $0x31] sm:$0xff]  ;;  %12723 = vmatmul.mubr.f32.gmra.mxu0 %v2325_v42 }
 0x1c8   :  { %v15422_v36 = vadd.f32 %v2009_v19, %v1695_v55  ;;  %v12420_v34 = vpop.f32.mrf.mxu0  ;;  %12885 = vmatprep.mubr.f32.mxu0 %v3321_v25  ;;  %v3851_v19 = vld [vmem:[#allocation2 + $0x39] sm:$0xff]  ;;  %v4457_v42 = vld [vmem:[#allocation6 + $0x470] sm:$0xff] }
 0x1c9   :  { %v12545_v20 = vpop.f32.mrf.mxu1  ;;  %12848 = vmatmul.mubr.f32.gmra.mxu1 %v2852_v50  ;;  %v1700_v29 = vadd.f32 %v12420_v34, %v15246_v38  ;;  %v3322_v50 = vld [vmem:[#allocation2 + $0x38] sm:$0xff]  ;;  %v3324_v25 = vld [vmem:[#allocation2 + $0x50] sm:$0xff] }
 0x1ca   :  { %12850 = vmatprep.mubr.f32.mxu1 %v2853_v1  ;;  %v15425_v33 = vadd.f32 %v12545_v20, %v1698_v60  ;;  %v1500_v27 = vpop.f32.mrf.mxu0  ;;  %v3323_v60 = vld [vmem:[#allocation2 + $0x48] sm:$0xff] }
 0x1cb   :  { %v2019_v13 = vpop.f32.mrf.mxu1  ;;  %v1699_v1 = vadd.f32 %v1500_v27, %v15249_v21  ;;  %v3852_v20 = vld [vmem:[#allocation2 + $0x49] sm:$0xff]  ;;  %12886 = vmatmul.mubr.f32.vlgmr.msra.gmra.mxu0 %v3322_v50  ;;  %v3853_v21 = vld [vmem:[#allocation2 + $0x51] sm:$0xff]  ;;  %v3854_v50 = vld [vmem:[#allocation2 + $0x61] sm:$0xff] }
 0x1cc   :  { %v15428_v39 = vadd.f32 %v2019_v13, %v1697_v62  ;;  %v12423_v53 = vpop.f32.mrf.mxu0  ;;  %13110 = vmatpush3.msra.mxu0 %v15332_v54  ;;  %12888 = vmatprep.mubr.f32.mxu0 %v3323_v60  ;;  %v4456_v27 = vld [vmem:[#allocation6 + $0x468] sm:$0xff] }
 0x1cd   :  { %v12548_v55 = vpop.f32.mrf.mxu1  ;;  %12851 = vmatmul.mubr.f32.gmra.mxu1 %v2854_v8  ;;  %v1702_v38 = vadd.f32 %v12423_v53, %v15253_v48  ;;  %13111 = vmatprep.subr.mxu0 %v4457_v42 }
 0x1ce   :  { %13013 = vmatprep.mubr.f32.mxu1 %v3850_v9  ;;  %v15431_v45 = vadd.f32 %v12548_v55, %v1700_v29  ;;  %v1510_v13 = vpop.f32.mrf.mxu0  ;;  %v3325_v9 = vld [vmem:[#allocation2 + $0x60] sm:$0xff]  ;;  %13112 = vmatpush3.msra.mxu0 %v4457_v42 }
 0x1cf   :  { %v2029_v40 = vpop.f32.mrf.mxu1  ;;  %v1701_v34 = vadd.f32 %v1510_v13, %v15257_v51  ;;  %12889 = vmatmul.mubr.f32.gmra.mxu0 %v3324_v25  ;;  %v3855_v51 = vld [vmem:[#allocation2 + $0x69] sm:$0xff]  ;;  %v3856_v25 = vld [vmem:[#allocation2 + $0x79] sm:$0xff]  ;;  %13113 = vmatprep.subr.mxu0 %v4456_v27 }
 0x1d0   :  { %v15434_v62 = vadd.f32 %v2029_v40, %v1699_v1  ;;  %v12426_v48 = vpop.f32.mrf.mxu0  ;;  %12891 = vmatprep.mubr.f32.mxu0 %v3325_v9  ;;  %v3326_v40 = vld [vmem:[#allocation2 + $0x68] sm:$0xff]  ;;  %v3328_v42 = vld [vmem:[#allocation2 + $0x80] sm:$0xff]  ;;  %13114 = vmatpush3.msra.mxu0 %v4456_v27 }
 0x1d1   :  { %v12551_v8 = vpop.f32.mrf.mxu1  ;;  %13014 = vmatmul.mubr.f32.vlgmr.msra.gmra.mxu1 %v3851_v19  ;;  %v1704_v54 = vadd.f32 %v12426_v48, %v15260_v46  ;;  %v4455_v46 = vld [vmem:[#allocation6 + $0x460] sm:$0xff] }
 0x1d2   :  { %13016 = vmatprep.mubr.f32.mxu1 %v3852_v20  ;;  %v15438_v29 = vadd.f32 %v12551_v8, %v1702_v38  ;;  %v1520_v60 = vpop.f32.mrf.mxu0  ;;  %v3327_v20 = vld [vmem:[#allocation2 + $0x78] sm:$0xff]  ;;  %13115 = vmatprep.subr.mxu0 %v4455_v46 }
 0x1d3   :  { %v2039_v55 = vpop.f32.mrf.mxu1  ;;  %v1703_v53 = vadd.f32 %v1520_v60, %v15263_v56  ;;  %12892 = vmatmul.mubr.f32.gmra.mxu0 %v3326_v40  ;;  %v3329_v56 = vld [vmem:[#allocation2 + $0x90] sm:$0xff]  ;;  %v3859_v27 = vld [vmem:[#allocation2 + $0x99] sm:$0xff] }
 0x1d4   :  { %v15441_v1 = vadd.f32 %v2039_v55, %v1701_v34  ;;  %v12429_v13 = vpop.f32.mrf.mxu0  ;;  %12894 = vmatprep.mubr.f32.mxu0 %v3327_v20  ;;  %v3858_v40 = vld [vmem:[#allocation2 + $0x91] sm:$0xff]  ;;  %13116 = vmatpush3.msra.mxu0 %v4455_v46 }
 0x1d5   :  { %v12554_v19 = vpop.f32.mrf.mxu1  ;;  %13017 = vmatmul.mubr.f32.gmra.mxu1 %v3853_v21  ;;  %v1706_v34 = vadd.f32 %v12429_v13, %v15266_v30  ;;  %v4454_v30 = vld [vmem:[#allocation6 + $0x458] sm:$0xff] }
 0x1d6   :  { %13019 = vmatprep.mubr.f32.mxu1 %v3854_v50  ;;  %v15444_v38 = vadd.f32 %v12554_v19, %v1704_v54  ;;  %v1530_v55 = vpop.f32.mrf.mxu0  ;;  %v3857_v50 = vld [vmem:[#allocation2 + $0x81] sm:$0xff]  ;;  %13117 = vmatprep.subr.mxu0 %v4454_v30  ;;  %v3861_v46 = vld [vmem:[#allocation2 + $0xb1] sm:$0xff] }
 0x1d7   :  { %v2049_v8 = vpop.f32.mrf.mxu1  ;;  %v1705_v48 = vadd.f32 %v1530_v55, %v15269_v7  ;;  %12895 = vmatmul.mubr.f32.gmra.mxu0 %v3328_v42  ;;  %v3331_v7 = vld [vmem:[#allocation2 + $0xa8] sm:$0xff] }
 0x1d8   :  { %v15447_v21 = vadd.f32 %v2049_v8, %v1703_v53  ;;  %v12432_v60 = vpop.f32.mrf.mxu0  ;;  %v19752_v53 = vld [vmem:[#allocation16_spill] sm:$0xff]  ;;  %12897 = vmatprep.mubr.f32.mxu0 %v3329_v56  ;;  %v3860_v42 = vld [vmem:[#allocation2 + $0xa9] sm:$0xff]  ;;  %13118 = vmatpush3.msra.mxu0 %v4454_v30 }
 0x1d9   :  { %v12557_v9 = vpop.f32.mrf.mxu1  ;;  %13020 = vmatmul.mubr.f32.gmra.mxu1 %v3855_v51  ;;  %v1708_v8 = vadd.f32 %v12432_v60, %v19752_v53  ;;  %v3863_v30 = vld [vmem:[#allocation2 + $0xc9] sm:$0xff] }
 0x1da   :  { %13022 = vmatprep.mubr.f32.mxu1 %v3856_v25  ;;  %v15450_v54 = vadd.f32 %v12557_v9, %v1706_v34  ;;  %v3330_v25 = vld [vmem:[#allocation2 + $0x98] sm:$0xff]  ;;  %v1540_v13 = vpop.f32.mrf.mxu0 }
 0x1db   :  { %v2059_v19 = vpop.f32.mrf.mxu1  ;;  %v1707_v34 = vadd.f32 %v1540_v13, %v15275_v28  ;;  %12898 = vmatmul.mubr.f32.gmra.mxu0 %v3330_v25  ;;  %v3333_v28 = vld [vmem:[#allocation2 + $0xc0] sm:$0xff] }
 0x1dc   :  { %19751 = vst [vmem:[#allocation32_spill] sm:$0xff] %v15450_v54  ;;  %v15453_v51 = vadd.f32 %v2059_v19, %v1705_v48  ;;  %v12435_v54 = vpop.f32.mrf.mxu0  ;;  %v4453_v48 = vld [vmem:[#allocation6 + $0x450] sm:$0xff]  ;;  %12900 = vmatprep.mubr.f32.mxu0 %v3331_v7  ;;  %v3862_v25 = vld [vmem:[#allocation2 + $0xc1] sm:$0xff] }
 0x1dd   :  { %v12560_v20 = vpop.f32.mrf.mxu1  ;;  %13023 = vmatmul.mubr.f32.gmra.mxu1 %v3857_v50  ;;  %v1710_v19 = vadd.f32 %v12435_v54, %v15278_v18  ;;  %13119 = vmatprep.subr.mxu0 %v4453_v48  ;;  %v4452_v18 = vld [vmem:[#allocation6 + $0x448] sm:$0xff] }
 0x1de   :  { %13025 = vmatprep.mubr.f32.mxu1 %v3858_v40  ;;  %v15456_v9 = vadd.f32 %v12560_v20, %v1708_v8  ;;  %v3332_v40 = vld [vmem:[#allocation2 + $0xb0] sm:$0xff]  ;;  %v1550_v60 = vpop.f32.mrf.mxu0  ;;  %13120 = vmatpush3.msra.mxu0 %v4453_v48  ;;  %v3865_v48 = vld [vmem:[#allocation2 + $0xe1] sm:$0xff] }
 0x1df   :  { %v2069_v55 = vpop.f32.mrf.mxu1  ;;  %v1709_v53 = vadd.f32 %v1550_v60, %v15281_v11  ;;  %12901 = vmatmul.mubr.f32.gmra.mxu0 %v3332_v40  ;;  %v3335_v11 = vld [vmem:[#allocation2 + $0xd8] sm:$0xff]  ;;  %13121 = vmatprep.subr.mxu0 %v4452_v18 }
 0x1e0   :  { %v15459_v50 = vadd.f32 %v2069_v55, %v1707_v34  ;;  %v12438_v13 = vpop.f32.mrf.mxu0  ;;  %12903 = vmatprep.mubr.f32.mxu0 %v3333_v28  ;;  %v3334_v34 = vld [vmem:[#allocation2 + $0xc8] sm:$0xff]  ;;  %v3864_v40 = vld [vmem:[#allocation2 + $0xd9] sm:$0xff]  ;;  %13122 = vmatpush3.msra.mxu0 %v4452_v18 }
 0x1e1   :  { %v12563_v56 = vpop.f32.mrf.mxu1  ;;  %13026 = vmatmul.mubr.f32.gmra.mxu1 %v3859_v27  ;;  %v1712_v54 = vadd.f32 %v12438_v13, %v15284_v59  ;;  %v4451_v59 = vld [vmem:[#allocation6 + $0x440] sm:$0xff] }
 0x1e2   :  { %13028 = vmatprep.mubr.f32.mxu1 %v3860_v42  ;;  %v15462_v8 = vadd.f32 %v12563_v56, %v1710_v19  ;;  %v1560_v55 = vpop.f32.mrf.mxu0  ;;  %v19755_v13 = vld [vmem:[#allocation17_spill] sm:$0xff]  ;;  %13123 = vmatprep.subr.mxu0 %v4451_v59 }
 0x1e3   :  { %v2079_v20 = vpop.f32.mrf.mxu1  ;;  %v1711_v42 = vadd.f32 %v1560_v55, %v15287_v4  ;;  %12904 = vmatmul.mubr.f32.gmra.mxu0 %v3334_v34  ;;  %v3337_v4 = vld [vmem:[#allocation2 + $0xf0] sm:$0xff]  ;;  %v3867_v18 = vld [vmem:[#allocation2 + $0xf9] sm:$0xff] }
 0x1e4   :  { %v15465_v27 = vadd.f32 %v2079_v20, %v1709_v53  ;;  %v12441_v60 = vpop.f32.mrf.mxu0  ;;  %12906 = vmatprep.mubr.f32.mxu0 %v3335_v11  ;;  %v3336_v20 = vld [vmem:[#allocation2 + $0xe0] sm:$0xff]  ;;  %v3866_v34 = vld [vmem:[#allocation2 + $0xf1] sm:$0xff]  ;;  %13124 = vmatpush3.msra.mxu0 %v4451_v59 }
 0x1e5   :  { %v12566_v7 = vpop.f32.mrf.mxu1  ;;  %13029 = vmatmul.mubr.f32.gmra.mxu1 %v3861_v46  ;;  %v1714_v53 = vadd.f32 %v12441_v60, %v15290_v52  ;;  %v4450_v52 = vld [vmem:[#allocation6 + $0x438] sm:$0xff] }
 0x1e6   :  { %13031 = vmatprep.mubr.f32.mxu1 %v3862_v25  ;;  %v15468_v19 = vadd.f32 %v12566_v7, %v1712_v54  ;;  %v1570_v25 = vpop.f32.mrf.mxu0  ;;  %13125 = vmatprep.subr.mxu0 %v4450_v52  ;;  %v3869_v59 = vld [vmem:[#allocation2 + $0x111] sm:$0xff] }
 0x1e7   :  { %v2089_v56 = vpop.f32.mrf.mxu1  ;;  %v1713_v54 = vadd.f32 %v1570_v25, %v19755_v13  ;;  %12907 = vmatmul.mubr.f32.gmra.mxu0 %v3336_v20  ;;  %v3339_v25 = vld [vmem:[#allocation2 + $0x108] sm:$0xff] }
 0x1e8   :  { %19753 = vst [vmem:[#allocation16_spill] sm:$0xff] %v15468_v19  ;;  %v15471_v46 = vadd.f32 %v2089_v56, %v1711_v42  ;;  %v12444_v19 = vpop.f32.mrf.mxu0  ;;  %v19757_v42 = vld [vmem:[#allocation18_spill] sm:$0xff]  ;;  %12909 = vmatprep.mubr.f32.mxu0 %v3337_v4  ;;  %13126 = vmatpush3.msra.mxu0 %v4450_v52 }
 0x1e9   :  { %v12569_v28 = vpop.f32.mrf.mxu1  ;;  %13032 = vmatmul.mubr.f32.gmra.mxu1 %v3863_v30  ;;  %v1716_v56 = vadd.f32 %v12444_v19, %v19757_v42  ;;  %v3868_v20 = vld [vmem:[#allocation2 + $0x109] sm:$0xff] }
 0x1ea   :  { %19754 = vst [vmem:[#allocation33_spill] sm:$0xff] %v15471_v46  ;;  %13034 = vmatprep.mubr.f32.mxu1 %v3864_v40  ;;  %v15474_v7 = vadd.f32 %v12569_v28, %v1714_v53  ;;  %v3338_v40 = vld [vmem:[#allocation2 + $0xf8] sm:$0xff]  ;;  %v1580_v60 = vpop.f32.mrf.mxu0  ;;  %v19759_v53 = vld [vmem:[#allocation19_spill] sm:$0xff] }
 0x1eb   :  { %v2099_v55 = vpop.f32.mrf.mxu1  ;;  %v1715_v28 = vadd.f32 %v1580_v60, %v19759_v53  ;;  %12910 = vmatmul.mubr.f32.gmra.mxu0 %v3338_v40  ;;  %v4449_v19 = vld [vmem:[#allocation6 + $0x430] sm:$0xff]  ;;  %v3341_v60 = vld [vmem:[#allocation2 + $0x120] sm:$0xff] }
 0x1ec   :  { %19756 = vst [vmem:[#allocation17_spill] sm:$0xff] %v15474_v7  ;;  %v15477_v30 = vadd.f32 %v2099_v55, %v1713_v54  ;;  %v12447_v46 = vpop.f32.mrf.mxu0  ;;  %v19761_v54 = vld [vmem:[#allocation20_spill] sm:$0xff]  ;;  %12912 = vmatprep.mubr.f32.mxu0 %v3339_v25  ;;  %v3870_v40 = vld [vmem:[#allocation2 + $0x121] sm:$0xff]  ;;  %13127 = vmatprep.subr.mxu0 %v4449_v19  ;;  %v3871_v52 = vld [vmem:[#allocation2 + $0x129] sm:$0xff] }
 0x1ed   :  { %v12572_v11 = vpop.f32.mrf.mxu1  ;;  %13035 = vmatmul.mubr.f32.gmra.mxu1 %v3865_v48  ;;  %v1718_v55 = vadd.f32 %v12447_v46, %v19761_v54  ;;  %v4448_v46 = vld [vmem:[#allocation6 + $0x428] sm:$0xff]  ;;  %13128 = vmatpush3.msra.mxu0 %v4449_v19 }
 0x1ee   :  { %19758 = vst [vmem:[#allocation18_spill] sm:$0xff] %v15477_v30  ;;  %13037 = vmatprep.mubr.f32.mxu1 %v3866_v34  ;;  %v15480_v13 = vadd.f32 %v12572_v11, %v1716_v56  ;;  %v3340_v34 = vld [vmem:[#allocation2 + $0x110] sm:$0xff]  ;;  %v1590_v42 = vpop.f32.mrf.mxu0  ;;  %v19763_v56 = vld [vmem:[#allocation21_spill] sm:$0xff]  ;;  %13129 = vmatprep.subr.mxu0 %v4448_v46 }
 0x1ef   :  { %v2109_v7 = vpop.f32.mrf.mxu1  ;;  %v1717_v11 = vadd.f32 %v1590_v42, %v19763_v56  ;;  %12913 = vmatmul.mubr.f32.gmra.mxu0 %v3340_v34  ;;  %v3343_v42 = vld [vmem:[#allocation2 + $0x138] sm:$0xff]  ;;  %v3873_v19 = vld [vmem:[#allocation2 + $0x141] sm:$0xff] }
 0x1f0   :  { %19760 = vst [vmem:[#allocation19_spill] sm:$0xff] %v15480_v13  ;;  %v15483_v48 = vadd.f32 %v2109_v7, %v1715_v28  ;;  %v12450_v30 = vpop.f32.mrf.mxu0  ;;  %v19765_v7 = vld [vmem:[#allocation13_spill] sm:$0xff]  ;;  %12915 = vmatprep.mubr.f32.mxu0 %v3341_v60  ;;  %13130 = vmatpush3.msra.mxu0 %v4448_v46 }
 0x1f1   :  { %v12575_v4 = vpop.f32.mrf.mxu1  ;;  %13038 = vmatmul.mubr.f32.gmra.mxu1 %v3867_v18  ;;  %v1720_v28 = vadd.f32 %v12450_v30, %v19765_v7  ;;  %v3872_v34 = vld [vmem:[#allocation2 + $0x139] sm:$0xff] }
 0x1f2   :  { %19762 = vst [vmem:[#allocation20_spill] sm:$0xff] %v15483_v48  ;;  %13040 = vmatprep.mubr.f32.mxu1 %v3868_v20  ;;  %v15486_v53 = vadd.f32 %v12575_v4, %v1718_v55  ;;  %v3342_v20 = vld [vmem:[#allocation2 + $0x128] sm:$0xff]  ;;  %v1600_v54 = vpop.f32.mrf.mxu0  ;;  %v4447_v30 = vld [vmem:[#allocation6 + $0x420] sm:$0xff] }
 0x1f3   :  { %v2119_v13 = vpop.f32.mrf.mxu1  ;;  %v19767_v55 = vld [vmem:[#allocation14_spill] sm:$0xff]  ;;  %12916 = vmatmul.mubr.f32.gmra.mxu0 %v3342_v20  ;;  %v3874_v20 = vld [vmem:[#allocation2 + $0x151] sm:$0xff]  ;;  %13131 = vmatprep.subr.mxu0 %v4447_v30  ;;  %v3875_v46 = vld [vmem:[#allocation2 + $0x159] sm:$0xff] }
 0x1f4   :  { %19764 = vst [vmem:[#allocation21_spill] sm:$0xff] %v15486_v53  ;;  %v15489_v18 = vadd.f32 %v2119_v13, %v1717_v11  ;;  %v1719_v4 = vadd.f32 %v1600_v54, %v19767_v55  ;;  %v12453_v48 = vpop.f32.mrf.mxu0  ;;  %v19769_v13 = vld [vmem:[#allocation15_spill] sm:$0xff]  ;;  %12918 = vmatprep.mubr.f32.mxu0 %v3343_v42  ;;  %13132 = vmatpush3.msra.mxu0 %v4447_v30 }
 0x1f5   :  { %v12578_v25 = vpop.f32.mrf.mxu1  ;;  %13041 = vmatmul.mubr.f32.gmra.mxu1 %v3869_v59  ;;  %v1722_v11 = vadd.f32 %v12453_v48, %v19769_v13  ;;  %v3345_v54 = vld [vmem:[#allocation2 + $0x150] sm:$0xff]  ;;  %v4446_v48 = vld [vmem:[#allocation6 + $0x418] sm:$0xff] }
 0x1f6   :  { %19766 = vst [vmem:[#allocation13_spill] sm:$0xff] %v15489_v18  ;;  %13043 = vmatprep.mubr.f32.mxu1 %v3870_v40  ;;  %v15492_v56 = vadd.f32 %v12578_v25, %v1720_v28  ;;  %v3344_v40 = vld [vmem:[#allocation2 + $0x140] sm:$0xff]  ;;  %v1610_v7 = vpop.f32.mrf.mxu0  ;;  %v19771_v28 = vld [vmem:[#allocation22_spill] sm:$0xff]  ;;  %13133 = vmatprep.subr.mxu0 %v4446_v48  ;;  %v3877_v30 = vld [vmem:[#allocation2 + $0x171] sm:$0xff] }
 0x1f7   :  { %v2129_v53 = vpop.f32.mrf.mxu1  ;;  %v1721_v25 = vadd.f32 %v1610_v7, %v19771_v28  ;;  %12919 = vmatmul.mubr.f32.gmra.mxu0 %v3344_v40  ;;  %v3347_v7 = vld [vmem:[#allocation2 + $0x168] sm:$0xff] }
 0x1f8   :  { %19768 = vst [vmem:[#allocation14_spill] sm:$0xff] %v15492_v56  ;;  %v15495_v59 = vadd.f32 %v2129_v53, %v1719_v4  ;;  %v12456_v18 = vpop.f32.mrf.mxu0  ;;  %v19773_v53 = vld [vmem:[#allocation23_spill] sm:$0xff]  ;;  %12921 = vmatprep.mubr.f32.mxu0 %v3345_v54  ;;  %13134 = vmatpush3.msra.mxu0 %v4446_v48 }
 0x1f9   :  { %v12581_v60 = vpop.f32.mrf.mxu1  ;;  %13044 = vmatmul.mubr.f32.gmra.mxu1 %v3871_v52  ;;  %v1724_v4 = vadd.f32 %v12456_v18, %v19773_v53  ;;  %v3876_v40 = vld [vmem:[#allocation2 + $0x169] sm:$0xff] }
 0x1fa   :  { %19770 = vst [vmem:[#allocation15_spill] sm:$0xff] %v15495_v59  ;;  %13046 = vmatprep.mubr.f32.mxu1 %v3872_v34  ;;  %v15498_v55 = vadd.f32 %v12581_v60, %v1722_v11  ;;  %v3346_v34 = vld [vmem:[#allocation2 + $0x158] sm:$0xff]  ;;  %v1620_v13 = vpop.f32.mrf.mxu0  ;;  %v4445_v18 = vld [vmem:[#allocation6 + $0x410] sm:$0xff] }
 0x1fb   :  { %v2139_v56 = vpop.f32.mrf.mxu1  ;;  %v19775_v11 = vld [vmem:[#allocation24_spill] sm:$0xff]  ;;  %12922 = vmatmul.mubr.f32.gmra.mxu0 %v3346_v34  ;;  %v3878_v34 = vld [vmem:[#allocation2 + $0x181] sm:$0xff]  ;;  %13135 = vmatprep.subr.mxu0 %v4445_v18  ;;  %v3879_v48 = vld [vmem:[#allocation2 + $0x189] sm:$0xff] }
 0x1fc   :  { %19772 = vst [vmem:[#allocation22_spill] sm:$0xff] %v15498_v55  ;;  %v15501_v52 = vadd.f32 %v2139_v56, %v1721_v25  ;;  %v1723_v60 = vadd.f32 %v1620_v13, %v19775_v11  ;;  %v12459_v59 = vpop.f32.mrf.mxu0  ;;  %v19777_v56 = vld [vmem:[#allocation25_spill] sm:$0xff]  ;;  %12924 = vmatprep.mubr.f32.mxu0 %v3347_v7  ;;  %13136 = vmatpush3.msra.mxu0 %v4445_v18 }
 0x1fd   :  { %v12584_v42 = vpop.f32.mrf.mxu1  ;;  %13047 = vmatmul.mubr.f32.gmra.mxu1 %v3873_v19  ;;  %v1726_v25 = vadd.f32 %v12459_v59, %v19777_v56  ;;  %v3349_v13 = vld [vmem:[#allocation2 + $0x180] sm:$0xff]  ;;  %v4444_v59 = vld [vmem:[#allocation6 + $0x408] sm:$0xff] }
 0x1fe   :  { %19774 = vst [vmem:[#allocation23_spill] sm:$0xff] %v15501_v52  ;;  %13049 = vmatprep.mubr.f32.mxu1 %v3874_v20  ;;  %v15504_v28 = vadd.f32 %v12584_v42, %v1724_v4  ;;  %v3348_v20 = vld [vmem:[#allocation2 + $0x170] sm:$0xff]  ;;  %v1630_v53 = vpop.f32.mrf.mxu0  ;;  %v19778_v4 = vld [vmem:[#allocation26_spill] sm:$0xff]  ;;  %13137 = vmatprep.subr.mxu0 %v4444_v59 }
 0x1ff   :  { %v2149_v55 = vpop.f32.mrf.mxu1  ;;  %v1725_v42 = vadd.f32 %v1630_v53, %v19778_v4  ;;  %12925 = vmatmul.mubr.f32.gmra.mxu0 %v3348_v20  ;;  %v3880_v4 = vld [vmem:[#allocation2 + $0x199] sm:$0xff] }
 0x200   :  { %19776 = vst [vmem:[#allocation24_spill] sm:$0xff] %v15504_v28  ;;  %v15507_v19 = vadd.f32 %v2149_v55, %v1723_v60  ;;  %v12462_v52 = vpop.f32.mrf.mxu0  ;;  %v19779_v55 = vld [vmem:[#allocation27_spill] sm:$0xff]  ;;  %12927 = vmatprep.mubr.f32.mxu0 %v3349_v13  ;;  %v15521_v13 = vld [vmem:[#allocation2] sm:$0xff]  ;;  %13138 = vmatpush3.msra.mxu0 %v4444_v59 }
 0x201   :  { %v12587_v54 = vpop.f32.mrf.mxu1  ;;  %13050 = vmatmul.mubr.f32.gmra.mxu1 %v3875_v46  ;;  %v1728_v60 = vadd.f32 %v12462_v52, %v19779_v55  ;;  %v4443_v52 = vld [vmem:[#allocation6 + $0x400] sm:$0xff]  ;;  %v3883_v59 = vld [vmem:[#allocation2 + $0x1e9] sm:$0xff] }
 0x202   :  { %13052 = vmatprep.mubr.f32.mxu1 %v3876_v40  ;;  %v15510_v11 = vadd.f32 %v12587_v54, %v1726_v25  ;;  %v3350_v40 = vld [vmem:[#allocation2 + $0x188] sm:$0xff]  ;;  %v1640_v56 = vpop.f32.mrf.mxu0  ;;  %13139 = vmatprep.subr.mxu0 %v4443_v52 }
 0x203   :  { %v2159_v28 = vpop.f32.mrf.mxu1  ;;  %v1727_v25 = vadd.f32 %v1640_v56, %v15326_v32  ;;  %12928 = vmatmul.mubr.f32.gmra.mxu0 %v3350_v40  ;;  %v3881_v32 = vld [vmem:[#allocation2 + $0x1a1] sm:$0xff] }
 0x204   :  { %v15513_v46 = vadd.f32 %v2159_v28, %v1725_v42  ;;  %v12465_v20 = vpop.f32.mrf.mxu0  ;;  %v19782_v28 = vld [vmem:[#allocation28_spill] sm:$0xff]  ;;  %12930 = vmatprep.mubr.f32.mxu0 %v15521_v13  ;;  %13140 = vmatpush3.msra.mxu0 %v4443_v52  ;;  %v3357_v52 = vld [vmem:[#allocation2 + $0x210] sm:$0xff] }
 0x205   :  { %v12590_v7 = vpop.f32.mrf.mxu1  ;;  %13053 = vmatmul.mubr.f32.gmra.mxu1 %v3877_v30  ;;  %v1730_v42 = vadd.f32 %v12465_v20, %v19782_v28 }
 0x206   :  { %19780 = vst [vmem:[#allocation25_spill] sm:$0xff] %v15513_v46  ;;  %13055 = vmatprep.mubr.f32.mxu1 %v3878_v34  ;;  %v15516_v54 = vadd.f32 %v12590_v7, %v1728_v60  ;;  %v1650_v18 = vpop.f32.mrf.mxu0  ;;  %v3353_v34 = vld [vmem:[#allocation2 + $0x1e0] sm:$0xff] }
 0x207   :  { %v2169_v53 = vpop.f32.mrf.mxu1  ;;  %v19784_v60 = vld [vmem:[#allocation29_spill] sm:$0xff]  ;;  %12931 = vmatmul.mubr.f32.gmra.mxu0 %v15521_v13 }
 0x208   :  { %19781 = vst [vmem:[#allocation26_spill] sm:$0xff] %v15516_v54  ;;  %v15519_v55 = vadd.f32 %v2169_v53, %v1727_v25  ;;  %v1729_v7 = vadd.f32 %v1650_v18, %v19784_v60  ;;  %v3882_v54 = vld [vmem:[#allocation2 + $0x1e1] sm:$0xff]  ;;  %v12468_v25 = vpop.f32.mrf.mxu0  ;;  %12933 = vmatprep.mubr.f32.mxu0 %v3353_v34  ;;  %v3355_v18 = vld [vmem:[#allocation2 + $0x1f8] sm:$0xff] }
 0x209   :  { %v12593_v30 = vpop.f32.mrf.mxu1  ;;  %13056 = vmatmul.mubr.f32.gmra.mxu1 %v3879_v48  ;;  %v19786_v48 = vld [vmem:[#allocation30_spill] sm:$0xff]  ;;  %v3356_v34 = vld [vmem:[#allocation2 + $0x200] sm:$0xff] }
 0x20a   :  { %19783 = vst [vmem:[#allocation27_spill] sm:$0xff] %v15519_v55  ;;  %13058 = vmatprep.mubr.f32.mxu1 %v3880_v4  ;;  %v15525_v56 = vadd.f32 %v12593_v30, %v1730_v42  ;;  %v1732_v53 = vadd.f32 %v12468_v25, %v19786_v48  ;;  %v3354_v4 = vld [vmem:[#allocation2 + $0x1e8] sm:$0xff]  ;;  %v1660_v55 = vpop.f32.mrf.mxu0 }
 0x20b   :  { %v2179_v40 = vpop.f32.mrf.mxu1  ;;  %v1731_v42 = vadd.f32 %v1660_v55, %v15337_v12  ;;  %12934 = vmatmul.mubr.f32.gmra.mxu0 %v3354_v4  ;;  %v3885_v48 = vld [vmem:[#allocation2 + $0x201] sm:$0xff] }
 0x20c   :  { %19785 = vst [vmem:[#allocation28_spill] sm:$0xff] %v15525_v56  ;;  %v15529_v20 = vadd.f32 %v2179_v40, %v1729_v7  ;;  %v3884_v56 = vld [vmem:[#allocation2 + $0x1f9] sm:$0xff]  ;;  %v12631_v46 = vpop.f32.mrf.mxu0  ;;  %v19788_v7 = vld [vmem:[#allocation31_spill] sm:$0xff]  ;;  %12936 = vmatprep.mubr.f32.mxu0 %v3355_v18 }
 0x20d   :  { %v12596_v28 = vpop.f32.mrf.mxu1  ;;  %13059 = vmatmul.mubr.f32.gmra.mxu1 %v3881_v32  ;;  %v2728_v40 = vadd.f32 %v12631_v46, %v19788_v7 }
 0x20e   :  { %13061 = vmatprep.mubr.f32.mxu1 %v3882_v54  ;;  %v15532_v30 = vadd.f32 %v12596_v28, %v1732_v53  ;;  %v2408_v54 = vpop.f32.mrf.mxu0  ;;  %v3886_v28 = vld [vmem:[#allocation2 + $0x211] sm:$0xff] }
 0x20f   :  { %v2189_v60 = vpop.f32.mrf.mxu1  ;;  %v2727_v12 = vadd.f32 %v2408_v54, %v15344_v17  ;;  %12937 = vmatmul.mubr.f32.gmra.mxu0 %v3356_v34 }
 0x210   :  { %19787 = vst [vmem:[#allocation29_spill] sm:$0xff] %v15532_v30  ;;  %v15534_v25 = vadd.f32 %v2189_v60, %v1731_v42  ;;  %v12634_v30 = vpop.f32.mrf.mxu0  ;;  %12939 = vmatprep.mubr.f32.mxu0 %v3357_v52  ;;  %v3359_v60 = vld [vmem:[#allocation2 + $0x228] sm:$0xff] }
 0x211   :  { %v12759_v32 = vpop.f32.mrf.mxu1  ;;  %13062 = vmatmul.mubr.f32.gmra.mxu1 %v3883_v59  ;;  %v2730_v4 = vadd.f32 %v12634_v30, %v15347_v15  ;;  %v3358_v59 = vld [vmem:[#allocation2 + $0x218] sm:$0xff] }
 0x212   :  { %13064 = vmatprep.mubr.f32.mxu1 %v3884_v56  ;;  %v15538_v55 = vadd.f32 %v12759_v32, %v2728_v40  ;;  %v2418_v18 = vpop.f32.mrf.mxu0  ;;  %v3887_v56 = vld [vmem:[#allocation2 + $0x219] sm:$0xff]  ;;  %v3888_v32 = vld [vmem:[#allocation2 + $0x229] sm:$0xff] }
 0x213   :  { %v2937_v53 = vpop.f32.mrf.mxu1  ;;  %v2729_v17 = vadd.f32 %v2418_v18, %v15350_v22  ;;  %12940 = vmatmul.mubr.f32.gmra.mxu0 %v3358_v59 }
 0x214   :  { %v15541_v42 = vadd.f32 %v2937_v53, %v2727_v12  ;;  %v12637_v54 = vpop.f32.mrf.mxu0  ;;  %12942 = vmatprep.mubr.f32.mxu0 %v3359_v60  ;;  %v3889_v12 = vld [vmem:[#allocation2 + $0x231] sm:$0xff]  ;;  %v3361_v53 = vld [vmem:[#allocation2 + $0x240] sm:$0xff] }
 0x215   :  { %v12762_v46 = vpop.f32.mrf.mxu1  ;;  %13065 = vmatmul.mubr.f32.gmra.mxu1 %v3885_v48  ;;  %v2732_v15 = vadd.f32 %v12637_v54, %v15353_v24  ;;  %v3360_v48 = vld [vmem:[#allocation2 + $0x230] sm:$0xff] }
 0x216   :  { %13067 = vmatprep.mubr.f32.mxu1 %v3886_v28  ;;  %v15544_v7 = vadd.f32 %v12762_v46, %v2730_v4  ;;  %v2428_v52 = vpop.f32.mrf.mxu0  ;;  %v3890_v46 = vld [vmem:[#allocation2 + $0x241] sm:$0xff] }
 0x217   :  { %v2947_v40 = vpop.f32.mrf.mxu1  ;;  %v2731_v22 = vadd.f32 %v2428_v52, %v15356_v3  ;;  %12943 = vmatmul.mubr.f32.gmra.mxu0 %v3360_v48 }
 0x218   :  { %v15547_v30 = vadd.f32 %v2947_v40, %v2729_v17  ;;  %v12640_v18 = vpop.f32.mrf.mxu0  ;;  %12945 = vmatprep.mubr.f32.mxu0 %v3361_v53  ;;  %v3891_v40 = vld [vmem:[#allocation2 + $0x249] sm:$0xff] }
 0x219   :  { %v12765_v34 = vpop.f32.mrf.mxu1  ;;  %13068 = vmatmul.mubr.f32.gmra.mxu1 %v3887_v56  ;;  %v2734_v24 = vadd.f32 %v12640_v18, %v15359_v43  ;;  %v3362_v56 = vld [vmem:[#allocation2 + $0x248] sm:$0xff] }
 0x21a   :  { %13070 = vmatprep.mubr.f32.mxu1 %v3888_v32  ;;  %v15550_v28 = vadd.f32 %v12765_v34, %v2732_v15  ;;  %v2438_v60 = vpop.f32.mrf.mxu0  ;;  %v3363_v32 = vld [vmem:[#allocation2 + $0x258] sm:$0xff] }
 0x21b   :  { %v2957_v4 = vpop.f32.mrf.mxu1  ;;  %v2733_v3 = vadd.f32 %v2438_v60, %v15362_v23  ;;  %v3892_v34 = vld [vmem:[#allocation2 + $0x259] sm:$0xff]  ;;  %12946 = vmatmul.mubr.f32.gmra.mxu0 %v3362_v56 }
 0x21c   :  { %v15553_v59 = vadd.f32 %v2957_v4, %v2731_v22  ;;  %v12643_v52 = vpop.f32.mrf.mxu0  ;;  %12948 = vmatprep.mubr.f32.mxu0 %v3363_v32  ;;  %v3893_v4 = vld [vmem:[#allocation2 + $0x261] sm:$0xff] }
 0x21d   :  { %v12768_v17 = vpop.f32.mrf.mxu1  ;;  %13071 = vmatmul.mubr.f32.gmra.mxu1 %v3889_v12  ;;  %v2736_v43 = vadd.f32 %v12643_v52, %v15365_v2  ;;  %v3364_v12 = vld [vmem:[#allocation2 + $0x260] sm:$0xff] }
 0x21e   :  { %13073 = vmatprep.mubr.f32.mxu1 %v3890_v46  ;;  %v15556_v54 = vadd.f32 %v12768_v17, %v2734_v24  ;;  %v2448_v53 = vpop.f32.mrf.mxu0  ;;  %v3365_v46 = vld [vmem:[#allocation2 + $0x270] sm:$0xff] }
 0x21f   :  { %v2967_v15 = vpop.f32.mrf.mxu1  ;;  %v2735_v23 = vadd.f32 %v2448_v53, %v15368_v5  ;;  %v3894_v17 = vld [vmem:[#allocation2 + $0x271] sm:$0xff]  ;;  %12949 = vmatmul.mubr.f32.gmra.mxu0 %v3364_v12 }
 0x220   :  { %v15559_v48 = vadd.f32 %v2967_v15, %v2733_v3  ;;  %v12646_v60 = vpop.f32.mrf.mxu0  ;;  %12951 = vmatprep.mubr.f32.mxu0 %v3365_v46  ;;  %v3895_v15 = vld [vmem:[#allocation2 + $0x279] sm:$0xff] }
 0x221   :  { %v12771_v22 = vpop.f32.mrf.mxu1  ;;  %13074 = vmatmul.mubr.f32.gmra.mxu1 %v3891_v40  ;;  %v2738_v2 = vadd.f32 %v12646_v60, %v15371_v63  ;;  %v3366_v40 = vld [vmem:[#allocation2 + $0x278] sm:$0xff] }
 0x222   :  { %13076 = vmatprep.mubr.f32.mxu1 %v3892_v34  ;;  %v15562_v18 = vadd.f32 %v12771_v22, %v2736_v43  ;;  %v2458_v32 = vpop.f32.mrf.mxu0  ;;  %v3367_v34 = vld [vmem:[#allocation2 + $0x288] sm:$0xff] }
 0x223   :  { %v2977_v24 = vpop.f32.mrf.mxu1  ;;  %v2737_v5 = vadd.f32 %v2458_v32, %v15374_v35  ;;  %v3896_v22 = vld [vmem:[#allocation2 + $0x289] sm:$0xff]  ;;  %12952 = vmatmul.mubr.f32.gmra.mxu0 %v3366_v40 }
 0x224   :  { %v15565_v56 = vadd.f32 %v2977_v24, %v2735_v23  ;;  %v12649_v53 = vpop.f32.mrf.mxu0  ;;  %12954 = vmatprep.mubr.f32.mxu0 %v3367_v34  ;;  %v3897_v24 = vld [vmem:[#allocation2 + $0x291] sm:$0xff] }
 0x225   :  { %v12774_v3 = vpop.f32.mrf.mxu1  ;;  %13077 = vmatmul.mubr.f32.gmra.mxu1 %v3893_v4  ;;  %v2740_v63 = vadd.f32 %v12649_v53, %v15377_v16  ;;  %v3368_v4 = vld [vmem:[#allocation2 + $0x290] sm:$0xff] }
 0x226   :  { %13079 = vmatprep.mubr.f32.mxu1 %v3894_v17  ;;  %v15568_v52 = vadd.f32 %v12774_v3, %v2738_v2  ;;  %v2468_v46 = vpop.f32.mrf.mxu0  ;;  %v3369_v17 = vld [vmem:[#allocation2 + $0x2a0] sm:$0xff] }
 0x227   :  { %v2987_v43 = vpop.f32.mrf.mxu1  ;;  %v2739_v35 = vadd.f32 %v2468_v46, %v15380_v26  ;;  %v3898_v3 = vld [vmem:[#allocation2 + $0x2a1] sm:$0xff]  ;;  %12955 = vmatmul.mubr.f32.gmra.mxu0 %v3368_v4 }
 0x228   :  { %v15571_v12 = vadd.f32 %v2987_v43, %v2737_v5  ;;  %v12652_v32 = vpop.f32.mrf.mxu0  ;;  %12957 = vmatprep.mubr.f32.mxu0 %v3369_v17  ;;  %v3899_v43 = vld [vmem:[#allocation2 + $0x2a9] sm:$0xff] }
 0x229   :  { %v12777_v23 = vpop.f32.mrf.mxu1  ;;  %13080 = vmatmul.mubr.f32.gmra.mxu1 %v3895_v15  ;;  %v2742_v16 = vadd.f32 %v12652_v32, %v15383_v10  ;;  %v3370_v15 = vld [vmem:[#allocation2 + $0x2a8] sm:$0xff] }
 0x22a   :  { %13082 = vmatprep.mubr.f32.mxu1 %v3896_v22  ;;  %v15574_v60 = vadd.f32 %v12777_v23, %v2740_v63  ;;  %v2478_v34 = vpop.f32.mrf.mxu0  ;;  %v3371_v22 = vld [vmem:[#allocation2 + $0x2b8] sm:$0xff] }
 0x22b   :  { %v2997_v2 = vpop.f32.mrf.mxu1  ;;  %v2741_v26 = vadd.f32 %v2478_v34, %v15386_v61  ;;  %v3900_v23 = vld [vmem:[#allocation2 + $0x2b9] sm:$0xff]  ;;  %12958 = vmatmul.mubr.f32.gmra.mxu0 %v3370_v15 }
 0x22c   :  { %v15577_v40 = vadd.f32 %v2997_v2, %v2739_v35  ;;  %v12655_v46 = vpop.f32.mrf.mxu0  ;;  %12960 = vmatprep.mubr.f32.mxu0 %v3371_v22  ;;  %v3901_v2 = vld [vmem:[#allocation2 + $0x2c1] sm:$0xff] }
 0x22d   :  { %v12780_v5 = vpop.f32.mrf.mxu1  ;;  %13083 = vmatmul.mubr.f32.gmra.mxu1 %v3897_v24  ;;  %v2744_v10 = vadd.f32 %v12655_v46, %v15389_v0  ;;  %v3372_v24 = vld [vmem:[#allocation2 + $0x2c0] sm:$0xff] }
 0x22e   :  { %13085 = vmatprep.mubr.f32.mxu1 %v3898_v3  ;;  %v15580_v53 = vadd.f32 %v12780_v5, %v2742_v16  ;;  %v2488_v17 = vpop.f32.mrf.mxu0  ;;  %v3373_v3 = vld [vmem:[#allocation2 + $0x2d0] sm:$0xff] }
 0x22f   :  { %v3007_v63 = vpop.f32.mrf.mxu1  ;;  %v15586_v61 = vadd.f32 %v2488_v17, %v15392_v31  ;;  %v3902_v5 = vld [vmem:[#allocation2 + $0x2d1] sm:$0xff]  ;;  %12961 = vmatmul.mubr.f32.gmra.mxu0 %v3372_v24 }
 0x230   :  { %v15583_v4 = vadd.f32 %v3007_v63, %v2741_v26  ;;  %v12658_v15 = vpop.f32.mrf.mxu0  ;;  %12963 = vmatprep.mubr.f32.mxu0 %v3373_v3  ;;  %v3903_v26 = vld [vmem:[#allocation2 + $0x2d9] sm:$0xff]  ;;  %v3375_v63 = vld [vmem:[#allocation2 + $0x2e8] sm:$0xff]  ;;  %v3376_v17 = vld [vmem:[#allocation2 + $0x2f0] sm:$0xff] }
 0x231   :  { %v12783_v35 = vpop.f32.mrf.mxu1  ;;  %13086 = vmatmul.mubr.f32.gmra.mxu1 %v3899_v43  ;;  %v2746_v0 = vadd.f32 %v12658_v15, %v15395_v49  ;;  %v3374_v43 = vld [vmem:[#allocation2 + $0x2d8] sm:$0xff] }
 0x232   :  { %13088 = vmatprep.mubr.f32.mxu1 %v3900_v23  ;;  %v15588_v32 = vadd.f32 %v12783_v35, %v2744_v10  ;;  %v2498_v22 = vpop.f32.mrf.mxu0  ;;  %v3904_v10 = vld [vmem:[#allocation2 + $0x2e9] sm:$0xff]  ;;  %v3905_v3 = vld [vmem:[#allocation2 + $0x2f1] sm:$0xff] }
 0x233   :  { %v15590_v16 = vpop.f32.mrf.mxu1  ;;  %v15594_v31 = vadd.f32 %v2498_v22, %v15398_v14  ;;  %12964 = vmatmul.mubr.f32.gmra.mxu0 %v3374_v43 }
 0x234   :  { %v12661_v35 = vpop.f32.mrf.mxu0  ;;  %12966 = vmatprep.mubr.f32.mxu0 %v3375_v63 }
 0x235   :  { %v12786_v34 = vpop.f32.mrf.mxu1  ;;  %13089 = vmatmul.mubr.f32.gmra.mxu1 %v3901_v2  ;;  %v2748_v49 = vadd.f32 %v12661_v35, %v15401_v57  ;;  %v3379_v35 = vld [vmem:[#allocation2 + $0x318] sm:$0xff] }
 0x236   :  { %13091 = vmatprep.mubr.f32.mxu1 %v3902_v5  ;;  %v15596_v23 = vadd.f32 %v12786_v34, %v2746_v0  ;;  %v2508_v2 = vpop.f32.mrf.mxu0  ;;  %v3377_v5 = vld [vmem:[#allocation2 + $0x300] sm:$0xff] }
 0x237   :  { %v15598_v46 = vpop.f32.mrf.mxu1  ;;  %v15602_v14 = vadd.f32 %v2508_v2, %v15404_v47  ;;  %v3906_v34 = vld [vmem:[#allocation2 + $0x301] sm:$0xff]  ;;  %12967 = vmatmul.mubr.f32.gmra.mxu0 %v3376_v17  ;;  %v3908_v2 = vld [vmem:[#allocation2 + $0x319] sm:$0xff] }
 0x238   :  { %v12664_v22 = vpop.f32.mrf.mxu0  ;;  %12969 = vmatprep.mubr.f32.mxu0 %v3377_v5 }
 0x239   :  { %v12789_v24 = vpop.f32.mrf.mxu1  ;;  %13092 = vmatmul.mubr.f32.gmra.mxu1 %v3903_v26  ;;  %19789 = vst [vmem:[#allocation30_spill] sm:$0xff] %v15602_v14  ;;  %v2750_v57 = vadd.f32 %v12664_v22, %v15407_v6  ;;  %v3378_v26 = vld [vmem:[#allocation2 + $0x308] sm:$0xff]  ;;  %v3381_v22 = vld [vmem:[#allocation2 + $0x330] sm:$0xff] }
 0x23a   :  { %13094 = vmatprep.mubr.f32.mxu1 %v3904_v10  ;;  %v15604_v15 = vadd.f32 %v12789_v24, %v2748_v49  ;;  %v2518_v63 = vpop.f32.mrf.mxu0  ;;  %v3907_v10 = vld [vmem:[#allocation2 + $0x309] sm:$0xff] }
 0x23b   :  { %v15606_v0 = vpop.f32.mrf.mxu1  ;;  %v15610_v47 = vadd.f32 %v2518_v63, %v15410_v37  ;;  %12970 = vmatmul.mubr.f32.gmra.mxu0 %v3378_v26  ;;  %v3910_v63 = vld [vmem:[#allocation2 + $0x331] sm:$0xff] }
 0x23c   :  { %19790 = vst [vmem:[#allocation31_spill] sm:$0xff] %v15606_v0  ;;  %v12667_v0 = vpop.f32.mrf.mxu0  ;;  %12972 = vmatprep.mubr.f32.mxu0 %v3379_v35  ;;  %v3382_v26 = vld [vmem:[#allocation2 + $0x338] sm:$0xff] }
 0x23d   :  { %v12792_v43 = vpop.f32.mrf.mxu1  ;;  %13095 = vmatmul.mubr.f32.gmra.mxu1 %v3905_v3  ;;  %19791 = vst [vmem:[#allocation34_spill] sm:$0xff] %v15610_v47  ;;  %v2752_v6 = vadd.f32 %v12667_v0, %v15413_v44  ;;  %v3380_v3 = vld [vmem:[#allocation2 + $0x320] sm:$0xff] }
 0x23e   :  { %13097 = vmatprep.mubr.f32.mxu1 %v3906_v34  ;;  %v15612_v49 = vadd.f32 %v12792_v43, %v2750_v57  ;;  %v2528_v5 = vpop.f32.mrf.mxu0  ;;  %v3909_v34 = vld [vmem:[#allocation2 + $0x321] sm:$0xff]  ;;  %v3911_v35 = vld [vmem:[#allocation2 + $0x339] sm:$0xff] }
 0x23f   :  { %v15614_v24 = vpop.f32.mrf.mxu1  ;;  %v15618_v37 = vadd.f32 %v2528_v5, %v15416_v58  ;;  %12973 = vmatmul.mubr.f32.gmra.mxu0 %v3380_v3 }
 0x240   :  { %19792 = vst [vmem:[#allocation35_spill] sm:$0xff] %v15614_v24  ;;  %v12670_v24 = vpop.f32.mrf.mxu0  ;;  %12975 = vmatprep.mubr.f32.mxu0 %v3381_v22  ;;  %v4379_v22 = vld [vmem:[#allocation2 + $0x32] sm:$0xff] }
 0x241   :  { %v12795_v17 = vpop.f32.mrf.mxu1  ;;  %13098 = vmatmul.mubr.f32.gmra.mxu1 %v3907_v10  ;;  %19793 = vst [vmem:[#allocation36_spill] sm:$0xff] %v15618_v37  ;;  %v2754_v44 = vadd.f32 %v12670_v24, %v15419_v41 }
 0x242   :  { %13100 = vmatprep.mubr.f32.mxu1 %v3908_v2  ;;  %v15620_v57 = vadd.f32 %v12795_v17, %v2752_v6  ;;  %v2538_v10 = vpop.f32.mrf.mxu0  ;;  %v3912_v17 = vld [vmem:[#allocation2 + $0x349] sm:$0xff] }
 0x243   :  { %v15622_v43 = vpop.f32.mrf.mxu1  ;;  %v15626_v2 = vadd.f32 %v2538_v10, %v15422_v36  ;;  %12976 = vmatmul.mubr.f32.gmra.mxu0 %v3382_v26  ;;  %v4380_v10 = vld [vmem:[#allocation2 + $0x3a] sm:$0xff] }
 0x244   :  { %19794 = vst [vmem:[#allocation37_spill] sm:$0xff] %v15622_v43  ;;  %v12673_v5 = vpop.f32.mrf.mxu0  ;;  %12978 = vmatprep.mubr.f32.mxu0 %v15521_v13 }
 0x245   :  { %v12798_v0 = vpop.f32.mrf.mxu1  ;;  %13101 = vmatmul.mubr.f32.gmra.mxu1 %v3909_v34  ;;  %19795 = vst [vmem:[#allocation38_spill] sm:$0xff] %v15626_v2  ;;  %v2756_v3 = vadd.f32 %v12673_v5, %v15425_v33  ;;  %v3913_v34 = vld [vmem:[#allocation2 + $0x351] sm:$0xff] }
 0x246   :  { %13103 = vmatprep.mubr.f32.mxu1 %v3910_v63  ;;  %v15628_v58 = vadd.f32 %v12798_v0, %v2754_v44  ;;  %v2548_v24 = vpop.f32.mrf.mxu0 }
 0x247   :  { %v15630_v6 = vpop.f32.mrf.mxu1  ;;  %v15635_v36 = vadd.f32 %v2548_v24, %v15428_v39  ;;  %12979 = vmatmul.mubr.f32.gmra.mxu0 %v15521_v13 }
 0x248   :  { %19796 = vst [vmem:[#allocation39_spill] sm:$0xff] %v15630_v6  ;;  %v12676_v0 = vpop.f32.mrf.mxu0  ;;  %13141 = vmatprep.mubr.f32.mxu0 %v4379_v22 }
 0x249   :  { %v12801_v41 = vpop.f32.mrf.mxu1  ;;  %13104 = vmatmul.mubr.f32.gmra.mxu1 %v3911_v35  ;;  %19797 = vst [vmem:[#allocation40_spill] sm:$0xff] %v15635_v36  ;;  %v2758_v33 = vadd.f32 %v12676_v0, %v15431_v45  ;;  %v4382_v45 = vld [vmem:[#allocation2 + $0x52] sm:$0xff] }
 0x24a   :  { %13106 = vmatprep.mubr.f32.mxu1 %v3912_v17  ;;  %v15637_v63 = vadd.f32 %v12801_v41, %v2756_v3  ;;  %v2558_v35 = vpop.f32.mrf.mxu0  ;;  %v4381_v17 = vld [vmem:[#allocation2 + $0x4a] sm:$0xff] }
 0x24b   :  { %v15639_v44 = vpop.f32.mrf.mxu1  ;;  %v15644_v5 = vadd.f32 %v2558_v35, %v15434_v62  ;;  %13142 = vmatmul.mubr.f32.vlgmr.msra.gmra.mxu0 %v4380_v10  ;;  %v4384_v10 = vld [vmem:[#allocation2 + $0x6a] sm:$0xff] }
 0x24c   :  { %19798 = vst [vmem:[#allocation41_spill] sm:$0xff] %v15639_v44  ;;  %v12679_v41 = vpop.f32.mrf.mxu0  ;;  %13144 = vmatprep.mubr.f32.mxu0 %v4381_v17 }
 0x24d   :  { %v12804_v26 = vpop.f32.mrf.mxu1  ;;  %13107 = vmatmul.mubr.f32.gmra.mxu1 %v3913_v34  ;;  %19799 = vst [vmem:[#allocation42_spill] sm:$0xff] %v15644_v5  ;;  %v2760_v24 = vadd.f32 %v12679_v41, %v15438_v29  ;;  %v4383_v34 = vld [vmem:[#allocation2 + $0x62] sm:$0xff]  ;;  %v4385_v41 = vld [vmem:[#allocation2 + $0x7a] sm:$0xff] }
 0x24e   :  { %v15646_v39 = vadd.f32 %v12804_v26, %v2758_v33  ;;  %v2568_v0 = vpop.f32.mrf.mxu0 }
 0x24f   :  { %v15648_v3 = vpop.f32.mrf.mxu1  ;;  %v15652_v22 = vadd.f32 %v2568_v0, %v15441_v1  ;;  %13145 = vmatmul.mubr.f32.gmra.mxu0 %v4382_v45  ;;  %v4386_v45 = vld [vmem:[#allocation2 + $0x82] sm:$0xff] }
 0x250   :  { %19800 = vst [vmem:[#allocation43_spill] sm:$0xff] %v15648_v3  ;;  %v12682_v33 = vpop.f32.mrf.mxu0  ;;  %13147 = vmatprep.mubr.f32.mxu0 %v4383_v34 }
 0x251   :  { %v12807_v13 = vpop.f32.mrf.mxu1  ;;  %19801 = vst [vmem:[#allocation44_spill] sm:$0xff] %v15652_v22  ;;  %v2762_v26 = vadd.f32 %v12682_v33, %v15444_v38  ;;  %v4387_v33 = vld [vmem:[#allocation2 + $0x92] sm:$0xff] }
 0x252   :  { %v15654_v44 = vadd.f32 %v12807_v13, %v2760_v24  ;;  %v2578_v29 = vpop.f32.mrf.mxu0  ;;  %v19805_v13 = vld [vmem:[#allocation32_spill] sm:$0xff] }
 0x253   :  { %v15656_v62 = vpop.f32.mrf.mxu1  ;;  %v15660_v17 = vadd.f32 %v2578_v29, %v15447_v21  ;;  %13148 = vmatmul.mubr.f32.gmra.mxu0 %v4384_v10  ;;  %v4388_v10 = vld [vmem:[#allocation2 + $0x9a] sm:$0xff] }
 0x254   :  { %19802 = vst [vmem:[#allocation45_spill] sm:$0xff] %v15656_v62  ;;  %v12685_v24 = vpop.f32.mrf.mxu0  ;;  %13150 = vmatprep.mubr.f32.mxu0 %v4385_v41 }
 0x255   :  { %v12810_v35 = vpop.f32.mrf.mxu1  ;;  %19803 = vst [vmem:[#allocation46_spill] sm:$0xff] %v15660_v17  ;;  %v2764_v0 = vadd.f32 %v12685_v24, %v19805_v13  ;;  %v4389_v13 = vld [vmem:[#allocation2 + $0xaa] sm:$0xff] }
 0x256   :  { %v15662_v3 = vadd.f32 %v12810_v35, %v2762_v26  ;;  %v2588_v38 = vpop.f32.mrf.mxu0 }
 0x257   :  { %v15664_v1 = vpop.f32.mrf.mxu1  ;;  %v15668_v34 = vadd.f32 %v2588_v38, %v15453_v51  ;;  %13151 = vmatmul.mubr.f32.gmra.mxu0 %v4386_v45  ;;  %v4390_v45 = vld [vmem:[#allocation2 + $0xb2] sm:$0xff] }
 0x258   :  { %19804 = vst [vmem:[#allocation47_spill] sm:$0xff] %v15664_v1  ;;  %v12688_v26 = vpop.f32.mrf.mxu0  ;;  %13153 = vmatprep.mubr.f32.mxu0 %v4387_v33 }
 0x259   :  { %v12813_v62 = vpop.f32.mrf.mxu1  ;;  %19806 = vst [vmem:[#allocation32_spill] sm:$0xff] %v15668_v34  ;;  %v2766_v35 = vadd.f32 %v12688_v26, %v15456_v9  ;;  %v4391_v26 = vld [vmem:[#allocation2 + $0xc2] sm:$0xff] }
 0x25a   :  { %v15670_v22 = vadd.f32 %v12813_v62, %v2764_v0  ;;  %v2598_v24 = vpop.f32.mrf.mxu0 }
 0x25b   :  { %v15672_v21 = vpop.f32.mrf.mxu1  ;;  %v15676_v41 = vadd.f32 %v2598_v24, %v15459_v50  ;;  %13154 = vmatmul.mubr.f32.gmra.mxu0 %v4388_v10  ;;  %v4392_v10 = vld [vmem:[#allocation2 + $0xca] sm:$0xff] }
 0x25c   :  { %19807 = vst [vmem:[#allocation48_spill] sm:$0xff] %v15672_v21  ;;  %v12691_v62 = vpop.f32.mrf.mxu0  ;;  %13156 = vmatprep.mubr.f32.mxu0 %v4389_v13  ;;  %v19813_v13 = vld [vmem:[#allocation33_spill] sm:$0xff] }
 0x25d   :  { %v12816_v29 = vpop.f32.mrf.mxu1  ;;  %19808 = vst [vmem:[#allocation49_spill] sm:$0xff] %v15676_v41  ;;  %v2768_v0 = vadd.f32 %v12691_v62, %v15462_v8  ;;  %v4393_v62 = vld [vmem:[#allocation2 + $0xda] sm:$0xff] }
 0x25e   :  { %v15678_v1 = vadd.f32 %v12816_v29, %v2766_v35  ;;  %v2608_v9 = vpop.f32.mrf.mxu0  ;;  %v19812_v29 = vld [vmem:[#allocation16_spill] sm:$0xff] }
 0x25f   :  { %v15680_v51 = vpop.f32.mrf.mxu1  ;;  %v15684_v33 = vadd.f32 %v2608_v9, %v15465_v27  ;;  %13157 = vmatmul.mubr.f32.gmra.mxu0 %v4390_v45  ;;  %v4394_v45 = vld [vmem:[#allocation2 + $0xe2] sm:$0xff] }
 0x260   :  { %19809 = vst [vmem:[#allocation50_spill] sm:$0xff] %v15680_v51  ;;  %v12694_v35 = vpop.f32.mrf.mxu0  ;;  %13159 = vmatprep.mubr.f32.mxu0 %v4391_v26  ;;  %v19817_v26 = vld [vmem:[#allocation18_spill] sm:$0xff] }
 0x261   :  { %v12819_v38 = vpop.f32.mrf.mxu1  ;;  %19810 = vst [vmem:[#allocation51_spill] sm:$0xff] %v15684_v33  ;;  %v2770_v24 = vadd.f32 %v12694_v35, %v19812_v29  ;;  %v4395_v29 = vld [vmem:[#allocation2 + $0xf2] sm:$0xff] }
 0x262   :  { %v15686_v21 = vadd.f32 %v12819_v38, %v2768_v0  ;;  %v2618_v8 = vpop.f32.mrf.mxu0  ;;  %v19816_v38 = vld [vmem:[#allocation17_spill] sm:$0xff] }
 0x263   :  { %v15688_v50 = vpop.f32.mrf.mxu1  ;;  %v15692_v41 = vadd.f32 %v2618_v8, %v19813_v13  ;;  %13160 = vmatmul.mubr.f32.gmra.mxu0 %v4392_v10  ;;  %v4396_v10 = vld [vmem:[#allocation2 + $0xfa] sm:$0xff] }
 0x264   :  { %19811 = vst [vmem:[#allocation52_spill] sm:$0xff] %v15688_v50  ;;  %v12697_v0 = vpop.f32.mrf.mxu0  ;;  %13162 = vmatprep.mubr.f32.mxu0 %v4393_v62  ;;  %v19821_v62 = vld [vmem:[#allocation20_spill] sm:$0xff] }
 0x265   :  { %v12822_v51 = vpop.f32.mrf.mxu1  ;;  %19814 = vst [vmem:[#allocation16_spill] sm:$0xff] %v15692_v41  ;;  %v2772_v9 = vadd.f32 %v12697_v0, %v19816_v38  ;;  %v4397_v38 = vld [vmem:[#allocation2 + $0x10a] sm:$0xff] }
 0x266   :  { %v15694_v34 = vadd.f32 %v12822_v51, %v2770_v24  ;;  %v2628_v35 = vpop.f32.mrf.mxu0  ;;  %v19820_v24 = vld [vmem:[#allocation19_spill] sm:$0xff] }
 0x267   :  { %v15696_v27 = vpop.f32.mrf.mxu1  ;;  %v15700_v33 = vadd.f32 %v2628_v35, %v19817_v26  ;;  %13163 = vmatmul.mubr.f32.gmra.mxu0 %v4394_v45  ;;  %v4398_v45 = vld [vmem:[#allocation2 + $0x112] sm:$0xff] }
 0x268   :  { %19815 = vst [vmem:[#allocation33_spill] sm:$0xff] %v15696_v27  ;;  %v12700_v51 = vpop.f32.mrf.mxu0  ;;  %13165 = vmatprep.mubr.f32.mxu0 %v4395_v29  ;;  %v19825_v29 = vld [vmem:[#allocation13_spill] sm:$0xff] }
 0x269   :  { %v12825_v50 = vpop.f32.mrf.mxu1  ;;  %19818 = vst [vmem:[#allocation17_spill] sm:$0xff] %v15700_v33  ;;  %v2774_v13 = vadd.f32 %v12700_v51, %v19820_v24  ;;  %v4399_v24 = vld [vmem:[#allocation2 + $0x122] sm:$0xff] }
 0x26a   :  { %v15702_v17 = vadd.f32 %v12825_v50, %v2772_v9  ;;  %v2638_v0 = vpop.f32.mrf.mxu0  ;;  %v19824_v9 = vld [vmem:[#allocation21_spill] sm:$0xff] }
 0x26b   :  { %v15704_v8 = vpop.f32.mrf.mxu1  ;;  %v15708_v41 = vadd.f32 %v2638_v0, %v19821_v62  ;;  %13166 = vmatmul.mubr.f32.gmra.mxu0 %v4396_v10  ;;  %v4400_v10 = vld [vmem:[#allocation2 + $0x12a] sm:$0xff] }
 0x26c   :  { %19819 = vst [vmem:[#allocation18_spill] sm:$0xff] %v15704_v8  ;;  %v12703_v50 = vpop.f32.mrf.mxu0  ;;  %13168 = vmatprep.mubr.f32.mxu0 %v4397_v38  ;;  %v19829_v38 = vld [vmem:[#allocation15_spill] sm:$0xff] }
 0x26d   :  { %v12828_v27 = vpop.f32.mrf.mxu1  ;;  %19822 = vst [vmem:[#allocation19_spill] sm:$0xff] %v15708_v41  ;;  %v2776_v26 = vadd.f32 %v12703_v50, %v19824_v9  ;;  %v4401_v9 = vld [vmem:[#allocation2 + $0x13a] sm:$0xff] }
 0x26e   :  { %v15710_v5 = vadd.f32 %v12828_v27, %v2774_v13  ;;  %v2648_v51 = vpop.f32.mrf.mxu0  ;;  %v19828_v13 = vld [vmem:[#allocation14_spill] sm:$0xff] }
 0x26f   :  { %v15712_v35 = vpop.f32.mrf.mxu1  ;;  %v15716_v33 = vadd.f32 %v2648_v51, %v19825_v29  ;;  %13169 = vmatmul.mubr.f32.gmra.mxu0 %v4398_v45  ;;  %v4402_v45 = vld [vmem:[#allocation2 + $0x142] sm:$0xff] }
 0x270   :  { %19823 = vst [vmem:[#allocation20_spill] sm:$0xff] %v15712_v35  ;;  %v12706_v27 = vpop.f32.mrf.mxu0  ;;  %13171 = vmatprep.mubr.f32.mxu0 %v4399_v24  ;;  %v19833_v24 = vld [vmem:[#allocation23_spill] sm:$0xff] }
 0x271   :  { %v12831_v8 = vpop.f32.mrf.mxu1  ;;  %19826 = vst [vmem:[#allocation21_spill] sm:$0xff] %v15716_v33  ;;  %v2778_v62 = vadd.f32 %v12706_v27, %v19828_v13  ;;  %v4403_v13 = vld [vmem:[#allocation2 + $0x152] sm:$0xff] }
 0x272   :  { %v15718_v36 = vadd.f32 %v12831_v8, %v2776_v26  ;;  %v2658_v50 = vpop.f32.mrf.mxu0  ;;  %v19832_v26 = vld [vmem:[#allocation22_spill] sm:$0xff] }
 0x273   :  { %v15720_v0 = vpop.f32.mrf.mxu1  ;;  %v15724_v41 = vadd.f32 %v2658_v50, %v19829_v38  ;;  %13172 = vmatmul.mubr.f32.gmra.mxu0 %v4400_v10  ;;  %v4404_v10 = vld [vmem:[#allocation2 + $0x15a] sm:$0xff] }
 0x274   :  { %19827 = vst [vmem:[#allocation13_spill] sm:$0xff] %v15720_v0  ;;  %v12709_v8 = vpop.f32.mrf.mxu0  ;;  %13174 = vmatprep.mubr.f32.mxu0 %v4401_v9 }
 0x275   :  { %v12834_v35 = vpop.f32.mrf.mxu1  ;;  %19830 = vst [vmem:[#allocation14_spill] sm:$0xff] %v15724_v41  ;;  %v2780_v29 = vadd.f32 %v12709_v8, %v19832_v26  ;;  %v4405_v26 = vld [vmem:[#allocation2 + $0x16a] sm:$0xff] }
 0x276   :  { %v15726_v6 = vadd.f32 %v12834_v35, %v2778_v62  ;;  %v2668_v27 = vpop.f32.mrf.mxu0  ;;  %v19836_v62 = vld [vmem:[#allocation24_spill] sm:$0xff] }
 0x277   :  { %v15728_v51 = vpop.f32.mrf.mxu1  ;;  %v15732_v33 = vadd.f32 %v2668_v27, %v19833_v24  ;;  %13175 = vmatmul.mubr.f32.gmra.mxu0 %v4402_v45  ;;  %v4406_v45 = vld [vmem:[#allocation2 + $0x172] sm:$0xff] }
 0x278   :  { %19831 = vst [vmem:[#allocation15_spill] sm:$0xff] %v15728_v51  ;;  %v12712_v35 = vpop.f32.mrf.mxu0  ;;  %13177 = vmatprep.mubr.f32.mxu0 %v4403_v13  ;;  %v19839_v13 = vld [vmem:[#allocation25_spill] sm:$0xff] }
 0x279   :  { %v12837_v0 = vpop.f32.mrf.mxu1  ;;  %19834 = vst [vmem:[#allocation22_spill] sm:$0xff] %v15732_v33  ;;  %v2782_v38 = vadd.f32 %v12712_v35, %v19836_v62  ;;  %v4407_v62 = vld [vmem:[#allocation2 + $0x182] sm:$0xff] }
 0x27a   :  { %v15734_v2 = vadd.f32 %v12837_v0, %v2780_v29  ;;  %v2678_v8 = vpop.f32.mrf.mxu0 }
 0x27b   :  { %v15736_v50 = vpop.f32.mrf.mxu1  ;;  %v15740_v9 = vadd.f32 %v2678_v8, %v15507_v19  ;;  %13178 = vmatmul.mubr.f32.gmra.mxu0 %v4404_v10  ;;  %v4408_v10 = vld [vmem:[#allocation2 + $0x18a] sm:$0xff] }
 0x27c   :  { %19835 = vst [vmem:[#allocation23_spill] sm:$0xff] %v15736_v50  ;;  %v12715_v0 = vpop.f32.mrf.mxu0  ;;  %13180 = vmatprep.mubr.f32.mxu0 %v4405_v26  ;;  %v19843_v26 = vld [vmem:[#allocation27_spill] sm:$0xff] }
 0x27d   :  { %v12840_v51 = vpop.f32.mrf.mxu1  ;;  %19837 = vst [vmem:[#allocation24_spill] sm:$0xff] %v15740_v9  ;;  %v2784_v29 = vadd.f32 %v12715_v0, %v15510_v11  ;;  %v4409_v0 = vld [vmem:[#allocation2 + $0x19a] sm:$0xff] }
 0x27e   :  { %v15742_v41 = vadd.f32 %v12840_v51, %v2782_v38  ;;  %v2688_v35 = vpop.f32.mrf.mxu0  ;;  %v19842_v38 = vld [vmem:[#allocation26_spill] sm:$0xff] }
 0x27f   :  { %v15744_v27 = vpop.f32.mrf.mxu1  ;;  %v15748_v50 = vadd.f32 %v2688_v35, %v19839_v13  ;;  %13181 = vmatmul.mubr.f32.gmra.mxu0 %v4406_v45  ;;  %v4410_v45 = vld [vmem:[#allocation2 + $0x1a2] sm:$0xff] }
 0x280   :  { %19838 = vst [vmem:[#allocation53_spill] sm:$0xff] %v15744_v27  ;;  %v12718_v51 = vpop.f32.mrf.mxu0  ;;  %13183 = vmatprep.mubr.f32.mxu0 %v4407_v62 }
 0x281   :  { %v12843_v24 = vpop.f32.mrf.mxu1  ;;  %19840 = vst [vmem:[#allocation25_spill] sm:$0xff] %v15748_v50  ;;  %v2786_v8 = vadd.f32 %v12718_v51, %v19842_v38  ;;  %v4411_v38 = vld [vmem:[#allocation2 + $0x1e2] sm:$0xff] }
 0x282   :  { %v15750_v33 = vadd.f32 %v12843_v24, %v2784_v29  ;;  %v2698_v11 = vpop.f32.mrf.mxu0  ;;  %v19846_v24 = vld [vmem:[#allocation28_spill] sm:$0xff] }
 0x283   :  { %v15752_v19 = vpop.f32.mrf.mxu1  ;;  %v15756_v9 = vadd.f32 %v2698_v11, %v19843_v26  ;;  %13184 = vmatmul.mubr.f32.gmra.mxu0 %v4408_v10  ;;  %v4412_v10 = vld [vmem:[#allocation2 + $0x1ea] sm:$0xff] }
 0x284   :  { %19841 = vst [vmem:[#allocation54_spill] sm:$0xff] %v15752_v19  ;;  %v12721_v29 = vpop.f32.mrf.mxu0  ;;  %13186 = vmatprep.mubr.f32.mxu0 %v4409_v0 }
 0x285   :  { %v12846_v27 = vpop.f32.mrf.mxu1  ;;  %19844 = vst [vmem:[#allocation26_spill] sm:$0xff] %v15756_v9  ;;  %v2788_v13 = vadd.f32 %v12721_v29, %v19846_v24  ;;  %v4413_v24 = vld [vmem:[#allocation2 + $0x1fa] sm:$0xff] }
 0x286   :  { %v15758_v43 = vadd.f32 %v12846_v27, %v2786_v8  ;;  %v2708_v51 = vpop.f32.mrf.mxu0  ;;  %v19849_v8 = vld [vmem:[#allocation29_spill] sm:$0xff] }
 0x287   :  { %v15760_v35 = vpop.f32.mrf.mxu1  ;;  %v15764_v62 = vadd.f32 %v2708_v51, %v15529_v20  ;;  %13187 = vmatmul.mubr.f32.gmra.mxu0 %v4410_v45  ;;  %v4414_v45 = vld [vmem:[#allocation2 + $0x202] sm:$0xff] }
 0x288   :  { %19845 = vst [vmem:[#allocation27_spill] sm:$0xff] %v15760_v35  ;;  %v12724_v27 = vpop.f32.mrf.mxu0  ;;  %13189 = vmatprep.mubr.f32.mxu0 %v4411_v38  ;;  %v4415_v38 = vld [vmem:[#allocation2 + $0x212] sm:$0xff] }
 0x289   :  { %v12849_v19 = vpop.f32.mrf.mxu1  ;;  %19847 = vst [vmem:[#allocation28_spill] sm:$0xff] %v15764_v62  ;;  %v2790_v26 = vadd.f32 %v12724_v27, %v19849_v8 }
 0x28a   :  { %v15766_v50 = vadd.f32 %v12849_v19, %v2788_v13  ;;  %v2718_v29 = vpop.f32.mrf.mxu0 }
 0x28b   :  { %v15768_v11 = vpop.f32.mrf.mxu1  ;;  %v15772_v0 = vadd.f32 %v2718_v29, %v15534_v25  ;;  %13190 = vmatmul.mubr.f32.gmra.mxu0 %v4412_v10  ;;  %v4417_v29 = vld [vmem:[#allocation2 + $0x22a] sm:$0xff] }
 0x28c   :  { %19848 = vst [vmem:[#allocation55_spill] sm:$0xff] %v15768_v11  ;;  %v12887_v19 = vpop.f32.mrf.mxu0  ;;  %13192 = vmatprep.mubr.f32.mxu0 %v4413_v24 }
 0x28d   :  { %v12852_v35 = vpop.f32.mrf.mxu1  ;;  %19850 = vst [vmem:[#allocation29_spill] sm:$0xff] %v15772_v0  ;;  %v15779_v13 = vadd.f32 %v12887_v19, %v15538_v55 }
 0x28e   :  { %v15774_v9 = vadd.f32 %v12852_v35, %v2790_v26  ;;  %v3467_v51 = vpop.f32.mrf.mxu0  ;;  %v4416_v26 = vld [vmem:[#allocation2 + $0x21a] sm:$0xff] }
 0x28f   :  { %v15776_v20 = vpop.f32.mrf.mxu1  ;;  %v15784_v8 = vadd.f32 %v3467_v51, %v15541_v42  ;;  %13193 = vmatmul.mubr.f32.gmra.mxu0 %v4414_v45  ;;  %v4418_v42 = vld [vmem:[#allocation2 + $0x232] sm:$0xff]  ;;  %v4419_v51 = vld [vmem:[#allocation2 + $0x242] sm:$0xff] }
 0x290   :  { %19851 = vst [vmem:[#allocation56_spill] sm:$0xff] %v15776_v20  ;;  %v12890_v25 = vpop.f32.mrf.mxu0  ;;  %13195 = vmatprep.mubr.f32.mxu0 %v4415_v38 }
 0x291   :  { %v15781_v27 = vpop.f32.mrf.mxu1  ;;  %v15787_v35 = vadd.f32 %v12890_v25, %v15544_v7 }
 0x292   :  { %v3477_v55 = vpop.f32.mrf.mxu0 }
 0x293   :  { %v15789_v10 = vpop.f32.mrf.mxu1  ;;  %v15792_v24 = vadd.f32 %v3477_v55, %v15547_v30  ;;  %13196 = vmatmul.mubr.f32.gmra.mxu0 %v4416_v26  ;;  %v4420_v30 = vld [vmem:[#allocation2 + $0x24a] sm:$0xff]  ;;  %v4421_v55 = vld [vmem:[#allocation2 + $0x25a] sm:$0xff] }
 0x294   :  { %v12893_v19 = vpop.f32.mrf.mxu0  ;;  %13198 = vmatprep.mubr.f32.mxu0 %v4417_v29 }
 0x295   :  { %v15795_v20 = vadd.f32 %v12893_v19, %v15550_v28  ;;  %v15797_v45 = vpop.f32.mrf.mxu1 }
 0x296   :  { %v3487_v7 = vpop.f32.mrf.mxu0 }
 0x297   :  { %v15800_v38 = vadd.f32 %v3487_v7, %v15553_v59  ;;  %13199 = vmatmul.mubr.f32.gmra.mxu0 %v4418_v42  ;;  %v15805_v26 = vpop.f32.mrf.mxu1  ;;  %v4422_v59 = vld [vmem:[#allocation2 + $0x262] sm:$0xff]  ;;  %v4423_v7 = vld [vmem:[#allocation2 + $0x272] sm:$0xff] }
 0x298   :  { %v12896_v25 = vpop.f32.mrf.mxu0  ;;  %13201 = vmatprep.mubr.f32.mxu0 %v4419_v51 }
 0x299   :  { %v15803_v0 = vadd.f32 %v12896_v25, %v15556_v54  ;;  %v15813_v42 = vpop.f32.mrf.mxu1 }
 0x29a   :  { %v3497_v28 = vpop.f32.mrf.mxu0 }
 0x29b   :  { %v15808_v29 = vadd.f32 %v3497_v28, %v15559_v48  ;;  %13202 = vmatmul.mubr.f32.gmra.mxu0 %v4420_v30  ;;  %v4424_v48 = vld [vmem:[#allocation2 + $0x27a] sm:$0xff]  ;;  %v15821_v30 = vpop.f32.mrf.mxu1  ;;  %v4425_v28 = vld [vmem:[#allocation2 + $0x28a] sm:$0xff] }
 0x29c   :  { %v12899_v19 = vpop.f32.mrf.mxu0  ;;  %13204 = vmatprep.mubr.f32.mxu0 %v4421_v55 }
 0x29d   :  { %v15811_v11 = vadd.f32 %v12899_v19, %v15562_v18 }
 0x29e   :  { %v3507_v54 = vpop.f32.mrf.mxu0 }
 0x29f   :  { %v15816_v51 = vadd.f32 %v3507_v54, %v15565_v56  ;;  %13205 = vmatmul.mubr.f32.gmra.mxu0 %v4422_v59  ;;  %v4426_v56 = vld [vmem:[#allocation2 + $0x292] sm:$0xff]  ;;  %v15829_v59 = vpop.f32.mrf.mxu1  ;;  %v4427_v54 = vld [vmem:[#allocation2 + $0x2a2] sm:$0xff] }
 0x2a0   :  { %v12902_v25 = vpop.f32.mrf.mxu0  ;;  %13207 = vmatprep.mubr.f32.mxu0 %v4423_v7 }
 0x2a1   :  { %v15819_v62 = vadd.f32 %v12902_v25, %v15568_v52 }
 0x2a2   :  { %v3517_v18 = vpop.f32.mrf.mxu0 }
 0x2a3   :  { %v15824_v55 = vadd.f32 %v3517_v18, %v15571_v12  ;;  %13208 = vmatmul.mubr.f32.gmra.mxu0 %v4424_v48  ;;  %v4428_v12 = vld [vmem:[#allocation2 + $0x2aa] sm:$0xff]  ;;  %v15837_v48 = vpop.f32.mrf.mxu1  ;;  %v4429_v18 = vld [vmem:[#allocation2 + $0x2ba] sm:$0xff] }
 0x2a4   :  { %v12905_v19 = vpop.f32.mrf.mxu0  ;;  %13210 = vmatprep.mubr.f32.mxu0 %v4425_v28 }
 0x2a5   :  { %v15827_v37 = vadd.f32 %v12905_v19, %v15574_v60 }
 0x2a6   :  { %v3527_v52 = vpop.f32.mrf.mxu0 }
 0x2a7   :  { %v15832_v7 = vadd.f32 %v3527_v52, %v15577_v40  ;;  %13211 = vmatmul.mubr.f32.gmra.mxu0 %v4426_v56  ;;  %v4430_v40 = vld [vmem:[#allocation2 + $0x2c2] sm:$0xff]  ;;  %v15845_v56 = vpop.f32.mrf.mxu1  ;;  %v4431_v52 = vld [vmem:[#allocation2 + $0x2d2] sm:$0xff] }
 0x2a8   :  { %v12908_v25 = vpop.f32.mrf.mxu0  ;;  %13213 = vmatprep.mubr.f32.mxu0 %v4427_v54 }
 0x2a9   :  { %v15835_v47 = vadd.f32 %v12908_v25, %v15580_v53 }
 0x2aa   :  { %v3537_v60 = vpop.f32.mrf.mxu0 }
 0x2ab   :  { %19852 = vst [vmem:[#allocation57_spill] sm:$0xff] %v15835_v47  ;;  %v15840_v28 = vadd.f32 %v3537_v60, %v15583_v4  ;;  %13214 = vmatmul.mubr.f32.gmra.mxu0 %v4428_v12  ;;  %v4432_v4 = vld [vmem:[#allocation2 + $0x2da] sm:$0xff]  ;;  %v15852_v60 = vpop.f32.mrf.mxu1 }
 0x2ac   :  { %v12911_v19 = vpop.f32.mrf.mxu0  ;;  %13216 = vmatprep.mubr.f32.mxu0 %v4429_v18 }
 0x2ad   :  { %v15843_v14 = vadd.f32 %v12911_v19, %v15588_v32  ;;  %v4433_v32 = vld [vmem:[#allocation2 + $0x2ea] sm:$0xff]  ;;  %v15859_v47 = vpop.f32.mrf.mxu1 }
 0x2ae   :  { %v15847_v53 = vpop.f32.mrf.mxu0 }
 0x2af   :  { %19853 = vst [vmem:[#allocation58_spill] sm:$0xff] %v15843_v14  ;;  %13217 = vmatmul.mubr.f32.gmra.mxu0 %v4430_v40  ;;  %v4434_v14 = vld [vmem:[#allocation2 + $0x2f2] sm:$0xff] }
 0x2b0   :  { %v12914_v54 = vpop.f32.mrf.mxu0  ;;  %13219 = vmatprep.mubr.f32.mxu0 %v4431_v52 }
 0x2b1   :  { %v15850_v25 = vadd.f32 %v12914_v54, %v15596_v23  ;;  %v4435_v23 = vld [vmem:[#allocation2 + $0x302] sm:$0xff] }
 0x2b2   :  { %v15854_v12 = vpop.f32.mrf.mxu0 }
 0x2b3   :  { %19854 = vst [vmem:[#allocation59_spill] sm:$0xff] %v15850_v25  ;;  %19855 = vst [vmem:[#allocation60_spill] sm:$0xff] %v15854_v12  ;;  %13220 = vmatmul.mubr.f32.gmra.mxu0 %v4432_v4  ;;  %v4436_v25 = vld [vmem:[#allocation2 + $0x30a] sm:$0xff]  ;;  %v15866_v12 = vpop.f32.mrf.mxu1 }
 0x2b4   :  { %v12917_v19 = vpop.f32.mrf.mxu0  ;;  %13222 = vmatprep.mubr.f32.mxu0 %v4433_v32 }
 0x2b5   :  { %v15857_v18 = vadd.f32 %v12917_v19, %v15604_v15  ;;  %v4437_v15 = vld [vmem:[#allocation2 + $0x31a] sm:$0xff] }
 0x2b6   :  { %v15861_v40 = vpop.f32.mrf.mxu0 }
 0x2b7   :  { %19856 = vst [vmem:[#allocation61_spill] sm:$0xff] %v15857_v18  ;;  %19857 = vst [vmem:[#allocation62_spill] sm:$0xff] %v15861_v40  ;;  %13223 = vmatmul.mubr.f32.gmra.mxu0 %v4434_v14  ;;  %v4438_v18 = vld [vmem:[#allocation2 + $0x322] sm:$0xff]  ;;  %v15873_v40 = vpop.f32.mrf.mxu1 }
 0x2b8   :  { %v12920_v54 = vpop.f32.mrf.mxu0  ;;  %13225 = vmatprep.mubr.f32.mxu0 %v4435_v23 }
 0x2b9   :  { %v15864_v52 = vadd.f32 %v12920_v54, %v15612_v49  ;;  %v4439_v49 = vld [vmem:[#allocation2 + $0x332] sm:$0xff] }
 0x2ba   :  { %v15868_v4 = vpop.f32.mrf.mxu0 }
 0x2bb   :  { %19858 = vst [vmem:[#allocation63_spill] sm:$0xff] %v15864_v52  ;;  %19859 = vst [vmem:[#allocation64_spill] sm:$0xff] %v15868_v4  ;;  %13226 = vmatmul.mubr.f32.gmra.mxu0 %v4436_v25  ;;  %v4440_v52 = vld [vmem:[#allocation2 + $0x33a] sm:$0xff]  ;;  %v15880_v4 = vpop.f32.mrf.mxu1 }
 0x2bc   :  { %v12923_v19 = vpop.f32.mrf.mxu0  ;;  %13228 = vmatprep.mubr.f32.mxu0 %v4437_v15 }
 0x2bd   :  { %v15871_v32 = vadd.f32 %v12923_v19, %v15620_v57  ;;  %v4441_v57 = vld [vmem:[#allocation2 + $0x34a] sm:$0xff] }
 0x2be   :  { %v15875_v14 = vpop.f32.mrf.mxu0 }
 0x2bf   :  { %19860 = vst [vmem:[#allocation65_spill] sm:$0xff] %v15871_v32  ;;  %19861 = vst [vmem:[#allocation66_spill] sm:$0xff] %v15875_v14  ;;  %13229 = vmatmul.mubr.f32.gmra.mxu0 %v4438_v18  ;;  %v4442_v32 = vld [vmem:[#allocation2 + $0x352] sm:$0xff]  ;;  %v15887_v14 = vpop.f32.mrf.mxu1 }
 0x2c0   :  { %v12926_v54 = vpop.f32.mrf.mxu0  ;;  %13231 = vmatprep.mubr.f32.mxu0 %v4439_v49 }
 0x2c1   :  { %v15878_v23 = vadd.f32 %v12926_v54, %v15628_v58  ;;  %v14401_v54 = vld [vmem:[#allocation2] sm:$0xff] }
 0x2c2   :  { %v15882_v25 = vpop.f32.mrf.mxu0 }
 0x2c3   :  { %19862 = vst [vmem:[#allocation67_spill] sm:$0xff] %v15878_v23  ;;  %19863 = vst [vmem:[#allocation68_spill] sm:$0xff] %v15882_v25  ;;  %13232 = vmatmul.mubr.f32.gmra.mxu0 %v4440_v52  ;;  %v15894_v23 = vpop.f32.mrf.mxu1 }
 0x2c4   :  { %v12929_v19 = vpop.f32.mrf.mxu0  ;;  %13234 = vmatprep.mubr.f32.mxu0 %v4441_v57 }
 0x2c5   :  { %v15885_v15 = vadd.f32 %v12929_v19, %v15637_v63  ;;  %v15901_v57 = vpop.f32.mrf.mxu1 }
 0x2c6   :  { %v15889_v18 = vpop.f32.mrf.mxu0 }
 0x2c7   :  { %19864 = vst [vmem:[#allocation69_spill] sm:$0xff] %v15885_v15  ;;  %13235 = vmatmul.mubr.f32.gmra.mxu0 %v4442_v32 }
 0x2c8   :  { %v12932_v58 = vpop.f32.mrf.mxu0  ;;  %13397 = vmatprep.mubr.f32.mxu0 %v14401_v54 }
 0x2c9   :  { %v15892_v49 = vadd.f32 %v12932_v58, %v15646_v39  ;;  %v15908_v39 = vpop.f32.mrf.mxu1 }
 0x2ca   :  { %v15896_v25 = vpop.f32.mrf.mxu0 }
 0x2cb   :  { %19865 = vst [vmem:[#allocation70_spill] sm:$0xff] %v15892_v49  ;;  %19866 = vst [vmem:[#allocation71_spill] sm:$0xff] %v15896_v25  ;;  %v15915_v25 = vpop.f32.mrf.mxu1 }
 0x2cc   :  { %v12935_v52 = vpop.f32.mrf.mxu0 }
 0x2cd   :  { %v15899_v63 = vadd.f32 %v12935_v52, %v15654_v44 }
 0x2ce   :  { %v15903_v19 = vpop.f32.mrf.mxu0 }
 0x2cf   :  { %19867 = vst [vmem:[#allocation72_spill] sm:$0xff] %v15899_v63  ;;  %19868 = vst [vmem:[#allocation73_spill] sm:$0xff] %v15903_v19  ;;  %v15922_v19 = vpop.f32.mrf.mxu1 }
 0x2d0   :  { %v12938_v15 = vpop.f32.mrf.mxu0 }
 0x2d1   :  { %v15906_v32 = vadd.f32 %v12938_v15, %v15662_v3 }
 0x2d2   :  { %v15910_v58 = vpop.f32.mrf.mxu0 }
 0x2d3   :  { %19869 = vst [vmem:[#allocation74_spill] sm:$0xff] %v15906_v32  ;;  %19870 = vst [vmem:[#allocation75_spill] sm:$0xff] %v15910_v58  ;;  %v15929_v58 = vpop.f32.mrf.mxu1 }
 0x2d4   :  { %v12941_v54 = vpop.f32.mrf.mxu0 }
 0x2d5   :  { %v15913_v49 = vadd.f32 %v12941_v54, %v15670_v22 }
 0x2d6   :  { %v15917_v44 = vpop.f32.mrf.mxu0 }
 0x2d7   :  { %19871 = vst [vmem:[#allocation76_spill] sm:$0xff] %v15913_v49  ;;  %19872 = vst [vmem:[#allocation77_spill] sm:$0xff] %v15917_v44  ;;  %v15936_v44 = vpop.f32.mrf.mxu1 }
 0x2d8   :  { %v12944_v52 = vpop.f32.mrf.mxu0 }
 0x2d9   :  { %v15920_v63 = vadd.f32 %v12944_v52, %v15678_v1 }
 0x2da   :  { %v15924_v3 = vpop.f32.mrf.mxu0 }
 0x2db   :  { %19873 = vst [vmem:[#allocation78_spill] sm:$0xff] %v15920_v63  ;;  %19874 = vst [vmem:[#allocation79_spill] sm:$0xff] %v15924_v3  ;;  %v15943_v3 = vpop.f32.mrf.mxu1 }
 0x2dc   :  { %v12947_v15 = vpop.f32.mrf.mxu0 }
 0x2dd   :  { %v15927_v32 = vadd.f32 %v12947_v15, %v15686_v21 }
 0x2de   :  { %v15931_v22 = vpop.f32.mrf.mxu0 }
 0x2df   :  { %19875 = vst [vmem:[#allocation80_spill] sm:$0xff] %v15927_v32  ;;  %19876 = vst [vmem:[#allocation81_spill] sm:$0xff] %v15931_v22  ;;  %v15950_v22 = vpop.f32.mrf.mxu1 }
 0x2e0   :  { %v12950_v54 = vpop.f32.mrf.mxu0 }
 0x2e1   :  { %v15934_v49 = vadd.f32 %v12950_v54, %v15694_v34 }
 0x2e2   :  { %v15938_v1 = vpop.f32.mrf.mxu0 }
 0x2e3   :  { %19877 = vst [vmem:[#allocation82_spill] sm:$0xff] %v15934_v49  ;;  %19878 = vst [vmem:[#allocation83_spill] sm:$0xff] %v15938_v1  ;;  %v15957_v1 = vpop.f32.mrf.mxu1 }
 0x2e4   :  { %v12953_v52 = vpop.f32.mrf.mxu0 }
 0x2e5   :  { %v15941_v63 = vadd.f32 %v12953_v52, %v15702_v17 }
 0x2e6   :  { %v15945_v21 = vpop.f32.mrf.mxu0 }
 0x2e7   :  { %19879 = vst [vmem:[#allocation84_spill] sm:$0xff] %v15941_v63  ;;  %19880 = vst [vmem:[#allocation85_spill] sm:$0xff] %v15945_v21  ;;  %v15964_v21 = vpop.f32.mrf.mxu1 }
 0x2e8   :  { %v12956_v15 = vpop.f32.mrf.mxu0 }
 0x2e9   :  { %v15948_v32 = vadd.f32 %v12956_v15, %v15710_v5 }
 0x2ea   :  { %v15952_v34 = vpop.f32.mrf.mxu0 }
 0x2eb   :  { %19881 = vst [vmem:[#allocation86_spill] sm:$0xff] %v15948_v32  ;;  %19882 = vst [vmem:[#allocation87_spill] sm:$0xff] %v15952_v34  ;;  %v15971_v34 = vpop.f32.mrf.mxu1 }
 0x2ec   :  { %v12959_v54 = vpop.f32.mrf.mxu0 }
 0x2ed   :  { %v15955_v49 = vadd.f32 %v12959_v54, %v15718_v36 }
 0x2ee   :  { %v15959_v17 = vpop.f32.mrf.mxu0 }
 0x2ef   :  { %19883 = vst [vmem:[#allocation88_spill] sm:$0xff] %v15955_v49  ;;  %19884 = vst [vmem:[#allocation89_spill] sm:$0xff] %v15959_v17  ;;  %v15978_v17 = vpop.f32.mrf.mxu1 }
 0x2f0   :  { %v12962_v52 = vpop.f32.mrf.mxu0 }
 0x2f1   :  { %v15962_v63 = vadd.f32 %v12962_v52, %v15726_v6 }
 0x2f2   :  { %v15966_v5 = vpop.f32.mrf.mxu0 }
 0x2f3   :  { %19885 = vst [vmem:[#allocation90_spill] sm:$0xff] %v15962_v63  ;;  %19886 = vst [vmem:[#allocation91_spill] sm:$0xff] %v15966_v5  ;;  %v15985_v5 = vpop.f32.mrf.mxu1 }
 0x2f4   :  { %v12965_v15 = vpop.f32.mrf.mxu0 }
 0x2f5   :  { %v15969_v32 = vadd.f32 %v12965_v15, %v15734_v2 }
 0x2f6   :  { %v15973_v36 = vpop.f32.mrf.mxu0 }
 0x2f7   :  { %19887 = vst [vmem:[#allocation92_spill] sm:$0xff] %v15969_v32  ;;  %19888 = vst [vmem:[#allocation93_spill] sm:$0xff] %v15973_v36  ;;  %v15992_v36 = vpop.f32.mrf.mxu1 }
 0x2f8   :  { %v12968_v54 = vpop.f32.mrf.mxu0 }
 0x2f9   :  { %v15976_v49 = vadd.f32 %v12968_v54, %v15742_v41 }
 0x2fa   :  { %v15980_v6 = vpop.f32.mrf.mxu0 }
 0x2fb   :  { %19889 = vst [vmem:[#allocation94_spill] sm:$0xff] %v15976_v49  ;;  %19890 = vst [vmem:[#allocation95_spill] sm:$0xff] %v15980_v6  ;;  %v15999_v6 = vpop.f32.mrf.mxu1 }
 0x2fc   :  { %v12971_v52 = vpop.f32.mrf.mxu0 }
 0x2fd   :  { %v15983_v63 = vadd.f32 %v12971_v52, %v15750_v33 }
 0x2fe   :  { %v15987_v2 = vpop.f32.mrf.mxu0 }
 0x2ff   :  { %19891 = vst [vmem:[#allocation96_spill] sm:$0xff] %v15983_v63  ;;  %19892 = vst [vmem:[#allocation97_spill] sm:$0xff] %v15987_v2  ;;  %v16006_v2 = vpop.f32.mrf.mxu1 }
 0x300   :  { %v12974_v15 = vpop.f32.mrf.mxu0 }
 0x301   :  { %v15990_v32 = vadd.f32 %v12974_v15, %v15758_v43 }
 0x302   :  { %v15994_v41 = vpop.f32.mrf.mxu0 }
 0x303   :  { %19893 = vst [vmem:[#allocation98_spill] sm:$0xff] %v15990_v32  ;;  %19894 = vst [vmem:[#allocation99_spill] sm:$0xff] %v15994_v41  ;;  %v4315_v32 = vadd.f32 %v15789_v10, %v15784_v8  ;;  %v16012_v41 = vpop.f32.mrf.mxu1  ;;  %v4318_v8 = vadd.f32 %v15797_v45, %v15787_v35 }
 0x304   :  { %v12977_v54 = vpop.f32.mrf.mxu0  ;;  %19899 = vst [vmem:[#allocation104_spill] sm:$0xff] %v16012_v41 }
 0x305   :  { %v15997_v49 = vadd.f32 %v12977_v54, %v15766_v50  ;;  %v4316_v54 = vadd.f32 %v15781_v27, %v15779_v13  ;;  %v4319_v27 = vadd.f32 %v15821_v30, %v15800_v38 }
 0x306   :  { %v16001_v33 = vpop.f32.mrf.mxu0 }
 0x307   :  { %19895 = vst [vmem:[#allocation100_spill] sm:$0xff] %v15997_v49  ;;  %19896 = vst [vmem:[#allocation101_spill] sm:$0xff] %v16001_v33 }
 0x308   :  { %v12980_v52 = vpop.f32.mrf.mxu0 }
 0x309   :  { %v16004_v63 = vadd.f32 %v12980_v52, %v15774_v9  ;;  %v4317_v9 = vadd.f32 %v15805_v26, %v15792_v24 }
 0x30a   :  { %v16008_v43 = vpop.f32.mrf.mxu0 }
 0x30b   :  { %19897 = vst [vmem:[#allocation102_spill] sm:$0xff] %v16004_v63  ;;  %19898 = vst [vmem:[#allocation103_spill] sm:$0xff] %v16008_v43  ;;  %v16022_v63 = vpop.f32.mrf.mxu1 }
 0x30c   :  { %v13143_v15 = vpop.f32.mrf.mxu0 }
 0x30d   :  { %v16020_v52 = vadd.f32 %v13143_v15, %v4316_v54  ;;  %v16035_v26 = vpop.f32.mrf.mxu1  ;;  %v4321_v54 = vadd.f32 %v15837_v48, %v15808_v29 }
 0x30e   :  { %v4525_v50 = vpop.f32.mrf.mxu0 }
 0x30f   :  { %v16016_v49 = vadd.f32 %v4525_v50, %v4315_v32  ;;  %v4320_v50 = vadd.f32 %v15813_v42, %v15795_v20  ;;  %v16047_v30 = vpop.f32.mrf.mxu1 }
 0x310   :  { %v13146_v33 = vpop.f32.mrf.mxu0 }
 0x311   :  { %v4908_v10 = vadd.f32 %v16020_v52, %v16016_v49  ;;  %v16032_v32 = vadd.f32 %v13146_v33, %v4318_v8  ;;  %v4322_v8 = vadd.f32 %v15829_v59, %v15803_v0  ;;  %v16059_v48 = vpop.f32.mrf.mxu1 }
 0x312   :  { %v4535_v43 = vpop.f32.mrf.mxu0 }
 0x313   :  { %v16028_v41 = vadd.f32 %v4535_v43, %v4317_v9 }
 0x314   :  { %v13149_v13 = vpop.f32.mrf.mxu0 }
 0x315   :  { %v4909_v24 = vadd.f32 %v4908_v10, %v16028_v41  ;;  %v16044_v9 = vadd.f32 %v13149_v13, %v4320_v50 }
 0x316   :  { %v4545_v15 = vpop.f32.mrf.mxu0 }
 0x317   :  { %v4910_v35 = vadd.f32 %v4909_v24, %v16032_v32  ;;  %v16040_v45 = vadd.f32 %v4545_v15, %v4319_v27  ;;  %v4323_v27 = vadd.f32 %v15852_v60, %v15816_v51  ;;  %v4324_v15 = vadd.f32 %v15845_v56, %v15811_v11  ;;  %v16071_v60 = vpop.f32.mrf.mxu1 }
 0x318   :  { %v13152_v43 = vpop.f32.mrf.mxu0 }
 0x319   :  { %v4911_v38 = vadd.f32 %v4910_v35, %v16040_v45  ;;  %v16056_v24 = vadd.f32 %v13152_v43, %v4322_v8  ;;  %v4325_v35 = vadd.f32 %v15866_v12, %v15824_v55  ;;  %v4327_v8 = vadd.f32 %v15880_v4, %v15832_v7  ;;  %v16083_v12 = vpop.f32.mrf.mxu1 }
 0x31a   :  { %v4555_v33 = vpop.f32.mrf.mxu0  ;;  %v4329_v7 = vadd.f32 %v15894_v23, %v15840_v28  ;;  %v19901_v23 = vld [vmem:[#allocation60_spill] sm:$0xff] }
 0x31b   :  { %v16051_v10 = vadd.f32 %v4555_v33, %v4321_v54  ;;  %v4912_v20 = vadd.f32 %v4911_v38, %v16044_v9  ;;  %v4326_v38 = vadd.f32 %v15859_v47, %v15819_v62  ;;  %v4328_v47 = vadd.f32 %v15873_v40, %v15827_v37  ;;  %v19900_v37 = vld [vmem:[#allocation57_spill] sm:$0xff] }
 0x31c   :  { %v13155_v42 = vpop.f32.mrf.mxu0  ;;  %v4330_v40 = vadd.f32 %v15887_v14, %v19900_v37  ;;  %v19904_v14 = vld [vmem:[#allocation58_spill] sm:$0xff] }
 0x31d   :  { %v4913_v29 = vadd.f32 %v4912_v20, %v16051_v10  ;;  %v16068_v54 = vadd.f32 %v13155_v42, %v4324_v15  ;;  %v19906_v37 = vld [vmem:[#allocation34_spill] sm:$0xff] }
 0x31e   :  { %v4565_v13 = vpop.f32.mrf.mxu0 }
 0x31f   :  { %v16063_v50 = vadd.f32 %v4565_v13, %v4323_v27  ;;  %v4914_v0 = vadd.f32 %v4913_v29, %v16056_v24  ;;  %v3272_v27 = vadd.f32 %v15590_v16, %v15586_v61  ;;  %v3274_v16 = vadd.f32 %v15598_v46, %v15594_v31  ;;  %v19902_v31 = vld [vmem:[#allocation30_spill] sm:$0xff]  ;;  %v19903_v46 = vld [vmem:[#allocation31_spill] sm:$0xff] }
 0x320   :  { %v13158_v59 = vpop.f32.mrf.mxu0 }
 0x321   :  { %v4915_v51 = vadd.f32 %v4914_v0, %v16063_v50  ;;  %v16080_v20 = vadd.f32 %v13158_v59, %v4326_v38  ;;  %v3802_v4 = vadd.f32 %v15847_v53, %v3272_v27  ;;  %v16098_v59 = vpop.f32.mrf.mxu1 }
 0x322   :  { %v4575_v43 = vpop.f32.mrf.mxu0 }
 0x323   :  { %v16075_v33 = vadd.f32 %v4575_v43, %v4325_v35  ;;  %v4916_v11 = vadd.f32 %v4915_v51, %v16068_v54  ;;  %v4331_v53 = vadd.f32 %v15908_v39, %v3802_v4  ;;  %v3804_v43 = vadd.f32 %v19901_v23, %v3274_v16 }
 0x324   :  { %v13161_v56 = vpop.f32.mrf.mxu0 }
 0x325   :  { %v4917_v55 = vadd.f32 %v4916_v11, %v16075_v33  ;;  %v16095_v15 = vadd.f32 %v13161_v56, %v4328_v47  ;;  %v16112_v56 = vpop.f32.mrf.mxu1 }
 0x326   :  { %v4585_v42 = vpop.f32.mrf.mxu0 }
 0x327   :  { %v16089_v62 = vadd.f32 %v4585_v42, %v4327_v8  ;;  %v4918_v29 = vadd.f32 %v4917_v55, %v16080_v20  ;;  %v3276_v55 = vadd.f32 %v19903_v46, %v19902_v31  ;;  %v4332_v42 = vadd.f32 %v15901_v57, %v19904_v14  ;;  %v19908_v57 = vld [vmem:[#allocation59_spill] sm:$0xff] }
 0x328   :  { %v13164_v13 = vpop.f32.mrf.mxu0 }
 0x329   :  { %v4919_v0 = vadd.f32 %v4918_v29, %v16089_v62  ;;  %v16109_v38 = vadd.f32 %v13164_v13, %v4330_v40  ;;  %v4333_v29 = vadd.f32 %v15922_v19, %v3804_v43  ;;  %v19905_v13 = vld [vmem:[#allocation62_spill] sm:$0xff]  ;;  %v19907_v40 = vld [vmem:[#allocation35_spill] sm:$0xff] }
 0x32a   :  { %v4595_v61 = vpop.f32.mrf.mxu0 }
 0x32b   :  { %v16104_v35 = vadd.f32 %v4595_v61, %v4329_v7  ;;  %v4920_v51 = vadd.f32 %v4919_v0, %v16095_v15  ;;  %v3806_v7 = vadd.f32 %v19905_v13, %v3276_v55  ;;  %v16126_v61 = vpop.f32.mrf.mxu1 }
 0x32c   :  { %v13167_v28 = vpop.f32.mrf.mxu0 }
 0x32d   :  { %v4921_v11 = vadd.f32 %v4920_v51, %v16104_v35  ;;  %v16123_v4 = vadd.f32 %v13167_v28, %v4332_v42  ;;  %v3278_v51 = vadd.f32 %v19907_v40, %v19906_v37  ;;  %v4335_v43 = vadd.f32 %v15936_v44, %v3806_v7  ;;  %v19909_v28 = vld [vmem:[#allocation64_spill] sm:$0xff]  ;;  %v16140_v55 = vpop.f32.mrf.mxu1 }
 0x32e   :  { %v4605_v8 = vpop.f32.mrf.mxu0  ;;  %v19910_v42 = vld [vmem:[#allocation36_spill] sm:$0xff] }
 0x32f   :  { %v16118_v27 = vadd.f32 %v4605_v8, %v4331_v53  ;;  %v4922_v47 = vadd.f32 %v4921_v11, %v16109_v38  ;;  %v4334_v53 = vadd.f32 %v15915_v25, %v19908_v57  ;;  %v3808_v8 = vadd.f32 %v19909_v28, %v3278_v51  ;;  %v19912_v25 = vld [vmem:[#allocation61_spill] sm:$0xff]  ;;  %v16154_v57 = vpop.f32.mrf.mxu1  ;;  %v19916_v28 = vld [vmem:[#allocation39_spill] sm:$0xff] }
 0x330   :  { %v13170_v39 = vpop.f32.mrf.mxu0 }
 0x331   :  { %v4923_v0 = vadd.f32 %v4922_v47, %v16118_v27  ;;  %v16137_v31 = vadd.f32 %v13170_v39, %v4334_v53  ;;  %v19911_v47 = vld [vmem:[#allocation37_spill] sm:$0xff]  ;;  %v4337_v7 = vadd.f32 %v15950_v22, %v3808_v8  ;;  %v19913_v39 = vld [vmem:[#allocation66_spill] sm:$0xff] }
 0x332   :  { %v4615_v16 = vpop.f32.mrf.mxu0  ;;  %v3280_v13 = vadd.f32 %v19911_v47, %v19910_v42 }
 0x333   :  { %v16132_v23 = vadd.f32 %v4615_v16, %v4333_v29  ;;  %v4924_v11 = vadd.f32 %v4923_v0, %v16123_v4  ;;  %v4336_v29 = vadd.f32 %v15929_v58, %v19912_v25  ;;  %v19917_v58 = vld [vmem:[#allocation63_spill] sm:$0xff] }
 0x334   :  { %v13173_v19 = vpop.f32.mrf.mxu0  ;;  %v3810_v37 = vadd.f32 %v19913_v39, %v3280_v13  ;;  %v19920_v39 = vld [vmem:[#allocation40_spill] sm:$0xff] }
 0x335   :  { %v4925_v46 = vadd.f32 %v4924_v11, %v16132_v23  ;;  %v16151_v40 = vadd.f32 %v13173_v19, %v4336_v29  ;;  %v19915_v11 = vld [vmem:[#allocation38_spill] sm:$0xff]  ;;  %v19919_v19 = vld [vmem:[#allocation68_spill] sm:$0xff]  ;;  %v16168_v29 = vpop.f32.mrf.mxu1 }
 0x336   :  { %v4625_v14 = vpop.f32.mrf.mxu0  ;;  %v3282_v42 = vadd.f32 %v19916_v28, %v19915_v11  ;;  %v4339_v8 = vadd.f32 %v15964_v21, %v3810_v37  ;;  %v19921_v11 = vld [vmem:[#allocation41_spill] sm:$0xff] }
 0x337   :  { %v16146_v16 = vadd.f32 %v4625_v14, %v4335_v43  ;;  %v4926_v0 = vadd.f32 %v4925_v46, %v16137_v31  ;;  %19914 = vst [vmem:[#allocation57_spill] sm:$0xff] %v16151_v40  ;;  %v4338_v43 = vadd.f32 %v15943_v3, %v19917_v58  ;;  %v3284_v28 = vadd.f32 %v19921_v11, %v19920_v39  ;;  %v19922_v3 = vld [vmem:[#allocation65_spill] sm:$0xff]  ;;  %v19925_v39 = vld [vmem:[#allocation43_spill] sm:$0xff] }
 0x338   :  { %v13176_v44 = vpop.f32.mrf.mxu0  ;;  %v3812_v47 = vadd.f32 %v19919_v19, %v3282_v42  ;;  %v19924_v19 = vld [vmem:[#allocation42_spill] sm:$0xff] }
 0x339   :  { %v4927_v51 = vadd.f32 %v4926_v0, %v16146_v16  ;;  %v16165_v13 = vadd.f32 %v13176_v44, %v4338_v43  ;;  %v3814_v44 = vadd.f32 %v15889_v18, %v3284_v28  ;;  %v16182_v43 = vpop.f32.mrf.mxu1  ;;  %v3286_v11 = vadd.f32 %v19925_v39, %v19924_v19  ;;  %v19929_v19 = vld [vmem:[#allocation44_spill] sm:$0xff]  ;;  %v19930_v39 = vld [vmem:[#allocation45_spill] sm:$0xff] }
 0x33a   :  { %v4635_v53 = vpop.f32.mrf.mxu0  ;;  %v4341_v37 = vadd.f32 %v15978_v17, %v3812_v47 }
 0x33b   :  { %v16160_v14 = vadd.f32 %v4635_v53, %v4337_v7  ;;  %v4928_v46 = vadd.f32 %v4927_v51, %v16151_v40  ;;  %v4340_v7 = vadd.f32 %v15957_v1, %v19922_v3  ;;  %v19926_v1 = vld [vmem:[#allocation67_spill] sm:$0xff]  ;;  %v4343_v18 = vadd.f32 %v15992_v36, %v3814_v44 }
 0x33c   :  { %v13179_v22 = vpop.f32.mrf.mxu0 }
 0x33d   :  { %19918 = vst [vmem:[#allocation60_spill] sm:$0xff] %v16160_v14  ;;  %v4929_v25 = vadd.f32 %v4928_v46, %v16160_v14  ;;  %v16179_v42 = vadd.f32 %v13179_v22, %v4340_v7  ;;  %v19928_v22 = vld [vmem:[#allocation71_spill] sm:$0xff]  ;;  %v16196_v7 = vpop.f32.mrf.mxu1 }
 0x33e   :  { %v4645_v0 = vpop.f32.mrf.mxu0  ;;  %v3816_v47 = vadd.f32 %v19928_v22, %v3286_v11 }
 0x33f   :  { %v16174_v53 = vadd.f32 %v4645_v0, %v4339_v8  ;;  %v4930_v51 = vadd.f32 %v4929_v25, %v16165_v13  ;;  %v4342_v8 = vadd.f32 %v15971_v34, %v19926_v1  ;;  %v19931_v34 = vld [vmem:[#allocation69_spill] sm:$0xff] }
 0x340   :  { %v13182_v21 = vpop.f32.mrf.mxu0  ;;  %v4345_v44 = vadd.f32 %v16006_v2, %v3816_v47 }
 0x341   :  { %19923 = vst [vmem:[#allocation30_spill] sm:$0xff] %v16174_v53  ;;  %v4931_v58 = vadd.f32 %v4930_v51, %v16174_v53  ;;  %v16193_v28 = vadd.f32 %v13182_v21, %v4342_v8  ;;  %v3288_v53 = vadd.f32 %v19930_v39, %v19929_v19  ;;  %v19933_v21 = vld [vmem:[#allocation73_spill] sm:$0xff]  ;;  %v19935_v19 = vld [vmem:[#allocation46_spill] sm:$0xff]  ;;  %v19936_v39 = vld [vmem:[#allocation47_spill] sm:$0xff] }
 0x342   :  { %v4655_v46 = vpop.f32.mrf.mxu0 }
 0x343   :  { %v16188_v0 = vadd.f32 %v4655_v46, %v4341_v37  ;;  %v4932_v25 = vadd.f32 %v4931_v58, %v16179_v42  ;;  %v4344_v37 = vadd.f32 %v15985_v5, %v19931_v34  ;;  %v3818_v11 = vadd.f32 %v19933_v21, %v3288_v53  ;;  %v19937_v5 = vld [vmem:[#allocation70_spill] sm:$0xff] }
 0x344   :  { %v13185_v17 = vpop.f32.mrf.mxu0 }
 0x345   :  { %19927 = vst [vmem:[#allocation31_spill] sm:$0xff] %v16188_v0  ;;  %v4933_v3 = vadd.f32 %v4932_v25, %v16188_v0  ;;  %v16207_v1 = vadd.f32 %v13185_v17, %v4344_v37  ;;  %v16210_v25 = vpop.f32.mrf.mxu1  ;;  %v3290_v0 = vadd.f32 %v19936_v39, %v19935_v19  ;;  %v4347_v53 = vadd.f32 %v16022_v63, %v3818_v11  ;;  %v19939_v17 = vld [vmem:[#allocation75_spill] sm:$0xff]  ;;  %v19941_v19 = vld [vmem:[#allocation32_spill] sm:$0xff] }
 0x346   :  { %v4665_v51 = vpop.f32.mrf.mxu0  ;;  %v19942_v39 = vld [vmem:[#allocation48_spill] sm:$0xff] }
 0x347   :  { %v16202_v46 = vadd.f32 %v4665_v51, %v4343_v18  ;;  %v4934_v58 = vadd.f32 %v4933_v3, %v16193_v28  ;;  %19934 = vst [vmem:[#allocation62_spill] sm:$0xff] %v16207_v1  ;;  %v4346_v18 = vadd.f32 %v15999_v6, %v19937_v5  ;;  %v3820_v47 = vadd.f32 %v19939_v17, %v3290_v0  ;;  %v19943_v6 = vld [vmem:[#allocation72_spill] sm:$0xff] }
 0x348   :  { %v13188_v36 = vpop.f32.mrf.mxu0 }
 0x349   :  { %19932 = vst [vmem:[#allocation58_spill] sm:$0xff] %v16202_v46  ;;  %v4935_v8 = vadd.f32 %v4934_v58, %v16202_v46  ;;  %v16221_v34 = vadd.f32 %v13188_v36, %v4346_v18  ;;  %v16224_v58 = vpop.f32.mrf.mxu1  ;;  %v3292_v46 = vadd.f32 %v19942_v39, %v19941_v19  ;;  %v4349_v0 = vadd.f32 %v16047_v30, %v3820_v47  ;;  %v19946_v36 = vld [vmem:[#allocation77_spill] sm:$0xff]  ;;  %v19949_v39 = vld [vmem:[#allocation50_spill] sm:$0xff] }
 0x34a   :  { %v4675_v22 = vpop.f32.mrf.mxu0  ;;  %v19948_v19 = vld [vmem:[#allocation49_spill] sm:$0xff] }
 0x34b   :  { %v16216_v51 = vadd.f32 %v4675_v22, %v4345_v44  ;;  %v4936_v3 = vadd.f32 %v4935_v8, %v16207_v1  ;;  %19940 = vst [vmem:[#allocation35_spill] sm:$0xff] %v16221_v34  ;;  %v19944_v44 = vld [vmem:[#allocation104_spill] sm:$0xff]  ;;  %v3822_v11 = vadd.f32 %v19946_v36, %v3292_v46  ;;  %v16238_v17 = vpop.f32.mrf.mxu1  ;;  %v3294_v1 = vadd.f32 %v19949_v39, %v19948_v19  ;;  %v19954_v19 = vld [vmem:[#allocation51_spill] sm:$0xff] }
 0x34c   :  { %v13191_v2 = vpop.f32.mrf.mxu0  ;;  %v4348_v22 = vadd.f32 %v19944_v44, %v19943_v6  ;;  %v19950_v6 = vld [vmem:[#allocation74_spill] sm:$0xff]  ;;  %v19955_v39 = vld [vmem:[#allocation52_spill] sm:$0xff] }
 0x34d   :  { %19938 = vst [vmem:[#allocation34_spill] sm:$0xff] %v16216_v51  ;;  %v4937_v37 = vadd.f32 %v4936_v3, %v16216_v51  ;;  %v4351_v46 = vadd.f32 %v16071_v60, %v3822_v11 }
 0x34e   :  { %v4685_v21 = vpop.f32.mrf.mxu0  ;;  %v16235_v18 = vadd.f32 %v13191_v2, %v4348_v22  ;;  %v19952_v2 = vld [vmem:[#allocation79_spill] sm:$0xff] }
 0x34f   :  { %v16230_v5 = vadd.f32 %v4685_v21, %v4347_v53  ;;  %v4938_v8 = vadd.f32 %v4937_v37, %v16221_v34  ;;  %v4350_v53 = vadd.f32 %v16035_v26, %v19950_v6  ;;  %v3824_v47 = vadd.f32 %v19952_v2, %v3294_v1  ;;  %v19956_v26 = vld [vmem:[#allocation76_spill] sm:$0xff] }
 0x350   :  { %v13194_v63 = vpop.f32.mrf.mxu0  ;;  %19947 = vst [vmem:[#allocation64_spill] sm:$0xff] %v16235_v18 }
 0x351   :  { %19945 = vst [vmem:[#allocation59_spill] sm:$0xff] %v16230_v5  ;;  %v4939_v3 = vadd.f32 %v4938_v8, %v16230_v5  ;;  %v16249_v44 = vadd.f32 %v13194_v63, %v4350_v53  ;;  %v16252_v8 = vpop.f32.mrf.mxu1  ;;  %v3296_v5 = vadd.f32 %v19955_v39, %v19954_v19  ;;  %v4353_v1 = vadd.f32 %v16098_v59, %v3824_v47  ;;  %v19958_v63 = vld [vmem:[#allocation81_spill] sm:$0xff] }
 0x352   :  { %v4695_v51 = vpop.f32.mrf.mxu0  ;;  %v19961_v19 = vld [vmem:[#allocation33_spill] sm:$0xff] }
 0x353   :  { %v16244_v21 = vadd.f32 %v4695_v51, %v4349_v0  ;;  %v4940_v37 = vadd.f32 %v4939_v3, %v16235_v18  ;;  %19953 = vst [vmem:[#allocation37_spill] sm:$0xff] %v16249_v44  ;;  %v4352_v51 = vadd.f32 %v16059_v48, %v19956_v26  ;;  %v3826_v11 = vadd.f32 %v19958_v63, %v3296_v5  ;;  %v19962_v18 = vld [vmem:[#allocation78_spill] sm:$0xff]  ;;  %v19964_v5 = vld [vmem:[#allocation83_spill] sm:$0xff] }
 0x354   :  { %v13197_v30 = vpop.f32.mrf.mxu0  ;;  %v4354_v48 = vadd.f32 %v16083_v12, %v19962_v18  ;;  %v19967_v63 = vld [vmem:[#allocation18_spill] sm:$0xff]  ;;  %v19968_v12 = vld [vmem:[#allocation80_spill] sm:$0xff] }
 0x355   :  { %19951 = vst [vmem:[#allocation36_spill] sm:$0xff] %v16244_v21  ;;  %v4941_v22 = vadd.f32 %v4940_v37, %v16244_v21  ;;  %v16263_v6 = vadd.f32 %v13197_v30, %v4352_v51  ;;  %v4246_v37 = vpop.f32.mrf.mxu1  ;;  %v19960_v21 = vld [vmem:[#allocation16_spill] sm:$0xff]  ;;  %v4355_v59 = vadd.f32 %v16126_v61, %v3826_v11  ;;  %v4356_v18 = vadd.f32 %v16112_v56, %v19968_v12 }
 0x356   :  { %v4705_v36 = vpop.f32.mrf.mxu0  ;;  %v3298_v39 = vadd.f32 %v19961_v19, %v19960_v21  ;;  %v19966_v21 = vld [vmem:[#allocation17_spill] sm:$0xff] }
 0x357   :  { %v16258_v0 = vadd.f32 %v4705_v36, %v4351_v46  ;;  %v4942_v3 = vadd.f32 %v4941_v22, %v16249_v44  ;;  %19959 = vst [vmem:[#allocation66_spill] sm:$0xff] %v16263_v6  ;;  %v16278_v51 = vpop.f32.mrf.mxu1  ;;  %v3300_v19 = vadd.f32 %v19967_v63, %v19966_v21  ;;  %v19973_v21 = vld [vmem:[#allocation20_spill] sm:$0xff] }
 0x358   :  { %v13200_v60 = vpop.f32.mrf.mxu0  ;;  %v3828_v30 = vadd.f32 %v19964_v5, %v3298_v39 }
 0x359   :  { %19957 = vst [vmem:[#allocation61_spill] sm:$0xff] %v16258_v0  ;;  %v4943_v53 = vadd.f32 %v4942_v3, %v16258_v0  ;;  %v16275_v47 = vadd.f32 %v13200_v60, %v4354_v48  ;;  %v19970_v60 = vld [vmem:[#allocation85_spill] sm:$0xff] }
 0x35a   :  { %v4715_v2 = vpop.f32.mrf.mxu0  ;;  %v4357_v11 = vadd.f32 %v16154_v57, %v3828_v30  ;;  %v19976_v30 = vld [vmem:[#allocation87_spill] sm:$0xff] }
 0x35b   :  { %v16270_v46 = vadd.f32 %v4715_v2, %v4353_v1  ;;  %v4944_v22 = vadd.f32 %v4943_v53, %v16263_v6  ;;  %19965 = vst [vmem:[#allocation39_spill] sm:$0xff] %v16275_v47  ;;  %v3830_v2 = vadd.f32 %v19970_v60, %v3300_v19  ;;  %v19974_v6 = vld [vmem:[#allocation82_spill] sm:$0xff]  ;;  %v19977_v60 = vld [vmem:[#allocation21_spill] sm:$0xff] }
 0x35c   :  { %v13203_v36 = vpop.f32.mrf.mxu0  ;;  %v4358_v56 = vadd.f32 %v16140_v55, %v19974_v6 }
 0x35d   :  { %19963 = vst [vmem:[#allocation38_spill] sm:$0xff] %v16270_v46  ;;  %v4945_v26 = vadd.f32 %v4944_v22, %v16270_v46  ;;  %v16289_v39 = vadd.f32 %v13203_v36, %v4356_v18  ;;  %v4256_v22 = vpop.f32.mrf.mxu1  ;;  %v19972_v46 = vld [vmem:[#allocation19_spill] sm:$0xff]  ;;  %v4359_v57 = vadd.f32 %v16182_v43, %v3830_v2  ;;  %v19981_v2 = vld [vmem:[#allocation89_spill] sm:$0xff] }
 0x35e   :  { %v4725_v3 = vpop.f32.mrf.mxu0  ;;  %v3302_v63 = vadd.f32 %v19973_v21, %v19972_v46  ;;  %v19978_v46 = vld [vmem:[#allocation13_spill] sm:$0xff] }
 0x35f   :  { %v16284_v1 = vadd.f32 %v4725_v3, %v4355_v59  ;;  %v4946_v53 = vadd.f32 %v4945_v26, %v16275_v47  ;;  %19971 = vst [vmem:[#allocation68_spill] sm:$0xff] %v16289_v39  ;;  %v13096_v18 = vpop.f32.mrf.mxu1  ;;  %v3304_v21 = vadd.f32 %v19978_v46, %v19977_v60  ;;  %v19984_v60 = vld [vmem:[#allocation15_spill] sm:$0xff] }
 0x360   :  { %v13206_v61 = vpop.f32.mrf.mxu0  ;;  %v3832_v36 = vadd.f32 %v19976_v30, %v3302_v63  ;;  %v19983_v30 = vld [vmem:[#allocation14_spill] sm:$0xff] }
 0x361   :  { %19969 = vst [vmem:[#allocation63_spill] sm:$0xff] %v16284_v1  ;;  %v4947_v48 = vadd.f32 %v4946_v53, %v16284_v1  ;;  %v16301_v19 = vadd.f32 %v13206_v61, %v4358_v56  ;;  %v19979_v1 = vld [vmem:[#allocation84_spill] sm:$0xff]  ;;  %v3834_v61 = vadd.f32 %v19981_v2, %v3304_v21  ;;  %v4266_v56 = vpop.f32.mrf.mxu1  ;;  %v3306_v46 = vadd.f32 %v19984_v60, %v19983_v30  ;;  %v19989_v2 = vld [vmem:[#allocation22_spill] sm:$0xff]  ;;  %v19990_v30 = vld [vmem:[#allocation23_spill] sm:$0xff] }
 0x362   :  { %v4735_v5 = vpop.f32.mrf.mxu0  ;;  %v4360_v55 = vadd.f32 %v16168_v29, %v19979_v1  ;;  %v4361_v43 = vadd.f32 %v16210_v25, %v3832_v36  ;;  %v19987_v36 = vld [vmem:[#allocation91_spill] sm:$0xff]  ;;  %v3308_v60 = vadd.f32 %v19990_v30, %v19989_v2  ;;  %v19997_v30 = vld [vmem:[#allocation90_spill] sm:$0xff] }
 0x363   :  { %v16296_v59 = vadd.f32 %v4735_v5, %v4357_v11  ;;  %v4948_v26 = vadd.f32 %v4947_v48, %v16289_v39  ;;  %v4363_v25 = vadd.f32 %v16238_v17, %v3834_v61  ;;  %v19993_v61 = vld [vmem:[#allocation93_spill] sm:$0xff] }
 0x364   :  { %v13209_v3 = vpop.f32.mrf.mxu0 }
 0x365   :  { %19975 = vst [vmem:[#allocation40_spill] sm:$0xff] %v16296_v59  ;;  %v4949_v12 = vadd.f32 %v4948_v26, %v16296_v59  ;;  %v16313_v5 = vadd.f32 %v13209_v3, %v4360_v55  ;;  %v19985_v59 = vld [vmem:[#allocation86_spill] sm:$0xff]  ;;  %v3836_v3 = vadd.f32 %v19987_v36, %v3306_v46  ;;  %v13099_v55 = vpop.f32.mrf.mxu1  ;;  %v19995_v36 = vld [vmem:[#allocation24_spill] sm:$0xff] }
 0x366   :  { %v4745_v53 = vpop.f32.mrf.mxu0  ;;  %v4362_v29 = vadd.f32 %v16196_v7, %v19985_v59 }
 0x367   :  { %v16308_v6 = vadd.f32 %v4745_v53, %v4359_v57  ;;  %v4950_v11 = vadd.f32 %v4949_v12, %v16301_v19  ;;  %19982 = vst [vmem:[#allocation65_spill] sm:$0xff] %v16313_v5  ;;  %v4365_v17 = vadd.f32 %v4246_v37, %v3836_v3  ;;  %v19999_v3 = vld [vmem:[#allocation95_spill] sm:$0xff] }
 0x368   :  { %v13212_v48 = vpop.f32.mrf.mxu0 }
 0x369   :  { %19980 = vst [vmem:[#allocation41_spill] sm:$0xff] %v16308_v6  ;;  %v4951_v63 = vadd.f32 %v4950_v11, %v16308_v6  ;;  %v16325_v53 = vadd.f32 %v13212_v48, %v4362_v29  ;;  %v19991_v6 = vld [vmem:[#allocation88_spill] sm:$0xff]  ;;  %v4276_v29 = vpop.f32.mrf.mxu1 }
 0x36a   :  { %v4755_v26 = vpop.f32.mrf.mxu0  ;;  %v4364_v7 = vadd.f32 %v16224_v58, %v19991_v6  ;;  %v4366_v58 = vadd.f32 %v16252_v8, %v19997_v30 }
 0x36b   :  { %v16320_v1 = vadd.f32 %v4755_v26, %v4361_v43  ;;  %v4952_v57 = vadd.f32 %v4951_v63, %v16313_v5  ;;  %19988 = vst [vmem:[#allocation43_spill] sm:$0xff] %v16325_v53  ;;  %v3838_v26 = vadd.f32 %v19993_v61, %v3308_v60  ;;  %v20001_v61 = vld [vmem:[#allocation25_spill] sm:$0xff] }
 0x36c   :  { %v13215_v12 = vpop.f32.mrf.mxu0 }
 0x36d   :  { %19986 = vst [vmem:[#allocation42_spill] sm:$0xff] %v16320_v1  ;;  %v4953_v21 = vadd.f32 %v4952_v57, %v16320_v1  ;;  %v16336_v48 = vadd.f32 %v13215_v12, %v4364_v7  ;;  %v19996_v1 = vld [vmem:[#allocation53_spill] sm:$0xff]  ;;  %v4367_v37 = vadd.f32 %v4256_v22, %v3838_v26  ;;  %v13102_v7 = vpop.f32.mrf.mxu1 }
 0x36e   :  { %v4765_v11 = vpop.f32.mrf.mxu0  ;;  %v3310_v2 = vadd.f32 %v19996_v1, %v19995_v36  ;;  %v20003_v36 = vld [vmem:[#allocation92_spill] sm:$0xff]  ;;  %v20005_v26 = vld [vmem:[#allocation97_spill] sm:$0xff] }
 0x36f   :  { %v16332_v59 = vadd.f32 %v4765_v11, %v4363_v25  ;;  %v4954_v43 = vadd.f32 %v4953_v21, %v16325_v53  ;;  %19994 = vst [vmem:[#allocation71_spill] sm:$0xff] %v16336_v48  ;;  %v4368_v8 = vadd.f32 %v16278_v51, %v20003_v36 }
 0x370   :  { %v13218_v63 = vpop.f32.mrf.mxu0  ;;  %v3840_v11 = vadd.f32 %v19999_v3, %v3310_v2  ;;  %v20006_v3 = vld [vmem:[#allocation26_spill] sm:$0xff] }
 0x371   :  { %19992 = vst [vmem:[#allocation67_spill] sm:$0xff] %v16332_v59  ;;  %v4955_v46 = vadd.f32 %v4954_v43, %v16332_v59  ;;  %v16347_v12 = vadd.f32 %v13218_v63, %v4366_v58  ;;  %v20002_v59 = vld [vmem:[#allocation54_spill] sm:$0xff]  ;;  %v4286_v58 = vpop.f32.mrf.mxu1 }
 0x372   :  { %v4775_v57 = vpop.f32.mrf.mxu0  ;;  %v3312_v1 = vadd.f32 %v20002_v59, %v20001_v61  ;;  %v4369_v22 = vadd.f32 %v4266_v56, %v3840_v11  ;;  %v20008_v61 = vld [vmem:[#allocation94_spill] sm:$0xff]  ;;  %v20010_v56 = vld [vmem:[#allocation99_spill] sm:$0xff] }
 0x373   :  { %v16343_v6 = vadd.f32 %v4775_v57, %v4365_v17  ;;  %v4956_v25 = vadd.f32 %v4955_v46, %v16336_v48  ;;  %20000 = vst [vmem:[#allocation45_spill] sm:$0xff] %v16347_v12  ;;  %v4370_v48 = vadd.f32 %v13096_v18, %v20008_v61  ;;  %v13105_v36 = vpop.f32.mrf.mxu1 }
 0x374   :  { %v13221_v21 = vpop.f32.mrf.mxu0  ;;  %v3842_v2 = vadd.f32 %v20005_v26, %v3312_v1  ;;  %v20012_v26 = vld [vmem:[#allocation55_spill] sm:$0xff] }
 0x375   :  { %19998 = vst [vmem:[#allocation44_spill] sm:$0xff] %v16343_v6  ;;  %v4957_v60 = vadd.f32 %v4956_v25, %v16343_v6  ;;  %v16358_v63 = vadd.f32 %v13221_v21, %v4368_v8  ;;  %v20007_v6 = vld [vmem:[#allocation27_spill] sm:$0xff] }
 0x376   :  { %v4785_v43 = vpop.f32.mrf.mxu0  ;;  %v3314_v59 = vadd.f32 %v20007_v6, %v20006_v3  ;;  %v20013_v6 = vld [vmem:[#allocation96_spill] sm:$0xff] }
 0x377   :  { %v16354_v17 = vadd.f32 %v4785_v43, %v4367_v37  ;;  %v4958_v46 = vadd.f32 %v4957_v60, %v16347_v12  ;;  %v4371_v43 = vadd.f32 %v4276_v29, %v3842_v2  ;;  %v4372_v3 = vadd.f32 %v13099_v55, %v20013_v6  ;;  %v20014_v29 = vld [vmem:[#allocation101_spill] sm:$0xff] }
 0x378   :  { %v13224_v57 = vpop.f32.mrf.mxu0  ;;  %v3844_v11 = vadd.f32 %v20010_v56, %v3314_v59 }
 0x379   :  { %20004 = vst [vmem:[#allocation69_spill] sm:$0xff] %v16354_v17  ;;  %v4959_v30 = vadd.f32 %v4958_v46, %v16354_v17  ;;  %v16368_v1 = vadd.f32 %v13224_v57, %v4370_v48  ;;  %v20011_v46 = vld [vmem:[#allocation28_spill] sm:$0xff]  ;;  %v4296_v57 = vpop.f32.mrf.mxu1 }
 0x37a   :  { %v4795_v25 = vpop.f32.mrf.mxu0  ;;  %v3316_v17 = vadd.f32 %v20012_v26, %v20011_v46 }
 0x37b   :  { %v16364_v51 = vadd.f32 %v4795_v25, %v4369_v22  ;;  %v4960_v37 = vadd.f32 %v4959_v30, %v16358_v63  ;;  %v4373_v25 = vadd.f32 %v4286_v58, %v3844_v11  ;;  %v13108_v11 = vpop.f32.mrf.mxu1 }
 0x37c   :  { %v13227_v60 = vpop.f32.mrf.mxu0  ;;  %v3846_v2 = vadd.f32 %v20014_v29, %v3316_v17 }
 0x37d   :  { %20009 = vst [vmem:[#allocation73_spill] sm:$0xff] %v16364_v51  ;;  %v4961_v21 = vadd.f32 %v4960_v37, %v16364_v51  ;;  %v16378_v59 = vadd.f32 %v13227_v60, %v4372_v3  ;;  %v20015_v37 = vld [vmem:[#allocation98_spill] sm:$0xff]  ;;  %v20016_v60 = vld [vmem:[#allocation29_spill] sm:$0xff]  ;;  %v4306_v29 = vpop.f32.mrf.mxu1 }
 0x37e   :  { %v4805_v8 = vpop.f32.mrf.mxu0  ;;  %v4374_v56 = vadd.f32 %v13102_v7, %v20015_v37 }
 0x37f   :  { %v16374_v18 = vadd.f32 %v4805_v8, %v4371_v43  ;;  %v4962_v22 = vadd.f32 %v4961_v21, %v16368_v1  ;;  %v4375_v8 = vadd.f32 %v4296_v57, %v3846_v2  ;;  %v20017_v21 = vld [vmem:[#allocation56_spill] sm:$0xff] }
 0x380   :  { %v13230_v30 = vpop.f32.mrf.mxu0  ;;  %v3318_v26 = vadd.f32 %v20017_v21, %v20016_v60 }
 0x381   :  { %v4963_v48 = vadd.f32 %v4962_v22, %v16374_v18  ;;  %v16385_v46 = vadd.f32 %v13230_v30, %v4374_v56  ;;  %v20019_v22 = vld [vmem:[#allocation103_spill] sm:$0xff] }
 0x382   :  { %v4815_v61 = vpop.f32.mrf.mxu0 }
 0x383   :  { %v16382_v51 = vadd.f32 %v4815_v61, %v4373_v25  ;;  %v4964_v55 = vadd.f32 %v4963_v48, %v16378_v59  ;;  %v3848_v25 = vadd.f32 %v20019_v22, %v3318_v26  ;;  %v20020_v48 = vld [vmem:[#allocation100_spill] sm:$0xff] }
 0x384   :  { %v13233_v43 = vpop.f32.mrf.mxu0  ;;  %v4376_v61 = vadd.f32 %v13105_v36, %v20020_v48 }
 0x385   :  { %v4965_v58 = vadd.f32 %v4964_v55, %v16382_v51  ;;  %v4377_v57 = vadd.f32 %v4306_v29, %v3848_v25 }
 0x386   :  { %v4825_v17 = vpop.f32.mrf.mxu0  ;;  %v16396_v37 = vadd.f32 %v13233_v43, %v4376_v61 }
 0x387   :  { %v16390_v6 = vadd.f32 %v4825_v17, %v4375_v8  ;;  %v4966_v3 = vadd.f32 %v4965_v58, %v16385_v46  ;;  %v20022_v8 = vld [vmem:[#allocation102_spill] sm:$0xff] }
 0x388   :  { %v13236_v7 = vpop.f32.mrf.mxu0  ;;  %20021 = vst [vmem:[#allocation47_spill] sm:$0xff] %v16396_v37  ;;  %v4378_v17 = vadd.f32 %v13108_v11, %v20022_v8 }
 0x389   :  { %20018 = vst [vmem:[#allocation46_spill] sm:$0xff] %v16390_v6  ;;  %v4967_v30 = vadd.f32 %v4966_v3, %v16390_v6 }
 0x38a   :  { %v4835_v2 = vpop.f32.mrf.mxu0  ;;  %v16403_v60 = vadd.f32 %v13236_v7, %v4378_v17 }
 0x38b   :  { %v16398_v56 = vadd.f32 %v4835_v2, %v4377_v57  ;;  %v4968_v55 = vadd.f32 %v4967_v30, %v16396_v37 }
 0x38c   :  { %20023 = vst [vmem:[#allocation70_spill] sm:$0xff] %v16403_v60 }
 0x38d   :  { %v4969_v58 = vadd.f32 %v4968_v55, %v16398_v56 }
 0x38f   :  { %v4970_v21 = vadd.f32 %v4969_v58, %v16403_v60 }
 0x391   :  { %v4971_v26 = vrot.slane %v4970_v21, 4 }
 0x393   :  { %v4972_v36 = vadd.f32 %v4971_v26, %v4970_v21 }
 0x395   :  { %v4973_v22 = vrot.slane %v4972_v36, 2 }
 0x397   :  { %v4974_v3 = vadd.f32 %v4973_v22, %v4972_v36 }
 0x399   :  { %v4975_v48 = vrot.slane %v4974_v3, 1 }
 0x39b   :  { %v4976_v25 = vadd.f32 %v4975_v48, %v4974_v3 }
 0x39d   :  { %v16406_v43 = vmul.f32 0.001953125, %v4976_v25 }
 0x39f   :  { %v4978_v29 = vsub.f32 %v16016_v49, %v16406_v43  ;;  %v4979_v11 = vsub.f32 %v16020_v52, %v16406_v43  ;;  %v4980_v7 = vsub.f32 %v16028_v41, %v16406_v43  ;;  %v4981_v2 = vsub.f32 %v16032_v32, %v16406_v43 }
 0x3a0   :  { %v4982_v57 = vsub.f32 %v16040_v45, %v16406_v43  ;;  %v4983_v17 = vsub.f32 %v16044_v9, %v16406_v43  ;;  %v4984_v26 = vsub.f32 %v16051_v10, %v16406_v43  ;;  %v4985_v3 = vsub.f32 %v16056_v24, %v16406_v43 }
 0x3a1   :  { %v5042_v61 = vmul.f32 %v4978_v29, %v4978_v29  ;;  %v5043_v30 = vmul.f32 %v4979_v11, %v4979_v11  ;;  %v5044_v55 = vmul.f32 %v4980_v7, %v4980_v7  ;;  %v5045_v58 = vmul.f32 %v4981_v2, %v4981_v2 }
 0x3a2   :  { %v5046_v36 = vmul.f32 %v4982_v57, %v4982_v57  ;;  %v5047_v48 = vmul.f32 %v4983_v17, %v4983_v17  ;;  %v4986_v29 = vsub.f32 %v16063_v50, %v16406_v43  ;;  %v5048_v11 = vmul.f32 %v4984_v26, %v4984_v26 }
 0x3a3   :  { %v5106_v8 = vadd.f32 %v5043_v30, %v5042_v61  ;;  %v4987_v61 = vsub.f32 %v16068_v54, %v16406_v43  ;;  %v5049_v30 = vmul.f32 %v4985_v3, %v4985_v3 }
 0x3a4   :  { %v5050_v57 = vmul.f32 %v4986_v29, %v4986_v29 }
 0x3a5   :  { %v5107_v21 = vadd.f32 %v5106_v8, %v5044_v55  ;;  %v4988_v55 = vsub.f32 %v16075_v33, %v16406_v43  ;;  %v5051_v17 = vmul.f32 %v4987_v61, %v4987_v61 }
 0x3a7   :  { %v5108_v22 = vadd.f32 %v5107_v21, %v5045_v58  ;;  %v4989_v58 = vsub.f32 %v16080_v20, %v16406_v43  ;;  %v5052_v26 = vmul.f32 %v4988_v55, %v4988_v55 }
 0x3a9   :  { %v5109_v25 = vadd.f32 %v5108_v22, %v5046_v36  ;;  %v4990_v36 = vsub.f32 %v16089_v62, %v16406_v43  ;;  %v5053_v3 = vmul.f32 %v4989_v58, %v4989_v58 }
 0x3ab   :  { %v5110_v7 = vadd.f32 %v5109_v25, %v5047_v48  ;;  %v4991_v48 = vsub.f32 %v16095_v15, %v16406_v43  ;;  %v5054_v29 = vmul.f32 %v4990_v36, %v4990_v36 }
 0x3ad   :  { %v5111_v2 = vadd.f32 %v5110_v7, %v5048_v11  ;;  %v4992_v11 = vsub.f32 %v16104_v35, %v16406_v43  ;;  %v5055_v61 = vmul.f32 %v4991_v48, %v4991_v48 }
 0x3af   :  { %v5112_v8 = vadd.f32 %v5111_v2, %v5049_v30  ;;  %v4993_v30 = vsub.f32 %v16109_v38, %v16406_v43  ;;  %v5056_v55 = vmul.f32 %v4992_v11, %v4992_v11 }
 0x3b1   :  { %v5113_v21 = vadd.f32 %v5112_v8, %v5050_v57  ;;  %v4994_v57 = vsub.f32 %v16118_v27, %v16406_v43  ;;  %v5057_v58 = vmul.f32 %v4993_v30, %v4993_v30 }
 0x3b3   :  { %v5114_v22 = vadd.f32 %v5113_v21, %v5051_v17  ;;  %v4995_v17 = vsub.f32 %v16123_v4, %v16406_v43  ;;  %v5058_v36 = vmul.f32 %v4994_v57, %v4994_v57 }
 0x3b5   :  { %v5115_v25 = vadd.f32 %v5114_v22, %v5052_v26  ;;  %v4996_v26 = vsub.f32 %v16132_v23, %v16406_v43  ;;  %v5059_v48 = vmul.f32 %v4995_v17, %v4995_v17 }
 0x3b7   :  { %v5116_v7 = vadd.f32 %v5115_v25, %v5053_v3  ;;  %v4997_v3 = vsub.f32 %v16137_v31, %v16406_v43  ;;  %v5060_v11 = vmul.f32 %v4996_v26, %v4996_v26 }
 0x3b9   :  { %v5117_v2 = vadd.f32 %v5116_v7, %v5054_v29  ;;  %v4998_v29 = vsub.f32 %v16146_v16, %v16406_v43  ;;  %v5061_v30 = vmul.f32 %v4997_v3, %v4997_v3 }
 0x3bb   :  { %v5118_v8 = vadd.f32 %v5117_v2, %v5055_v61  ;;  %v4999_v61 = vsub.f32 %v16151_v40, %v16406_v43  ;;  %v5062_v57 = vmul.f32 %v4998_v29, %v4998_v29  ;;  %v5530_v40 = vld [vmem:[#allocation8 + $0x78] sm:$0xff] }
 0x3bc   :  { %13365 = vmatprep.subr.mxu0 %v5530_v40 }
 0x3bd   :  { %v5119_v21 = vadd.f32 %v5118_v8, %v5056_v55  ;;  %v5000_v55 = vsub.f32 %v16160_v14, %v16406_v43  ;;  %v5063_v17 = vmul.f32 %v4999_v61, %v4999_v61  ;;  %v5005_v61 = vsub.f32 %v16193_v28, %v16406_v43  ;;  %13366 = vmatpush3.msra.mxu0 %v5530_v40  ;;  %v5607_v40 = vld [vmem:[#allocation8 + $0xe0] sm:$0xff] }
 0x3bf   :  { %v5120_v22 = vadd.f32 %v5119_v21, %v5057_v58  ;;  %v5001_v58 = vsub.f32 %v16165_v13, %v16406_v43  ;;  %v5064_v26 = vmul.f32 %v5000_v55, %v5000_v55 }
 0x3c1   :  { %v5121_v25 = vadd.f32 %v5120_v22, %v5058_v36  ;;  %v20024_v36 = vld [vmem:[#allocation30_spill] sm:$0xff]  ;;  %v5065_v3 = vmul.f32 %v5001_v58, %v5001_v58 }
 0x3c2   :  { %v5002_v22 = vsub.f32 %v20024_v36, %v16406_v43  ;;  %v20026_v58 = vld [vmem:[#allocation58_spill] sm:$0xff] }
 0x3c3   :  { %v5122_v7 = vadd.f32 %v5121_v25, %v5059_v48  ;;  %v5003_v25 = vsub.f32 %v16179_v42, %v16406_v43 }
 0x3c4   :  { %v5066_v29 = vmul.f32 %v5002_v22, %v5002_v22 }
 0x3c5   :  { %v5123_v2 = vadd.f32 %v5122_v7, %v5060_v11  ;;  %v20025_v7 = vld [vmem:[#allocation31_spill] sm:$0xff] }
 0x3c6   :  { %v5004_v14 = vsub.f32 %v20025_v7, %v16406_v43 }
 0x3c7   :  { %v5124_v8 = vadd.f32 %v5123_v2, %v5061_v30  ;;  %v5610_v2 = vld [vmem:[#allocation8 + $0xf8] sm:$0xff] }
 0x3c8   :  { %13237 = vmatprep.subr.mxu1 %v5610_v2  ;;  %v5068_v22 = vmul.f32 %v5004_v14, %v5004_v14  ;;  %v20028_v14 = vld [vmem:[#allocation34_spill] sm:$0xff] }
 0x3c9   :  { %v5125_v21 = vadd.f32 %v5124_v8, %v5062_v57  ;;  %v5067_v57 = vmul.f32 %v5003_v25, %v5003_v25  ;;  %13238 = vmatpush3.msra.mxu1 %v5610_v2  ;;  %v5609_v8 = vld [vmem:[#allocation8 + $0xf0] sm:$0xff]  ;;  %v20027_v25 = vld [vmem:[#allocation62_spill] sm:$0xff]  ;;  %v5527_v2 = vld [vmem:[#allocation8 + $0x60] sm:$0xff] }
 0x3ca   :  { %13239 = vmatprep.subr.mxu1 %v5609_v8 }
 0x3cb   :  { %v5126_v48 = vadd.f32 %v5125_v21, %v5063_v17  ;;  %v5529_v17 = vld [vmem:[#allocation8 + $0x70] sm:$0xff]  ;;  %v5006_v21 = vsub.f32 %v20026_v58, %v16406_v43  ;;  %13240 = vmatpush3.msra.mxu1 %v5609_v8  ;;  %v5526_v58 = vld [vmem:[#allocation8 + $0x58] sm:$0xff] }
 0x3cc   :  { %13367 = vmatprep.subr.mxu0 %v5529_v17 }
 0x3cd   :  { %v5127_v11 = vadd.f32 %v5126_v48, %v5064_v26  ;;  %v5608_v48 = vld [vmem:[#allocation8 + $0xe8] sm:$0xff]  ;;  %13368 = vmatpush3.msra.mxu0 %v5529_v17  ;;  %v5606_v17 = vld [vmem:[#allocation8 + $0xd8] sm:$0xff] }
 0x3ce   :  { %13241 = vmatprep.subr.mxu1 %v5608_v48 }
 0x3cf   :  { %v5128_v30 = vadd.f32 %v5127_v11, %v5065_v3  ;;  %v5528_v3 = vld [vmem:[#allocation8 + $0x68] sm:$0xff]  ;;  %v5007_v11 = vsub.f32 %v20027_v25, %v16406_v43  ;;  %13242 = vmatpush3.msra.mxu1 %v5608_v48  ;;  %v5605_v48 = vld [vmem:[#allocation8 + $0xd0] sm:$0xff] }
 0x3d0   :  { %13369 = vmatprep.subr.mxu0 %v5528_v3  ;;  %13243 = vmatprep.subr.mxu1 %v5607_v40 }
 0x3d1   :  { %v5129_v55 = vadd.f32 %v5128_v30, %v5066_v29  ;;  %v5069_v29 = vmul.f32 %v5005_v61, %v5005_v61  ;;  %13370 = vmatpush3.msra.mxu0 %v5528_v3  ;;  %13244 = vmatpush3.msra.mxu1 %v5607_v40  ;;  %v5009_v61 = vsub.f32 %v16221_v34, %v16406_v43  ;;  %v5525_v3 = vld [vmem:[#allocation8 + $0x50] sm:$0xff]  ;;  %v5523_v34 = vld [vmem:[#allocation8 + $0x40] sm:$0xff] }
 0x3d2   :  { %13371 = vmatprep.subr.mxu0 %v5527_v2  ;;  %13245 = vmatprep.subr.mxu1 %v5606_v17 }
 0x3d3   :  { %v5130_v26 = vadd.f32 %v5129_v55, %v5067_v57  ;;  %v5008_v57 = vsub.f32 %v20028_v14, %v16406_v43  ;;  %v5070_v55 = vmul.f32 %v5006_v21, %v5006_v21  ;;  %13372 = vmatpush3.msra.mxu0 %v5527_v2  ;;  %13246 = vmatpush3.msra.mxu1 %v5606_v17  ;;  %v20029_v21 = vld [vmem:[#allocation59_spill] sm:$0xff]  ;;  %v5604_v2 = vld [vmem:[#allocation8 + $0xc8] sm:$0xff] }
 0x3d4   :  { %13373 = vmatprep.subr.mxu0 %v5526_v58  ;;  %13247 = vmatprep.subr.mxu1 %v5605_v48  ;;  %v5524_v14 = vld [vmem:[#allocation8 + $0x48] sm:$0xff] }
 0x3d5   :  { %v5131_v30 = vadd.f32 %v5130_v26, %v5068_v22  ;;  %v5071_v22 = vmul.f32 %v5007_v11, %v5007_v11  ;;  %13374 = vmatpush3.msra.mxu0 %v5526_v58  ;;  %13248 = vmatpush3.msra.mxu1 %v5605_v48  ;;  %v20030_v11 = vld [vmem:[#allocation64_spill] sm:$0xff]  ;;  %v5603_v58 = vld [vmem:[#allocation8 + $0xc0] sm:$0xff] }
 0x3d6   :  { %13375 = vmatprep.subr.mxu0 %v5525_v3  ;;  %13249 = vmatprep.subr.mxu1 %v5604_v2 }
 0x3d7   :  { %v5132_v8 = vadd.f32 %v5131_v30, %v5069_v29  ;;  %v5010_v29 = vsub.f32 %v20029_v21, %v16406_v43  ;;  %v5072_v30 = vmul.f32 %v5008_v57, %v5008_v57  ;;  %13376 = vmatpush3.msra.mxu0 %v5525_v3  ;;  %13250 = vmatpush3.msra.mxu1 %v5604_v2  ;;  %v20031_v57 = vld [vmem:[#allocation36_spill] sm:$0xff]  ;;  %v5521_v2 = vld [vmem:[#allocation8 + $0x30] sm:$0xff] }
 0x3d8   :  { %13377 = vmatprep.subr.mxu0 %v5524_v14  ;;  %13251 = vmatprep.subr.mxu1 %v5603_v58  ;;  %v5602_v3 = vld [vmem:[#allocation8 + $0xb8] sm:$0xff] }
 0x3d9   :  { %v5133_v26 = vadd.f32 %v5132_v8, %v5070_v55  ;;  %v5011_v55 = vsub.f32 %v20030_v11, %v16406_v43  ;;  %v5073_v8 = vmul.f32 %v5009_v61, %v5009_v61  ;;  %13378 = vmatpush3.msra.mxu0 %v5524_v14  ;;  %13252 = vmatpush3.msra.mxu1 %v5603_v58  ;;  %v5522_v21 = vld [vmem:[#allocation8 + $0x38] sm:$0xff]  ;;  %v5601_v14 = vld [vmem:[#allocation8 + $0xb0] sm:$0xff]  ;;  %v5520_v58 = vld [vmem:[#allocation8 + $0x28] sm:$0xff] }
 0x3da   :  { %13379 = vmatprep.subr.mxu0 %v5523_v34  ;;  %13253 = vmatprep.subr.mxu1 %v5602_v3  ;;  %v5013_v61 = vsub.f32 %v16249_v44, %v16406_v43  ;;  %v5519_v44 = vld [vmem:[#allocation8 + $0x20] sm:$0xff] }
 0x3db   :  { %v5134_v40 = vadd.f32 %v5133_v26, %v5071_v22  ;;  %v5012_v22 = vsub.f32 %v20031_v57, %v16406_v43  ;;  %v5074_v26 = vmul.f32 %v5010_v29, %v5010_v29  ;;  %13380 = vmatpush3.msra.mxu0 %v5523_v34  ;;  %13254 = vmatpush3.msra.mxu1 %v5602_v3  ;;  %v5600_v34 = vld [vmem:[#allocation8 + $0xa8] sm:$0xff] }
 0x3dc   :  { %13381 = vmatprep.subr.mxu0 %v5522_v21  ;;  %13255 = vmatprep.subr.mxu1 %v5601_v14  ;;  %v5014_v29 = vsub.f32 %v16258_v0, %v16406_v43  ;;  %v5518_v0 = vld [vmem:[#allocation8 + $0x18] sm:$0xff] }
 0x3dd   :  { %v5135_v17 = vadd.f32 %v5134_v40, %v5072_v30  ;;  %v5075_v30 = vmul.f32 %v5011_v55, %v5011_v55  ;;  %13382 = vmatpush3.msra.mxu0 %v5522_v21  ;;  %13256 = vmatpush3.msra.mxu1 %v5601_v14  ;;  %v20032_v55 = vld [vmem:[#allocation66_spill] sm:$0xff]  ;;  %v5599_v21 = vld [vmem:[#allocation8 + $0xa0] sm:$0xff] }
 0x3de   :  { %13383 = vmatprep.subr.mxu0 %v5521_v2  ;;  %13257 = vmatprep.subr.mxu1 %v5600_v34 }
 0x3df   :  { %v5136_v48 = vadd.f32 %v5135_v17, %v5073_v8  ;;  %v5076_v8 = vmul.f32 %v5012_v22, %v5012_v22  ;;  %13384 = vmatpush3.msra.mxu0 %v5521_v2  ;;  %13258 = vmatpush3.msra.mxu1 %v5600_v34  ;;  %v20033_v22 = vld [vmem:[#allocation38_spill] sm:$0xff]  ;;  %v5598_v2 = vld [vmem:[#allocation8 + $0x98] sm:$0xff]  ;;  %v5597_v34 = vld [vmem:[#allocation8 + $0x90] sm:$0xff] }
 0x3e0   :  { %13385 = vmatprep.subr.mxu0 %v5520_v58  ;;  %13259 = vmatprep.subr.mxu1 %v5599_v21 }
 0x3e1   :  { %v5137_v40 = vadd.f32 %v5136_v48, %v5074_v26  ;;  %v5015_v26 = vsub.f32 %v20032_v55, %v16406_v43  ;;  %v5077_v48 = vmul.f32 %v5013_v61, %v5013_v61  ;;  %13386 = vmatpush3.msra.mxu0 %v5520_v58  ;;  %13260 = vmatpush3.msra.mxu1 %v5599_v21  ;;  %v5517_v58 = vld [vmem:[#allocation8 + $0x10] sm:$0xff] }
 0x3e2   :  { %13387 = vmatprep.subr.mxu0 %v5519_v44  ;;  %13261 = vmatprep.subr.mxu1 %v5598_v2  ;;  %v5017_v61 = vsub.f32 %v16275_v47, %v16406_v43 }
 0x3e3   :  { %v5138_v17 = vadd.f32 %v5137_v40, %v5075_v30  ;;  %v5016_v30 = vsub.f32 %v20033_v22, %v16406_v43  ;;  %v5078_v40 = vmul.f32 %v5014_v29, %v5014_v29  ;;  %13388 = vmatpush3.msra.mxu0 %v5519_v44  ;;  %13262 = vmatpush3.msra.mxu1 %v5598_v2  ;;  %v20034_v29 = vld [vmem:[#allocation63_spill] sm:$0xff]  ;;  %v5596_v44 = vld [vmem:[#allocation8 + $0x88] sm:$0xff]  ;;  %v5515_v2 = vld [vmem:[#allocation8] sm:$0xff] }
 0x3e4   :  { %13389 = vmatprep.subr.mxu0 %v5518_v0  ;;  %13263 = vmatprep.subr.mxu1 %v5597_v34  ;;  %v5516_v22 = vld [vmem:[#allocation8 + $0x8] sm:$0xff] }
 0x3e5   :  { %v5139_v3 = vadd.f32 %v5138_v17, %v5076_v8  ;;  %v5079_v8 = vmul.f32 %v5015_v26, %v5015_v26  ;;  %13390 = vmatpush3.msra.mxu0 %v5518_v0  ;;  %13264 = vmatpush3.msra.mxu1 %v5597_v34  ;;  %v5019_v26 = vsub.f32 %v16289_v39, %v16406_v43  ;;  %v5595_v0 = vld [vmem:[#allocation8 + $0x80] sm:$0xff] }
 0x3e6   :  { %13391 = vmatprep.subr.mxu0 %v5517_v58  ;;  %13265 = vmatprep.subr.mxu1 %v5596_v44 }
 0x3e7   :  { %v5140_v14 = vadd.f32 %v5139_v3, %v5077_v48  ;;  %v5018_v48 = vsub.f32 %v20034_v29, %v16406_v43  ;;  %v5080_v3 = vmul.f32 %v5016_v30, %v5016_v30  ;;  %13392 = vmatpush3.msra.mxu0 %v5517_v58  ;;  %13266 = vmatpush3.msra.mxu1 %v5596_v44  ;;  %v5531_v29 = vld [vmem:[#allocation2 + $0x1] sm:$0xff]  ;;  %v20035_v30 = vld [vmem:[#allocation40_spill] sm:$0xff]  ;;  %v5532_v58 = vld [vmem:[#allocation2 + $0x9] sm:$0xff] }
 0x3e8   :  { %13393 = vmatprep.subr.mxu0 %v5516_v22  ;;  %13267 = vmatprep.subr.mxu1 %v5595_v0  ;;  %v20036_v44 = vld [vmem:[#allocation41_spill] sm:$0xff] }
 0x3e9   :  { %v5141_v17 = vadd.f32 %v5140_v14, %v5078_v40  ;;  %v5081_v40 = vmul.f32 %v5017_v61, %v5017_v61  ;;  %13394 = vmatpush3.msra.mxu0 %v5516_v22  ;;  %13268 = vmatpush3.msra.mxu1 %v5595_v0  ;;  %v5021_v61 = vsub.f32 %v16301_v19, %v16406_v43  ;;  %v14402_v22 = vld [vmem:[#allocation2] sm:$0xff]  ;;  %v6459_v0 = vld [vmem:[#allocation8 + $0x170] sm:$0xff] }
 0x3ea   :  { %13395 = vmatprep.subr.mxu0 %v5515_v2  ;;  %13269 = vmatprep.mubr.f32.mxu1 %v5531_v29  ;;  %v5022_v39 = vsub.f32 %v20036_v44, %v16406_v43 }
 0x3eb   :  { %v5142_v21 = vadd.f32 %v5141_v17, %v5079_v8  ;;  %v5020_v8 = vsub.f32 %v20035_v30, %v16406_v43  ;;  %v5082_v17 = vmul.f32 %v5018_v48, %v5018_v48  ;;  %13396 = vmatpush3.msra.mxu0 %v5515_v2  ;;  %13270 = vmatmul.mubr.f32.vlgmr.msra.gmra.mxu1 %v5532_v58  ;;  %v20037_v2 = vld [vmem:[#allocation42_spill] sm:$0xff] }
 0x3ec   :  { %13398 = vmatmul.mubr.f32.vlgmr.msra.gmra.mxu0 %v14402_v22  ;;  %v5023_v48 = vsub.f32 %v16313_v5, %v16406_v43  ;;  %v5024_v58 = vsub.f32 %v20037_v2, %v16406_v43  ;;  %v20039_v2 = vld [vmem:[#allocation71_spill] sm:$0xff] }
 0x3ed   :  { %v5143_v14 = vadd.f32 %v5142_v21, %v5080_v3  ;;  %v5083_v3 = vmul.f32 %v5019_v26, %v5019_v26  ;;  %v5084_v47 = vmul.f32 %v5020_v8, %v5020_v8  ;;  %v5086_v26 = vmul.f32 %v5022_v39, %v5022_v39 }
 0x3ee   :  { %v5087_v8 = vmul.f32 %v5023_v48, %v5023_v48  ;;  %v5027_v39 = vsub.f32 %v20039_v2, %v16406_v43 }
 0x3ef   :  { %v5144_v34 = vadd.f32 %v5143_v14, %v5081_v40  ;;  %v5085_v40 = vmul.f32 %v5021_v61, %v5021_v61  ;;  %v6460_v14 = vld [vmem:[#allocation8 + $0x178] sm:$0xff]  ;;  %v20038_v61 = vld [vmem:[#allocation67_spill] sm:$0xff] }
 0x3f0   :  { %13493 = vmatprep.subr.mxu1 %v6460_v14 }
 0x3f1   :  { %v5145_v21 = vadd.f32 %v5144_v34, %v5082_v17  ;;  %13494 = vmatpush3.msra.mxu1 %v6460_v14  ;;  %v5025_v34 = vsub.f32 %v16325_v53, %v16406_v43  ;;  %v20040_v14 = vld [vmem:[#allocation44_spill] sm:$0xff] }
 0x3f2   :  { %13495 = vmatprep.subr.mxu1 %v6459_v0  ;;  %v5028_v5 = vsub.f32 %v20040_v14, %v16406_v43 }
 0x3f3   :  { %v5146_v55 = vadd.f32 %v5145_v21, %v5083_v3  ;;  %13496 = vmatpush3.msra.mxu1 %v6459_v0  ;;  %v6458_v21 = vld [vmem:[#allocation8 + $0x168] sm:$0xff]  ;;  %v5029_v0 = vsub.f32 %v16347_v12, %v16406_v43 }
 0x3f4   :  { %13497 = vmatprep.subr.mxu1 %v6458_v21 }
 0x3f5   :  { %v5147_v29 = vadd.f32 %v5146_v55, %v5084_v47  ;;  %v5026_v47 = vsub.f32 %v20038_v61, %v16406_v43  ;;  %v5088_v55 = vmul.f32 %v5024_v58, %v5024_v58  ;;  %13498 = vmatpush3.msra.mxu1 %v6458_v21  ;;  %v6457_v61 = vld [vmem:[#allocation8 + $0x160] sm:$0xff] }
 0x3f6   :  { %v20041_v58 = vld [vmem:[#allocation69_spill] sm:$0xff]  ;;  %13499 = vmatprep.subr.mxu1 %v6457_v61 }
 0x3f7   :  { %v5148_v17 = vadd.f32 %v5147_v29, %v5085_v40  ;;  %v5089_v40 = vmul.f32 %v5025_v34, %v5025_v34  ;;  %v5090_v53 = vmul.f32 %v5026_v47, %v5026_v47  ;;  %13500 = vmatpush3.msra.mxu1 %v6457_v61  ;;  %v5031_v34 = vsub.f32 %v16358_v63, %v16406_v43  ;;  %v20042_v47 = vld [vmem:[#allocation73_spill] sm:$0xff] }
 0x3f9   :  { %v5149_v3 = vadd.f32 %v5148_v17, %v5086_v26  ;;  %v5091_v26 = vmul.f32 %v5027_v39, %v5027_v39  ;;  %v5095_v39 = vmul.f32 %v5031_v34, %v5031_v34 }
 0x3fb   :  { %v5150_v22 = vadd.f32 %v5149_v3, %v5087_v8  ;;  %v5030_v8 = vsub.f32 %v20041_v58, %v16406_v43  ;;  %v5092_v3 = vmul.f32 %v5028_v5, %v5028_v5  ;;  %v6456_v58 = vld [vmem:[#allocation8 + $0x158] sm:$0xff]  ;;  %v5034_v5 = vsub.f32 %v16374_v18, %v16406_v43 }
 0x3fc   :  { %13501 = vmatprep.subr.mxu1 %v6456_v58 }
 0x3fd   :  { %v5151_v29 = vadd.f32 %v5150_v22, %v5088_v55  ;;  %v5093_v55 = vmul.f32 %v5029_v0, %v5029_v0  ;;  %13502 = vmatpush3.msra.mxu1 %v6456_v58  ;;  %v5035_v0 = vsub.f32 %v16378_v59, %v16406_v43 }
 0x3ff   :  { %v5152_v48 = vadd.f32 %v5151_v29, %v5089_v40  ;;  %v5032_v40 = vsub.f32 %v20042_v47, %v16406_v43  ;;  %v5094_v29 = vmul.f32 %v5030_v8, %v5030_v8  ;;  %v5036_v8 = vsub.f32 %v16382_v51, %v16406_v43 }
 0x400   :  { %v5099_v34 = vmul.f32 %v5035_v0, %v5035_v0  ;;  %v5041_v0 = vsub.f32 %v16403_v60, %v16406_v43 }
 0x401   :  { %v5153_v17 = vadd.f32 %v5152_v48, %v5090_v53  ;;  %v5033_v53 = vsub.f32 %v16368_v1, %v16406_v43  ;;  %v5096_v61 = vmul.f32 %v5032_v40, %v5032_v40  ;;  %v5038_v40 = vsub.f32 %v16390_v6, %v16406_v43  ;;  %v6452_v6 = vld [vmem:[#allocation8 + $0x138] sm:$0xff] }
 0x402   :  { %v5100_v58 = vmul.f32 %v5036_v8, %v5036_v8 }
 0x403   :  { %v5154_v21 = vadd.f32 %v5153_v17, %v5091_v26  ;;  %v5097_v17 = vmul.f32 %v5033_v53, %v5033_v53  ;;  %v5039_v53 = vsub.f32 %v16396_v37, %v16406_v43 }
 0x405   :  { %v5155_v22 = vadd.f32 %v5154_v21, %v5092_v3  ;;  %v5098_v21 = vmul.f32 %v5034_v5, %v5034_v5  ;;  %v5040_v5 = vsub.f32 %v16398_v56, %v16406_v43 }
 0x407   :  { %v5156_v12 = vadd.f32 %v5155_v22, %v5093_v55  ;;  %v5104_v8 = vmul.f32 %v5040_v5, %v5040_v5 }
 0x409   :  { %v5157_v48 = vadd.f32 %v5156_v12, %v5094_v29  ;;  %v5037_v12 = vsub.f32 %v16385_v46, %v16406_v43  ;;  %v6455_v29 = vld [vmem:[#allocation8 + $0x150] sm:$0xff] }
 0x40a   :  { %13503 = vmatprep.subr.mxu1 %v6455_v29 }
 0x40b   :  { %v5158_v26 = vadd.f32 %v5157_v48, %v5095_v39  ;;  %13504 = vmatpush3.msra.mxu1 %v6455_v29  ;;  %v5101_v48 = vmul.f32 %v5037_v12, %v5037_v12 }
 0x40d   :  { %v5159_v3 = vadd.f32 %v5158_v26, %v5096_v61  ;;  %v5102_v26 = vmul.f32 %v5038_v40, %v5038_v40 }
 0x40f   :  { %v5160_v55 = vadd.f32 %v5159_v3, %v5097_v17  ;;  %v5103_v3 = vmul.f32 %v5039_v53, %v5039_v53 }
 0x411   :  { %v5161_v22 = vadd.f32 %v5160_v55, %v5098_v21  ;;  %v6454_v55 = vld [vmem:[#allocation8 + $0x148] sm:$0xff] }
 0x412   :  { %13505 = vmatprep.subr.mxu1 %v6454_v55 }
 0x413   :  { %v5162_v39 = vadd.f32 %v5161_v22, %v5099_v34  ;;  %13506 = vmatpush3.msra.mxu1 %v6454_v55  ;;  %v5105_v22 = vmul.f32 %v5041_v0, %v5041_v0 }
 0x415   :  { %v5163_v61 = vadd.f32 %v5162_v39, %v5100_v58  ;;  %v6453_v58 = vld [vmem:[#allocation8 + $0x140] sm:$0xff] }
 0x416   :  { %13507 = vmatprep.subr.mxu1 %v6453_v58 }
 0x417   :  { %v5164_v17 = vadd.f32 %v5163_v61, %v5101_v48  ;;  %13508 = vmatpush3.msra.mxu1 %v6453_v58 }
 0x418   :  { %13509 = vmatprep.subr.mxu1 %v6452_v6 }
 0x419   :  { %v5165_v21 = vadd.f32 %v5164_v17, %v5102_v26  ;;  %13510 = vmatpush3.msra.mxu1 %v6452_v6  ;;  %v6451_v26 = vld [vmem:[#allocation8 + $0x130] sm:$0xff]  ;;  %v5184_v17 = vlaneseq  ;;  %v5180_v6 = vld [vmem:[%s19546_s3] sm:$0x1] }
 0x41a   :  { %13511 = vmatprep.subr.mxu1 %v6451_v26 }
 0x41b   :  { %v5166_v34 = vadd.f32 %v5165_v21, %v5103_v3  ;;  %13512 = vmatpush3.msra.mxu1 %v6451_v26  ;;  %v5185_v0 = vshrl.u32 %v5184_v17, 7  ;;  %v6450_v3 = vld [vmem:[#allocation8 + $0x128] sm:$0xff]  ;;  %v20045_v26 = vld [vmem:[#allocation60_spill] sm:$0xff] }
 0x41c   :  { %13513 = vmatprep.subr.mxu1 %v6450_v3 }
 0x41d   :  { %v5167_v29 = vadd.f32 %v5166_v34, %v5104_v8  ;;  %13514 = vmatpush3.msra.mxu1 %v6450_v3  ;;  %v16539_v21 = vsub.s32 0, %v5185_v0  ;;  %v6448_v0 = vld [vmem:[#allocation8 + $0x118] sm:$0xff] }
 0x41e   :  { %v6989_v3 = vld [vmem:[#allocation8 + $0x1f8] sm:$0xff] }
 0x41f   :  { %v5168_v37 = vadd.f32 %v5167_v29, %v5105_v22  ;;  %20043 = vst [vmem:[#allocation75_spill] sm:$0xff] %v16539_v21  ;;  %v6449_v22 = vld [vmem:[#allocation8 + $0x120] sm:$0xff]  ;;  %13621 = vmatprep.subr.mxu0 %v6989_v3 }
 0x420   :  { %13515 = vmatprep.subr.mxu1 %v6449_v22  ;;  %13622 = vmatpush3.msra.mxu0 %v6989_v3 }
 0x421   :  { %v5169_v12 = vrot.slane %v5168_v37, 4  ;;  %13516 = vmatpush3.msra.mxu1 %v6449_v22 }
 0x422   :  { %13517 = vmatprep.subr.mxu1 %v6448_v0 }
 0x423   :  { %v5170_v39 = vadd.f32 %v5169_v12, %v5168_v37  ;;  %v5176_v37 = vld [vmem:[%s19545_s2] sm:$0x1]  ;;  %13518 = vmatpush3.msra.mxu1 %v6448_v0 }
 0x425   :  { %v5171_v40 = vrot.slane %v5170_v39, 2 }
 0x427   :  { %v5172_v48 = vadd.f32 %v5171_v40, %v5170_v39 }
 0x429   :  { %v5173_v61 = vrot.slane %v5172_v48, 1 }
 0x42b   :  { %v5174_v60 = vadd.f32 %v5173_v61, %v5172_v48 }
 0x42d   :  { %v5175_v53 = vmul.f32 0.001953125, %v5174_v60 }
 0x42f   :  { %v5177_v5 = vadd.f32 1e-05, %v5175_v53 }
 0x431   :  { %14396 = vrsqrt.f32 %v5177_v5  ;;  %v20044_v5 = vld [vmem:[#allocation57_spill] sm:$0xff] }
 0x43e   :  { %v14397_v55 = vpop.eup %14396 }
 0x43f   :  { %v5179_v8 = vmul.f32 %v14397_v55, %v5176_v37 }
 0x441   :  { %v5181_v60 = vmul.f32 %v5179_v8, %v16406_v43  ;;  %v16546_v34 = vrot.slane %v5179_v8, %v16539_v21 }
 0x443   :  { %v5182_v29 = vsub.f32 %v5180_v6, %v5181_v60  ;;  %v5251_v12 = vmul.f32 %v16546_v34, %v16398_v56  ;;  %v16552_v58 = vmul.f32 %v16546_v34, %v16016_v49  ;;  %v16556_v39 = vmul.f32 %v16546_v34, %v16020_v52 }
 0x444   :  { %v16560_v43 = vmul.f32 %v16546_v34, %v16028_v41  ;;  %v16564_v40 = vmul.f32 %v16546_v34, %v16032_v32  ;;  %v16568_v56 = vmul.f32 %v16546_v34, %v16040_v45  ;;  %v16572_v49 = vmul.f32 %v16546_v34, %v16044_v9 }
 0x445   :  { %v16575_v52 = vrot.slane %v5182_v29, %v16539_v21  ;;  %v16579_v41 = vmul.f32 %v16546_v34, %v16051_v10  ;;  %v16583_v32 = vmul.f32 %v16546_v34, %v16056_v24  ;;  %v16587_v45 = vmul.f32 %v16546_v34, %v16063_v50  ;;  %v6988_v29 = vld [vmem:[#allocation8 + $0x1f0] sm:$0xff]  ;;  %v20057_v21 = vld [vmem:[#allocation68_spill] sm:$0xff] }
 0x446   :  { %v16591_v9 = vmul.f32 %v16546_v34, %v16068_v54  ;;  %v16595_v48 = vmul.f32 %v16546_v34, %v16075_v33  ;;  %v16599_v10 = vmul.f32 %v16546_v34, %v16080_v20  ;;  %v16603_v24 = vmul.f32 %v16546_v34, %v16089_v62  ;;  %13623 = vmatprep.subr.mxu0 %v6988_v29 }
 0x447   :  { %v5321_v61 = vadd.f32 %v16575_v52, %v5251_v12  ;;  %v16608_v50 = vmul.f32 %v16546_v34, %v16095_v15  ;;  %v16612_v54 = vmul.f32 %v16546_v34, %v16104_v35  ;;  %v16616_v33 = vmul.f32 %v16546_v34, %v16109_v38  ;;  %v20050_v12 = vld [vmem:[#allocation37_spill] sm:$0xff]  ;;  %13624 = vmatpush3.msra.mxu0 %v6988_v29 }
 0x448   :  { %v16620_v20 = vmul.f32 %v16546_v34, %v16118_v27  ;;  %v16624_v62 = vmul.f32 %v16546_v34, %v16123_v4  ;;  %v16628_v15 = vmul.f32 %v16546_v34, %v16132_v23  ;;  %v16632_v35 = vmul.f32 %v16546_v34, %v16137_v31 }
 0x449   :  { %v5385_v53 = vmax.f32 %v5321_v61, 0.0  ;;  %v16636_v38 = vmul.f32 %v16546_v34, %v16146_v16  ;;  %v16640_v27 = vmul.f32 %v16546_v34, %v20044_v5  ;;  %v16644_v4 = vmul.f32 %v16546_v34, %v20045_v26  ;;  %v20052_v26 = vld [vmem:[#allocation66_spill] sm:$0xff] }
 0x44a   :  { %v16648_v23 = vmul.f32 %v16546_v34, %v16165_v13  ;;  %v16652_v31 = vmul.f32 %v16546_v34, %v20024_v36  ;;  %v16656_v16 = vmul.f32 %v16546_v34, %v16179_v42  ;;  %v16660_v17 = vmul.f32 %v16546_v34, %v20025_v7  ;;  %v20046_v13 = vld [vmem:[#allocation58_spill] sm:$0xff]  ;;  %v20048_v7 = vld [vmem:[#allocation35_spill] sm:$0xff] }
 0x44b   :  { %v16664_v37 = vmul.f32 %v16546_v34, %v16193_v28  ;;  %v16668_v55 = vmul.f32 %v16546_v34, %v20046_v13  ;;  %v16672_v36 = vmul.f32 %v16546_v34, %v20027_v25  ;;  %v20047_v42 = vld [vmem:[#allocation34_spill] sm:$0xff]  ;;  %5449 = vst [vmem:[#allocation2 + $0x331] sm:$0xff] %v5385_v53  ;;  %v16680_v6 = vmul.f32 %v16546_v34, %v20048_v7  ;;  %v20049_v28 = vld [vmem:[#allocation59_spill] sm:$0xff]  ;;  %v20051_v53 = vld [vmem:[#allocation61_spill] sm:$0xff] }
 0x44c   :  { %v16676_v8 = vmul.f32 %v16546_v34, %v20047_v42  ;;  %v16684_v60 = vmul.f32 %v16546_v34, %v20049_v28  ;;  %v16688_v22 = vmul.f32 %v16546_v34, %v20030_v11  ;;  %v16692_v25 = vmul.f32 %v16546_v34, %v20031_v57  ;;  %v20053_v11 = vld [vmem:[#allocation38_spill] sm:$0xff]  ;;  %v20054_v57 = vld [vmem:[#allocation39_spill] sm:$0xff] }
 0x44d   :  { %v16696_v61 = vmul.f32 %v16546_v34, %v20050_v12  ;;  %v16700_v5 = vmul.f32 %v16546_v34, %v20051_v53  ;;  %v16704_v13 = vmul.f32 %v16546_v34, %v20052_v26  ;;  %v16708_v42 = vmul.f32 %v16546_v34, %v20053_v11  ;;  %v20055_v28 = vld [vmem:[#allocation63_spill] sm:$0xff]  ;;  %v6987_v11 = vld [vmem:[#allocation8 + $0x1e8] sm:$0xff] }
 0x44e   :  { %v16712_v7 = vmul.f32 %v16546_v34, %v20054_v57  ;;  %v16716_v12 = vmul.f32 %v16546_v34, %v20055_v28  ;;  %v16720_v53 = vmul.f32 %v16546_v34, %v20057_v21  ;;  %v16724_v26 = vmul.f32 %v16546_v34, %v20035_v30  ;;  %v20060_v28 = vld [vmem:[#allocation65_spill] sm:$0xff]  ;;  %v20062_v21 = vld [vmem:[#allocation42_spill] sm:$0xff]  ;;  %v20064_v30 = vld [vmem:[#allocation43_spill] sm:$0xff]  ;;  %13625 = vmatprep.subr.mxu0 %v6987_v11 }
 0x44f   :  { %v16728_v0 = vmul.f32 %v16546_v34, %v16301_v19  ;;  %v16732_v57 = vmul.f32 %v16546_v34, %v20036_v44  ;;  %v16744_v3 = vmul.f32 %v16546_v34, %v20064_v30  ;;  %v16752_v44 = vmul.f32 %v16546_v34, %v20039_v2  ;;  %v20068_v30 = vld [vmem:[#allocation69_spill] sm:$0xff]  ;;  %13626 = vmatpush3.msra.mxu0 %v6987_v11 }
 0x450   :  { %20056 = vst [vmem:[#allocation32_spill] sm:$0xff] %v16716_v12  ;;  %20058 = vst [vmem:[#allocation48_spill] sm:$0xff] %v16720_v53  ;;  %v16736_v12 = vmul.f32 %v16546_v34, %v20060_v28  ;;  %v16740_v53 = vmul.f32 %v16546_v34, %v20062_v21  ;;  %v16756_v28 = vmul.f32 %v16546_v34, %v20040_v14  ;;  %v6986_v21 = vld [vmem:[#allocation8 + $0x1e0] sm:$0xff] }
 0x451   :  { %20059 = vst [vmem:[#allocation72_spill] sm:$0xff] %v16724_v26  ;;  %20065 = vst [vmem:[#allocation49_spill] sm:$0xff] %v16744_v3  ;;  %v20066_v26 = vld [vmem:[#allocation67_spill] sm:$0xff]  ;;  %v16764_v3 = vmul.f32 %v16546_v34, %v20068_v30  ;;  %v16772_v2 = vmul.f32 %v16546_v34, %v20042_v47  ;;  %v16776_v14 = vmul.f32 %v16546_v34, %v16368_v1  ;;  %v20072_v1 = vld [vmem:[#allocation46_spill] sm:$0xff]  ;;  %13627 = vmatprep.subr.mxu0 %v6986_v21 }
 0x452   :  { %20061 = vst [vmem:[#allocation104_spill] sm:$0xff] %v16736_v12  ;;  %20063 = vst [vmem:[#allocation77_spill] sm:$0xff] %v16740_v53  ;;  %v16748_v19 = vmul.f32 %v16546_v34, %v20066_v26  ;;  %v20067_v53 = vld [vmem:[#allocation45_spill] sm:$0xff]  ;;  %v16768_v26 = vmul.f32 %v16546_v34, %v16358_v63  ;;  %v16780_v29 = vmul.f32 %v16546_v34, %v16374_v18  ;;  %v6447_v47 = vld [vmem:[#allocation8 + $0x110] sm:$0xff]  ;;  %13628 = vmatpush3.msra.mxu0 %v6986_v21 }
 0x453   :  { %v16760_v12 = vmul.f32 %v16546_v34, %v20067_v53  ;;  %20069 = vst [vmem:[#allocation50_spill] sm:$0xff] %v16776_v14  ;;  %v16784_v53 = vmul.f32 %v16546_v34, %v16378_v59  ;;  %v16788_v63 = vmul.f32 %v16546_v34, %v16382_v51  ;;  %v16792_v30 = vmul.f32 %v16546_v34, %v16385_v46  ;;  %v20073_v18 = vld [vmem:[#allocation47_spill] sm:$0xff]  ;;  %v20074_v59 = vld [vmem:[#allocation70_spill] sm:$0xff]  ;;  %v6985_v51 = vld [vmem:[#allocation8 + $0x1d8] sm:$0xff] }
 0x454   :  { %20070 = vst [vmem:[#allocation74_spill] sm:$0xff] %v16780_v29  ;;  %v16796_v14 = vmul.f32 %v16546_v34, %v20072_v1  ;;  %v16800_v29 = vmul.f32 %v16546_v34, %v20073_v18  ;;  %v16808_v11 = vadd.f32 %v16575_v52, %v16552_v58  ;;  %v16812_v46 = vadd.f32 %v16575_v52, %v16556_v39 }
 0x455   :  { %20071 = vst [vmem:[#allocation79_spill] sm:$0xff] %v16784_v53  ;;  %v16804_v53 = vmul.f32 %v16546_v34, %v20074_v59  ;;  %v16816_v1 = vadd.f32 %v16575_v52, %v16560_v43  ;;  %v16820_v18 = vadd.f32 %v16575_v52, %v16564_v40  ;;  %v16824_v34 = vadd.f32 %v16575_v52, %v16568_v56 }
 0x456   :  { %v16828_v58 = vadd.f32 %v16575_v52, %v16572_v49  ;;  %v16832_v39 = vadd.f32 %v16575_v52, %v16579_v41  ;;  %v16836_v43 = vadd.f32 %v16575_v52, %v16583_v32  ;;  %13519 = vmatprep.subr.mxu1 %v6447_v47  ;;  %v16840_v40 = vadd.f32 %v16575_v52, %v16587_v45  ;;  %v6984_v32 = vld [vmem:[#allocation8 + $0x1d0] sm:$0xff] }
 0x457   :  { %v16844_v56 = vadd.f32 %v16575_v52, %v16591_v9  ;;  %v16848_v49 = vadd.f32 %v16575_v52, %v16595_v48  ;;  %v16852_v41 = vadd.f32 %v16575_v52, %v16599_v10  ;;  %13629 = vmatprep.subr.mxu0 %v6985_v51  ;;  %v16856_v21 = vadd.f32 %v16575_v52, %v16603_v24 }
 0x458   :  { %v16860_v45 = vadd.f32 %v16575_v52, %v16608_v50  ;;  %v16864_v9 = vadd.f32 %v16575_v52, %v16612_v54  ;;  %v16868_v48 = vadd.f32 %v16575_v52, %v16616_v33  ;;  %13520 = vmatpush3.msra.mxu1 %v6447_v47  ;;  %v16872_v10 = vadd.f32 %v16575_v52, %v16620_v20  ;;  %v6983_v33 = vld [vmem:[#allocation8 + $0x1c8] sm:$0xff] }
 0x459   :  { %v16876_v24 = vadd.f32 %v16575_v52, %v16624_v62  ;;  %v16880_v50 = vadd.f32 %v16575_v52, %v16628_v15  ;;  %v16884_v54 = vadd.f32 %v16575_v52, %v16632_v35  ;;  %13630 = vmatpush3.msra.mxu0 %v6985_v51  ;;  %v16888_v47 = vadd.f32 %v16575_v52, %v16636_v38 }
 0x45a   :  { %v16892_v20 = vadd.f32 %v16575_v52, %v16640_v27  ;;  %v16896_v62 = vadd.f32 %v16575_v52, %v16644_v4  ;;  %v16900_v15 = vadd.f32 %v16575_v52, %v16648_v23  ;;  %13631 = vmatprep.subr.mxu0 %v6984_v32  ;;  %v16904_v35 = vadd.f32 %v16575_v52, %v16652_v31  ;;  %v6982_v23 = vld [vmem:[#allocation8 + $0x1c0] sm:$0xff] }
 0x45b   :  { %v16908_v38 = vadd.f32 %v16575_v52, %v16656_v16  ;;  %v16912_v27 = vadd.f32 %v16575_v52, %v16660_v17  ;;  %v16916_v4 = vadd.f32 %v16575_v52, %v16664_v37  ;;  %13632 = vmatpush3.msra.mxu0 %v6984_v32  ;;  %v16920_v59 = vadd.f32 %v16575_v52, %v16668_v55  ;;  %v20078_v32 = vld [vmem:[#allocation32_spill] sm:$0xff] }
 0x45c   :  { %v16924_v31 = vadd.f32 %v16575_v52, %v16672_v36  ;;  %v16928_v16 = vadd.f32 %v16575_v52, %v16676_v8  ;;  %v16932_v17 = vadd.f32 %v16575_v52, %v16680_v6  ;;  %13633 = vmatprep.subr.mxu0 %v6983_v33  ;;  %v16936_v37 = vadd.f32 %v16575_v52, %v16684_v60  ;;  %v6446_v6 = vld [vmem:[#allocation8 + $0x108] sm:$0xff] }
 0x45d   :  { %v16940_v55 = vadd.f32 %v16575_v52, %v16688_v22  ;;  %v16944_v36 = vadd.f32 %v16575_v52, %v16692_v25  ;;  %v16948_v8 = vadd.f32 %v16575_v52, %v16696_v61  ;;  %13634 = vmatpush3.msra.mxu0 %v6983_v33  ;;  %v16952_v51 = vadd.f32 %v16575_v52, %v16700_v5  ;;  %v6981_v61 = vld [vmem:[#allocation8 + $0x1b8] sm:$0xff] }
 0x45e   :  { %v16956_v60 = vadd.f32 %v16575_v52, %v16704_v13  ;;  %v16960_v22 = vadd.f32 %v16575_v52, %v16708_v42  ;;  %v16964_v25 = vadd.f32 %v16575_v52, %v16712_v7  ;;  %13635 = vmatprep.subr.mxu0 %v6982_v23  ;;  %v16968_v33 = vadd.f32 %v16575_v52, %v20078_v32  ;;  %v20080_v5 = vld [vmem:[#allocation48_spill] sm:$0xff] }
 0x45f   :  { %20075 = vst [vmem:[#allocation51_spill] sm:$0xff] %v16952_v51  ;;  %v16972_v51 = vadd.f32 %v16575_v52, %v20080_v5  ;;  %v20082_v13 = vld [vmem:[#allocation72_spill] sm:$0xff]  ;;  %v16980_v42 = vadd.f32 %v16575_v52, %v16728_v0  ;;  %13636 = vmatpush3.msra.mxu0 %v6982_v23  ;;  %v16984_v7 = vadd.f32 %v16575_v52, %v16732_v57 }
 0x460   :  { %20076 = vst [vmem:[#allocation52_spill] sm:$0xff] %v16956_v60  ;;  %20077 = vst [vmem:[#allocation76_spill] sm:$0xff] %v16964_v25  ;;  %v16976_v60 = vadd.f32 %v16575_v52, %v20082_v13  ;;  %v20083_v25 = vld [vmem:[#allocation104_spill] sm:$0xff]  ;;  %13521 = vmatprep.subr.mxu1 %v6446_v6  ;;  %v17000_v0 = vadd.f32 %v16575_v52, %v16748_v19  ;;  %v17004_v57 = vadd.f32 %v16575_v52, %v16752_v44 }
 0x461   :  { %20079 = vst [vmem:[#allocation81_spill] sm:$0xff] %v16968_v33  ;;  %20081 = vst [vmem:[#allocation16_spill] sm:$0xff] %v16972_v51  ;;  %v16988_v32 = vadd.f32 %v16575_v52, %v20083_v25  ;;  %v20084_v33 = vld [vmem:[#allocation77_spill] sm:$0xff]  ;;  %v17008_v23 = vadd.f32 %v16575_v52, %v16756_v28  ;;  %v17012_v25 = vadd.f32 %v16575_v52, %v16760_v12  ;;  %13637 = vmatprep.subr.mxu0 %v6981_v61  ;;  %v20089_v28 = vld [vmem:[#allocation50_spill] sm:$0xff] }
 0x462   :  { %v16992_v5 = vadd.f32 %v16575_v52, %v20084_v33  ;;  %v20085_v51 = vld [vmem:[#allocation49_spill] sm:$0xff]  ;;  %20086 = vst [vmem:[#allocation33_spill] sm:$0xff] %v17004_v57  ;;  %v17016_v33 = vadd.f32 %v16575_v52, %v16764_v3  ;;  %v17020_v19 = vadd.f32 %v16575_v52, %v16768_v26  ;;  %v17024_v44 = vadd.f32 %v16575_v52, %v16772_v2  ;;  %v20091_v12 = vld [vmem:[#allocation74_spill] sm:$0xff]  ;;  %v20092_v57 = vld [vmem:[#allocation79_spill] sm:$0xff] }
 0x463   :  { %v16996_v13 = vadd.f32 %v16575_v52, %v20085_v51  ;;  %20087 = vst [vmem:[#allocation78_spill] sm:$0xff] %v17008_v23  ;;  %20088 = vst [vmem:[#allocation83_spill] sm:$0xff] %v17012_v25  ;;  %v6980_v51 = vld [vmem:[#allocation8 + $0x1b0] sm:$0xff]  ;;  %v17028_v23 = vadd.f32 %v16575_v52, %v20089_v28  ;;  %13522 = vmatpush3.msra.mxu1 %v6446_v6  ;;  %v17032_v25 = vadd.f32 %v16575_v52, %v20091_v12  ;;  %v6979_v28 = vld [vmem:[#allocation8 + $0x1a8] sm:$0xff] }
 0x464   :  { %v17036_v3 = vadd.f32 %v16575_v52, %v20092_v57  ;;  %v17040_v26 = vadd.f32 %v16575_v52, %v16788_v63  ;;  %v17044_v2 = vadd.f32 %v16575_v52, %v16792_v30  ;;  %13638 = vmatpush3.msra.mxu0 %v6981_v61  ;;  %v17048_v6 = vadd.f32 %v16575_v52, %v16796_v14 }
 0x465   :  { %20090 = vst [vmem:[#allocation17_spill] sm:$0xff] %v17028_v23  ;;  %v6445_v23 = vld [vmem:[#allocation8 + $0x100] sm:$0xff]  ;;  %v17052_v12 = vadd.f32 %v16575_v52, %v16800_v29  ;;  %v17056_v57 = vadd.f32 %v16575_v52, %v16804_v53  ;;  %v5323_v63 = vmax.f32 %v16808_v11, 0.0  ;;  %13639 = vmatprep.subr.mxu0 %v6980_v51  ;;  %v5324_v30 = vmax.f32 %v16812_v46, 0.0 }
 0x466   :  { %20093 = vst [vmem:[#allocation18_spill] sm:$0xff] %v17044_v2  ;;  %20094 = vst [vmem:[#allocation80_spill] sm:$0xff] %v17048_v6  ;;  %13523 = vmatprep.subr.mxu1 %v6445_v23  ;;  %v5325_v61 = vmax.f32 %v16816_v1, 0.0  ;;  %v5326_v2 = vmax.f32 %v16820_v18, 0.0  ;;  %v19629_v14 = vmax.f32 %v16824_v34, 0.0  ;;  %13640 = vmatpush3.msra.mxu0 %v6980_v51  ;;  %v6978_v6 = vld [vmem:[#allocation8 + $0x1a0] sm:$0xff] }
 0x467   :  { %13524 = vmatpush3.msra.mxu1 %v6445_v23  ;;  %v19630_v29 = vmax.f32 %v16828_v58, 0.0  ;;  %v19631_v52 = vmax.f32 %v16832_v39, 0.0  ;;  %v19632_v53 = vmax.f32 %v16836_v43, 0.0  ;;  %5387 = vst [vmem:[#allocation2 + $0x19] sm:$0xff] %v5323_v63  ;;  %13272 = vmatprep.mubr.f32.mxu1 %v5323_v63  ;;  %v19634_v18 = vmax.f32 %v16852_v41, 0.0  ;;  %5388 = vst [vmem:[#allocation2 + $0x21] sm:$0xff] %v5324_v30 }
 0x468   :  { %13641 = vmatprep.subr.mxu0 %v6979_v28  ;;  %v19633_v51 = vmax.f32 %v16856_v21, 0.0  ;;  %5389 = vst [vmem:[#allocation2 + $0x31] sm:$0xff] %v5325_v61  ;;  %5390 = vst [vmem:[#allocation2 + $0x39] sm:$0xff] %v5326_v2  ;;  %13273 = vmatmul.mubr.f32.gmra.mxu1 %v5324_v30  ;;  %v6977_v23 = vld [vmem:[#allocation8 + $0x198] sm:$0xff]  ;;  %v19636_v63 = vmax.f32 %v16860_v45, 0.0  ;;  %v19635_v11 = vmax.f32 %v16864_v9, 0.0 }
 0x469   :  { %5391 = vst [vmem:[#allocation2 + $0x49] sm:$0xff] %v19629_v14  ;;  %13642 = vmatpush3.msra.mxu0 %v6979_v28  ;;  %5392 = vst [vmem:[#allocation2 + $0x51] sm:$0xff] %v19630_v29  ;;  %v20095_v28 = vmax.f32 %v16840_v40, 0.0  ;;  %13275 = vmatprep.mubr.f32.mxu1 %v5325_v61  ;;  %v19637_v30 = vmax.f32 %v16876_v24, 0.0  ;;  %v19638_v14 = vmax.f32 %v16880_v50, 0.0  ;;  %v20096_v29 = vmax.f32 %v16844_v56, 0.0 }
 0x46a   :  { %5393 = vst [vmem:[#allocation2 + $0x61] sm:$0xff] %v19631_v52  ;;  %5394 = vst [vmem:[#allocation2 + $0x69] sm:$0xff] %v19632_v53  ;;  %13643 = vmatprep.subr.mxu0 %v6978_v6  ;;  %v20097_v52 = vmax.f32 %v16848_v49, 0.0  ;;  %v6976_v61 = vld [vmem:[#allocation8 + $0x190] sm:$0xff]  ;;  %v19641_v53 = vmax.f32 %v16896_v62, 0.0  ;;  %v19640_v46 = vmax.f32 %v16900_v15, 0.0 }
 0x46b   :  { %5395 = vst [vmem:[#allocation2 + $0x79] sm:$0xff] %v20095_v28  ;;  %5396 = vst [vmem:[#allocation2 + $0x81] sm:$0xff] %v20096_v29  ;;  %13644 = vmatpush3.msra.mxu0 %v6978_v6  ;;  %v19639_v28 = vmax.f32 %v16892_v20, 0.0  ;;  %v20098_v29 = vmax.f32 %v16868_v48, 0.0  ;;  %v20099_v6 = vmax.f32 %v16872_v10, 0.0  ;;  %v19645_v1 = vmax.f32 %v16924_v31, 0.0 }
 0x46c   :  { %5397 = vst [vmem:[#allocation2 + $0x91] sm:$0xff] %v20097_v52  ;;  %5398 = vst [vmem:[#allocation2 + $0x99] sm:$0xff] %v19634_v18  ;;  %13645 = vmatprep.subr.mxu0 %v6977_v23  ;;  %v19642_v52 = vmax.f32 %v16908_v38, 0.0  ;;  %13276 = vmatmul.mubr.f32.gmra.mxu1 %v5326_v2  ;;  %v5353_v18 = vmax.f32 %v16928_v16, 0.0  ;;  %v20103_v2 = vmax.f32 %v16904_v35, 0.0  ;;  %v20119_v16 = vmax.f32 %v16828_v58, 0.0 }
 0x46d   :  { %5399 = vst [vmem:[#allocation2 + $0xa9] sm:$0xff] %v19633_v51  ;;  %5400 = vst [vmem:[#allocation2 + $0xb1] sm:$0xff] %v19636_v63  ;;  %v19643_v51 = vmax.f32 %v16912_v27, 0.0  ;;  %13646 = vmatpush3.msra.mxu0 %v6977_v23  ;;  %v17123_v63 = vld [vmem:[#allocation8 + $0x278] sm:$0xff]  ;;  %v20104_v23 = vmax.f32 %v16824_v34, 0.0  ;;  %v20107_v34 = vmax.f32 %v16920_v59, 0.0 }
 0x46e   :  { %5401 = vst [vmem:[#allocation2 + $0xc1] sm:$0xff] %v19635_v11  ;;  %5402 = vst [vmem:[#allocation2 + $0xc9] sm:$0xff] %v20098_v29  ;;  %v20100_v29 = vmax.f32 %v16884_v54, 0.0  ;;  %v17121_v11 = vld [vmem:[#allocation8 + $0x188] sm:$0xff]  ;;  %13647 = vmatprep.subr.mxu0 %v6976_v61  ;;  %13749 = vmatprep.subr.mxu1 %v17123_v63 }
 0x46f   :  { %5403 = vst [vmem:[#allocation2 + $0xd9] sm:$0xff] %v20099_v6  ;;  %5404 = vst [vmem:[#allocation2 + $0xe1] sm:$0xff] %v19637_v30  ;;  %v20101_v6 = vmax.f32 %v16888_v47, 0.0  ;;  %v5354_v30 = vmax.f32 %v16932_v17, 0.0  ;;  %13278 = vmatprep.mubr.f32.mxu1 %v20104_v23  ;;  %v17151_v23 = vld [vmem:[#allocation2 + $0x18] sm:$0xff]  ;;  %13648 = vmatpush3.msra.mxu0 %v6976_v61  ;;  %v20111_v17 = vld [vmem:[#allocation81_spill] sm:$0xff] }
 0x470   :  { %5405 = vst [vmem:[#allocation2 + $0xf1] sm:$0xff] %v19638_v14  ;;  %5406 = vst [vmem:[#allocation2 + $0xf9] sm:$0xff] %v20100_v29  ;;  %v19644_v14 = vmax.f32 %v16936_v37, 0.0  ;;  %v20110_v29 = vld [vmem:[#allocation76_spill] sm:$0xff]  ;;  %13400 = vmatprep.mubr.f32.mxu0 %v17151_v23  ;;  %v17163_v61 = vld [vmem:[#allocation2 + $0x20] sm:$0xff]  ;;  %13649 = vmatprep.subr.mxu0 %v17121_v11  ;;  %v20122_v58 = vmax.f32 %v20111_v17, 0.0 }
 0x471   :  { %5407 = vst [vmem:[#allocation2 + $0x109] sm:$0xff] %v20101_v6  ;;  %20102 = vst [vmem:[#allocation85_spill] sm:$0xff] %v17123_v63  ;;  %v20105_v6 = vld [vmem:[#allocation51_spill] sm:$0xff]  ;;  %13401 = vmatmul.mubr.f32.gmra.mxu0 %v17163_v61  ;;  %13279 = vmatmul.mubr.f32.gmra.mxu1 %v20119_v16  ;;  %v20123_v16 = vmax.f32 %v16832_v39, 0.0  ;;  %v20130_v39 = vmax.f32 %v16984_v7, 0.0 }
 0x472   :  { %5408 = vst [vmem:[#allocation2 + $0x111] sm:$0xff] %v19639_v28  ;;  %5409 = vst [vmem:[#allocation2 + $0x121] sm:$0xff] %v19641_v53  ;;  %v20125_v28 = vld [vmem:[#allocation78_spill] sm:$0xff]  ;;  %13650 = vmatpush3.msra.mxu0 %v17121_v11  ;;  %v17223_v11 = vld [vmem:[#allocation2 + $0x38] sm:$0xff] }
 0x473   :  { %5410 = vst [vmem:[#allocation2 + $0x129] sm:$0xff] %v19640_v46  ;;  %5411 = vst [vmem:[#allocation2 + $0x139] sm:$0xff] %v20103_v2  ;;  %v20106_v2 = vmax.f32 %v16916_v4, 0.0  ;;  %v20109_v46 = vld [vmem:[#allocation52_spill] sm:$0xff]  ;;  %13281 = vmatprep.mubr.f32.mxu1 %v20123_v16  ;;  %v20142_v16 = vmax.f32 %v16836_v43, 0.0  ;;  %v20147_v43 = vmax.f32 %v16840_v40, 0.0 }
 0x474   :  { %5412 = vst [vmem:[#allocation2 + $0x141] sm:$0xff] %v19642_v52  ;;  %5413 = vst [vmem:[#allocation2 + $0x151] sm:$0xff] %v19643_v51  ;;  %v19647_v53 = vmax.f32 %v20109_v46, 0.0  ;;  %v6974_v52 = vld [vmem:[#allocation8 + $0x180] sm:$0xff] }
 0x475   :  { %5414 = vst [vmem:[#allocation2 + $0x159] sm:$0xff] %v20106_v2  ;;  %5415 = vst [vmem:[#allocation2 + $0x169] sm:$0xff] %v20107_v34  ;;  %v20113_v2 = vld [vmem:[#allocation16_spill] sm:$0xff]  ;;  %v17179_v34 = vld [vmem:[#allocation2 + $0x30] sm:$0xff]  ;;  %13651 = vmatprep.subr.mxu0 %v6974_v52  ;;  %13282 = vmatmul.mubr.f32.gmra.mxu1 %v20142_v16  ;;  %v20148_v16 = vmax.f32 %v17036_v3, 0.0 }
 0x476   :  { %20108 = vst [vmem:[#allocation19_spill] sm:$0xff] %v17151_v23  ;;  %5416 = vst [vmem:[#allocation2 + $0x171] sm:$0xff] %v19645_v1  ;;  %v20117_v1 = vmax.f32 %v20105_v6, 0.0  ;;  %13403 = vmatprep.mubr.f32.mxu0 %v17179_v34  ;;  %v20131_v51 = vld [vmem:[#allocation17_spill] sm:$0xff]  ;;  %v20143_v23 = vmax.f32 %v17020_v19, 0.0  ;;  %13284 = vmatprep.mubr.f32.mxu1 %v20147_v43  ;;  %v20153_v43 = vmax.f32 %v16848_v49, 0.0 }
 0x477   :  { %5417 = vst [vmem:[#allocation2 + $0x181] sm:$0xff] %v5353_v18  ;;  %5418 = vst [vmem:[#allocation2 + $0x189] sm:$0xff] %v5354_v30  ;;  %v20114_v18 = vmax.f32 %v16940_v55, 0.0  ;;  %v20115_v30 = vmax.f32 %v16944_v36, 0.0  ;;  %13404 = vmatmul.mubr.f32.gmra.mxu0 %v17223_v11  ;;  %v17268_v40 = vld [vmem:[#allocation2 + $0x60] sm:$0xff]  ;;  %v17288_v49 = vld [vmem:[#allocation2 + $0x90] sm:$0xff] }
 0x478   :  { %5419 = vst [vmem:[#allocation2 + $0x1c9] sm:$0xff] %v19644_v14  ;;  %20112 = vst [vmem:[#allocation20_spill] sm:$0xff] %v17163_v61  ;;  %v20116_v14 = vmax.f32 %v16948_v8, 0.0  ;;  %v20126_v61 = vld [vmem:[#allocation83_spill] sm:$0xff]  ;;  %13652 = vmatpush3.msra.mxu0 %v6974_v52  ;;  %v17278_v52 = vld [vmem:[#allocation2 + $0x78] sm:$0xff] }
 0x479   :  { %5420 = vst [vmem:[#allocation2 + $0x1d1] sm:$0xff] %v20114_v18  ;;  %5421 = vst [vmem:[#allocation2 + $0x1e1] sm:$0xff] %v20115_v30  ;;  %v20124_v30 = vld [vmem:[#allocation33_spill] sm:$0xff]  ;;  %v20136_v18 = vld [vmem:[#allocation18_spill] sm:$0xff] }
 0x47a   :  { %5422 = vst [vmem:[#allocation2 + $0x1e9] sm:$0xff] %v20116_v14  ;;  %5423 = vst [vmem:[#allocation2 + $0x1f9] sm:$0xff] %v20117_v1  ;;  %v20120_v14 = vmax.f32 %v16960_v22, 0.0  ;;  %v20121_v1 = vmax.f32 %v20110_v29, 0.0  ;;  %v20138_v63 = vmax.f32 %v20124_v30, 0.0 }
 0x47b   :  { %20118 = vst [vmem:[#allocation82_spill] sm:$0xff] %v17179_v34  ;;  %5424 = vst [vmem:[#allocation2 + $0x201] sm:$0xff] %v19647_v53  ;;  %v20137_v34 = vld [vmem:[#allocation80_spill] sm:$0xff]  ;;  %v17238_v53 = vld [vmem:[#allocation2 + $0x48] sm:$0xff] }
 0x47c   :  { %5425 = vst [vmem:[#allocation2 + $0x211] sm:$0xff] %v20120_v14  ;;  %5426 = vst [vmem:[#allocation2 + $0x219] sm:$0xff] %v20121_v1  ;;  %v20127_v14 = vmax.f32 %v20113_v2, 0.0  ;;  %v20128_v1 = vmax.f32 %v16976_v60, 0.0  ;;  %13406 = vmatprep.mubr.f32.mxu0 %v17238_v53 }
 0x47d   :  { %5427 = vst [vmem:[#allocation2 + $0x229] sm:$0xff] %v20122_v58  ;;  %v20129_v58 = vmax.f32 %v16980_v42, 0.0  ;;  %5431 = vst [vmem:[#allocation2 + $0x259] sm:$0xff] %v20130_v39  ;;  %v20135_v39 = vmax.f32 %v17000_v0, 0.0 }
 0x47e   :  { %5428 = vst [vmem:[#allocation2 + $0x231] sm:$0xff] %v20127_v14  ;;  %5429 = vst [vmem:[#allocation2 + $0x241] sm:$0xff] %v20128_v1  ;;  %v20132_v14 = vmax.f32 %v16988_v32, 0.0  ;;  %v20133_v1 = vmax.f32 %v16992_v5, 0.0 }
 0x47f   :  { %5430 = vst [vmem:[#allocation2 + $0x249] sm:$0xff] %v20129_v58  ;;  %v20134_v58 = vmax.f32 %v16996_v13, 0.0  ;;  %5435 = vst [vmem:[#allocation2 + $0x289] sm:$0xff] %v20135_v39  ;;  %v20141_v39 = vmax.f32 %v17016_v33, 0.0 }
 0x480   :  { %5432 = vst [vmem:[#allocation2 + $0x261] sm:$0xff] %v20132_v14  ;;  %5433 = vst [vmem:[#allocation2 + $0x271] sm:$0xff] %v20133_v1  ;;  %v20139_v1 = vmax.f32 %v20125_v28, 0.0  ;;  %v5384_v14 = vmax.f32 %v17052_v12, 0.0  ;;  %v20207_v12 = vld [vmem:[#allocation85_spill] sm:$0xff] }
 0x481   :  { %5434 = vst [vmem:[#allocation2 + $0x279] sm:$0xff] %v20134_v58  ;;  %5436 = vst [vmem:[#allocation2 + $0x291] sm:$0xff] %v20138_v63  ;;  %v20140_v58 = vmax.f32 %v20126_v61, 0.0  ;;  %v5386_v63 = vmax.f32 %v17056_v57, 0.0  ;;  %v20149_v57 = vmax.f32 %v17040_v26, 0.0 }
 0x482   :  { %5437 = vst [vmem:[#allocation2 + $0x2a1] sm:$0xff] %v20139_v1  ;;  %5439 = vst [vmem:[#allocation2 + $0x2b9] sm:$0xff] %v20141_v39  ;;  %v20144_v1 = vmax.f32 %v17024_v44, 0.0  ;;  %v20146_v39 = vmax.f32 %v17032_v25, 0.0 }
 0x483   :  { %5438 = vst [vmem:[#allocation2 + $0x2a9] sm:$0xff] %v20140_v58  ;;  %5440 = vst [vmem:[#allocation2 + $0x2c1] sm:$0xff] %v20143_v23  ;;  %v20145_v58 = vmax.f32 %v20131_v51, 0.0  ;;  %v20150_v23 = vmax.f32 %v20136_v18, 0.0 }
 0x484   :  { %5441 = vst [vmem:[#allocation2 + $0x2d1] sm:$0xff] %v20144_v1  ;;  %5443 = vst [vmem:[#allocation2 + $0x2e9] sm:$0xff] %v20146_v39  ;;  %v20151_v1 = vmax.f32 %v20137_v34, 0.0  ;;  %v20152_v39 = vmax.f32 %v16844_v56, 0.0  ;;  %v17285_v56 = vld [vmem:[#allocation2 + $0x80] sm:$0xff] }
 0x485   :  { %5442 = vst [vmem:[#allocation2 + $0x2d9] sm:$0xff] %v20145_v58  ;;  %5444 = vst [vmem:[#allocation2 + $0x2f1] sm:$0xff] %v20148_v16  ;;  %v17265_v58 = vld [vmem:[#allocation2 + $0x50] sm:$0xff]  ;;  %v17275_v16 = vld [vmem:[#allocation2 + $0x68] sm:$0xff] }
 0x486   :  { %5445 = vst [vmem:[#allocation2 + $0x301] sm:$0xff] %v20149_v57  ;;  %5446 = vst [vmem:[#allocation2 + $0x309] sm:$0xff] %v20150_v23  ;;  %13407 = vmatmul.mubr.f32.gmra.mxu0 %v17265_v58  ;;  %13285 = vmatmul.mubr.f32.gmra.mxu1 %v20152_v39  ;;  %v20155_v57 = vmax.f32 %v16856_v21, 0.0  ;;  %v20156_v23 = vmax.f32 %v16860_v45, 0.0  ;;  %v17298_v21 = vld [vmem:[#allocation2 + $0xa8] sm:$0xff]  ;;  %v20158_v39 = vmax.f32 %v16868_v48, 0.0 }
 0x487   :  { %5447 = vst [vmem:[#allocation2 + $0x319] sm:$0xff] %v20151_v1  ;;  %5448 = vst [vmem:[#allocation2 + $0x321] sm:$0xff] %v5384_v14  ;;  %13409 = vmatprep.mubr.f32.mxu0 %v17268_v40  ;;  %13287 = vmatprep.mubr.f32.mxu1 %v20153_v43  ;;  %v20157_v1 = vmax.f32 %v16864_v9, 0.0  ;;  %v20159_v43 = vmax.f32 %v16872_v10, 0.0  ;;  %v17305_v45 = vld [vmem:[#allocation2 + $0xb0] sm:$0xff]  ;;  %v17308_v9 = vld [vmem:[#allocation2 + $0xc0] sm:$0xff] }
 0x488   :  { %5450 = vst [vmem:[#allocation2 + $0x339] sm:$0xff] %v5386_v63  ;;  %v20154_v63 = vmax.f32 %v16852_v41, 0.0  ;;  %v17295_v41 = vld [vmem:[#allocation2 + $0x98] sm:$0xff]  ;;  %v17315_v48 = vld [vmem:[#allocation2 + $0xc8] sm:$0xff] }
 0x489   :  { %v17318_v10 = vld [vmem:[#allocation2 + $0xd8] sm:$0xff] }
 0x48a   :  { %13410 = vmatmul.mubr.f32.gmra.mxu0 %v17275_v16  ;;  %13288 = vmatmul.mubr.f32.gmra.mxu1 %v20154_v63  ;;  %v20160_v63 = vmax.f32 %v16876_v24, 0.0  ;;  %v17325_v24 = vld [vmem:[#allocation2 + $0xe0] sm:$0xff] }
 0x48b   :  { %13412 = vmatprep.mubr.f32.mxu0 %v17278_v52  ;;  %13290 = vmatprep.mubr.f32.mxu1 %v20155_v57  ;;  %v20161_v57 = vmax.f32 %v16880_v50, 0.0  ;;  %v17328_v50 = vld [vmem:[#allocation2 + $0xf0] sm:$0xff] }
 0x48e   :  { %13413 = vmatmul.mubr.f32.gmra.mxu0 %v17285_v56  ;;  %13291 = vmatmul.mubr.f32.gmra.mxu1 %v20156_v23  ;;  %v20162_v23 = vmax.f32 %v16884_v54, 0.0  ;;  %v17335_v54 = vld [vmem:[#allocation2 + $0xf8] sm:$0xff] }
 0x48f   :  { %13415 = vmatprep.mubr.f32.mxu0 %v17288_v49  ;;  %13293 = vmatprep.mubr.f32.mxu1 %v20157_v1  ;;  %v20163_v1 = vmax.f32 %v16888_v47, 0.0  ;;  %v17338_v47 = vld [vmem:[#allocation2 + $0x108] sm:$0xff] }
 0x492   :  { %13416 = vmatmul.mubr.f32.gmra.mxu0 %v17295_v41  ;;  %13294 = vmatmul.mubr.f32.gmra.mxu1 %v20158_v39  ;;  %v20164_v39 = vmax.f32 %v16892_v20, 0.0  ;;  %v17345_v20 = vld [vmem:[#allocation2 + $0x110] sm:$0xff] }
 0x493   :  { %13418 = vmatprep.mubr.f32.mxu0 %v17298_v21  ;;  %13296 = vmatprep.mubr.f32.mxu1 %v20159_v43  ;;  %v20165_v43 = vmax.f32 %v16896_v62, 0.0  ;;  %v17348_v62 = vld [vmem:[#allocation2 + $0x120] sm:$0xff] }
 0x496   :  { %13419 = vmatmul.mubr.f32.gmra.mxu0 %v17305_v45  ;;  %13297 = vmatmul.mubr.f32.gmra.mxu1 %v20160_v63  ;;  %v20166_v63 = vmax.f32 %v16900_v15, 0.0  ;;  %v17355_v15 = vld [vmem:[#allocation2 + $0x128] sm:$0xff] }
 0x497   :  { %13421 = vmatprep.mubr.f32.mxu0 %v17308_v9  ;;  %13299 = vmatprep.mubr.f32.mxu1 %v20161_v57  ;;  %v20167_v57 = vmax.f32 %v16904_v35, 0.0  ;;  %v17358_v35 = vld [vmem:[#allocation2 + $0x138] sm:$0xff] }
 0x49a   :  { %13422 = vmatmul.mubr.f32.gmra.mxu0 %v17315_v48  ;;  %13300 = vmatmul.mubr.f32.gmra.mxu1 %v20162_v23  ;;  %v20168_v23 = vmax.f32 %v16908_v38, 0.0  ;;  %v5563_v38 = vld [vmem:[#allocation2 + $0x1b1] sm:$0xff] }
 0x49b   :  { %13424 = vmatprep.mubr.f32.mxu0 %v17318_v10  ;;  %13302 = vmatprep.mubr.f32.mxu1 %v20163_v1  ;;  %v20169_v1 = vmax.f32 %v16912_v27, 0.0  ;;  %v17368_v27 = vld [vmem:[#allocation2 + $0x150] sm:$0xff] }
 0x49e   :  { %13425 = vmatmul.mubr.f32.gmra.mxu0 %v17325_v24  ;;  %13303 = vmatmul.mubr.f32.gmra.mxu1 %v20164_v39  ;;  %v20170_v39 = vmax.f32 %v16916_v4, 0.0  ;;  %v5564_v4 = vld [vmem:[#allocation2 + $0x1b9] sm:$0xff] }
 0x49f   :  { %13427 = vmatprep.mubr.f32.mxu0 %v17328_v50  ;;  %13305 = vmatprep.mubr.f32.mxu1 %v20165_v43  ;;  %v20171_v43 = vmax.f32 %v16920_v59, 0.0  ;;  %v17376_v59 = vld [vmem:[#allocation2 + $0x168] sm:$0xff] }
 0x4a2   :  { %13428 = vmatmul.mubr.f32.gmra.mxu0 %v17335_v54  ;;  %13306 = vmatmul.mubr.f32.gmra.mxu1 %v20166_v63  ;;  %v17365_v63 = vld [vmem:[#allocation2 + $0x140] sm:$0xff] }
 0x4a3   :  { %13430 = vmatprep.mubr.f32.mxu0 %v17338_v47  ;;  %13308 = vmatprep.mubr.f32.mxu1 %v20167_v57  ;;  %v20172_v57 = vmax.f32 %v16924_v31, 0.0  ;;  %v20174_v31 = vmax.f32 %v16940_v55, 0.0  ;;  %v17398_v55 = vld [vmem:[#allocation2 + $0x1e0] sm:$0xff] }
 0x4a6   :  { %13431 = vmatmul.mubr.f32.gmra.mxu0 %v17345_v20  ;;  %13309 = vmatmul.mubr.f32.gmra.mxu1 %v20168_v23  ;;  %v17373_v23 = vld [vmem:[#allocation2 + $0x158] sm:$0xff] }
 0x4a7   :  { %13433 = vmatprep.mubr.f32.mxu0 %v17348_v62  ;;  %13311 = vmatprep.mubr.f32.mxu1 %v20169_v1  ;;  %v20173_v1 = vmax.f32 %v16936_v37, 0.0  ;;  %v20177_v37 = vmax.f32 %v20105_v6, 0.0  ;;  %v17408_v6 = vld [vmem:[#allocation2 + $0x1f8] sm:$0xff] }
 0x4aa   :  { %13434 = vmatmul.mubr.f32.gmra.mxu0 %v17355_v15  ;;  %13312 = vmatmul.mubr.f32.gmra.mxu1 %v20170_v39  ;;  %v17381_v39 = vld [vmem:[#allocation2 + $0x170] sm:$0xff] }
 0x4ab   :  { %13436 = vmatprep.mubr.f32.mxu0 %v17358_v35  ;;  %13314 = vmatprep.mubr.f32.mxu1 %v20171_v43  ;;  %v14403_v43 = vld [vmem:[#allocation2] sm:$0xff] }
 0x4ae   :  { %13437 = vmatmul.mubr.f32.gmra.mxu0 %v17365_v63  ;;  %13315 = vmatmul.mubr.f32.gmra.mxu1 %v20172_v57  ;;  %v17388_v57 = vld [vmem:[#allocation2 + $0x1c8] sm:$0xff] }
 0x4af   :  { %13439 = vmatprep.mubr.f32.mxu0 %v17368_v27  ;;  %13317 = vmatprep.mubr.f32.mxu1 %v5563_v38  ;;  %v20175_v38 = vmax.f32 %v16944_v36, 0.0  ;;  %v20178_v36 = vmax.f32 %v20109_v46, 0.0  ;;  %v20182_v46 = vmax.f32 %v20111_v17, 0.0  ;;  %v17430_v17 = vld [vmem:[#allocation2 + $0x228] sm:$0xff] }
 0x4b2   :  { %13440 = vmatmul.mubr.f32.gmra.mxu0 %v17373_v23  ;;  %13318 = vmatmul.mubr.f32.gmra.mxu1 %v5564_v4  ;;  %v20176_v4 = vmax.f32 %v16948_v8, 0.0  ;;  %v17405_v8 = vld [vmem:[#allocation2 + $0x1e8] sm:$0xff] }
 0x4b3   :  { %13442 = vmatprep.mubr.f32.mxu0 %v17376_v59  ;;  %13320 = vmatprep.mubr.f32.mxu1 %v20173_v1  ;;  %v17395_v1 = vld [vmem:[#allocation2 + $0x1d0] sm:$0xff] }
 0x4b6   :  { %13443 = vmatmul.mubr.f32.gmra.mxu0 %v17381_v39  ;;  %13321 = vmatmul.mubr.f32.gmra.mxu1 %v20174_v31  ;;  %v20179_v31 = vmax.f32 %v16960_v22, 0.0  ;;  %v17417_v22 = vld [vmem:[#allocation2 + $0x200] sm:$0xff] }
 0x4b7   :  { %13445 = vmatprep.mubr.f32.mxu0 %v14403_v43  ;;  %13323 = vmatprep.mubr.f32.mxu1 %v20175_v38  ;;  %v13399_v38 = vpop.f32.mrf.mxu0 }
 0x4ba   :  { %13446 = vmatmul.mubr.f32.gmra.mxu0 %v14403_v43  ;;  %13324 = vmatmul.mubr.f32.gmra.mxu1 %v20176_v4  ;;  %v13271_v43 = vpop.f32.mrf.mxu1  ;;  %v20180_v4 = vmax.f32 %v20110_v29, 0.0  ;;  %v20184_v29 = vmax.f32 %v16976_v60, 0.0  ;;  %v17440_v60 = vld [vmem:[#allocation2 + $0x240] sm:$0xff] }
 0x4bb   :  { %13448 = vmatprep.mubr.f32.mxu0 %v17388_v57  ;;  %13326 = vmatprep.mubr.f32.mxu1 %v20177_v37  ;;  %v17412_v37 = vadd.f32 %v13399_v38, %v13271_v43  ;;  %v17427_v43 = vld [vmem:[#allocation2 + $0x218] sm:$0xff]  ;;  %v20185_v38 = vmax.f32 %v16980_v42, 0.0  ;;  %v17447_v42 = vld [vmem:[#allocation2 + $0x248] sm:$0xff] }
 0x4bd   :  { %20181 = vst [vmem:[#allocation87_spill] sm:$0xff] %v17412_v37  ;;  %v17541_v37 = vld [vmem:[#allocation2 + $0x32] sm:$0xff] }
 0x4be   :  { %13449 = vmatmul.mubr.f32.gmra.mxu0 %v17395_v1  ;;  %13327 = vmatmul.mubr.f32.gmra.mxu1 %v20178_v36  ;;  %v17420_v36 = vld [vmem:[#allocation2 + $0x210] sm:$0xff] }
 0x4bf   :  { %13451 = vmatprep.mubr.f32.mxu0 %v17398_v55  ;;  %13329 = vmatprep.mubr.f32.mxu1 %v20179_v31  ;;  %v20183_v31 = vmax.f32 %v20113_v2, 0.0  ;;  %v17437_v2 = vld [vmem:[#allocation2 + $0x230] sm:$0xff] }
 0x4c2   :  { %13452 = vmatmul.mubr.f32.gmra.mxu0 %v17405_v8  ;;  %13330 = vmatmul.mubr.f32.gmra.mxu1 %v20180_v4  ;;  %v20186_v4 = vmax.f32 %v16984_v7, 0.0  ;;  %v17450_v7 = vld [vmem:[#allocation2 + $0x258] sm:$0xff] }
 0x4c3   :  { %13454 = vmatprep.mubr.f32.mxu0 %v17408_v6  ;;  %13332 = vmatprep.mubr.f32.mxu1 %v20182_v46  ;;  %v20187_v46 = vmax.f32 %v16988_v32, 0.0  ;;  %v17457_v32 = vld [vmem:[#allocation2 + $0x260] sm:$0xff] }
 0x4c6   :  { %13455 = vmatmul.mubr.f32.gmra.mxu0 %v17417_v22  ;;  %13333 = vmatmul.mubr.f32.gmra.mxu1 %v20183_v31  ;;  %v20188_v31 = vmax.f32 %v16992_v5, 0.0  ;;  %v17460_v5 = vld [vmem:[#allocation2 + $0x270] sm:$0xff] }
 0x4c7   :  { %13457 = vmatprep.mubr.f32.mxu0 %v17420_v36  ;;  %13335 = vmatprep.mubr.f32.mxu1 %v20184_v29  ;;  %v20189_v29 = vmax.f32 %v16996_v13, 0.0  ;;  %v17467_v13 = vld [vmem:[#allocation2 + $0x278] sm:$0xff] }
 0x4ca   :  { %13458 = vmatmul.mubr.f32.gmra.mxu0 %v17427_v43  ;;  %13336 = vmatmul.mubr.f32.gmra.mxu1 %v20185_v38  ;;  %v20190_v38 = vmax.f32 %v17000_v0, 0.0  ;;  %v17470_v0 = vld [vmem:[#allocation2 + $0x288] sm:$0xff] }
 0x4cb   :  { %13460 = vmatprep.mubr.f32.mxu0 %v17430_v17  ;;  %13338 = vmatprep.mubr.f32.mxu1 %v20186_v4  ;;  %v20191_v4 = vmax.f32 %v20124_v30, 0.0  ;;  %v8047_v30 = vld [vmem:[#allocation8 + $0x2f8] sm:$0xff] }
 0x4cc   :  { %13877 = vmatprep.subr.mxu0 %v8047_v30 }
 0x4ce   :  { %13461 = vmatmul.mubr.f32.gmra.mxu0 %v17437_v2  ;;  %13339 = vmatmul.mubr.f32.gmra.mxu1 %v20187_v46  ;;  %v20192_v46 = vmax.f32 %v20125_v28, 0.0  ;;  %v17480_v28 = vld [vmem:[#allocation2 + $0x2a0] sm:$0xff] }
 0x4cf   :  { %13463 = vmatprep.mubr.f32.mxu0 %v17440_v60  ;;  %13341 = vmatprep.mubr.f32.mxu1 %v20188_v31  ;;  %v20193_v31 = vmax.f32 %v20126_v61, 0.0  ;;  %v20196_v61 = vmax.f32 %v17024_v44, 0.0  ;;  %v17500_v44 = vld [vmem:[#allocation2 + $0x2d0] sm:$0xff] }
 0x4d2   :  { %13464 = vmatmul.mubr.f32.gmra.mxu0 %v17447_v42  ;;  %13342 = vmatmul.mubr.f32.gmra.mxu1 %v20189_v29  ;;  %v20194_v29 = vmax.f32 %v17016_v33, 0.0  ;;  %v17490_v33 = vld [vmem:[#allocation2 + $0x2b8] sm:$0xff] }
 0x4d3   :  { %13466 = vmatprep.mubr.f32.mxu0 %v17450_v7  ;;  %13344 = vmatprep.mubr.f32.mxu1 %v20190_v38  ;;  %v17477_v38 = vld [vmem:[#allocation2 + $0x290] sm:$0xff] }
 0x4d6   :  { %13467 = vmatmul.mubr.f32.gmra.mxu0 %v17457_v32  ;;  %13345 = vmatmul.mubr.f32.gmra.mxu1 %v20191_v4  ;;  %v20195_v4 = vmax.f32 %v17020_v19, 0.0  ;;  %v17497_v19 = vld [vmem:[#allocation2 + $0x2c0] sm:$0xff] }
 0x4d7   :  { %13469 = vmatprep.mubr.f32.mxu0 %v17460_v5  ;;  %13347 = vmatprep.mubr.f32.mxu1 %v20192_v46  ;;  %v17487_v46 = vld [vmem:[#allocation2 + $0x2a8] sm:$0xff] }
 0x4da   :  { %13470 = vmatmul.mubr.f32.gmra.mxu0 %v17467_v13  ;;  %13348 = vmatmul.mubr.f32.gmra.mxu1 %v20193_v31  ;;  %v20197_v31 = vmax.f32 %v20131_v51, 0.0  ;;  %v17507_v51 = vld [vmem:[#allocation2 + $0x2d8] sm:$0xff] }
 0x4db   :  { %13472 = vmatprep.mubr.f32.mxu0 %v17470_v0  ;;  %13350 = vmatprep.mubr.f32.mxu1 %v20194_v29  ;;  %v20198_v29 = vmax.f32 %v17032_v25, 0.0  ;;  %v17510_v25 = vld [vmem:[#allocation2 + $0x2e8] sm:$0xff] }
 0x4de   :  { %13473 = vmatmul.mubr.f32.gmra.mxu0 %v17477_v38  ;;  %13351 = vmatmul.mubr.f32.gmra.mxu1 %v20195_v4  ;;  %v20199_v4 = vmax.f32 %v17036_v3, 0.0  ;;  %v6381_v3 = vld [vmem:[#allocation2 + $0x2] sm:$0xff] }
 0x4df   :  { %13475 = vmatprep.mubr.f32.mxu0 %v17480_v28  ;;  %13353 = vmatprep.mubr.f32.mxu1 %v20196_v61  ;;  %v20200_v61 = vmax.f32 %v17040_v26, 0.0  ;;  %v17520_v26 = vld [vmem:[#allocation2 + $0x300] sm:$0xff] }
 0x4e0   :  { %20203 = vst [vmem:[#allocation21_spill] sm:$0xff] %v17520_v26 }
 0x4e2   :  { %13476 = vmatmul.mubr.f32.gmra.mxu0 %v17487_v46  ;;  %13354 = vmatmul.mubr.f32.gmra.mxu1 %v20197_v31  ;;  %v20201_v31 = vmax.f32 %v20136_v18, 0.0  ;;  %v6382_v18 = vld [vmem:[#allocation2 + $0xa] sm:$0xff] }
 0x4e3   :  { %13478 = vmatprep.mubr.f32.mxu0 %v17490_v33  ;;  %13356 = vmatprep.mubr.f32.mxu1 %v20198_v29  ;;  %v20202_v29 = vmax.f32 %v20137_v34, 0.0  ;;  %v17528_v34 = vld [vmem:[#allocation2 + $0x318] sm:$0xff] }
 0x4e4   :  { %20205 = vst [vmem:[#allocation84_spill] sm:$0xff] %v17528_v34 }
 0x4e6   :  { %13479 = vmatmul.mubr.f32.gmra.mxu0 %v17497_v19  ;;  %13357 = vmatmul.mubr.f32.gmra.mxu1 %v20199_v4  ;;  %v17517_v4 = vld [vmem:[#allocation2 + $0x2f0] sm:$0xff] }
 0x4e7   :  { %13481 = vmatprep.mubr.f32.mxu0 %v17500_v44  ;;  %13359 = vmatprep.mubr.f32.mxu1 %v20200_v61  ;;  %v17525_v61 = vld [vmem:[#allocation2 + $0x308] sm:$0xff] }
 0x4e8   :  { %20204 = vst [vmem:[#allocation13_spill] sm:$0xff] %v17525_v61 }
 0x4ea   :  { %13482 = vmatmul.mubr.f32.gmra.mxu0 %v17507_v51  ;;  %13360 = vmatmul.mubr.f32.gmra.mxu1 %v20201_v31  ;;  %v17530_v31 = vld [vmem:[#allocation2 + $0x1a] sm:$0xff] }
 0x4eb   :  { %13484 = vmatprep.mubr.f32.mxu0 %v17510_v25  ;;  %13362 = vmatprep.mubr.f32.mxu1 %v20202_v29  ;;  %20206 = vst [vmem:[#allocation89_spill] sm:$0xff] %v17530_v31  ;;  %v7517_v29 = vld [vmem:[#allocation8 + $0x270] sm:$0xff] }
 0x4ee   :  { %13485 = vmatmul.mubr.f32.gmra.mxu0 %v17517_v4  ;;  %13363 = vmatmul.mubr.f32.gmra.mxu1 %v5384_v14  ;;  %v17535_v14 = vld [vmem:[#allocation2 + $0x320] sm:$0xff] }
 0x4ef   :  { %13487 = vmatprep.mubr.f32.mxu0 %v17520_v26  ;;  %13525 = vmatprep.mubr.f32.mxu1 %v6381_v3  ;;  %20208 = vst [vmem:[#allocation14_spill] sm:$0xff] %v17535_v14  ;;  %v17537_v3 = vld [vmem:[#allocation2 + $0x22] sm:$0xff]  ;;  %v8046_v26 = vld [vmem:[#allocation8 + $0x2f0] sm:$0xff] }
 0x4f0   :  { %20209 = vst [vmem:[#allocation15_spill] sm:$0xff] %v17537_v3 }
 0x4f2   :  { %13488 = vmatmul.mubr.f32.gmra.mxu0 %v17525_v61  ;;  %13526 = vmatmul.mubr.f32.vlgmr.msra.gmra.mxu1 %v6382_v18  ;;  %v7516_v18 = vld [vmem:[#allocation8 + $0x268] sm:$0xff]  ;;  %v20210_v61 = vld [vmem:[#allocation19_spill] sm:$0xff] }
 0x4f3   :  { %13490 = vmatprep.mubr.f32.mxu0 %v17528_v34  ;;  %13528 = vmatprep.mubr.f32.mxu1 %v17530_v31  ;;  %v17545_v31 = vld [vmem:[#allocation2 + $0x3a] sm:$0xff]  ;;  %v17549_v34 = vld [vmem:[#allocation2 + $0x4a] sm:$0xff] }
 0x4f4   :  { %13750 = vmatpush3.msra.mxu1 %v20207_v12  ;;  %20211 = vst [vmem:[#allocation86_spill] sm:$0xff] %v17545_v31  ;;  %v20212_v12 = vld [vmem:[#allocation20_spill] sm:$0xff] }
 0x4f5   :  { %13751 = vmatprep.subr.mxu1 %v7517_v29 }
 0x4f6   :  { %13491 = vmatmul.mubr.f32.gmra.mxu0 %v17535_v14  ;;  %13529 = vmatmul.mubr.f32.gmra.mxu1 %v17537_v3  ;;  %v7515_v14 = vld [vmem:[#allocation8 + $0x260] sm:$0xff]  ;;  %v20213_v3 = vld [vmem:[#allocation82_spill] sm:$0xff] }
 0x4f7   :  { %13653 = vmatprep.mubr.f32.mxu0 %v20210_v61  ;;  %13531 = vmatprep.mubr.f32.mxu1 %v17541_v37  ;;  %v17553_v61 = vld [vmem:[#allocation2 + $0x52] sm:$0xff] }
 0x4f8   :  { %13752 = vmatpush3.msra.mxu1 %v7517_v29  ;;  %v17557_v29 = vld [vmem:[#allocation2 + $0x62] sm:$0xff] }
 0x4f9   :  { %13753 = vmatprep.subr.mxu1 %v7516_v18 }
 0x4fa   :  { %13654 = vmatmul.mubr.f32.vlgmr.msra.gmra.mxu0 %v20212_v12  ;;  %13532 = vmatmul.mubr.f32.gmra.mxu1 %v17545_v31  ;;  %v7514_v12 = vld [vmem:[#allocation8 + $0x258] sm:$0xff]  ;;  %v8045_v31 = vld [vmem:[#allocation8 + $0x2e8] sm:$0xff] }
 0x4fb   :  { %13656 = vmatprep.mubr.f32.mxu0 %v20213_v3  ;;  %13534 = vmatprep.mubr.f32.mxu1 %v17549_v34  ;;  %v17561_v3 = vld [vmem:[#allocation2 + $0x6a] sm:$0xff] }
 0x4fc   :  { %13754 = vmatpush3.msra.mxu1 %v7516_v18  ;;  %13878 = vmatpush3.msra.mxu0 %v8047_v30  ;;  %v7513_v30 = vld [vmem:[#allocation8 + $0x250] sm:$0xff]  ;;  %v8044_v18 = vld [vmem:[#allocation8 + $0x2e0] sm:$0xff] }
 0x4fd   :  { %13755 = vmatprep.subr.mxu1 %v7515_v14  ;;  %13879 = vmatprep.subr.mxu0 %v8046_v26 }
 0x4fe   :  { %13657 = vmatmul.mubr.f32.gmra.mxu0 %v17223_v11  ;;  %13535 = vmatmul.mubr.f32.gmra.mxu1 %v17553_v61  ;;  %v17565_v11 = vld [vmem:[#allocation2 + $0x7a] sm:$0xff] }
 0x4ff   :  { %13659 = vmatprep.mubr.f32.mxu0 %v17238_v53  ;;  %13537 = vmatprep.mubr.f32.mxu1 %v17557_v29  ;;  %v17569_v53 = vld [vmem:[#allocation2 + $0x82] sm:$0xff] }
 0x500   :  { %13756 = vmatpush3.msra.mxu1 %v7515_v14  ;;  %13880 = vmatpush3.msra.mxu0 %v8046_v26  ;;  %v7512_v26 = vld [vmem:[#allocation8 + $0x248] sm:$0xff]  ;;  %v8043_v14 = vld [vmem:[#allocation8 + $0x2d8] sm:$0xff] }
 0x501   :  { %13757 = vmatprep.subr.mxu1 %v7514_v12  ;;  %13881 = vmatprep.subr.mxu0 %v8045_v31 }
 0x502   :  { %13660 = vmatmul.mubr.f32.gmra.mxu0 %v17265_v58  ;;  %13538 = vmatmul.mubr.f32.gmra.mxu1 %v17561_v3  ;;  %v17573_v58 = vld [vmem:[#allocation2 + $0x92] sm:$0xff] }
 0x503   :  { %13662 = vmatprep.mubr.f32.mxu0 %v17268_v40  ;;  %13540 = vmatprep.mubr.f32.mxu1 %v17565_v11  ;;  %v17577_v40 = vld [vmem:[#allocation2 + $0x9a] sm:$0xff] }
 0x504   :  { %13758 = vmatpush3.msra.mxu1 %v7514_v12  ;;  %13882 = vmatpush3.msra.mxu0 %v8045_v31  ;;  %v7511_v31 = vld [vmem:[#allocation8 + $0x240] sm:$0xff]  ;;  %v8042_v12 = vld [vmem:[#allocation8 + $0x2d0] sm:$0xff] }
 0x505   :  { %13759 = vmatprep.subr.mxu1 %v7513_v30  ;;  %13883 = vmatprep.subr.mxu0 %v8044_v18 }
 0x506   :  { %13663 = vmatmul.mubr.f32.gmra.mxu0 %v17275_v16  ;;  %13541 = vmatmul.mubr.f32.gmra.mxu1 %v17569_v53  ;;  %v17581_v16 = vld [vmem:[#allocation2 + $0xaa] sm:$0xff] }
 0x507   :  { %13665 = vmatprep.mubr.f32.mxu0 %v17278_v52  ;;  %13543 = vmatprep.mubr.f32.mxu1 %v17573_v58  ;;  %v17585_v52 = vld [vmem:[#allocation2 + $0xb2] sm:$0xff] }
 0x508   :  { %13760 = vmatpush3.msra.mxu1 %v7513_v30  ;;  %13884 = vmatpush3.msra.mxu0 %v8044_v18  ;;  %v7510_v30 = vld [vmem:[#allocation8 + $0x238] sm:$0xff]  ;;  %v8041_v18 = vld [vmem:[#allocation8 + $0x2c8] sm:$0xff] }
 0x509   :  { %13761 = vmatprep.subr.mxu1 %v7512_v26  ;;  %13885 = vmatprep.subr.mxu0 %v8043_v14 }
 0x50a   :  { %13666 = vmatmul.mubr.f32.gmra.mxu0 %v17285_v56  ;;  %13544 = vmatmul.mubr.f32.gmra.mxu1 %v17577_v40  ;;  %v17589_v56 = vld [vmem:[#allocation2 + $0xc2] sm:$0xff] }
 0x50b   :  { %13668 = vmatprep.mubr.f32.mxu0 %v17288_v49  ;;  %13546 = vmatprep.mubr.f32.mxu1 %v17581_v16  ;;  %v17593_v49 = vld [vmem:[#allocation2 + $0xca] sm:$0xff] }
 0x50c   :  { %13762 = vmatpush3.msra.mxu1 %v7512_v26  ;;  %13886 = vmatpush3.msra.mxu0 %v8043_v14  ;;  %v7509_v26 = vld [vmem:[#allocation8 + $0x230] sm:$0xff]  ;;  %v8040_v14 = vld [vmem:[#allocation8 + $0x2c0] sm:$0xff] }
 0x50d   :  { %13763 = vmatprep.subr.mxu1 %v7511_v31  ;;  %13887 = vmatprep.subr.mxu0 %v8042_v12 }
 0x50e   :  { %13669 = vmatmul.mubr.f32.gmra.mxu0 %v17295_v41  ;;  %13547 = vmatmul.mubr.f32.gmra.mxu1 %v17585_v52  ;;  %v17597_v41 = vld [vmem:[#allocation2 + $0xda] sm:$0xff] }
 0x50f   :  { %13671 = vmatprep.mubr.f32.mxu0 %v17298_v21  ;;  %13549 = vmatprep.mubr.f32.mxu1 %v17589_v56  ;;  %v17601_v21 = vld [vmem:[#allocation2 + $0xe2] sm:$0xff] }
 0x510   :  { %13764 = vmatpush3.msra.mxu1 %v7511_v31  ;;  %13888 = vmatpush3.msra.mxu0 %v8042_v12  ;;  %v7508_v31 = vld [vmem:[#allocation8 + $0x228] sm:$0xff]  ;;  %v8039_v12 = vld [vmem:[#allocation8 + $0x2b8] sm:$0xff] }
 0x511   :  { %13765 = vmatprep.subr.mxu1 %v7510_v30  ;;  %13889 = vmatprep.subr.mxu0 %v8041_v18 }
 0x512   :  { %13672 = vmatmul.mubr.f32.gmra.mxu0 %v17305_v45  ;;  %13550 = vmatmul.mubr.f32.gmra.mxu1 %v17593_v49  ;;  %v17605_v45 = vld [vmem:[#allocation2 + $0xf2] sm:$0xff] }
 0x513   :  { %13674 = vmatprep.mubr.f32.mxu0 %v17308_v9  ;;  %13552 = vmatprep.mubr.f32.mxu1 %v17597_v41  ;;  %v17609_v9 = vld [vmem:[#allocation2 + $0xfa] sm:$0xff] }
 0x514   :  { %13766 = vmatpush3.msra.mxu1 %v7510_v30  ;;  %13890 = vmatpush3.msra.mxu0 %v8041_v18  ;;  %v7507_v30 = vld [vmem:[#allocation8 + $0x220] sm:$0xff]  ;;  %v8038_v18 = vld [vmem:[#allocation8 + $0x2b0] sm:$0xff] }
 0x515   :  { %13767 = vmatprep.subr.mxu1 %v7509_v26  ;;  %13891 = vmatprep.subr.mxu0 %v8040_v14 }
 0x516   :  { %13675 = vmatmul.mubr.f32.gmra.mxu0 %v17315_v48  ;;  %13553 = vmatmul.mubr.f32.gmra.mxu1 %v17601_v21  ;;  %v17613_v48 = vld [vmem:[#allocation2 + $0x10a] sm:$0xff] }
 0x517   :  { %13677 = vmatprep.mubr.f32.mxu0 %v17318_v10  ;;  %13555 = vmatprep.mubr.f32.mxu1 %v17605_v45  ;;  %v17617_v10 = vld [vmem:[#allocation2 + $0x112] sm:$0xff] }
 0x518   :  { %13768 = vmatpush3.msra.mxu1 %v7509_v26  ;;  %13892 = vmatpush3.msra.mxu0 %v8040_v14  ;;  %v7506_v26 = vld [vmem:[#allocation8 + $0x218] sm:$0xff]  ;;  %v8037_v14 = vld [vmem:[#allocation8 + $0x2a8] sm:$0xff] }
 0x519   :  { %13769 = vmatprep.subr.mxu1 %v7508_v31  ;;  %13893 = vmatprep.subr.mxu0 %v8039_v12 }
 0x51a   :  { %13678 = vmatmul.mubr.f32.gmra.mxu0 %v17325_v24  ;;  %13556 = vmatmul.mubr.f32.gmra.mxu1 %v17609_v9  ;;  %v17621_v24 = vld [vmem:[#allocation2 + $0x122] sm:$0xff] }
 0x51b   :  { %13680 = vmatprep.mubr.f32.mxu0 %v17328_v50  ;;  %13558 = vmatprep.mubr.f32.mxu1 %v17613_v48  ;;  %v17625_v50 = vld [vmem:[#allocation2 + $0x12a] sm:$0xff] }
 0x51c   :  { %13770 = vmatpush3.msra.mxu1 %v7508_v31  ;;  %13894 = vmatpush3.msra.mxu0 %v8039_v12  ;;  %20214 = vst [vmem:[#allocation91_spill] sm:$0xff] %v17625_v50  ;;  %v7505_v31 = vld [vmem:[#allocation8 + $0x210] sm:$0xff]  ;;  %v8036_v12 = vld [vmem:[#allocation8 + $0x2a0] sm:$0xff] }
 0x51d   :  { %13771 = vmatprep.subr.mxu1 %v7507_v30  ;;  %13895 = vmatprep.subr.mxu0 %v8038_v18 }
 0x51e   :  { %13681 = vmatmul.mubr.f32.gmra.mxu0 %v17335_v54  ;;  %13559 = vmatmul.mubr.f32.gmra.mxu1 %v17617_v10  ;;  %v17629_v54 = vld [vmem:[#allocation2 + $0x13a] sm:$0xff] }
 0x51f   :  { %13683 = vmatprep.mubr.f32.mxu0 %v17338_v47  ;;  %13561 = vmatprep.mubr.f32.mxu1 %v17621_v24  ;;  %v6408_v47 = vld [vmem:[#allocation2 + $0x142] sm:$0xff] }
 0x520   :  { %13772 = vmatpush3.msra.mxu1 %v7507_v30  ;;  %13896 = vmatpush3.msra.mxu0 %v8038_v18  ;;  %v6409_v30 = vld [vmem:[#allocation2 + $0x152] sm:$0xff] }
 0x521   :  { %13773 = vmatprep.subr.mxu1 %v7506_v26  ;;  %13897 = vmatprep.subr.mxu0 %v8037_v14  ;;  %v8035_v18 = vld [vmem:[#allocation8 + $0x298] sm:$0xff] }
 0x522   :  { %13684 = vmatmul.mubr.f32.gmra.mxu0 %v17345_v20  ;;  %13562 = vmatmul.mubr.f32.gmra.mxu1 %v17625_v50  ;;  %v7504_v20 = vld [vmem:[#allocation8 + $0x208] sm:$0xff]  ;;  %v6410_v50 = vld [vmem:[#allocation2 + $0x15a] sm:$0xff] }
 0x523   :  { %13686 = vmatprep.mubr.f32.mxu0 %v17348_v62  ;;  %13564 = vmatprep.mubr.f32.mxu1 %v17629_v54  ;;  %v6411_v62 = vld [vmem:[#allocation2 + $0x16a] sm:$0xff] }
 0x524   :  { %13774 = vmatpush3.msra.mxu1 %v7506_v26  ;;  %13898 = vmatpush3.msra.mxu0 %v8037_v14  ;;  %v7503_v26 = vld [vmem:[#allocation8 + $0x200] sm:$0xff]  ;;  %v8034_v14 = vld [vmem:[#allocation8 + $0x290] sm:$0xff] }
 0x525   :  { %13775 = vmatprep.subr.mxu1 %v7505_v31  ;;  %13899 = vmatprep.subr.mxu0 %v8036_v12 }
 0x526   :  { %13687 = vmatmul.mubr.f32.gmra.mxu0 %v17355_v15  ;;  %13565 = vmatmul.mubr.f32.gmra.mxu1 %v6408_v47  ;;  %v6413_v15 = vld [vmem:[#allocation2 + $0x1b2] sm:$0xff] }
 0x527   :  { %13689 = vmatprep.mubr.f32.mxu0 %v17358_v35  ;;  %13567 = vmatprep.mubr.f32.mxu1 %v6409_v30  ;;  %v6412_v47 = vld [vmem:[#allocation2 + $0x172] sm:$0xff]  ;;  %v8033_v35 = vld [vmem:[#allocation8 + $0x288] sm:$0xff] }
 0x528   :  { %13776 = vmatpush3.msra.mxu1 %v7505_v31  ;;  %13900 = vmatpush3.msra.mxu0 %v8036_v12  ;;  %v17638_v31 = vld [vmem:[#allocation8 + $0x378] sm:$0xff]  ;;  %v8032_v12 = vld [vmem:[#allocation8 + $0x280] sm:$0xff]  ;;  %v6941_v30 = vld [vmem:[#allocation2 + $0x188] sm:$0xff] }
 0x529   :  { %13777 = vmatprep.subr.mxu1 %v7504_v20  ;;  %13901 = vmatprep.subr.mxu0 %v8035_v18 }
 0x52a   :  { %13690 = vmatmul.mubr.f32.gmra.mxu0 %v17365_v63  ;;  %13568 = vmatmul.mubr.f32.gmra.mxu1 %v6410_v50  ;;  %v6414_v63 = vld [vmem:[#allocation2 + $0x1ba] sm:$0xff]  ;;  %v6415_v50 = vld [vmem:[#allocation2 + $0x1ca] sm:$0xff] }
 0x52b   :  { %13692 = vmatprep.mubr.f32.mxu0 %v17368_v27  ;;  %13570 = vmatprep.mubr.f32.mxu1 %v6411_v62  ;;  %v6940_v27 = vld [vmem:[#allocation2 + $0x180] sm:$0xff]  ;;  %v6418_v62 = vld [vmem:[#allocation2 + $0x1ea] sm:$0xff] }
 0x52c   :  { %13778 = vmatpush3.msra.mxu1 %v7504_v20  ;;  %13902 = vmatpush3.msra.mxu0 %v8035_v18  ;;  %v6417_v18 = vld [vmem:[#allocation2 + $0x1e2] sm:$0xff] }
 0x52d   :  { %13779 = vmatprep.subr.mxu1 %v7503_v26  ;;  %13903 = vmatprep.subr.mxu0 %v8034_v14 }
 0x52e   :  { %13693 = vmatmul.mubr.f32.gmra.mxu0 %v17373_v23  ;;  %13571 = vmatmul.mubr.f32.gmra.mxu1 %v6412_v47  ;;  %v17643_v23 = vpop.f32.mrf.mxu1 }
 0x52f   :  { %13695 = vmatprep.mubr.f32.mxu0 %v17376_v59  ;;  %13573 = vmatprep.mubr.f32.mxu1 %v6413_v15  ;;  %v6416_v59 = vld [vmem:[#allocation2 + $0x1d2] sm:$0xff]  ;;  %v17648_v15 = vpop.f32.mrf.mxu0 }
 0x530   :  { %13780 = vmatpush3.msra.mxu1 %v7503_v26  ;;  %13904 = vmatpush3.msra.mxu0 %v8034_v14  ;;  %v13274_v20 = vpop.f32.mrf.mxu1  ;;  %v6419_v14 = vld [vmem:[#allocation2 + $0x1fa] sm:$0xff] }
 0x531   :  { %13905 = vmatprep.subr.mxu0 %v8033_v35  ;;  %14005 = vmatprep.subr.mxu1 %v17638_v31 }
 0x532   :  { %13696 = vmatmul.mubr.f32.gmra.mxu0 %v17381_v39  ;;  %13574 = vmatmul.mubr.f32.gmra.mxu1 %v6414_v63  ;;  %v5687_v39 = vpop.f32.mrf.mxu1  ;;  %v13402_v63 = vpop.f32.mrf.mxu0 }
 0x533   :  { %13698 = vmatprep.mubr.f32.mxu0 %v6940_v27  ;;  %13576 = vmatprep.mubr.f32.mxu1 %v6415_v50  ;;  %v6421_v27 = vld [vmem:[#allocation2 + $0x212] sm:$0xff]  ;;  %v17651_v50 = vadd.f32 %v13402_v63, %v13274_v20 }
 0x534   :  { %13906 = vmatpush3.msra.mxu0 %v8033_v35  ;;  %v13277_v26 = vpop.f32.mrf.mxu1  ;;  %v6420_v35 = vld [vmem:[#allocation2 + $0x202] sm:$0xff] }
 0x535   :  { %13907 = vmatprep.subr.mxu0 %v8032_v12 }
 0x536   :  { %13699 = vmatmul.mubr.f32.gmra.mxu0 %v6941_v30  ;;  %13577 = vmatmul.mubr.f32.gmra.mxu1 %v6416_v59  ;;  %v5697_v47 = vpop.f32.mrf.mxu1 }
 0x537   :  { %13701 = vmatprep.mubr.f32.mxu0 %v17388_v57  ;;  %13579 = vmatprep.mubr.f32.mxu1 %v6417_v18 }
 0x538   :  { %13908 = vmatpush3.msra.mxu0 %v8032_v12  ;;  %v13280_v57 = vpop.f32.mrf.mxu1 }
 0x53a   :  { %13702 = vmatmul.mubr.f32.gmra.mxu0 %v17395_v1  ;;  %13580 = vmatmul.mubr.f32.gmra.mxu1 %v6418_v62  ;;  %v6072_v1 = vpop.f32.mrf.mxu0  ;;  %v5707_v12 = vpop.f32.mrf.mxu1  ;;  %v6423_v62 = vld [vmem:[#allocation2 + $0x22a] sm:$0xff] }
 0x53b   :  { %13704 = vmatprep.mubr.f32.mxu0 %v17398_v55  ;;  %13582 = vmatprep.mubr.f32.mxu1 %v6419_v14  ;;  %v17654_v30 = vadd.f32 %v6072_v1, %v5687_v39  ;;  %v6422_v55 = vld [vmem:[#allocation2 + $0x21a] sm:$0xff] }
 0x53c   :  { %v13405_v59 = vpop.f32.mrf.mxu0  ;;  %v13283_v18 = vpop.f32.mrf.mxu1 }
 0x53e   :  { %13705 = vmatmul.mubr.f32.gmra.mxu0 %v17405_v8  ;;  %13583 = vmatmul.mubr.f32.gmra.mxu1 %v6420_v35  ;;  %v17657_v8 = vadd.f32 %v13405_v59, %v13277_v26  ;;  %v6082_v20 = vpop.f32.mrf.mxu0  ;;  %v5717_v14 = vpop.f32.mrf.mxu1  ;;  %v6424_v35 = vld [vmem:[#allocation2 + $0x232] sm:$0xff] }
 0x53f   :  { %13707 = vmatprep.mubr.f32.mxu0 %v17408_v6  ;;  %13585 = vmatprep.mubr.f32.mxu1 %v6421_v27  ;;  %v17660_v6 = vadd.f32 %v6082_v20, %v5697_v47  ;;  %v6425_v27 = vld [vmem:[#allocation2 + $0x242] sm:$0xff] }
 0x542   :  { %13708 = vmatmul.mubr.f32.gmra.mxu0 %v17417_v22  ;;  %13586 = vmatmul.mubr.f32.gmra.mxu1 %v6422_v55  ;;  %v6426_v55 = vld [vmem:[#allocation2 + $0x24a] sm:$0xff] }
 0x543   :  { %13710 = vmatprep.mubr.f32.mxu0 %v17420_v36  ;;  %13588 = vmatprep.mubr.f32.mxu1 %v6423_v62  ;;  %v6427_v62 = vld [vmem:[#allocation2 + $0x25a] sm:$0xff] }
 0x546   :  { %v13408_v63 = vpop.f32.mrf.mxu0  ;;  %13711 = vmatmul.mubr.f32.gmra.mxu0 %v17427_v43  ;;  %v13286_v39 = vpop.f32.mrf.mxu1  ;;  %13589 = vmatmul.mubr.f32.gmra.mxu1 %v6424_v35  ;;  %v6428_v35 = vld [vmem:[#allocation2 + $0x262] sm:$0xff] }
 0x547   :  { %v17663_v22 = vadd.f32 %v13408_v63, %v13280_v57  ;;  %13713 = vmatprep.mubr.f32.mxu0 %v17430_v17  ;;  %13591 = vmatprep.mubr.f32.mxu1 %v6425_v27  ;;  %v6429_v27 = vld [vmem:[#allocation2 + $0x272] sm:$0xff] }
 0x548   :  { %v6092_v26 = vpop.f32.mrf.mxu0  ;;  %v5727_v1 = vpop.f32.mrf.mxu1 }
 0x549   :  { %v17666_v36 = vadd.f32 %v6092_v26, %v5707_v12 }
 0x54a   :  { %v13411_v59 = vpop.f32.mrf.mxu0  ;;  %13714 = vmatmul.mubr.f32.gmra.mxu0 %v17437_v2  ;;  %v13289_v47 = vpop.f32.mrf.mxu1  ;;  %13592 = vmatmul.mubr.f32.gmra.mxu1 %v6426_v55  ;;  %v6430_v55 = vld [vmem:[#allocation2 + $0x27a] sm:$0xff] }
 0x54b   :  { %v17669_v43 = vadd.f32 %v13411_v59, %v13283_v18  ;;  %13716 = vmatprep.mubr.f32.mxu0 %v17440_v60  ;;  %13594 = vmatprep.mubr.f32.mxu1 %v6427_v62  ;;  %v6431_v62 = vld [vmem:[#allocation2 + $0x28a] sm:$0xff] }
 0x54c   :  { %v6102_v57 = vpop.f32.mrf.mxu0  ;;  %v5737_v20 = vpop.f32.mrf.mxu1 }
 0x54d   :  { %v17672_v17 = vadd.f32 %v6102_v57, %v5717_v14 }
 0x54e   :  { %v13414_v63 = vpop.f32.mrf.mxu0  ;;  %13717 = vmatmul.mubr.f32.gmra.mxu0 %v17447_v42  ;;  %v13292_v12 = vpop.f32.mrf.mxu1  ;;  %13595 = vmatmul.mubr.f32.gmra.mxu1 %v6428_v35  ;;  %v6432_v35 = vld [vmem:[#allocation2 + $0x292] sm:$0xff] }
 0x54f   :  { %v17675_v2 = vadd.f32 %v13414_v63, %v13286_v39  ;;  %13719 = vmatprep.mubr.f32.mxu0 %v17450_v7  ;;  %13597 = vmatprep.mubr.f32.mxu1 %v6429_v27  ;;  %v6433_v27 = vld [vmem:[#allocation2 + $0x2a2] sm:$0xff] }
 0x550   :  { %v6112_v18 = vpop.f32.mrf.mxu0  ;;  %v5747_v26 = vpop.f32.mrf.mxu1 }
 0x551   :  { %v17678_v60 = vadd.f32 %v6112_v18, %v5727_v1 }
 0x552   :  { %v13417_v59 = vpop.f32.mrf.mxu0  ;;  %13720 = vmatmul.mubr.f32.gmra.mxu0 %v17457_v32  ;;  %v13295_v14 = vpop.f32.mrf.mxu1  ;;  %13598 = vmatmul.mubr.f32.gmra.mxu1 %v6430_v55  ;;  %v6434_v55 = vld [vmem:[#allocation2 + $0x2aa] sm:$0xff] }
 0x553   :  { %v17681_v42 = vadd.f32 %v13417_v59, %v13289_v47  ;;  %13722 = vmatprep.mubr.f32.mxu0 %v17460_v5  ;;  %13600 = vmatprep.mubr.f32.mxu1 %v6431_v62  ;;  %v6435_v62 = vld [vmem:[#allocation2 + $0x2ba] sm:$0xff] }
 0x554   :  { %v6122_v39 = vpop.f32.mrf.mxu0  ;;  %v5757_v57 = vpop.f32.mrf.mxu1 }
 0x555   :  { %v17684_v7 = vadd.f32 %v6122_v39, %v5737_v20 }
 0x556   :  { %v13420_v63 = vpop.f32.mrf.mxu0  ;;  %13723 = vmatmul.mubr.f32.gmra.mxu0 %v17467_v13  ;;  %v13298_v1 = vpop.f32.mrf.mxu1  ;;  %13601 = vmatmul.mubr.f32.gmra.mxu1 %v6432_v35  ;;  %v6436_v35 = vld [vmem:[#allocation2 + $0x2c2] sm:$0xff] }
 0x557   :  { %v17687_v32 = vadd.f32 %v13420_v63, %v13292_v12  ;;  %13725 = vmatprep.mubr.f32.mxu0 %v17470_v0  ;;  %13603 = vmatprep.mubr.f32.mxu1 %v6433_v27  ;;  %v17696_v12 = vld [vmem:[#allocation8 + $0x3f8] sm:$0xff] }
 0x558   :  { %v6132_v47 = vpop.f32.mrf.mxu0  ;;  %v5767_v18 = vpop.f32.mrf.mxu1  ;;  %14133 = vmatprep.subr.mxu0 %v17696_v12  ;;  %v6437_v27 = vld [vmem:[#allocation2 + $0x2d2] sm:$0xff] }
 0x559   :  { %v17690_v5 = vadd.f32 %v6132_v47, %v5747_v26 }
 0x55a   :  { %v13423_v59 = vpop.f32.mrf.mxu0  ;;  %13726 = vmatmul.mubr.f32.gmra.mxu0 %v17477_v38  ;;  %v13301_v20 = vpop.f32.mrf.mxu1  ;;  %13604 = vmatmul.mubr.f32.gmra.mxu1 %v6434_v55 }
 0x55b   :  { %v17693_v13 = vadd.f32 %v13423_v59, %v13295_v14  ;;  %13728 = vmatprep.mubr.f32.mxu0 %v17480_v28  ;;  %13606 = vmatprep.mubr.f32.mxu1 %v6435_v62  ;;  %v6438_v59 = vld [vmem:[#allocation2 + $0x2da] sm:$0xff] }
 0x55c   :  { %v6142_v0 = vpop.f32.mrf.mxu0  ;;  %v5777_v39 = vpop.f32.mrf.mxu1 }
 0x55d   :  { %v17699_v26 = vadd.f32 %v6142_v0, %v5757_v57  ;;  %v6439_v0 = vld [vmem:[#allocation2 + $0x2ea] sm:$0xff] }
 0x55e   :  { %v13426_v63 = vpop.f32.mrf.mxu0  ;;  %13729 = vmatmul.mubr.f32.gmra.mxu0 %v17487_v46  ;;  %v13304_v38 = vpop.f32.mrf.mxu1  ;;  %13607 = vmatmul.mubr.f32.gmra.mxu1 %v6436_v35 }
 0x55f   :  { %v17702_v14 = vadd.f32 %v13426_v63, %v13298_v1  ;;  %13731 = vmatprep.mubr.f32.mxu0 %v17490_v33  ;;  %13609 = vmatprep.mubr.f32.mxu1 %v6437_v27  ;;  %v6440_v63 = vld [vmem:[#allocation2 + $0x2f2] sm:$0xff] }
 0x560   :  { %v6152_v28 = vpop.f32.mrf.mxu0  ;;  %v5787_v47 = vpop.f32.mrf.mxu1 }
 0x561   :  { %v17705_v55 = vadd.f32 %v6152_v28, %v5767_v18  ;;  %v6441_v28 = vld [vmem:[#allocation2 + $0x302] sm:$0xff] }
 0x562   :  { %v13429_v62 = vpop.f32.mrf.mxu0  ;;  %13732 = vmatmul.mubr.f32.gmra.mxu0 %v17497_v19  ;;  %v13307_v57 = vpop.f32.mrf.mxu1  ;;  %13610 = vmatmul.mubr.f32.gmra.mxu1 %v6438_v59 }
 0x563   :  { %v17708_v46 = vadd.f32 %v13429_v62, %v13301_v20  ;;  %13734 = vmatprep.mubr.f32.mxu0 %v17500_v44  ;;  %13612 = vmatprep.mubr.f32.mxu1 %v6439_v0  ;;  %v6442_v62 = vld [vmem:[#allocation2 + $0x30a] sm:$0xff] }
 0x564   :  { %v6162_v1 = vpop.f32.mrf.mxu0  ;;  %v5797_v35 = vpop.f32.mrf.mxu1 }
 0x565   :  { %v17711_v33 = vadd.f32 %v6162_v1, %v5777_v39  ;;  %v6443_v1 = vld [vmem:[#allocation2 + $0x31a] sm:$0xff] }
 0x566   :  { %v13432_v27 = vpop.f32.mrf.mxu0  ;;  %13735 = vmatmul.mubr.f32.gmra.mxu0 %v17507_v51  ;;  %v13310_v18 = vpop.f32.mrf.mxu1  ;;  %13613 = vmatmul.mubr.f32.gmra.mxu1 %v6440_v63  ;;  %v20219_v63 = vld [vmem:[#allocation21_spill] sm:$0xff] }
 0x567   :  { %20215 = vst [vmem:[#allocation22_spill] sm:$0xff] %v17711_v33  ;;  %v17714_v19 = vadd.f32 %v13432_v27, %v13304_v38  ;;  %13737 = vmatprep.mubr.f32.mxu0 %v17510_v25  ;;  %13615 = vmatprep.mubr.f32.mxu1 %v6441_v28  ;;  %v6444_v28 = vld [vmem:[#allocation2 + $0x322] sm:$0xff]  ;;  %v8575_v33 = vld [vmem:[#allocation8 + $0x370] sm:$0xff] }
 0x568   :  { %v6172_v20 = vpop.f32.mrf.mxu0  ;;  %v5807_v59 = vpop.f32.mrf.mxu1 }
 0x569   :  { %20216 = vst [vmem:[#allocation23_spill] sm:$0xff] %v17714_v19  ;;  %v17717_v44 = vadd.f32 %v6172_v20, %v5787_v47  ;;  %v20221_v47 = vld [vmem:[#allocation13_spill] sm:$0xff] }
 0x56a   :  { %v13435_v0 = vpop.f32.mrf.mxu0  ;;  %13738 = vmatmul.mubr.f32.gmra.mxu0 %v17517_v4  ;;  %v13313_v39 = vpop.f32.mrf.mxu1  ;;  %13616 = vmatmul.mubr.f32.gmra.mxu1 %v6442_v62  ;;  %v20223_v62 = vld [vmem:[#allocation84_spill] sm:$0xff] }
 0x56b   :  { %20217 = vst [vmem:[#allocation88_spill] sm:$0xff] %v17717_v44  ;;  %v17720_v51 = vadd.f32 %v13435_v0, %v13307_v57  ;;  %13740 = vmatprep.mubr.f32.mxu0 %v20219_v63  ;;  %13618 = vmatprep.mubr.f32.mxu1 %v6443_v1  ;;  %v7439_v44 = vld [vmem:[#allocation2 + $0x19] sm:$0xff]  ;;  %v7440_v1 = vld [vmem:[#allocation2 + $0x21] sm:$0xff] }
 0x56c   :  { %v6182_v38 = vpop.f32.mrf.mxu0  ;;  %v5817_v27 = vpop.f32.mrf.mxu1 }
 0x56d   :  { %20218 = vst [vmem:[#allocation93_spill] sm:$0xff] %v17720_v51  ;;  %v17723_v25 = vadd.f32 %v6182_v38, %v5797_v35  ;;  %v20225_v35 = vld [vmem:[#allocation14_spill] sm:$0xff]  ;;  %v6972_v38 = vld [vmem:[#allocation2 + $0x330] sm:$0xff] }
 0x56e   :  { %v13438_v19 = vpop.f32.mrf.mxu0  ;;  %13741 = vmatmul.mubr.f32.gmra.mxu0 %v20221_v47  ;;  %v13316_v20 = vpop.f32.mrf.mxu1  ;;  %13619 = vmatmul.mubr.f32.gmra.mxu1 %v6444_v28  ;;  %v7441_v47 = vld [vmem:[#allocation2 + $0x31] sm:$0xff] }
 0x56f   :  { %20220 = vst [vmem:[#allocation24_spill] sm:$0xff] %v17723_v25  ;;  %v17726_v4 = vadd.f32 %v13438_v19, %v13310_v18  ;;  %13743 = vmatprep.mubr.f32.mxu0 %v20223_v62  ;;  %13781 = vmatprep.mubr.f32.mxu1 %v7439_v44  ;;  %v7442_v62 = vld [vmem:[#allocation2 + $0x39] sm:$0xff] }
 0x570   :  { %v6192_v57 = vpop.f32.mrf.mxu0  ;;  %v5827_v0 = vpop.f32.mrf.mxu1 }
 0x571   :  { %20222 = vst [vmem:[#allocation53_spill] sm:$0xff] %v17726_v4  ;;  %v17729_v63 = vadd.f32 %v6192_v57, %v5807_v59  ;;  %v6973_v59 = vld [vmem:[#allocation2 + $0x338] sm:$0xff] }
 0x572   :  { %v13441_v51 = vpop.f32.mrf.mxu0  ;;  %13744 = vmatmul.mubr.f32.gmra.mxu0 %v20225_v35  ;;  %v13319_v25 = vpop.f32.mrf.mxu1  ;;  %13782 = vmatmul.mubr.f32.vlgmr.msra.gmra.mxu1 %v7440_v1  ;;  %v7443_v1 = vld [vmem:[#allocation2 + $0x49] sm:$0xff] }
 0x573   :  { %20224 = vst [vmem:[#allocation90_spill] sm:$0xff] %v17729_v63  ;;  %v17732_v28 = vadd.f32 %v13441_v51, %v13313_v39  ;;  %13746 = vmatprep.mubr.f32.mxu0 %v6972_v38  ;;  %13784 = vmatprep.mubr.f32.mxu1 %v7441_v47  ;;  %v8574_v63 = vld [vmem:[#allocation8 + $0x368] sm:$0xff]  ;;  %v20228_v39 = vld [vmem:[#allocation89_spill] sm:$0xff] }
 0x574   :  { %v6202_v18 = vpop.f32.mrf.mxu0  ;;  %14006 = vmatpush3.msra.mxu1 %v17638_v31  ;;  %v5837_v19 = vpop.f32.mrf.mxu1 }
 0x575   :  { %20226 = vst [vmem:[#allocation95_spill] sm:$0xff] %v17732_v28  ;;  %v17735_v44 = vadd.f32 %v6202_v18, %v5817_v27  ;;  %14007 = vmatprep.subr.mxu1 %v8575_v33  ;;  %v7444_v27 = vld [vmem:[#allocation2 + $0x51] sm:$0xff] }
 0x576   :  { %v13444_v57 = vpop.f32.mrf.mxu0  ;;  %13747 = vmatmul.mubr.f32.gmra.mxu0 %v6973_v59  ;;  %v13322_v35 = vpop.f32.mrf.mxu1  ;;  %13785 = vmatmul.mubr.f32.gmra.mxu1 %v7442_v62  ;;  %v20229_v18 = vld [vmem:[#allocation15_spill] sm:$0xff]  ;;  %v7445_v62 = vld [vmem:[#allocation2 + $0x61] sm:$0xff] }
 0x577   :  { %20227 = vst [vmem:[#allocation25_spill] sm:$0xff] %v17735_v44  ;;  %v17737_v4 = vadd.f32 %v13444_v57, %v13316_v20  ;;  %13909 = vmatprep.mubr.f32.mxu0 %v20228_v39  ;;  %13787 = vmatprep.mubr.f32.mxu1 %v7443_v1  ;;  %v8573_v44 = vld [vmem:[#allocation8 + $0x360] sm:$0xff]  ;;  %v9104_v28 = vld [vmem:[#allocation8 + $0x3f0] sm:$0xff] }
 0x578   :  { %v6212_v51 = vpop.f32.mrf.mxu0  ;;  %v5847_v38 = vpop.f32.mrf.mxu1  ;;  %14008 = vmatpush3.msra.mxu1 %v8575_v33 }
 0x579   :  { %v17740_v31 = vadd.f32 %v6212_v51, %v5827_v0  ;;  %14009 = vmatprep.subr.mxu1 %v8574_v63  ;;  %v7446_v0 = vld [vmem:[#allocation2 + $0x69] sm:$0xff] }
 0x57a   :  { %v13447_v47 = vpop.f32.mrf.mxu0  ;;  %13910 = vmatmul.mubr.f32.vlgmr.msra.gmra.mxu0 %v20229_v18  ;;  %v13325_v59 = vpop.f32.mrf.mxu1  ;;  %13788 = vmatmul.mubr.f32.gmra.mxu1 %v7444_v27  ;;  %v20230_v51 = vld [vmem:[#allocation86_spill] sm:$0xff] }
 0x57b   :  { %v17743_v20 = vadd.f32 %v13447_v47, %v13319_v25  ;;  %13912 = vmatprep.mubr.f32.mxu0 %v17541_v37  ;;  %13790 = vmatprep.mubr.f32.mxu1 %v7445_v62  ;;  %v7447_v25 = vld [vmem:[#allocation2 + $0x79] sm:$0xff]  ;;  %v9103_v18 = vld [vmem:[#allocation8 + $0x3e8] sm:$0xff] }
 0x57c   :  { %v6222_v57 = vpop.f32.mrf.mxu0  ;;  %v5857_v1 = vpop.f32.mrf.mxu1  ;;  %14010 = vmatpush3.msra.mxu1 %v8574_v63  ;;  %14134 = vmatpush3.msra.mxu0 %v17696_v12  ;;  %v8572_v47 = vld [vmem:[#allocation8 + $0x358] sm:$0xff]  ;;  %v7448_v62 = vld [vmem:[#allocation2 + $0x81] sm:$0xff] }
 0x57d   :  { %v17747_v33 = vadd.f32 %v6222_v57, %v5837_v19  ;;  %14011 = vmatprep.subr.mxu1 %v8573_v44  ;;  %14135 = vmatprep.subr.mxu0 %v9104_v28 }
 0x57e   :  { %v13450_v39 = vpop.f32.mrf.mxu0  ;;  %13913 = vmatmul.mubr.f32.gmra.mxu0 %v20230_v51  ;;  %v13328_v27 = vpop.f32.mrf.mxu1  ;;  %13791 = vmatmul.mubr.f32.gmra.mxu1 %v7446_v0  ;;  %v7449_v51 = vld [vmem:[#allocation2 + $0x91] sm:$0xff] }
 0x57f   :  { %v17750_v37 = vadd.f32 %v13450_v39, %v13322_v35  ;;  %13915 = vmatprep.mubr.f32.mxu0 %v17549_v34  ;;  %13793 = vmatprep.mubr.f32.mxu1 %v7447_v25  ;;  %v8571_v35 = vld [vmem:[#allocation8 + $0x350] sm:$0xff]  ;;  %v9102_v39 = vld [vmem:[#allocation8 + $0x3e0] sm:$0xff] }
 0x580   :  { %v6232_v63 = vpop.f32.mrf.mxu0  ;;  %v5867_v12 = vpop.f32.mrf.mxu1  ;;  %14012 = vmatpush3.msra.mxu1 %v8573_v44  ;;  %14136 = vmatpush3.msra.mxu0 %v9104_v28 }
 0x581   :  { %20231 = vst [vmem:[#allocation54_spill] sm:$0xff] %v17750_v37  ;;  %v17753_v19 = vadd.f32 %v6232_v63, %v5847_v38  ;;  %14013 = vmatprep.subr.mxu1 %v8572_v47  ;;  %14137 = vmatprep.subr.mxu0 %v9103_v18  ;;  %v7450_v38 = vld [vmem:[#allocation2 + $0x99] sm:$0xff]  ;;  %v7451_v63 = vld [vmem:[#allocation2 + $0xa9] sm:$0xff] }
 0x582   :  { %v13453_v57 = vpop.f32.mrf.mxu0  ;;  %13916 = vmatmul.mubr.f32.gmra.mxu0 %v17553_v61  ;;  %v13331_v0 = vpop.f32.mrf.mxu1  ;;  %13794 = vmatmul.mubr.f32.gmra.mxu1 %v7448_v62  ;;  %v9101_v62 = vld [vmem:[#allocation8 + $0x3d8] sm:$0xff] }
 0x583   :  { %v17756_v37 = vadd.f32 %v13453_v57, %v13325_v59  ;;  %13918 = vmatprep.mubr.f32.mxu0 %v17557_v29  ;;  %13796 = vmatprep.mubr.f32.mxu1 %v7449_v51  ;;  %v8570_v59 = vld [vmem:[#allocation8 + $0x348] sm:$0xff] }
 0x584   :  { %v6242_v34 = vpop.f32.mrf.mxu0  ;;  %v5877_v28 = vpop.f32.mrf.mxu1  ;;  %14014 = vmatpush3.msra.mxu1 %v8572_v47  ;;  %14138 = vmatpush3.msra.mxu0 %v9103_v18  ;;  %v7452_v18 = vld [vmem:[#allocation2 + $0xb1] sm:$0xff] }
 0x585   :  { %v17759_v44 = vadd.f32 %v6242_v34, %v5857_v1  ;;  %14015 = vmatprep.subr.mxu1 %v8571_v35  ;;  %14139 = vmatprep.subr.mxu0 %v9102_v39  ;;  %v7453_v34 = vld [vmem:[#allocation2 + $0xc1] sm:$0xff] }
 0x586   :  { %v13456_v61 = vpop.f32.mrf.mxu0  ;;  %13919 = vmatmul.mubr.f32.gmra.mxu0 %v17561_v3  ;;  %v13334_v25 = vpop.f32.mrf.mxu1  ;;  %13797 = vmatmul.mubr.f32.gmra.mxu1 %v7450_v38  ;;  %v9100_v38 = vld [vmem:[#allocation8 + $0x3d0] sm:$0xff] }
 0x587   :  { %v17762_v57 = vadd.f32 %v13456_v61, %v13328_v27  ;;  %13921 = vmatprep.mubr.f32.mxu0 %v17565_v11  ;;  %13799 = vmatprep.mubr.f32.mxu1 %v7451_v63  ;;  %v8569_v27 = vld [vmem:[#allocation8 + $0x340] sm:$0xff] }
 0x588   :  { %v6252_v29 = vpop.f32.mrf.mxu0  ;;  %v5887_v47 = vpop.f32.mrf.mxu1  ;;  %14016 = vmatpush3.msra.mxu1 %v8571_v35  ;;  %14140 = vmatpush3.msra.mxu0 %v9102_v39  ;;  %v7454_v39 = vld [vmem:[#allocation2 + $0xc9] sm:$0xff] }
 0x589   :  { %v17765_v1 = vadd.f32 %v6252_v29, %v5867_v12  ;;  %14017 = vmatprep.subr.mxu1 %v8570_v59  ;;  %14141 = vmatprep.subr.mxu0 %v9101_v62  ;;  %v7455_v29 = vld [vmem:[#allocation2 + $0xd9] sm:$0xff] }
 0x58a   :  { %v13459_v3 = vpop.f32.mrf.mxu0  ;;  %13922 = vmatmul.mubr.f32.gmra.mxu0 %v17569_v53  ;;  %v13337_v51 = vpop.f32.mrf.mxu1  ;;  %13800 = vmatmul.mubr.f32.gmra.mxu1 %v7452_v18  ;;  %v9099_v18 = vld [vmem:[#allocation8 + $0x3c8] sm:$0xff] }
 0x58b   :  { %v17768_v61 = vadd.f32 %v13459_v3, %v13331_v0  ;;  %13924 = vmatprep.mubr.f32.mxu0 %v17573_v58  ;;  %13802 = vmatprep.mubr.f32.mxu1 %v7453_v34  ;;  %v8568_v0 = vld [vmem:[#allocation8 + $0x338] sm:$0xff] }
 0x58c   :  { %v6262_v11 = vpop.f32.mrf.mxu0  ;;  %v5897_v35 = vpop.f32.mrf.mxu1  ;;  %14018 = vmatpush3.msra.mxu1 %v8570_v59  ;;  %14142 = vmatpush3.msra.mxu0 %v9101_v62  ;;  %v7456_v62 = vld [vmem:[#allocation2 + $0xe1] sm:$0xff] }
 0x58d   :  { %v17771_v12 = vadd.f32 %v6262_v11, %v5877_v28  ;;  %14019 = vmatprep.subr.mxu1 %v8569_v27  ;;  %14143 = vmatprep.subr.mxu0 %v9100_v38  ;;  %v7457_v11 = vld [vmem:[#allocation2 + $0xf1] sm:$0xff] }
 0x58e   :  { %v13462_v53 = vpop.f32.mrf.mxu0  ;;  %13925 = vmatmul.mubr.f32.gmra.mxu0 %v17577_v40  ;;  %v13340_v63 = vpop.f32.mrf.mxu1  ;;  %13803 = vmatmul.mubr.f32.gmra.mxu1 %v7454_v39  ;;  %v9098_v39 = vld [vmem:[#allocation8 + $0x3c0] sm:$0xff] }
 0x58f   :  { %v17774_v3 = vadd.f32 %v13462_v53, %v13334_v25  ;;  %13927 = vmatprep.mubr.f32.mxu0 %v17581_v16  ;;  %13805 = vmatprep.mubr.f32.mxu1 %v7455_v29  ;;  %v8567_v25 = vld [vmem:[#allocation8 + $0x330] sm:$0xff] }
 0x590   :  { %v6272_v58 = vpop.f32.mrf.mxu0  ;;  %v5907_v59 = vpop.f32.mrf.mxu1  ;;  %14020 = vmatpush3.msra.mxu1 %v8569_v27  ;;  %14144 = vmatpush3.msra.mxu0 %v9100_v38  ;;  %v7458_v38 = vld [vmem:[#allocation2 + $0xf9] sm:$0xff] }
 0x591   :  { %v17777_v28 = vadd.f32 %v6272_v58, %v5887_v47  ;;  %14021 = vmatprep.subr.mxu1 %v8568_v0  ;;  %14145 = vmatprep.subr.mxu0 %v9099_v18  ;;  %v7459_v58 = vld [vmem:[#allocation2 + $0x109] sm:$0xff] }
 0x592   :  { %v13465_v40 = vpop.f32.mrf.mxu0  ;;  %13928 = vmatmul.mubr.f32.gmra.mxu0 %v17585_v52  ;;  %v13343_v34 = vpop.f32.mrf.mxu1  ;;  %13806 = vmatmul.mubr.f32.gmra.mxu1 %v7456_v62  ;;  %v9097_v62 = vld [vmem:[#allocation8 + $0x3b8] sm:$0xff] }
 0x593   :  { %v17780_v53 = vadd.f32 %v13465_v40, %v13337_v51  ;;  %13930 = vmatprep.mubr.f32.mxu0 %v17589_v56  ;;  %13808 = vmatprep.mubr.f32.mxu1 %v7457_v11  ;;  %v8566_v51 = vld [vmem:[#allocation8 + $0x328] sm:$0xff] }
 0x594   :  { %v6282_v16 = vpop.f32.mrf.mxu0  ;;  %v5917_v27 = vpop.f32.mrf.mxu1  ;;  %14022 = vmatpush3.msra.mxu1 %v8568_v0  ;;  %14146 = vmatpush3.msra.mxu0 %v9099_v18  ;;  %v7460_v18 = vld [vmem:[#allocation2 + $0x111] sm:$0xff] }
 0x595   :  { %v17783_v47 = vadd.f32 %v6282_v16, %v5897_v35  ;;  %14023 = vmatprep.subr.mxu1 %v8567_v25  ;;  %14147 = vmatprep.subr.mxu0 %v9098_v39  ;;  %v7461_v16 = vld [vmem:[#allocation2 + $0x121] sm:$0xff] }
 0x596   :  { %v13468_v52 = vpop.f32.mrf.mxu0  ;;  %13931 = vmatmul.mubr.f32.gmra.mxu0 %v17593_v49  ;;  %v13346_v29 = vpop.f32.mrf.mxu1  ;;  %13809 = vmatmul.mubr.f32.gmra.mxu1 %v7458_v38  ;;  %v9096_v38 = vld [vmem:[#allocation8 + $0x3b0] sm:$0xff] }
 0x597   :  { %v17786_v40 = vadd.f32 %v13468_v52, %v13340_v63  ;;  %13933 = vmatprep.mubr.f32.mxu0 %v17597_v41  ;;  %13811 = vmatprep.mubr.f32.mxu1 %v7459_v58  ;;  %v8565_v63 = vld [vmem:[#allocation8 + $0x320] sm:$0xff] }
 0x598   :  { %v6292_v56 = vpop.f32.mrf.mxu0  ;;  %v5927_v0 = vpop.f32.mrf.mxu1  ;;  %14024 = vmatpush3.msra.mxu1 %v8567_v25  ;;  %14148 = vmatpush3.msra.mxu0 %v9098_v39  ;;  %v7462_v39 = vld [vmem:[#allocation2 + $0x129] sm:$0xff] }
 0x599   :  { %v17789_v35 = vadd.f32 %v6292_v56, %v5907_v59  ;;  %14025 = vmatprep.subr.mxu1 %v8566_v51  ;;  %14149 = vmatprep.subr.mxu0 %v9097_v62  ;;  %v7463_v56 = vld [vmem:[#allocation2 + $0x139] sm:$0xff] }
 0x59a   :  { %v13471_v49 = vpop.f32.mrf.mxu0  ;;  %13934 = vmatmul.mubr.f32.gmra.mxu0 %v17601_v21  ;;  %v13349_v11 = vpop.f32.mrf.mxu1  ;;  %13812 = vmatmul.mubr.f32.gmra.mxu1 %v7460_v18  ;;  %v9095_v18 = vld [vmem:[#allocation8 + $0x3a8] sm:$0xff] }
 0x59b   :  { %v17792_v52 = vadd.f32 %v13471_v49, %v13343_v34  ;;  %13936 = vmatprep.mubr.f32.mxu0 %v17605_v45  ;;  %13814 = vmatprep.mubr.f32.mxu1 %v7461_v16  ;;  %v8564_v34 = vld [vmem:[#allocation8 + $0x318] sm:$0xff] }
 0x59c   :  { %v6302_v41 = vpop.f32.mrf.mxu0  ;;  %v5937_v25 = vpop.f32.mrf.mxu1  ;;  %14026 = vmatpush3.msra.mxu1 %v8566_v51  ;;  %14150 = vmatpush3.msra.mxu0 %v9097_v62  ;;  %v7464_v62 = vld [vmem:[#allocation2 + $0x141] sm:$0xff] }
 0x59d   :  { %v17795_v59 = vadd.f32 %v6302_v41, %v5917_v27  ;;  %14027 = vmatprep.subr.mxu1 %v8565_v63  ;;  %14151 = vmatprep.subr.mxu0 %v9096_v38  ;;  %v7465_v41 = vld [vmem:[#allocation2 + $0x151] sm:$0xff] }
 0x59e   :  { %v13474_v21 = vpop.f32.mrf.mxu0  ;;  %13937 = vmatmul.mubr.f32.gmra.mxu0 %v17609_v9  ;;  %v13352_v58 = vpop.f32.mrf.mxu1  ;;  %13815 = vmatmul.mubr.f32.gmra.mxu1 %v7462_v39  ;;  %v9094_v39 = vld [vmem:[#allocation8 + $0x3a0] sm:$0xff] }
 0x59f   :  { %v17798_v49 = vadd.f32 %v13474_v21, %v13346_v29  ;;  %13939 = vmatprep.mubr.f32.mxu0 %v17613_v48  ;;  %13817 = vmatprep.mubr.f32.mxu1 %v7463_v56  ;;  %v8563_v29 = vld [vmem:[#allocation8 + $0x310] sm:$0xff] }
 0x5a0   :  { %v6312_v45 = vpop.f32.mrf.mxu0  ;;  %v5947_v51 = vpop.f32.mrf.mxu1  ;;  %14028 = vmatpush3.msra.mxu1 %v8565_v63  ;;  %14152 = vmatpush3.msra.mxu0 %v9096_v38  ;;  %v7466_v38 = vld [vmem:[#allocation2 + $0x159] sm:$0xff]  ;;  %v20235_v56 = vld [vmem:[#allocation91_spill] sm:$0xff] }
 0x5a1   :  { %v17801_v27 = vadd.f32 %v6312_v45, %v5927_v0  ;;  %14029 = vmatprep.subr.mxu1 %v8564_v34  ;;  %14153 = vmatprep.subr.mxu0 %v9095_v18 }
 0x5a2   :  { %v13477_v9 = vpop.f32.mrf.mxu0  ;;  %13940 = vmatmul.mubr.f32.gmra.mxu0 %v17617_v10  ;;  %v13355_v16 = vpop.f32.mrf.mxu1  ;;  %13818 = vmatmul.mubr.f32.gmra.mxu1 %v7464_v62  ;;  %v7467_v62 = vld [vmem:[#allocation2 + $0x169] sm:$0xff] }
 0x5a3   :  { %20232 = vst [vmem:[#allocation92_spill] sm:$0xff] %v17801_v27  ;;  %v17804_v21 = vadd.f32 %v13477_v9, %v13349_v11  ;;  %13942 = vmatprep.mubr.f32.mxu0 %v17621_v24  ;;  %13820 = vmatprep.mubr.f32.mxu1 %v7465_v41  ;;  %v8562_v11 = vld [vmem:[#allocation8 + $0x308] sm:$0xff]  ;;  %v9093_v9 = vld [vmem:[#allocation8 + $0x398] sm:$0xff] }
 0x5a4   :  { %v6322_v48 = vpop.f32.mrf.mxu0  ;;  %v5957_v63 = vpop.f32.mrf.mxu1  ;;  %14030 = vmatpush3.msra.mxu1 %v8564_v34  ;;  %14154 = vmatpush3.msra.mxu0 %v9095_v18  ;;  %v7993_v18 = vld [vmem:[#allocation2 + $0x142] sm:$0xff]  ;;  %v7994_v41 = vld [vmem:[#allocation2 + $0x152] sm:$0xff] }
 0x5a5   :  { %20233 = vst [vmem:[#allocation97_spill] sm:$0xff] %v17804_v21  ;;  %v17807_v0 = vadd.f32 %v6322_v48, %v5937_v25  ;;  %14031 = vmatprep.subr.mxu1 %v8563_v29  ;;  %14155 = vmatprep.subr.mxu0 %v9094_v39  ;;  %v7468_v48 = vld [vmem:[#allocation2 + $0x171] sm:$0xff]  ;;  %v7475_v27 = vld [vmem:[#allocation2 + $0x1f9] sm:$0xff] }
 0x5a6   :  { %v13480_v10 = vpop.f32.mrf.mxu0  ;;  %13943 = vmatmul.mubr.f32.gmra.mxu0 %v20235_v56  ;;  %v13358_v45 = vpop.f32.mrf.mxu1  ;;  %13821 = vmatmul.mubr.f32.gmra.mxu1 %v7466_v38 }
 0x5a7   :  { %20234 = vst [vmem:[#allocation26_spill] sm:$0xff] %v17807_v0  ;;  %v17810_v21 = vadd.f32 %v13480_v10, %v13352_v58  ;;  %13945 = vmatprep.mubr.f32.mxu0 %v17629_v54  ;;  %13823 = vmatprep.mubr.f32.mxu1 %v7467_v62  ;;  %v7469_v58 = vld [vmem:[#allocation2 + $0x181] sm:$0xff]  ;;  %v7471_v0 = vld [vmem:[#allocation2 + $0x1c9] sm:$0xff] }
 0x5a8   :  { %v6332_v24 = vpop.f32.mrf.mxu0  ;;  %v5967_v34 = vpop.f32.mrf.mxu1  ;;  %14032 = vmatpush3.msra.mxu1 %v8563_v29  ;;  %14156 = vmatpush3.msra.mxu0 %v9094_v39  ;;  %v8561_v10 = vld [vmem:[#allocation8 + $0x300] sm:$0xff] }
 0x5a9   :  { %20236 = vst [vmem:[#allocation27_spill] sm:$0xff] %v17810_v21  ;;  %v17813_v25 = vadd.f32 %v6332_v24, %v5947_v51  ;;  %14033 = vmatprep.subr.mxu1 %v8562_v11  ;;  %14157 = vmatprep.subr.mxu0 %v9093_v9  ;;  %v9092_v21 = vld [vmem:[#allocation8 + $0x390] sm:$0xff]  ;;  %v7995_v62 = vld [vmem:[#allocation2 + $0x15a] sm:$0xff] }
 0x5aa   :  { %v13483_v38 = vpop.f32.mrf.mxu0  ;;  %13946 = vmatmul.mubr.f32.gmra.mxu0 %v7993_v18  ;;  %v13361_v56 = vpop.f32.mrf.mxu1  ;;  %13824 = vmatmul.mubr.f32.gmra.mxu1 %v7468_v48  ;;  %v7996_v24 = vld [vmem:[#allocation2 + $0x16a] sm:$0xff] }
 0x5ab   :  { %20237 = vst [vmem:[#allocation94_spill] sm:$0xff] %v17813_v25  ;;  %v17815_v54 = vadd.f32 %v13483_v38, %v13355_v16  ;;  %13948 = vmatprep.mubr.f32.mxu0 %v7994_v41  ;;  %13826 = vmatprep.mubr.f32.mxu1 %v7469_v58  ;;  %v7470_v25 = vld [vmem:[#allocation2 + $0x189] sm:$0xff]  ;;  %v17819_v38 = vld [vmem:[#allocation8 + $0x478] sm:$0xff] }
 0x5ac   :  { %v6342_v29 = vpop.f32.mrf.mxu0  ;;  %v5977_v39 = vpop.f32.mrf.mxu1  ;;  %14034 = vmatpush3.msra.mxu1 %v8562_v11  ;;  %14158 = vmatpush3.msra.mxu0 %v9093_v9  ;;  %v9091_v16 = vld [vmem:[#allocation8 + $0x388] sm:$0xff]  ;;  %v7997_v58 = vld [vmem:[#allocation2 + $0x172] sm:$0xff] }
 0x5ad   :  { %20238 = vst [vmem:[#allocation99_spill] sm:$0xff] %v17815_v54  ;;  %v17817_v51 = vadd.f32 %v6342_v29, %v5957_v63  ;;  %14035 = vmatprep.subr.mxu1 %v8561_v10  ;;  %14159 = vmatprep.subr.mxu0 %v9092_v21  ;;  %v7472_v29 = vld [vmem:[#allocation2 + $0x1d1] sm:$0xff] }
 0x5ae   :  { %v13486_v18 = vpop.f32.mrf.mxu0  ;;  %13949 = vmatmul.mubr.f32.gmra.mxu0 %v7995_v62  ;;  %v13364_v48 = vpop.f32.mrf.mxu1  ;;  %13827 = vmatmul.mubr.f32.gmra.mxu1 %v7470_v25  ;;  %v7998_v62 = vld [vmem:[#allocation2 + $0x182] sm:$0xff]  ;;  %v8000_v54 = vld [vmem:[#allocation2 + $0x1ca] sm:$0xff] }
 0x5af   :  { %20239 = vst [vmem:[#allocation28_spill] sm:$0xff] %v17817_v51  ;;  %v17821_v41 = vadd.f32 %v13486_v18, %v13358_v45  ;;  %13951 = vmatprep.mubr.f32.mxu0 %v7996_v24  ;;  %13829 = vmatprep.mubr.f32.mxu1 %v7471_v0  ;;  %v7473_v45 = vld [vmem:[#allocation2 + $0x1e1] sm:$0xff]  ;;  %v20242_v0 = vld [vmem:[#allocation87_spill] sm:$0xff] }
 0x5b0   :  { %v6352_v11 = vpop.f32.mrf.mxu0  ;;  %v5987_v63 = vpop.f32.mrf.mxu1  ;;  %14036 = vmatpush3.msra.mxu1 %v8561_v10  ;;  %14160 = vmatpush3.msra.mxu0 %v9092_v21  ;;  %v9090_v18 = vld [vmem:[#allocation8 + $0x380] sm:$0xff] }
 0x5b1   :  { %20240 = vst [vmem:[#allocation55_spill] sm:$0xff] %v17821_v41  ;;  %v17823_v9 = vadd.f32 %v6352_v11, %v5967_v34  ;;  %14161 = vmatprep.subr.mxu0 %v9091_v16  ;;  %14261 = vmatprep.subr.mxu1 %v17819_v38  ;;  %v7474_v41 = vld [vmem:[#allocation2 + $0x1e9] sm:$0xff] }
 0x5b2   :  { %v13489_v25 = vpop.f32.mrf.mxu0  ;;  %13952 = vmatmul.mubr.f32.gmra.mxu0 %v7997_v58  ;;  %v13527_v51 = vpop.f32.mrf.mxu1  ;;  %13830 = vmatmul.mubr.f32.gmra.mxu1 %v7472_v29 }
 0x5b3   :  { %20241 = vst [vmem:[#allocation96_spill] sm:$0xff] %v17823_v9  ;;  %v17826_v24 = vadd.f32 %v13489_v25, %v13361_v56  ;;  %13954 = vmatprep.mubr.f32.mxu0 %v7998_v62  ;;  %v6847_v10 = vadd.f32 %v13527_v51, %v20242_v0  ;;  %13832 = vmatprep.mubr.f32.mxu1 %v7473_v45  ;;  %v7999_v9 = vld [vmem:[#allocation2 + $0x18a] sm:$0xff]  ;;  %v8001_v45 = vld [vmem:[#allocation2 + $0x1d2] sm:$0xff]  ;;  %v7476_v0 = vld [vmem:[#allocation2 + $0x201] sm:$0xff] }
 0x5b4   :  { %v6362_v21 = vpop.f32.mrf.mxu0  ;;  %v6527_v34 = vpop.f32.mrf.mxu1  ;;  %14162 = vmatpush3.msra.mxu0 %v9091_v16 }
 0x5b5   :  { %v17829_v11 = vadd.f32 %v6362_v21, %v5977_v39  ;;  %14163 = vmatprep.subr.mxu0 %v9090_v18  ;;  %v6063_v39 = vadd.f32 %v17648_v15, %v17643_v23 }
 0x5b6   :  { %v13492_v58 = vpop.f32.mrf.mxu0  ;;  %13955 = vmatmul.mubr.f32.gmra.mxu0 %v7999_v9  ;;  %v13530_v29 = vpop.f32.mrf.mxu1  ;;  %13833 = vmatmul.mubr.f32.gmra.mxu1 %v7474_v41 }
 0x5b7   :  { %v17831_v56 = vadd.f32 %v13492_v58, %v13364_v48  ;;  %13957 = vmatprep.mubr.f32.mxu0 %v8000_v54  ;;  %v6849_v51 = vadd.f32 %v13530_v29, %v17651_v50  ;;  %13835 = vmatprep.mubr.f32.mxu1 %v7475_v27  ;;  %v8002_v48 = vld [vmem:[#allocation2 + $0x1e2] sm:$0xff]  ;;  %v7477_v54 = vld [vmem:[#allocation2 + $0x211] sm:$0xff]  ;;  %v6846_v27 = vadd.f32 %v6527_v34, %v6063_v39  ;;  %v7478_v29 = vld [vmem:[#allocation2 + $0x219] sm:$0xff] }
 0x5b8   :  { %v6372_v25 = vpop.f32.mrf.mxu0  ;;  %v6537_v62 = vpop.f32.mrf.mxu1  ;;  %14164 = vmatpush3.msra.mxu0 %v9090_v18  ;;  %v8003_v58 = vld [vmem:[#allocation2 + $0x1ea] sm:$0xff] }
 0x5b9   :  { %v17836_v16 = vadd.f32 %v6372_v25, %v5987_v63  ;;  %v6848_v9 = vadd.f32 %v6537_v62, %v17654_v30  ;;  %v8004_v62 = vld [vmem:[#allocation2 + $0x1fa] sm:$0xff] }
 0x5ba   :  { %v13655_v41 = vpop.f32.mrf.mxu0  ;;  %13958 = vmatmul.mubr.f32.gmra.mxu0 %v8001_v45  ;;  %v13533_v21 = vpop.f32.mrf.mxu1  ;;  %13836 = vmatmul.mubr.f32.gmra.mxu1 %v7476_v0 }
 0x5bb   :  { %v17839_v50 = vadd.f32 %v13655_v41, %v6847_v10  ;;  %13960 = vmatprep.mubr.f32.mxu0 %v8002_v48  ;;  %v6851_v18 = vadd.f32 %v13533_v21, %v17657_v8  ;;  %13838 = vmatprep.mubr.f32.mxu1 %v7477_v54  ;;  %v7479_v10 = vld [vmem:[#allocation2 + $0x229] sm:$0xff]  ;;  %v7480_v21 = vld [vmem:[#allocation2 + $0x231] sm:$0xff] }
 0x5bc   :  { %v7056_v23 = vpop.f32.mrf.mxu0  ;;  %v6547_v15 = vpop.f32.mrf.mxu1  ;;  %v8005_v48 = vld [vmem:[#allocation2 + $0x202] sm:$0xff] }
 0x5bd   :  { %v17842_v63 = vadd.f32 %v7056_v23, %v6846_v27  ;;  %v6850_v30 = vadd.f32 %v6547_v15, %v17660_v6  ;;  %v8006_v27 = vld [vmem:[#allocation2 + $0x212] sm:$0xff]  ;;  %v7481_v15 = vld [vmem:[#allocation2 + $0x241] sm:$0xff] }
 0x5be   :  { %v13658_v25 = vpop.f32.mrf.mxu0  ;;  %13961 = vmatmul.mubr.f32.gmra.mxu0 %v8003_v58  ;;  %v13536_v45 = vpop.f32.mrf.mxu1  ;;  %13839 = vmatmul.mubr.f32.gmra.mxu1 %v7478_v29 }
 0x5bf   :  { %v17845_v0 = vadd.f32 %v13658_v25, %v6849_v51  ;;  %13963 = vmatprep.mubr.f32.mxu0 %v8004_v62  ;;  %v6853_v8 = vadd.f32 %v13536_v45, %v17663_v22  ;;  %13841 = vmatprep.mubr.f32.mxu1 %v7479_v10  ;;  %v8007_v25 = vld [vmem:[#allocation2 + $0x21a] sm:$0xff]  ;;  %v7482_v62 = vld [vmem:[#allocation2 + $0x249] sm:$0xff] }
 0x5c0   :  { %v7066_v34 = vpop.f32.mrf.mxu0  ;;  %v6557_v39 = vpop.f32.mrf.mxu1  ;;  %v8008_v10 = vld [vmem:[#allocation2 + $0x22a] sm:$0xff] }
 0x5c1   :  { %v17848_v41 = vadd.f32 %v7066_v34, %v6848_v9  ;;  %v6852_v6 = vadd.f32 %v6557_v39, %v17666_v36  ;;  %v7483_v39 = vld [vmem:[#allocation2 + $0x259] sm:$0xff] }
 0x5c2   :  { %v13661_v54 = vpop.f32.mrf.mxu0  ;;  %13964 = vmatmul.mubr.f32.gmra.mxu0 %v8005_v48  ;;  %v13539_v23 = vpop.f32.mrf.mxu1  ;;  %13842 = vmatmul.mubr.f32.gmra.mxu1 %v7480_v21 }
 0x5c3   :  { %v17851_v51 = vadd.f32 %v13661_v54, %v6851_v18  ;;  %13966 = vmatprep.mubr.f32.mxu0 %v8006_v27  ;;  %v6855_v22 = vadd.f32 %v13539_v23, %v17669_v43  ;;  %13844 = vmatprep.mubr.f32.mxu1 %v7481_v15  ;;  %v8009_v54 = vld [vmem:[#allocation2 + $0x232] sm:$0xff]  ;;  %v7484_v27 = vld [vmem:[#allocation2 + $0x261] sm:$0xff] }
 0x5c4   :  { %v7076_v58 = vpop.f32.mrf.mxu0  ;;  %v6567_v29 = vpop.f32.mrf.mxu1  ;;  %v8010_v15 = vld [vmem:[#allocation2 + $0x242] sm:$0xff] }
 0x5c5   :  { %v17854_v9 = vadd.f32 %v7076_v58, %v6850_v30  ;;  %v6854_v36 = vadd.f32 %v6567_v29, %v17672_v17  ;;  %v7485_v29 = vld [vmem:[#allocation2 + $0x271] sm:$0xff] }
 0x5c6   :  { %v13664_v45 = vpop.f32.mrf.mxu0  ;;  %13967 = vmatmul.mubr.f32.gmra.mxu0 %v8007_v25  ;;  %v13542_v34 = vpop.f32.mrf.mxu1  ;;  %13845 = vmatmul.mubr.f32.gmra.mxu1 %v7482_v62 }
 0x5c7   :  { %v17857_v18 = vadd.f32 %v13664_v45, %v6853_v8  ;;  %13969 = vmatprep.mubr.f32.mxu0 %v8008_v10  ;;  %v6857_v43 = vadd.f32 %v13542_v34, %v17675_v2  ;;  %13847 = vmatprep.mubr.f32.mxu1 %v7483_v39  ;;  %v8011_v45 = vld [vmem:[#allocation2 + $0x24a] sm:$0xff]  ;;  %v7486_v10 = vld [vmem:[#allocation2 + $0x279] sm:$0xff] }
 0x5c8   :  { %v7086_v48 = vpop.f32.mrf.mxu0  ;;  %v6577_v21 = vpop.f32.mrf.mxu1  ;;  %v8012_v39 = vld [vmem:[#allocation2 + $0x25a] sm:$0xff] }
 0x5c9   :  { %v17860_v30 = vadd.f32 %v7086_v48, %v6852_v6  ;;  %v6856_v17 = vadd.f32 %v6577_v21, %v17678_v60  ;;  %v7487_v21 = vld [vmem:[#allocation2 + $0x289] sm:$0xff] }
 0x5ca   :  { %v13667_v23 = vpop.f32.mrf.mxu0  ;;  %13970 = vmatmul.mubr.f32.gmra.mxu0 %v8009_v54  ;;  %v13545_v58 = vpop.f32.mrf.mxu1  ;;  %13848 = vmatmul.mubr.f32.gmra.mxu1 %v7484_v27 }
 0x5cb   :  { %v17863_v8 = vadd.f32 %v13667_v23, %v6855_v22  ;;  %13972 = vmatprep.mubr.f32.mxu0 %v8010_v15  ;;  %v6859_v2 = vadd.f32 %v13545_v58, %v17681_v42  ;;  %13850 = vmatprep.mubr.f32.mxu1 %v7485_v29  ;;  %v8013_v23 = vld [vmem:[#allocation2 + $0x262] sm:$0xff]  ;;  %v7488_v15 = vld [vmem:[#allocation2 + $0x291] sm:$0xff] }
 0x5cc   :  { %v7096_v25 = vpop.f32.mrf.mxu0  ;;  %v6587_v62 = vpop.f32.mrf.mxu1  ;;  %v8014_v29 = vld [vmem:[#allocation2 + $0x272] sm:$0xff] }
 0x5cd   :  { %v17866_v6 = vadd.f32 %v7096_v25, %v6854_v36  ;;  %v6858_v60 = vadd.f32 %v6587_v62, %v17684_v7  ;;  %v7489_v62 = vld [vmem:[#allocation2 + $0x2a1] sm:$0xff] }
 0x5ce   :  { %v13670_v34 = vpop.f32.mrf.mxu0  ;;  %13973 = vmatmul.mubr.f32.gmra.mxu0 %v8011_v45  ;;  %v13548_v48 = vpop.f32.mrf.mxu1  ;;  %13851 = vmatmul.mubr.f32.gmra.mxu1 %v7486_v10 }
 0x5cf   :  { %v17869_v22 = vadd.f32 %v13670_v34, %v6857_v43  ;;  %13975 = vmatprep.mubr.f32.mxu0 %v8012_v39  ;;  %v6861_v42 = vadd.f32 %v13548_v48, %v17687_v32  ;;  %13853 = vmatprep.mubr.f32.mxu1 %v7487_v21  ;;  %v8015_v34 = vld [vmem:[#allocation2 + $0x27a] sm:$0xff]  ;;  %v7490_v39 = vld [vmem:[#allocation2 + $0x2a9] sm:$0xff] }
 0x5d0   :  { %v7106_v54 = vpop.f32.mrf.mxu0  ;;  %v6597_v27 = vpop.f32.mrf.mxu1  ;;  %v8016_v21 = vld [vmem:[#allocation2 + $0x28a] sm:$0xff] }
 0x5d1   :  { %v17872_v36 = vadd.f32 %v7106_v54, %v6856_v17  ;;  %v6860_v7 = vadd.f32 %v6597_v27, %v17690_v5  ;;  %v7491_v27 = vld [vmem:[#allocation2 + $0x2b9] sm:$0xff] }
 0x5d2   :  { %v13673_v58 = vpop.f32.mrf.mxu0  ;;  %13976 = vmatmul.mubr.f32.gmra.mxu0 %v8013_v23  ;;  %v13551_v25 = vpop.f32.mrf.mxu1  ;;  %13854 = vmatmul.mubr.f32.gmra.mxu1 %v7488_v15 }
 0x5d3   :  { %v17875_v43 = vadd.f32 %v13673_v58, %v6859_v2  ;;  %13978 = vmatprep.mubr.f32.mxu0 %v8014_v29  ;;  %v6863_v32 = vadd.f32 %v13551_v25, %v17693_v13  ;;  %13856 = vmatprep.mubr.f32.mxu1 %v7489_v62  ;;  %v8017_v58 = vld [vmem:[#allocation2 + $0x292] sm:$0xff]  ;;  %v7492_v29 = vld [vmem:[#allocation2 + $0x2c1] sm:$0xff] }
 0x5d4   :  { %v7116_v45 = vpop.f32.mrf.mxu0  ;;  %v6607_v10 = vpop.f32.mrf.mxu1  ;;  %v8018_v62 = vld [vmem:[#allocation2 + $0x2a2] sm:$0xff] }
 0x5d5   :  { %v17878_v17 = vadd.f32 %v7116_v45, %v6858_v60  ;;  %v6862_v5 = vadd.f32 %v6607_v10, %v17699_v26  ;;  %v7493_v10 = vld [vmem:[#allocation2 + $0x2d1] sm:$0xff] }
 0x5d6   :  { %v13676_v48 = vpop.f32.mrf.mxu0  ;;  %13979 = vmatmul.mubr.f32.gmra.mxu0 %v8015_v34  ;;  %v13554_v54 = vpop.f32.mrf.mxu1  ;;  %13857 = vmatmul.mubr.f32.gmra.mxu1 %v7490_v39 }
 0x5d7   :  { %v17881_v2 = vadd.f32 %v13676_v48, %v6861_v42  ;;  %13981 = vmatprep.mubr.f32.mxu0 %v8016_v21  ;;  %v6865_v13 = vadd.f32 %v13554_v54, %v17702_v14  ;;  %13859 = vmatprep.mubr.f32.mxu1 %v7491_v27  ;;  %v8019_v48 = vld [vmem:[#allocation2 + $0x2aa] sm:$0xff]  ;;  %v7494_v54 = vld [vmem:[#allocation2 + $0x2d9] sm:$0xff] }
 0x5d8   :  { %v7126_v23 = vpop.f32.mrf.mxu0  ;;  %v6617_v15 = vpop.f32.mrf.mxu1  ;;  %v20244_v21 = vld [vmem:[#allocation22_spill] sm:$0xff] }
 0x5d9   :  { %v17884_v60 = vadd.f32 %v7126_v23, %v6860_v7  ;;  %v6864_v26 = vadd.f32 %v6617_v15, %v17705_v55  ;;  %v8020_v23 = vld [vmem:[#allocation2 + $0x2ba] sm:$0xff] }
 0x5da   :  { %v13679_v25 = vpop.f32.mrf.mxu0  ;;  %13982 = vmatmul.mubr.f32.gmra.mxu0 %v8017_v58  ;;  %v13557_v45 = vpop.f32.mrf.mxu1  ;;  %13860 = vmatmul.mubr.f32.gmra.mxu1 %v7492_v29  ;;  %v7495_v58 = vld [vmem:[#allocation2 + $0x2e9] sm:$0xff] }
 0x5db   :  { %v17887_v42 = vadd.f32 %v13679_v25, %v6863_v32  ;;  %13984 = vmatprep.mubr.f32.mxu0 %v8018_v62  ;;  %v6867_v14 = vadd.f32 %v13557_v45, %v17708_v46  ;;  %13862 = vmatprep.mubr.f32.mxu1 %v7493_v10  ;;  %v20246_v29 = vld [vmem:[#allocation23_spill] sm:$0xff]  ;;  %v8021_v45 = vld [vmem:[#allocation2 + $0x2c2] sm:$0xff]  ;;  %v20248_v10 = vld [vmem:[#allocation88_spill] sm:$0xff] }
 0x5dc   :  { %v7136_v34 = vpop.f32.mrf.mxu0  ;;  %v6627_v39 = vpop.f32.mrf.mxu1 }
 0x5dd   :  { %v17890_v7 = vadd.f32 %v7136_v34, %v6862_v5  ;;  %v6866_v55 = vadd.f32 %v6627_v39, %v20244_v21  ;;  %v7496_v39 = vld [vmem:[#allocation2 + $0x2f1] sm:$0xff] }
 0x5de   :  { %v13682_v27 = vpop.f32.mrf.mxu0  ;;  %13985 = vmatmul.mubr.f32.gmra.mxu0 %v8019_v48  ;;  %v13560_v15 = vpop.f32.mrf.mxu1  ;;  %13863 = vmatmul.mubr.f32.gmra.mxu1 %v7494_v54  ;;  %v8022_v48 = vld [vmem:[#allocation2 + $0x2d2] sm:$0xff]  ;;  %v7497_v54 = vld [vmem:[#allocation2 + $0x301] sm:$0xff] }
 0x5df   :  { %20243 = vst [vmem:[#allocation101_spill] sm:$0xff] %v17890_v7  ;;  %v17893_v32 = vadd.f32 %v13682_v27, %v6865_v13  ;;  %13987 = vmatprep.mubr.f32.mxu0 %v8020_v23  ;;  %v6869_v46 = vadd.f32 %v13560_v15, %v20246_v29  ;;  %13865 = vmatprep.mubr.f32.mxu1 %v7495_v58  ;;  %v20250_v27 = vld [vmem:[#allocation93_spill] sm:$0xff] }
 0x5e0   :  { %v7146_v25 = vpop.f32.mrf.mxu0  ;;  %v6637_v62 = vpop.f32.mrf.mxu1  ;;  %v8023_v29 = vld [vmem:[#allocation2 + $0x2da] sm:$0xff] }
 0x5e1   :  { %20245 = vst [vmem:[#allocation98_spill] sm:$0xff] %v17893_v32  ;;  %v17896_v5 = vadd.f32 %v7146_v25, %v6864_v26  ;;  %v6868_v34 = vadd.f32 %v6637_v62, %v20248_v10  ;;  %v20252_v25 = vld [vmem:[#allocation24_spill] sm:$0xff]  ;;  %v7498_v10 = vld [vmem:[#allocation2 + $0x309] sm:$0xff] }
 0x5e2   :  { %v13685_v21 = vpop.f32.mrf.mxu0  ;;  %13988 = vmatmul.mubr.f32.gmra.mxu0 %v8021_v45  ;;  %v13563_v7 = vpop.f32.mrf.mxu1  ;;  %13866 = vmatmul.mubr.f32.gmra.mxu1 %v7496_v39  ;;  %v8024_v45 = vld [vmem:[#allocation2 + $0x2ea] sm:$0xff]  ;;  %v7499_v39 = vld [vmem:[#allocation2 + $0x319] sm:$0xff] }
 0x5e3   :  { %20247 = vst [vmem:[#allocation29_spill] sm:$0xff] %v17896_v5  ;;  %v17899_v13 = vadd.f32 %v13685_v21, %v6867_v14  ;;  %13990 = vmatprep.mubr.f32.mxu0 %v8022_v48  ;;  %v6871_v23 = vadd.f32 %v13563_v7, %v20250_v27  ;;  %13868 = vmatprep.mubr.f32.mxu1 %v7497_v54  ;;  %v20254_v21 = vld [vmem:[#allocation53_spill] sm:$0xff]  ;;  %v8025_v27 = vld [vmem:[#allocation2 + $0x2f2] sm:$0xff] }
 0x5e4   :  { %v7156_v15 = vpop.f32.mrf.mxu0  ;;  %v6647_v58 = vpop.f32.mrf.mxu1 }
 0x5e5   :  { %20249 = vst [vmem:[#allocation56_spill] sm:$0xff] %v17899_v13  ;;  %v17902_v26 = vadd.f32 %v7156_v15, %v6866_v55  ;;  %v6870_v62 = vadd.f32 %v6647_v58, %v20252_v25  ;;  %v20256_v15 = vld [vmem:[#allocation90_spill] sm:$0xff] }
 0x5e6   :  { %v13688_v5 = vpop.f32.mrf.mxu0  ;;  %13991 = vmatmul.mubr.f32.gmra.mxu0 %v8023_v29  ;;  %v13566_v32 = vpop.f32.mrf.mxu1  ;;  %13869 = vmatmul.mubr.f32.gmra.mxu1 %v7498_v10  ;;  %v7500_v25 = vld [vmem:[#allocation2 + $0x321] sm:$0xff]  ;;  %v7501_v10 = vld [vmem:[#allocation2 + $0x331] sm:$0xff] }
 0x5e7   :  { %20251 = vst [vmem:[#allocation103_spill] sm:$0xff] %v17902_v26  ;;  %v17905_v14 = vadd.f32 %v13688_v5, %v6869_v46  ;;  %13993 = vmatprep.mubr.f32.mxu0 %v8024_v45  ;;  %v6873_v7 = vadd.f32 %v13566_v32, %v20254_v21  ;;  %13871 = vmatprep.mubr.f32.mxu1 %v7499_v39  ;;  %v8026_v29 = vld [vmem:[#allocation2 + $0x302] sm:$0xff]  ;;  %v20257_v5 = vld [vmem:[#allocation95_spill] sm:$0xff] }
 0x5e8   :  { %v7166_v48 = vpop.f32.mrf.mxu0  ;;  %v6657_v54 = vpop.f32.mrf.mxu1  ;;  %v8027_v21 = vld [vmem:[#allocation2 + $0x30a] sm:$0xff] }
 0x5e9   :  { %20253 = vst [vmem:[#allocation100_spill] sm:$0xff] %v17905_v14  ;;  %v17908_v55 = vadd.f32 %v7166_v48, %v6868_v34  ;;  %v6872_v58 = vadd.f32 %v6657_v54, %v20256_v15  ;;  %v20258_v48 = vld [vmem:[#allocation25_spill] sm:$0xff] }
 0x5ea   :  { %v13691_v26 = vpop.f32.mrf.mxu0  ;;  %13994 = vmatmul.mubr.f32.gmra.mxu0 %v8025_v27  ;;  %v13569_v13 = vpop.f32.mrf.mxu1  ;;  %13872 = vmatmul.mubr.f32.gmra.mxu1 %v7500_v25  ;;  %v7502_v15 = vld [vmem:[#allocation2 + $0x339] sm:$0xff]  ;;  %v8497_v25 = vld [vmem:[#allocation2 + $0x30] sm:$0xff] }
 0x5eb   :  { %20255 = vst [vmem:[#allocation102_spill] sm:$0xff] %v17908_v55  ;;  %v17911_v46 = vadd.f32 %v13691_v26, %v6871_v23  ;;  %13996 = vmatprep.mubr.f32.mxu0 %v8026_v29  ;;  %v6875_v32 = vadd.f32 %v13569_v13, %v20257_v5  ;;  %13874 = vmatprep.mubr.f32.mxu1 %v7501_v10  ;;  %v8028_v27 = vld [vmem:[#allocation2 + $0x31a] sm:$0xff]  ;;  %v8029_v10 = vld [vmem:[#allocation2 + $0x322] sm:$0xff] }
 0x5ec   :  { %v7176_v45 = vpop.f32.mrf.mxu0  ;;  %v6667_v39 = vpop.f32.mrf.mxu1 }
 0x5ed   :  { %v17914_v34 = vadd.f32 %v7176_v45, %v6870_v62  ;;  %v6874_v54 = vadd.f32 %v6667_v39, %v20258_v48  ;;  %v8498_v45 = vld [vmem:[#allocation2 + $0x38] sm:$0xff] }
 0x5ee   :  { %v13694_v55 = vpop.f32.mrf.mxu0  ;;  %13997 = vmatmul.mubr.f32.gmra.mxu0 %v8027_v21  ;;  %v13572_v14 = vpop.f32.mrf.mxu1  ;;  %13875 = vmatmul.mubr.f32.gmra.mxu1 %v7502_v15  ;;  %v8030_v21 = vld [vmem:[#allocation2 + $0x332] sm:$0xff]  ;;  %v8499_v15 = vld [vmem:[#allocation2 + $0x48] sm:$0xff] }
 0x5ef   :  { %v17917_v23 = vadd.f32 %v13694_v55, %v6873_v7  ;;  %13999 = vmatprep.mubr.f32.mxu0 %v8028_v27  ;;  %v6877_v13 = vadd.f32 %v13572_v14, %v17737_v4  ;;  %14037 = vmatprep.mubr.f32.mxu1 %v8497_v25  ;;  %v9633_v7 = vld [vmem:[#allocation8 + $0x470] sm:$0xff] }
 0x5f0   :  { %v7186_v26 = vpop.f32.mrf.mxu0  ;;  %v6677_v29 = vpop.f32.mrf.mxu1 }
 0x5f1   :  { %v17920_v62 = vadd.f32 %v7186_v26, %v6872_v58  ;;  %v6876_v5 = vadd.f32 %v6677_v29, %v17740_v31  ;;  %v8031_v31 = vld [vmem:[#allocation2 + $0x33a] sm:$0xff]  ;;  %v8500_v26 = vld [vmem:[#allocation2 + $0x50] sm:$0xff] }
 0x5f2   :  { %v13697_v39 = vpop.f32.mrf.mxu0  ;;  %14000 = vmatmul.mubr.f32.gmra.mxu0 %v8029_v10  ;;  %v13575_v48 = vpop.f32.mrf.mxu1  ;;  %14038 = vmatmul.mubr.f32.vlgmr.msra.gmra.mxu1 %v8498_v45  ;;  %v9026_v10 = vld [vmem:[#allocation2 + $0x31] sm:$0xff]  ;;  %v8501_v45 = vld [vmem:[#allocation2 + $0x60] sm:$0xff] }
 0x5f3   :  { %v17923_v55 = vadd.f32 %v13697_v39, %v6875_v32  ;;  %14002 = vmatprep.mubr.f32.mxu0 %v8030_v21  ;;  %v6879_v4 = vadd.f32 %v13575_v48, %v17743_v20  ;;  %14040 = vmatprep.mubr.f32.mxu1 %v8499_v15  ;;  %v9632_v39 = vld [vmem:[#allocation8 + $0x468] sm:$0xff] }
 0x5f4   :  { %v7196_v14 = vpop.f32.mrf.mxu0  ;;  %14262 = vmatpush3.msra.mxu1 %v17819_v38  ;;  %v6687_v58 = vpop.f32.mrf.mxu1  ;;  %v20260_v21 = vld [vmem:[#allocation54_spill] sm:$0xff] }
 0x5f5   :  { %v17927_v27 = vadd.f32 %v7196_v14, %v6874_v54  ;;  %v6878_v25 = vadd.f32 %v6687_v58, %v17747_v33  ;;  %14263 = vmatprep.subr.mxu1 %v9633_v7  ;;  %v9027_v33 = vld [vmem:[#allocation2 + $0x39] sm:$0xff]  ;;  %v8502_v58 = vld [vmem:[#allocation2 + $0x68] sm:$0xff] }
 0x5f6   :  { %v13700_v29 = vpop.f32.mrf.mxu0  ;;  %14003 = vmatmul.mubr.f32.gmra.mxu0 %v8031_v31  ;;  %v13578_v32 = vpop.f32.mrf.mxu1  ;;  %14041 = vmatmul.mubr.f32.gmra.mxu1 %v8500_v26  ;;  %v9028_v26 = vld [vmem:[#allocation2 + $0x49] sm:$0xff] }
 0x5f7   :  { %20259 = vst [vmem:[#allocation30_spill] sm:$0xff] %v17927_v27  ;;  %v17930_v20 = vadd.f32 %v13700_v29, %v6877_v13  ;;  %14165 = vmatprep.mubr.f32.mxu0 %v9026_v10  ;;  %v6881_v38 = vadd.f32 %v13578_v32, %v20260_v21  ;;  %14043 = vmatprep.mubr.f32.mxu1 %v8501_v45  ;;  %v8503_v13 = vld [vmem:[#allocation2 + $0x78] sm:$0xff]  ;;  %v9631_v29 = vld [vmem:[#allocation8 + $0x460] sm:$0xff] }
 0x5f8   :  { %v7206_v54 = vpop.f32.mrf.mxu0  ;;  %v6697_v48 = vpop.f32.mrf.mxu1  ;;  %14264 = vmatpush3.msra.mxu1 %v9633_v7 }
 0x5f9   :  { %v17933_v15 = vadd.f32 %v7206_v54, %v6876_v5  ;;  %v6880_v14 = vadd.f32 %v6697_v48, %v17753_v19  ;;  %14265 = vmatprep.subr.mxu1 %v9632_v39  ;;  %v9029_v19 = vld [vmem:[#allocation2 + $0x51] sm:$0xff]  ;;  %v8504_v54 = vld [vmem:[#allocation2 + $0x80] sm:$0xff] }
 0x5fa   :  { %v13703_v31 = vpop.f32.mrf.mxu0  ;;  %14166 = vmatmul.mubr.f32.vlgmr.msra.gmra.mxu0 %v9027_v33  ;;  %v13581_v27 = vpop.f32.mrf.mxu1  ;;  %14044 = vmatmul.mubr.f32.gmra.mxu1 %v8502_v58  ;;  %v9030_v33 = vld [vmem:[#allocation2 + $0x61] sm:$0xff] }
 0x5fb   :  { %v17936_v10 = vadd.f32 %v13703_v31, %v6879_v4  ;;  %14168 = vmatprep.mubr.f32.mxu0 %v9028_v26  ;;  %v6883_v32 = vadd.f32 %v13581_v27, %v17756_v37  ;;  %14046 = vmatprep.mubr.f32.mxu1 %v8503_v13  ;;  %v8505_v4 = vld [vmem:[#allocation2 + $0x90] sm:$0xff]  ;;  %v9630_v31 = vld [vmem:[#allocation8 + $0x458] sm:$0xff] }
 0x5fc   :  { %v7216_v5 = vpop.f32.mrf.mxu0  ;;  %v6707_v7 = vpop.f32.mrf.mxu1  ;;  %14266 = vmatpush3.msra.mxu1 %v9632_v39 }
 0x5fd   :  { %v17939_v45 = vadd.f32 %v7216_v5, %v6878_v25  ;;  %v6882_v21 = vadd.f32 %v6707_v7, %v17759_v44  ;;  %14267 = vmatprep.subr.mxu1 %v9631_v29  ;;  %v9031_v44 = vld [vmem:[#allocation2 + $0x69] sm:$0xff]  ;;  %v8506_v5 = vld [vmem:[#allocation2 + $0x98] sm:$0xff] }
 0x5fe   :  { %v13706_v48 = vpop.f32.mrf.mxu0  ;;  %14169 = vmatmul.mubr.f32.gmra.mxu0 %v9029_v19  ;;  %v13584_v58 = vpop.f32.mrf.mxu1  ;;  %14047 = vmatmul.mubr.f32.gmra.mxu1 %v8504_v54  ;;  %v9032_v19 = vld [vmem:[#allocation2 + $0x79] sm:$0xff] }
 0x5ff   :  { %v17942_v26 = vadd.f32 %v13706_v48, %v6881_v38  ;;  %14171 = vmatprep.mubr.f32.mxu0 %v9030_v33  ;;  %v6885_v37 = vadd.f32 %v13584_v58, %v17762_v57  ;;  %14049 = vmatprep.mubr.f32.mxu1 %v8505_v4  ;;  %v8507_v38 = vld [vmem:[#allocation2 + $0xa8] sm:$0xff]  ;;  %v9629_v48 = vld [vmem:[#allocation8 + $0x450] sm:$0xff] }
 0x600   :  { %v7226_v27 = vpop.f32.mrf.mxu0  ;;  %v6717_v25 = vpop.f32.mrf.mxu1  ;;  %14268 = vmatpush3.msra.mxu1 %v9631_v29 }
 0x601   :  { %v17945_v39 = vadd.f32 %v7226_v27, %v6880_v14  ;;  %v6884_v13 = vadd.f32 %v6717_v25, %v17765_v1  ;;  %14269 = vmatprep.subr.mxu1 %v9630_v31  ;;  %v9033_v1 = vld [vmem:[#allocation2 + $0x81] sm:$0xff]  ;;  %v8508_v27 = vld [vmem:[#allocation2 + $0xb0] sm:$0xff] }
 0x602   :  { %v13709_v7 = vpop.f32.mrf.mxu0  ;;  %14172 = vmatmul.mubr.f32.gmra.mxu0 %v9031_v44  ;;  %v13587_v54 = vpop.f32.mrf.mxu1  ;;  %14050 = vmatmul.mubr.f32.gmra.mxu1 %v8506_v5  ;;  %v9034_v44 = vld [vmem:[#allocation2 + $0x91] sm:$0xff] }
 0x603   :  { %v17948_v33 = vadd.f32 %v13709_v7, %v6883_v32  ;;  %14174 = vmatprep.mubr.f32.mxu0 %v9032_v19  ;;  %v6887_v57 = vadd.f32 %v13587_v54, %v17768_v61  ;;  %14052 = vmatprep.mubr.f32.mxu1 %v8507_v38  ;;  %v8509_v32 = vld [vmem:[#allocation2 + $0xc0] sm:$0xff]  ;;  %v9628_v7 = vld [vmem:[#allocation8 + $0x448] sm:$0xff] }
 0x604   :  { %v7236_v14 = vpop.f32.mrf.mxu0  ;;  %v6727_v29 = vpop.f32.mrf.mxu1  ;;  %14270 = vmatpush3.msra.mxu1 %v9630_v31 }
 0x605   :  { %v17951_v58 = vadd.f32 %v7236_v14, %v6882_v21  ;;  %v6886_v4 = vadd.f32 %v6727_v29, %v17771_v12  ;;  %14271 = vmatprep.subr.mxu1 %v9629_v48  ;;  %v9035_v12 = vld [vmem:[#allocation2 + $0x99] sm:$0xff]  ;;  %v8510_v14 = vld [vmem:[#allocation2 + $0xc8] sm:$0xff] }
 0x606   :  { %v13712_v25 = vpop.f32.mrf.mxu0  ;;  %14175 = vmatmul.mubr.f32.gmra.mxu0 %v9033_v1  ;;  %v13590_v5 = vpop.f32.mrf.mxu1  ;;  %14053 = vmatmul.mubr.f32.gmra.mxu1 %v8508_v27  ;;  %v9036_v1 = vld [vmem:[#allocation2 + $0xa9] sm:$0xff] }
 0x607   :  { %v17954_v19 = vadd.f32 %v13712_v25, %v6885_v37  ;;  %14177 = vmatprep.mubr.f32.mxu0 %v9034_v44  ;;  %v6889_v61 = vadd.f32 %v13590_v5, %v17774_v3  ;;  %14055 = vmatprep.mubr.f32.mxu1 %v8509_v32  ;;  %v8511_v37 = vld [vmem:[#allocation2 + $0xd8] sm:$0xff]  ;;  %v9627_v25 = vld [vmem:[#allocation8 + $0x440] sm:$0xff] }
 0x608   :  { %v7246_v21 = vpop.f32.mrf.mxu0  ;;  %v6737_v31 = vpop.f32.mrf.mxu1  ;;  %14272 = vmatpush3.msra.mxu1 %v9629_v48 }
 0x609   :  { %v17957_v54 = vadd.f32 %v7246_v21, %v6884_v13  ;;  %v6888_v38 = vadd.f32 %v6737_v31, %v17777_v28  ;;  %14273 = vmatprep.subr.mxu1 %v9628_v7  ;;  %v9037_v28 = vld [vmem:[#allocation2 + $0xb1] sm:$0xff]  ;;  %v8512_v21 = vld [vmem:[#allocation2 + $0xe0] sm:$0xff] }
 0x60a   :  { %v13715_v29 = vpop.f32.mrf.mxu0  ;;  %14178 = vmatmul.mubr.f32.gmra.mxu0 %v9035_v12  ;;  %v13593_v27 = vpop.f32.mrf.mxu1  ;;  %14056 = vmatmul.mubr.f32.gmra.mxu1 %v8510_v14  ;;  %v9038_v12 = vld [vmem:[#allocation2 + $0xc1] sm:$0xff] }
 0x60b   :  { %v17960_v44 = vadd.f32 %v13715_v29, %v6887_v57  ;;  %14180 = vmatprep.mubr.f32.mxu0 %v9036_v1  ;;  %v6891_v3 = vadd.f32 %v13593_v27, %v17780_v53  ;;  %14058 = vmatprep.mubr.f32.mxu1 %v8511_v37  ;;  %v8513_v57 = vld [vmem:[#allocation2 + $0xf0] sm:$0xff]  ;;  %v9626_v29 = vld [vmem:[#allocation8 + $0x438] sm:$0xff] }
 0x60c   :  { %v7256_v13 = vpop.f32.mrf.mxu0  ;;  %v6747_v48 = vpop.f32.mrf.mxu1  ;;  %14274 = vmatpush3.msra.mxu1 %v9628_v7 }
 0x60d   :  { %v17963_v5 = vadd.f32 %v7256_v13, %v6886_v4  ;;  %v6890_v32 = vadd.f32 %v6747_v48, %v17783_v47  ;;  %14275 = vmatprep.subr.mxu1 %v9627_v25  ;;  %v9039_v47 = vld [vmem:[#allocation2 + $0xc9] sm:$0xff]  ;;  %v8514_v13 = vld [vmem:[#allocation2 + $0xf8] sm:$0xff] }
 0x60e   :  { %v13718_v31 = vpop.f32.mrf.mxu0  ;;  %14181 = vmatmul.mubr.f32.gmra.mxu0 %v9037_v28  ;;  %v13596_v14 = vpop.f32.mrf.mxu1  ;;  %14059 = vmatmul.mubr.f32.gmra.mxu1 %v8512_v21  ;;  %v9040_v28 = vld [vmem:[#allocation2 + $0xd9] sm:$0xff] }
 0x60f   :  { %v17966_v1 = vadd.f32 %v13718_v31, %v6889_v61  ;;  %14183 = vmatprep.mubr.f32.mxu0 %v9038_v12  ;;  %v6893_v53 = vadd.f32 %v13596_v14, %v17786_v40  ;;  %14061 = vmatprep.mubr.f32.mxu1 %v8513_v57  ;;  %v8515_v61 = vld [vmem:[#allocation2 + $0x108] sm:$0xff]  ;;  %v9625_v31 = vld [vmem:[#allocation8 + $0x430] sm:$0xff] }
 0x610   :  { %v7266_v4 = vpop.f32.mrf.mxu0  ;;  %v6757_v7 = vpop.f32.mrf.mxu1  ;;  %14276 = vmatpush3.msra.mxu1 %v9627_v25 }
 0x611   :  { %v17969_v27 = vadd.f32 %v7266_v4, %v6888_v38  ;;  %v6892_v37 = vadd.f32 %v6757_v7, %v17789_v35  ;;  %14277 = vmatprep.subr.mxu1 %v9626_v29  ;;  %v9041_v35 = vld [vmem:[#allocation2 + $0xe1] sm:$0xff]  ;;  %v8516_v4 = vld [vmem:[#allocation2 + $0x110] sm:$0xff] }
 0x612   :  { %v13721_v48 = vpop.f32.mrf.mxu0  ;;  %14184 = vmatmul.mubr.f32.gmra.mxu0 %v9039_v47  ;;  %v13599_v21 = vpop.f32.mrf.mxu1  ;;  %14062 = vmatmul.mubr.f32.gmra.mxu1 %v8514_v13  ;;  %v9042_v47 = vld [vmem:[#allocation2 + $0xf1] sm:$0xff] }
 0x613   :  { %v17972_v12 = vadd.f32 %v13721_v48, %v6891_v3  ;;  %14186 = vmatprep.mubr.f32.mxu0 %v9040_v28  ;;  %v6895_v40 = vadd.f32 %v13599_v21, %v17792_v52  ;;  %14064 = vmatprep.mubr.f32.mxu1 %v8515_v61  ;;  %v8517_v3 = vld [vmem:[#allocation2 + $0x120] sm:$0xff]  ;;  %v9624_v48 = vld [vmem:[#allocation8 + $0x428] sm:$0xff]  ;;  %v20264_v61 = vld [vmem:[#allocation92_spill] sm:$0xff] }
 0x614   :  { %v7276_v38 = vpop.f32.mrf.mxu0  ;;  %v6767_v25 = vpop.f32.mrf.mxu1  ;;  %14278 = vmatpush3.msra.mxu1 %v9626_v29 }
 0x615   :  { %v17975_v14 = vadd.f32 %v7276_v38, %v6890_v32  ;;  %v6894_v57 = vadd.f32 %v6767_v25, %v17795_v59  ;;  %14279 = vmatprep.subr.mxu1 %v9625_v31  ;;  %v9043_v59 = vld [vmem:[#allocation2 + $0xf9] sm:$0xff]  ;;  %v8518_v25 = vld [vmem:[#allocation2 + $0x128] sm:$0xff] }
 0x616   :  { %v13724_v7 = vpop.f32.mrf.mxu0  ;;  %14187 = vmatmul.mubr.f32.gmra.mxu0 %v9041_v35  ;;  %v13602_v13 = vpop.f32.mrf.mxu1  ;;  %14065 = vmatmul.mubr.f32.gmra.mxu1 %v8516_v4  ;;  %v9044_v4 = vld [vmem:[#allocation2 + $0x109] sm:$0xff] }
 0x617   :  { %20261 = vst [vmem:[#allocation31_spill] sm:$0xff] %v17975_v14  ;;  %v17978_v28 = vadd.f32 %v13724_v7, %v6893_v53  ;;  %14189 = vmatprep.mubr.f32.mxu0 %v9042_v47  ;;  %v6897_v52 = vadd.f32 %v13602_v13, %v17798_v49  ;;  %14067 = vmatprep.mubr.f32.mxu1 %v8517_v3  ;;  %v8519_v53 = vld [vmem:[#allocation2 + $0x138] sm:$0xff]  ;;  %v9623_v7 = vld [vmem:[#allocation8 + $0x420] sm:$0xff] }
 0x618   :  { %v7286_v32 = vpop.f32.mrf.mxu0  ;;  %v6777_v29 = vpop.f32.mrf.mxu1  ;;  %14280 = vmatpush3.msra.mxu1 %v9625_v31  ;;  %v20266_v49 = vld [vmem:[#allocation97_spill] sm:$0xff] }
 0x619   :  { %20262 = vst [vmem:[#allocation62_spill] sm:$0xff] %v17978_v28  ;;  %v17981_v21 = vadd.f32 %v7286_v32, %v6892_v37  ;;  %v6896_v38 = vadd.f32 %v6777_v29, %v20264_v61  ;;  %14281 = vmatprep.subr.mxu1 %v9624_v48  ;;  %v9045_v32 = vld [vmem:[#allocation2 + $0x111] sm:$0xff]  ;;  %v20268_v29 = vld [vmem:[#allocation26_spill] sm:$0xff] }
 0x61a   :  { %v13727_v35 = vpop.f32.mrf.mxu0  ;;  %14190 = vmatmul.mubr.f32.gmra.mxu0 %v9043_v59  ;;  %v13605_v14 = vpop.f32.mrf.mxu1  ;;  %14068 = vmatmul.mubr.f32.gmra.mxu1 %v8518_v25  ;;  %v8520_v59 = vld [vmem:[#allocation2 + $0x140] sm:$0xff] }
 0x61b   :  { %20263 = vst [vmem:[#allocation64_spill] sm:$0xff] %v17981_v21  ;;  %v17984_v47 = vadd.f32 %v13727_v35, %v6895_v40  ;;  %14192 = vmatprep.mubr.f32.mxu0 %v9044_v4  ;;  %v6899_v13 = vadd.f32 %v13605_v14, %v20266_v49  ;;  %14070 = vmatprep.mubr.f32.mxu1 %v8519_v53  ;;  %v9046_v25 = vld [vmem:[#allocation2 + $0x121] sm:$0xff]  ;;  %v8521_v40 = vld [vmem:[#allocation2 + $0x150] sm:$0xff]  ;;  %v9622_v35 = vld [vmem:[#allocation8 + $0x418] sm:$0xff] }
 0x61c   :  { %v7296_v37 = vpop.f32.mrf.mxu0  ;;  %v6787_v31 = vpop.f32.mrf.mxu1  ;;  %14282 = vmatpush3.msra.mxu1 %v9624_v48  ;;  %v20270_v14 = vld [vmem:[#allocation27_spill] sm:$0xff] }
 0x61d   :  { %20265 = vst [vmem:[#allocation36_spill] sm:$0xff] %v17984_v47  ;;  %v17987_v3 = vadd.f32 %v7296_v37, %v6894_v57  ;;  %v6898_v61 = vadd.f32 %v6787_v31, %v20268_v29  ;;  %14283 = vmatprep.subr.mxu1 %v9623_v7  ;;  %v9047_v37 = vld [vmem:[#allocation2 + $0x129] sm:$0xff] }
 0x61e   :  { %v13730_v21 = vpop.f32.mrf.mxu0  ;;  %14193 = vmatmul.mubr.f32.gmra.mxu0 %v9045_v32  ;;  %v13608_v28 = vpop.f32.mrf.mxu1  ;;  %14071 = vmatmul.mubr.f32.gmra.mxu1 %v8520_v59  ;;  %v20272_v31 = vld [vmem:[#allocation94_spill] sm:$0xff]  ;;  %v8522_v32 = vld [vmem:[#allocation2 + $0x158] sm:$0xff] }
 0x61f   :  { %20267 = vst [vmem:[#allocation40_spill] sm:$0xff] %v17987_v3  ;;  %v17990_v4 = vadd.f32 %v13730_v21, %v6897_v52  ;;  %14195 = vmatprep.mubr.f32.mxu0 %v9046_v25  ;;  %v6901_v53 = vadd.f32 %v13608_v28, %v20270_v14  ;;  %14073 = vmatprep.mubr.f32.mxu1 %v8521_v40  ;;  %v9048_v59 = vld [vmem:[#allocation2 + $0x139] sm:$0xff]  ;;  %v8523_v52 = vld [vmem:[#allocation2 + $0x168] sm:$0xff]  ;;  %v9621_v21 = vld [vmem:[#allocation8 + $0x410] sm:$0xff] }
 0x620   :  { %v7306_v57 = vpop.f32.mrf.mxu0  ;;  %v6797_v48 = vpop.f32.mrf.mxu1  ;;  %14284 = vmatpush3.msra.mxu1 %v9623_v7  ;;  %v20274_v28 = vld [vmem:[#allocation99_spill] sm:$0xff] }
 0x621   :  { %20269 = vst [vmem:[#allocation41_spill] sm:$0xff] %v17990_v4  ;;  %v17993_v49 = vadd.f32 %v7306_v57, %v6896_v38  ;;  %v6900_v29 = vadd.f32 %v6797_v48, %v20272_v31  ;;  %14285 = vmatprep.subr.mxu1 %v9622_v35  ;;  %v9049_v57 = vld [vmem:[#allocation2 + $0x141] sm:$0xff]  ;;  %v20276_v48 = vld [vmem:[#allocation28_spill] sm:$0xff] }
 0x622   :  { %v13733_v3 = vpop.f32.mrf.mxu0  ;;  %14196 = vmatmul.mubr.f32.gmra.mxu0 %v9047_v37  ;;  %v13611_v47 = vpop.f32.mrf.mxu1  ;;  %14074 = vmatmul.mubr.f32.gmra.mxu1 %v8522_v32  ;;  %v8524_v37 = vld [vmem:[#allocation2 + $0x170] sm:$0xff] }
 0x623   :  { %20271 = vst [vmem:[#allocation71_spill] sm:$0xff] %v17993_v49  ;;  %v17996_v25 = vadd.f32 %v13733_v3, %v6899_v13  ;;  %14198 = vmatprep.mubr.f32.mxu0 %v9048_v59  ;;  %v6903_v40 = vadd.f32 %v13611_v47, %v20274_v28  ;;  %14076 = vmatprep.mubr.f32.mxu1 %v8523_v52  ;;  %v9050_v32 = vld [vmem:[#allocation2 + $0x151] sm:$0xff]  ;;  %v8525_v13 = vld [vmem:[#allocation2 + $0x180] sm:$0xff]  ;;  %v9620_v3 = vld [vmem:[#allocation8 + $0x408] sm:$0xff] }
 0x624   :  { %v7316_v38 = vpop.f32.mrf.mxu0  ;;  %v6807_v7 = vpop.f32.mrf.mxu1  ;;  %14286 = vmatpush3.msra.mxu1 %v9622_v35  ;;  %v20277_v47 = vld [vmem:[#allocation55_spill] sm:$0xff] }
 0x625   :  { %20273 = vst [vmem:[#allocation44_spill] sm:$0xff] %v17996_v25  ;;  %v17999_v14 = vadd.f32 %v7316_v38, %v6898_v61  ;;  %v6902_v31 = vadd.f32 %v6807_v7, %v20276_v48  ;;  %14287 = vmatprep.subr.mxu1 %v9621_v21  ;;  %v9051_v38 = vld [vmem:[#allocation2 + $0x159] sm:$0xff] }
 0x626   :  { %v13736_v49 = vpop.f32.mrf.mxu0  ;;  %14199 = vmatmul.mubr.f32.gmra.mxu0 %v9049_v57  ;;  %v13614_v4 = vpop.f32.mrf.mxu1  ;;  %14077 = vmatmul.mubr.f32.gmra.mxu1 %v8524_v37  ;;  %v20278_v7 = vld [vmem:[#allocation96_spill] sm:$0xff]  ;;  %v8526_v57 = vld [vmem:[#allocation2 + $0x188] sm:$0xff] }
 0x627   :  { %20275 = vst [vmem:[#allocation73_spill] sm:$0xff] %v17999_v14  ;;  %v18002_v59 = vadd.f32 %v13736_v49, %v6901_v53  ;;  %14201 = vmatprep.mubr.f32.mxu0 %v9050_v32  ;;  %v6905_v52 = vadd.f32 %v13614_v4, %v20277_v47  ;;  %14079 = vmatprep.mubr.f32.mxu1 %v8525_v13  ;;  %v9052_v37 = vld [vmem:[#allocation2 + $0x169] sm:$0xff]  ;;  %v9619_v53 = vld [vmem:[#allocation8 + $0x400] sm:$0xff]  ;;  %v9053_v47 = vld [vmem:[#allocation2 + $0x171] sm:$0xff] }
 0x628   :  { %v7326_v61 = vpop.f32.mrf.mxu0  ;;  %v6817_v35 = vpop.f32.mrf.mxu1  ;;  %14288 = vmatpush3.msra.mxu1 %v9621_v21  ;;  %v18011_v32 = vld [vmem:[#allocation2] sm:$0xff] }
 0x629   :  { %v18005_v28 = vadd.f32 %v7326_v61, %v6900_v29  ;;  %v6904_v48 = vadd.f32 %v6817_v35, %v20278_v7  ;;  %14289 = vmatprep.subr.mxu1 %v9620_v3 }
 0x62a   :  { %v13739_v14 = vpop.f32.mrf.mxu0  ;;  %14202 = vmatmul.mubr.f32.gmra.mxu0 %v9051_v38  ;;  %v13617_v25 = vpop.f32.mrf.mxu1  ;;  %14080 = vmatmul.mubr.f32.gmra.mxu1 %v8526_v57 }
 0x62b   :  { %v18008_v49 = vadd.f32 %v13739_v14, %v6903_v40  ;;  %14204 = vmatprep.mubr.f32.mxu0 %v9052_v37  ;;  %v6907_v4 = vadd.f32 %v13617_v25, %v17826_v24  ;;  %14082 = vmatprep.mubr.f32.mxu1 %v18011_v32  ;;  %v9054_v40 = vld [vmem:[#allocation2 + $0x181] sm:$0xff] }
 0x62c   :  { %v7336_v29 = vpop.f32.mrf.mxu0  ;;  %v6827_v21 = vpop.f32.mrf.mxu1  ;;  %14290 = vmatpush3.msra.mxu1 %v9620_v3  ;;  %v8529_v24 = vld [vmem:[#allocation2 + $0x1e0] sm:$0xff] }
 0x62d   :  { %v18014_v13 = vadd.f32 %v7336_v29, %v6902_v31  ;;  %v6906_v61 = vadd.f32 %v6827_v21, %v17829_v11  ;;  %14291 = vmatprep.subr.mxu1 %v9619_v53  ;;  %v9056_v31 = vld [vmem:[#allocation2 + $0x199] sm:$0xff]  ;;  %v9055_v11 = vld [vmem:[#allocation2 + $0x189] sm:$0xff] }
 0x62e   :  { %v13742_v35 = vpop.f32.mrf.mxu0  ;;  %14205 = vmatmul.mubr.f32.gmra.mxu0 %v9053_v47  ;;  %v13620_v14 = vpop.f32.mrf.mxu1  ;;  %14083 = vmatmul.mubr.f32.gmra.mxu1 %v18011_v32  ;;  %v8530_v29 = vld [vmem:[#allocation2 + $0x1e8] sm:$0xff] }
 0x62f   :  { %v18018_v25 = vadd.f32 %v13742_v35, %v6905_v52  ;;  %14207 = vmatprep.mubr.f32.mxu0 %v9054_v40  ;;  %v6909_v38 = vadd.f32 %v13620_v14, %v17831_v56  ;;  %14085 = vmatprep.mubr.f32.mxu1 %v8529_v24  ;;  %v8531_v52 = vld [vmem:[#allocation2 + $0x1f8] sm:$0xff]  ;;  %v9057_v56 = vld [vmem:[#allocation2 + $0x1a1] sm:$0xff] }
 0x630   :  { %v7346_v3 = vpop.f32.mrf.mxu0  ;;  %v6837_v7 = vpop.f32.mrf.mxu1  ;;  %14292 = vmatpush3.msra.mxu1 %v9619_v53 }
 0x631   :  { %v18021_v57 = vadd.f32 %v7346_v3, %v6904_v48  ;;  %v6908_v37 = vadd.f32 %v6837_v7, %v17836_v16  ;;  %v8532_v16 = vld [vmem:[#allocation2 + $0x200] sm:$0xff] }
 0x632   :  { %v13745_v21 = vpop.f32.mrf.mxu0  ;;  %14208 = vmatmul.mubr.f32.gmra.mxu0 %v9055_v11  ;;  %v13783_v47 = vpop.f32.mrf.mxu1  ;;  %14086 = vmatmul.mubr.f32.gmra.mxu1 %v8530_v29  ;;  %v9058_v7 = vld [vmem:[#allocation2 + $0x1e1] sm:$0xff]  ;;  %v8533_v29 = vld [vmem:[#allocation2 + $0x210] sm:$0xff] }
 0x633   :  { %v18024_v35 = vadd.f32 %v13745_v21, %v6907_v4  ;;  %14210 = vmatprep.mubr.f32.mxu0 %v9056_v31  ;;  %v7905_v40 = vadd.f32 %v13783_v47, %v17839_v50  ;;  %14088 = vmatprep.mubr.f32.mxu1 %v8531_v52  ;;  %v8534_v52 = vld [vmem:[#allocation2 + $0x218] sm:$0xff] }
 0x634   :  { %v7356_v14 = vpop.f32.mrf.mxu0  ;;  %v7585_v53 = vpop.f32.mrf.mxu1 }
 0x635   :  { %v18027_v48 = vadd.f32 %v7356_v14, %v6906_v61  ;;  %v7904_v24 = vadd.f32 %v7585_v53, %v17842_v63  ;;  %v9059_v61 = vld [vmem:[#allocation2 + $0x1e9] sm:$0xff] }
 0x636   :  { %v13748_v3 = vpop.f32.mrf.mxu0  ;;  %14211 = vmatmul.mubr.f32.gmra.mxu0 %v9057_v56  ;;  %v13786_v11 = vpop.f32.mrf.mxu1  ;;  %14089 = vmatmul.mubr.f32.gmra.mxu1 %v8532_v16  ;;  %v9060_v56 = vld [vmem:[#allocation2 + $0x1f9] sm:$0xff]  ;;  %v8535_v16 = vld [vmem:[#allocation2 + $0x228] sm:$0xff] }
 0x637   :  { %v18030_v4 = vadd.f32 %v13748_v3, %v6909_v38  ;;  %14213 = vmatprep.mubr.f32.mxu0 %v9058_v7  ;;  %v7907_v31 = vadd.f32 %v13786_v11, %v17845_v0  ;;  %14091 = vmatprep.mubr.f32.mxu1 %v8533_v29  ;;  %v9061_v11 = vld [vmem:[#allocation2 + $0x201] sm:$0xff]  ;;  %v8536_v29 = vld [vmem:[#allocation2 + $0x230] sm:$0xff] }
 0x638   :  { %v7366_v50 = vpop.f32.mrf.mxu0  ;;  %v7595_v21 = vpop.f32.mrf.mxu1 }
 0x639   :  { %v18033_v47 = vadd.f32 %v7366_v50, %v6908_v37  ;;  %v7906_v63 = vadd.f32 %v7595_v21, %v17848_v41  ;;  %v9062_v21 = vld [vmem:[#allocation2 + $0x211] sm:$0xff] }
 0x63a   :  { %v13911_v14 = vpop.f32.mrf.mxu0  ;;  %14214 = vmatmul.mubr.f32.gmra.mxu0 %v9059_v61  ;;  %v13789_v53 = vpop.f32.mrf.mxu1  ;;  %14092 = vmatmul.mubr.f32.gmra.mxu1 %v8534_v52  ;;  %v8537_v52 = vld [vmem:[#allocation2 + $0x240] sm:$0xff] }
 0x63b   :  { %v18036_v38 = vadd.f32 %v13911_v14, %v7905_v40  ;;  %14216 = vmatprep.mubr.f32.mxu0 %v9060_v56  ;;  %v7909_v0 = vadd.f32 %v13789_v53, %v17851_v51  ;;  %14094 = vmatprep.mubr.f32.mxu1 %v8535_v16  ;;  %v9063_v53 = vld [vmem:[#allocation2 + $0x219] sm:$0xff]  ;;  %v8538_v16 = vld [vmem:[#allocation2 + $0x248] sm:$0xff] }
 0x63c   :  { %v8114_v3 = vpop.f32.mrf.mxu0  ;;  %v7605_v7 = vpop.f32.mrf.mxu1 }
 0x63d   :  { %v18039_v37 = vadd.f32 %v8114_v3, %v7904_v24  ;;  %v7908_v41 = vadd.f32 %v7605_v7, %v17854_v9  ;;  %v9064_v7 = vld [vmem:[#allocation2 + $0x229] sm:$0xff] }
 0x63e   :  { %v13914_v50 = vpop.f32.mrf.mxu0  ;;  %14217 = vmatmul.mubr.f32.gmra.mxu0 %v9061_v11  ;;  %v13792_v61 = vpop.f32.mrf.mxu1  ;;  %14095 = vmatmul.mubr.f32.gmra.mxu1 %v8536_v29  ;;  %v8539_v29 = vld [vmem:[#allocation2 + $0x258] sm:$0xff] }
 0x63f   :  { %v18042_v40 = vadd.f32 %v13914_v50, %v7907_v31  ;;  %14219 = vmatprep.mubr.f32.mxu0 %v9062_v21  ;;  %v7911_v51 = vadd.f32 %v13792_v61, %v17857_v18  ;;  %14097 = vmatprep.mubr.f32.mxu1 %v8537_v52  ;;  %v9065_v61 = vld [vmem:[#allocation2 + $0x231] sm:$0xff]  ;;  %v8540_v52 = vld [vmem:[#allocation2 + $0x260] sm:$0xff] }
 0x640   :  { %v8124_v14 = vpop.f32.mrf.mxu0  ;;  %v7615_v56 = vpop.f32.mrf.mxu1 }
 0x641   :  { %v18045_v24 = vadd.f32 %v8124_v14, %v7906_v63  ;;  %v7910_v9 = vadd.f32 %v7615_v56, %v17860_v30  ;;  %v9066_v56 = vld [vmem:[#allocation2 + $0x241] sm:$0xff] }
 0x642   :  { %v13917_v3 = vpop.f32.mrf.mxu0  ;;  %14220 = vmatmul.mubr.f32.gmra.mxu0 %v9063_v53  ;;  %v13795_v11 = vpop.f32.mrf.mxu1  ;;  %14098 = vmatmul.mubr.f32.gmra.mxu1 %v8538_v16  ;;  %v8541_v16 = vld [vmem:[#allocation2 + $0x270] sm:$0xff] }
 0x643   :  { %v18048_v31 = vadd.f32 %v13917_v3, %v7909_v0  ;;  %14222 = vmatprep.mubr.f32.mxu0 %v9064_v7  ;;  %v7913_v18 = vadd.f32 %v13795_v11, %v17863_v8  ;;  %14100 = vmatprep.mubr.f32.mxu1 %v8539_v29  ;;  %v9067_v11 = vld [vmem:[#allocation2 + $0x249] sm:$0xff]  ;;  %v8542_v29 = vld [vmem:[#allocation2 + $0x278] sm:$0xff] }
 0x644   :  { %v8134_v50 = vpop.f32.mrf.mxu0  ;;  %v7625_v21 = vpop.f32.mrf.mxu1 }
 0x645   :  { %v18051_v63 = vadd.f32 %v8134_v50, %v7908_v41  ;;  %v7912_v30 = vadd.f32 %v7625_v21, %v17866_v6  ;;  %v9068_v21 = vld [vmem:[#allocation2 + $0x259] sm:$0xff] }
 0x646   :  { %v13920_v14 = vpop.f32.mrf.mxu0  ;;  %14223 = vmatmul.mubr.f32.gmra.mxu0 %v9065_v61  ;;  %v13798_v53 = vpop.f32.mrf.mxu1  ;;  %14101 = vmatmul.mubr.f32.gmra.mxu1 %v8540_v52  ;;  %v8543_v52 = vld [vmem:[#allocation2 + $0x288] sm:$0xff] }
 0x647   :  { %v18054_v0 = vadd.f32 %v13920_v14, %v7911_v51  ;;  %14225 = vmatprep.mubr.f32.mxu0 %v9066_v56  ;;  %v7915_v8 = vadd.f32 %v13798_v53, %v17869_v22  ;;  %14103 = vmatprep.mubr.f32.mxu1 %v8541_v16  ;;  %v9069_v53 = vld [vmem:[#allocation2 + $0x261] sm:$0xff]  ;;  %v8544_v16 = vld [vmem:[#allocation2 + $0x290] sm:$0xff] }
 0x648   :  { %v8144_v3 = vpop.f32.mrf.mxu0  ;;  %v7635_v7 = vpop.f32.mrf.mxu1 }
 0x649   :  { %v18057_v41 = vadd.f32 %v8144_v3, %v7910_v9  ;;  %v7914_v6 = vadd.f32 %v7635_v7, %v17872_v36  ;;  %v9070_v7 = vld [vmem:[#allocation2 + $0x271] sm:$0xff] }
 0x64a   :  { %v13923_v50 = vpop.f32.mrf.mxu0  ;;  %14226 = vmatmul.mubr.f32.gmra.mxu0 %v9067_v11  ;;  %v13801_v61 = vpop.f32.mrf.mxu1  ;;  %14104 = vmatmul.mubr.f32.gmra.mxu1 %v8542_v29  ;;  %v8545_v29 = vld [vmem:[#allocation2 + $0x2a0] sm:$0xff] }
 0x64b   :  { %v18060_v51 = vadd.f32 %v13923_v50, %v7913_v18  ;;  %14228 = vmatprep.mubr.f32.mxu0 %v9068_v21  ;;  %v7917_v22 = vadd.f32 %v13801_v61, %v17875_v43  ;;  %14106 = vmatprep.mubr.f32.mxu1 %v8543_v52  ;;  %v9071_v61 = vld [vmem:[#allocation2 + $0x279] sm:$0xff]  ;;  %v8546_v52 = vld [vmem:[#allocation2 + $0x2a8] sm:$0xff] }
 0x64c   :  { %v8154_v14 = vpop.f32.mrf.mxu0  ;;  %v7645_v56 = vpop.f32.mrf.mxu1 }
 0x64d   :  { %v18063_v9 = vadd.f32 %v8154_v14, %v7912_v30  ;;  %v7916_v36 = vadd.f32 %v7645_v56, %v17878_v17  ;;  %v9072_v56 = vld [vmem:[#allocation2 + $0x289] sm:$0xff] }
 0x64e   :  { %v13926_v3 = vpop.f32.mrf.mxu0  ;;  %14229 = vmatmul.mubr.f32.gmra.mxu0 %v9069_v53  ;;  %v13804_v11 = vpop.f32.mrf.mxu1  ;;  %14107 = vmatmul.mubr.f32.gmra.mxu1 %v8544_v16  ;;  %v8547_v16 = vld [vmem:[#allocation2 + $0x2b8] sm:$0xff] }
 0x64f   :  { %v18066_v18 = vadd.f32 %v13926_v3, %v7915_v8  ;;  %14231 = vmatprep.mubr.f32.mxu0 %v9070_v7  ;;  %v7919_v43 = vadd.f32 %v13804_v11, %v17881_v2  ;;  %14109 = vmatprep.mubr.f32.mxu1 %v8545_v29  ;;  %v9073_v11 = vld [vmem:[#allocation2 + $0x291] sm:$0xff]  ;;  %v20282_v29 = vld [vmem:[#allocation101_spill] sm:$0xff] }
 0x650   :  { %v8164_v50 = vpop.f32.mrf.mxu0  ;;  %v7655_v21 = vpop.f32.mrf.mxu1 }
 0x651   :  { %v18069_v30 = vadd.f32 %v8164_v50, %v7914_v6  ;;  %v7918_v17 = vadd.f32 %v7655_v21, %v17884_v60  ;;  %v8548_v50 = vld [vmem:[#allocation2 + $0x2c0] sm:$0xff] }
 0x652   :  { %v13929_v14 = vpop.f32.mrf.mxu0  ;;  %14232 = vmatmul.mubr.f32.gmra.mxu0 %v9071_v61  ;;  %v13807_v53 = vpop.f32.mrf.mxu1  ;;  %14110 = vmatmul.mubr.f32.gmra.mxu1 %v8546_v52  ;;  %v9074_v61 = vld [vmem:[#allocation2 + $0x2a1] sm:$0xff]  ;;  %v8549_v52 = vld [vmem:[#allocation2 + $0x2d0] sm:$0xff] }
 0x653   :  { %20279 = vst [vmem:[#allocation57_spill] sm:$0xff] %v18069_v30  ;;  %v18072_v8 = vadd.f32 %v13929_v14, %v7917_v22  ;;  %14234 = vmatprep.mubr.f32.mxu0 %v9072_v56  ;;  %v7921_v2 = vadd.f32 %v13807_v53, %v17887_v42  ;;  %14112 = vmatprep.mubr.f32.mxu1 %v8547_v16  ;;  %v20284_v14 = vld [vmem:[#allocation98_spill] sm:$0xff] }
 0x654   :  { %v8174_v3 = vpop.f32.mrf.mxu0  ;;  %v7665_v7 = vpop.f32.mrf.mxu1  ;;  %v9075_v16 = vld [vmem:[#allocation2 + $0x2a9] sm:$0xff] }
 0x655   :  { %20280 = vst [vmem:[#allocation60_spill] sm:$0xff] %v18072_v8  ;;  %v18075_v6 = vadd.f32 %v8174_v3, %v7916_v36  ;;  %v7920_v60 = vadd.f32 %v7665_v7, %v20282_v29  ;;  %v20286_v3 = vld [vmem:[#allocation29_spill] sm:$0xff]  ;;  %v8550_v29 = vld [vmem:[#allocation2 + $0x2d8] sm:$0xff] }
 0x656   :  { %v13932_v21 = vpop.f32.mrf.mxu0  ;;  %14235 = vmatmul.mubr.f32.gmra.mxu0 %v9073_v11  ;;  %v13810_v30 = vpop.f32.mrf.mxu1  ;;  %14113 = vmatmul.mubr.f32.gmra.mxu1 %v8548_v50  ;;  %v9076_v11 = vld [vmem:[#allocation2 + $0x2b9] sm:$0xff]  ;;  %v8551_v50 = vld [vmem:[#allocation2 + $0x2e8] sm:$0xff] }
 0x657   :  { %20281 = vst [vmem:[#allocation58_spill] sm:$0xff] %v18075_v6  ;;  %v18078_v22 = vadd.f32 %v13932_v21, %v7919_v43  ;;  %14237 = vmatprep.mubr.f32.mxu0 %v9074_v61  ;;  %v7923_v42 = vadd.f32 %v13810_v30, %v20284_v14  ;;  %14115 = vmatprep.mubr.f32.mxu1 %v8549_v52  ;;  %v20288_v21 = vld [vmem:[#allocation56_spill] sm:$0xff]  ;;  %v9077_v14 = vld [vmem:[#allocation2 + $0x2c1] sm:$0xff] }
 0x658   :  { %v8184_v56 = vpop.f32.mrf.mxu0  ;;  %v7675_v53 = vpop.f32.mrf.mxu1 }
 0x659   :  { %20283 = vst [vmem:[#allocation34_spill] sm:$0xff] %v18078_v22  ;;  %v18081_v36 = vadd.f32 %v8184_v56, %v7918_v17  ;;  %v7922_v7 = vadd.f32 %v7675_v53, %v20286_v3  ;;  %v20290_v56 = vld [vmem:[#allocation103_spill] sm:$0xff] }
 0x65a   :  { %v13935_v6 = vpop.f32.mrf.mxu0  ;;  %14238 = vmatmul.mubr.f32.gmra.mxu0 %v9075_v16  ;;  %v13813_v8 = vpop.f32.mrf.mxu1  ;;  %14116 = vmatmul.mubr.f32.gmra.mxu1 %v8550_v29  ;;  %v8552_v3 = vld [vmem:[#allocation2 + $0x2f0] sm:$0xff]  ;;  %v8553_v29 = vld [vmem:[#allocation2 + $0x300] sm:$0xff] }
 0x65b   :  { %20285 = vst [vmem:[#allocation35_spill] sm:$0xff] %v18081_v36  ;;  %v18084_v43 = vadd.f32 %v13935_v6, %v7921_v2  ;;  %14240 = vmatprep.mubr.f32.mxu0 %v9076_v11  ;;  %v7925_v30 = vadd.f32 %v13813_v8, %v20288_v21  ;;  %14118 = vmatprep.mubr.f32.mxu1 %v8551_v50  ;;  %v9078_v16 = vld [vmem:[#allocation2 + $0x2d1] sm:$0xff]  ;;  %v9079_v21 = vld [vmem:[#allocation2 + $0x2d9] sm:$0xff] }
 0x65c   :  { %v8194_v61 = vpop.f32.mrf.mxu0  ;;  %v7685_v52 = vpop.f32.mrf.mxu1  ;;  %v20291_v6 = vld [vmem:[#allocation100_spill] sm:$0xff] }
 0x65d   :  { %20287 = vst [vmem:[#allocation59_spill] sm:$0xff] %v18084_v43  ;;  %v18087_v17 = vadd.f32 %v8194_v61, %v7920_v60  ;;  %v7924_v53 = vadd.f32 %v7685_v52, %v20290_v56  ;;  %v20292_v61 = vld [vmem:[#allocation102_spill] sm:$0xff] }
 0x65e   :  { %v13938_v36 = vpop.f32.mrf.mxu0  ;;  %14241 = vmatmul.mubr.f32.gmra.mxu0 %v9077_v14  ;;  %v13816_v22 = vpop.f32.mrf.mxu1  ;;  %14119 = vmatmul.mubr.f32.gmra.mxu1 %v8552_v3  ;;  %v8554_v56 = vld [vmem:[#allocation2 + $0x308] sm:$0xff]  ;;  %v8555_v3 = vld [vmem:[#allocation2 + $0x318] sm:$0xff] }
 0x65f   :  { %20289 = vst [vmem:[#allocation37_spill] sm:$0xff] %v18087_v17  ;;  %v18090_v2 = vadd.f32 %v13938_v36, %v7923_v42  ;;  %14243 = vmatprep.mubr.f32.mxu0 %v9078_v16  ;;  %v7927_v8 = vadd.f32 %v13816_v22, %v20291_v6  ;;  %14121 = vmatprep.mubr.f32.mxu1 %v8553_v29  ;;  %v9080_v14 = vld [vmem:[#allocation2 + $0x2e9] sm:$0xff]  ;;  %v9081_v29 = vld [vmem:[#allocation2 + $0x2f1] sm:$0xff] }
 0x660   :  { %v8204_v11 = vpop.f32.mrf.mxu0  ;;  %v7695_v50 = vpop.f32.mrf.mxu1 }
 0x661   :  { %v18093_v60 = vadd.f32 %v8204_v11, %v7922_v7  ;;  %v7926_v52 = vadd.f32 %v7695_v50, %v20292_v61  ;;  %v8556_v11 = vld [vmem:[#allocation2 + $0x320] sm:$0xff] }
 0x662   :  { %v13941_v17 = vpop.f32.mrf.mxu0  ;;  %14244 = vmatmul.mubr.f32.gmra.mxu0 %v9079_v21  ;;  %v13819_v43 = vpop.f32.mrf.mxu1  ;;  %14122 = vmatmul.mubr.f32.gmra.mxu1 %v8554_v56  ;;  %v9082_v21 = vld [vmem:[#allocation2 + $0x301] sm:$0xff]  ;;  %v8557_v56 = vld [vmem:[#allocation2 + $0x330] sm:$0xff] }
 0x663   :  { %v18096_v42 = vadd.f32 %v13941_v17, %v7925_v30  ;;  %14246 = vmatprep.mubr.f32.mxu0 %v9080_v14  ;;  %v7929_v22 = vadd.f32 %v13819_v43, %v17911_v46  ;;  %14124 = vmatprep.mubr.f32.mxu1 %v8555_v3  ;;  %v9083_v14 = vld [vmem:[#allocation2 + $0x309] sm:$0xff]  ;;  %v8558_v3 = vld [vmem:[#allocation2 + $0x338] sm:$0xff] }
 0x664   :  { %v8214_v36 = vpop.f32.mrf.mxu0  ;;  %v7705_v16 = vpop.f32.mrf.mxu1 }
 0x665   :  { %v18099_v7 = vadd.f32 %v8214_v36, %v7924_v53  ;;  %v7928_v6 = vadd.f32 %v7705_v16, %v17914_v34  ;;  %v9084_v16 = vld [vmem:[#allocation2 + $0x319] sm:$0xff] }
 0x666   :  { %v13944_v50 = vpop.f32.mrf.mxu0  ;;  %14247 = vmatmul.mubr.f32.gmra.mxu0 %v9081_v29  ;;  %v13822_v61 = vpop.f32.mrf.mxu1  ;;  %14125 = vmatmul.mubr.f32.gmra.mxu1 %v8556_v11 }
 0x667   :  { %v18102_v30 = vadd.f32 %v13944_v50, %v7927_v8  ;;  %14249 = vmatprep.mubr.f32.mxu0 %v9082_v21  ;;  %v7931_v46 = vadd.f32 %v13822_v61, %v17917_v23  ;;  %14127 = vmatprep.mubr.f32.mxu1 %v8557_v56  ;;  %v9085_v21 = vld [vmem:[#allocation2 + $0x321] sm:$0xff] }
 0x668   :  { %v8224_v43 = vpop.f32.mrf.mxu0  ;;  %v7715_v17 = vpop.f32.mrf.mxu1  ;;  %v20293_v61 = vld [vmem:[#allocation30_spill] sm:$0xff] }
 0x669   :  { %v18105_v53 = vadd.f32 %v8224_v43, %v7926_v52  ;;  %v7930_v34 = vadd.f32 %v7715_v17, %v17920_v62  ;;  %v9086_v43 = vld [vmem:[#allocation2 + $0x331] sm:$0xff] }
 0x66a   :  { %v13947_v36 = vpop.f32.mrf.mxu0  ;;  %14250 = vmatmul.mubr.f32.gmra.mxu0 %v9083_v14  ;;  %v13825_v29 = vpop.f32.mrf.mxu1  ;;  %14128 = vmatmul.mubr.f32.gmra.mxu1 %v8558_v3 }
 0x66b   :  { %v18108_v11 = vadd.f32 %v13947_v36, %v7929_v22  ;;  %14252 = vmatprep.mubr.f32.mxu0 %v9084_v16  ;;  %v7933_v8 = vadd.f32 %v13825_v29, %v17923_v55  ;;  %14130 = vmatprep.mubr.f32.mxu1 %v18011_v32  ;;  %v9555_v22 = vld [vmem:[#allocation2 + $0x32] sm:$0xff]  ;;  %v9088_v36 = vld [vmem:[#allocation2 + $0x349] sm:$0xff] }
 0x66c   :  { %v8234_v23 = vpop.f32.mrf.mxu0  ;;  %v7725_v50 = vpop.f32.mrf.mxu1  ;;  %v9087_v29 = vld [vmem:[#allocation2 + $0x339] sm:$0xff] }
 0x66d   :  { %v18112_v52 = vadd.f32 %v8234_v23, %v7928_v6  ;;  %v7932_v62 = vadd.f32 %v7725_v50, %v20293_v61  ;;  %v9556_v50 = vld [vmem:[#allocation2 + $0x3a] sm:$0xff] }
 0x66e   :  { %v13950_v56 = vpop.f32.mrf.mxu0  ;;  %14253 = vmatmul.mubr.f32.gmra.mxu0 %v9085_v21  ;;  %v13828_v17 = vpop.f32.mrf.mxu1  ;;  %14131 = vmatmul.mubr.f32.gmra.mxu1 %v18011_v32  ;;  %v9557_v32 = vld [vmem:[#allocation2 + $0x4a] sm:$0xff] }
 0x66f   :  { %v18116_v14 = vadd.f32 %v13950_v56, %v7931_v46  ;;  %14255 = vmatprep.mubr.f32.mxu0 %v9086_v43  ;;  %v7935_v55 = vadd.f32 %v13828_v17, %v17930_v20  ;;  %14293 = vmatprep.mubr.f32.mxu1 %v9555_v22  ;;  %v9089_v56 = vld [vmem:[#allocation2 + $0x351] sm:$0xff] }
 0x670   :  { %v8244_v3 = vpop.f32.mrf.mxu0  ;;  %v7735_v6 = vpop.f32.mrf.mxu1 }
 0x671   :  { %v18119_v16 = vadd.f32 %v8244_v3, %v7930_v34  ;;  %v7934_v23 = vadd.f32 %v7735_v6, %v17933_v15  ;;  %v9558_v15 = vld [vmem:[#allocation2 + $0x52] sm:$0xff] }
 0x672   :  { %v13953_v21 = vpop.f32.mrf.mxu0  ;;  %14256 = vmatmul.mubr.f32.gmra.mxu0 %v9087_v29  ;;  %v13831_v61 = vpop.f32.mrf.mxu1  ;;  %14294 = vmatmul.mubr.f32.vlgmr.msra.gmra.mxu1 %v9556_v50  ;;  %v9559_v29 = vld [vmem:[#allocation2 + $0x62] sm:$0xff] }
 0x673   :  { %v18122_v46 = vadd.f32 %v13953_v21, %v7933_v8  ;;  %14258 = vmatprep.mubr.f32.mxu0 %v9088_v36  ;;  %v7937_v20 = vadd.f32 %v13831_v61, %v17936_v10  ;;  %14296 = vmatprep.mubr.f32.mxu1 %v9557_v32  ;;  %v9560_v61 = vld [vmem:[#allocation2 + $0x6a] sm:$0xff] }
 0x674   :  { %v8254_v43 = vpop.f32.mrf.mxu0  ;;  %v7745_v17 = vpop.f32.mrf.mxu1 }
 0x675   :  { %v18125_v34 = vadd.f32 %v8254_v43, %v7932_v62  ;;  %v7936_v22 = vadd.f32 %v7745_v17, %v17939_v45  ;;  %v9561_v43 = vld [vmem:[#allocation2 + $0x7a] sm:$0xff] }
 0x676   :  { %v13956_v3 = vpop.f32.mrf.mxu0  ;;  %14259 = vmatmul.mubr.f32.gmra.mxu0 %v9089_v56  ;;  %v13834_v6 = vpop.f32.mrf.mxu1  ;;  %14297 = vmatmul.mubr.f32.gmra.mxu1 %v9558_v15 }
 0x677   :  { %v18128_v50 = vadd.f32 %v13956_v3, %v7935_v55  ;;  %v7939_v8 = vadd.f32 %v13834_v6, %v17942_v26  ;;  %14299 = vmatprep.mubr.f32.mxu1 %v9559_v29 }
 0x678   :  { %v8264_v36 = vpop.f32.mrf.mxu0  ;;  %v7755_v10 = vpop.f32.mrf.mxu1 }
 0x679   :  { %v18131_v21 = vadd.f32 %v8264_v36, %v7934_v23  ;;  %v7938_v62 = vadd.f32 %v7755_v10, %v17945_v39  ;;  %v9562_v23 = vld [vmem:[#allocation2 + $0x82] sm:$0xff]  ;;  %v9563_v39 = vld [vmem:[#allocation2 + $0x92] sm:$0xff] }
 0x67a   :  { %v13959_v32 = vpop.f32.mrf.mxu0  ;;  %v13837_v45 = vpop.f32.mrf.mxu1  ;;  %14300 = vmatmul.mubr.f32.gmra.mxu1 %v9560_v61 }
 0x67b   :  { %v18134_v56 = vadd.f32 %v13959_v32, %v7937_v20  ;;  %v7941_v17 = vadd.f32 %v13837_v45, %v17948_v33  ;;  %14302 = vmatprep.mubr.f32.mxu1 %v9561_v43 }
 0x67c   :  { %v8274_v55 = vpop.f32.mrf.mxu0  ;;  %v7765_v15 = vpop.f32.mrf.mxu1 }
 0x67d   :  { %v18137_v26 = vadd.f32 %v8274_v55, %v7936_v22  ;;  %v7940_v3 = vadd.f32 %v7765_v15, %v17951_v58  ;;  %v9564_v22 = vld [vmem:[#allocation2 + $0x9a] sm:$0xff]  ;;  %v9565_v58 = vld [vmem:[#allocation2 + $0xaa] sm:$0xff] }
 0x67e   :  { %v13962_v6 = vpop.f32.mrf.mxu0  ;;  %v13840_v29 = vpop.f32.mrf.mxu1  ;;  %14303 = vmatmul.mubr.f32.gmra.mxu1 %v9562_v23 }
 0x67f   :  { %v18140_v36 = vadd.f32 %v13962_v6, %v7939_v8  ;;  %v7943_v10 = vadd.f32 %v13840_v29, %v17954_v19  ;;  %14305 = vmatprep.mubr.f32.mxu1 %v9563_v39 }
 0x680   :  { %v8284_v20 = vpop.f32.mrf.mxu0  ;;  %v7775_v61 = vpop.f32.mrf.mxu1 }
 0x681   :  { %v18143_v33 = vadd.f32 %v8284_v20, %v7938_v62  ;;  %v7942_v32 = vadd.f32 %v7775_v61, %v17957_v54  ;;  %v9566_v62 = vld [vmem:[#allocation2 + $0xb2] sm:$0xff]  ;;  %v9567_v54 = vld [vmem:[#allocation2 + $0xc2] sm:$0xff] }
 0x682   :  { %v13965_v45 = vpop.f32.mrf.mxu0  ;;  %v13843_v43 = vpop.f32.mrf.mxu1  ;;  %14306 = vmatmul.mubr.f32.gmra.mxu1 %v9564_v22 }
 0x683   :  { %v18146_v55 = vadd.f32 %v13965_v45, %v7941_v17  ;;  %v7945_v15 = vadd.f32 %v13843_v43, %v17960_v44  ;;  %14308 = vmatprep.mubr.f32.mxu1 %v9565_v58 }
 0x684   :  { %v8294_v8 = vpop.f32.mrf.mxu0  ;;  %v7785_v23 = vpop.f32.mrf.mxu1 }
 0x685   :  { %v18149_v19 = vadd.f32 %v8294_v8, %v7940_v3  ;;  %v7944_v6 = vadd.f32 %v7785_v23, %v17963_v5  ;;  %v9568_v3 = vld [vmem:[#allocation2 + $0xca] sm:$0xff]  ;;  %v9569_v5 = vld [vmem:[#allocation2 + $0xda] sm:$0xff] }
 0x686   :  { %v13968_v29 = vpop.f32.mrf.mxu0  ;;  %v13846_v39 = vpop.f32.mrf.mxu1  ;;  %14309 = vmatmul.mubr.f32.gmra.mxu1 %v9566_v62 }
 0x687   :  { %v18152_v20 = vadd.f32 %v13968_v29, %v7943_v10  ;;  %v7947_v61 = vadd.f32 %v13846_v39, %v17966_v1  ;;  %14311 = vmatprep.mubr.f32.mxu1 %v9567_v54  ;;  %v20297_v29 = vld [vmem:[#allocation31_spill] sm:$0xff] }
 0x688   :  { %v8304_v17 = vpop.f32.mrf.mxu0  ;;  %v7795_v22 = vpop.f32.mrf.mxu1 }
 0x689   :  { %v18155_v44 = vadd.f32 %v8304_v17, %v7942_v32  ;;  %v7946_v45 = vadd.f32 %v7795_v22, %v17969_v27  ;;  %v9570_v32 = vld [vmem:[#allocation2 + $0xe2] sm:$0xff]  ;;  %v9571_v27 = vld [vmem:[#allocation2 + $0xf2] sm:$0xff] }
 0x68a   :  { %v13971_v43 = vpop.f32.mrf.mxu0  ;;  %v13849_v58 = vpop.f32.mrf.mxu1  ;;  %14312 = vmatmul.mubr.f32.gmra.mxu1 %v9568_v3  ;;  %v20299_v3 = vld [vmem:[#allocation62_spill] sm:$0xff] }
 0x68b   :  { %20294 = vst [vmem:[#allocation61_spill] sm:$0xff] %v18155_v44  ;;  %v18158_v8 = vadd.f32 %v13971_v43, %v7945_v15  ;;  %v7949_v23 = vadd.f32 %v13849_v58, %v17972_v12  ;;  %14314 = vmatprep.mubr.f32.mxu1 %v9569_v5  ;;  %v20301_v58 = vld [vmem:[#allocation64_spill] sm:$0xff] }
 0x68c   :  { %v8314_v10 = vpop.f32.mrf.mxu0  ;;  %v7805_v62 = vpop.f32.mrf.mxu1 }
 0x68d   :  { %20295 = vst [vmem:[#allocation66_spill] sm:$0xff] %v18158_v8  ;;  %v18161_v1 = vadd.f32 %v8314_v10, %v7944_v6  ;;  %v7948_v39 = vadd.f32 %v7805_v62, %v20297_v29  ;;  %v9572_v6 = vld [vmem:[#allocation2 + $0xfa] sm:$0xff]  ;;  %v9573_v62 = vld [vmem:[#allocation2 + $0x10a] sm:$0xff] }
 0x68e   :  { %v13974_v54 = vpop.f32.mrf.mxu0  ;;  %v13852_v17 = vpop.f32.mrf.mxu1  ;;  %14315 = vmatmul.mubr.f32.gmra.mxu1 %v9570_v32  ;;  %v20303_v32 = vld [vmem:[#allocation36_spill] sm:$0xff] }
 0x68f   :  { %20296 = vst [vmem:[#allocation38_spill] sm:$0xff] %v18161_v1  ;;  %v18164_v22 = vadd.f32 %v13974_v54, %v7947_v61  ;;  %v7951_v44 = vadd.f32 %v13852_v17, %v20299_v3  ;;  %14317 = vmatprep.mubr.f32.mxu1 %v9571_v27  ;;  %v20305_v27 = vld [vmem:[#allocation40_spill] sm:$0xff] }
 0x690   :  { %v8324_v15 = vpop.f32.mrf.mxu0  ;;  %v7815_v43 = vpop.f32.mrf.mxu1 }
 0x691   :  { %20298 = vst [vmem:[#allocation39_spill] sm:$0xff] %v18164_v22  ;;  %v18167_v12 = vadd.f32 %v8324_v15, %v7946_v45  ;;  %v7950_v5 = vadd.f32 %v7815_v43, %v20301_v58  ;;  %v9574_v45 = vld [vmem:[#allocation2 + $0x112] sm:$0xff]  ;;  %v9575_v43 = vld [vmem:[#allocation2 + $0x122] sm:$0xff] }
 0x692   :  { %v13977_v10 = vpop.f32.mrf.mxu0  ;;  %v13855_v1 = vpop.f32.mrf.mxu1  ;;  %14318 = vmatmul.mubr.f32.gmra.mxu1 %v9572_v6  ;;  %v20306_v6 = vld [vmem:[#allocation41_spill] sm:$0xff] }
 0x693   :  { %20300 = vst [vmem:[#allocation63_spill] sm:$0xff] %v18167_v12  ;;  %v18170_v29 = vadd.f32 %v13977_v10, %v7949_v23  ;;  %v7953_v8 = vadd.f32 %v13855_v1, %v20303_v32  ;;  %14320 = vmatprep.mubr.f32.mxu1 %v9573_v62  ;;  %v20308_v62 = vld [vmem:[#allocation71_spill] sm:$0xff] }
 0x694   :  { %v8334_v61 = vpop.f32.mrf.mxu0  ;;  %v7825_v54 = vpop.f32.mrf.mxu1 }
 0x695   :  { %20302 = vst [vmem:[#allocation68_spill] sm:$0xff] %v18170_v29  ;;  %v18173_v17 = vadd.f32 %v8334_v61, %v7948_v39  ;;  %v7952_v3 = vadd.f32 %v7825_v54, %v20305_v27  ;;  %v9576_v39 = vld [vmem:[#allocation2 + $0x12a] sm:$0xff]  ;;  %v9577_v54 = vld [vmem:[#allocation2 + $0x13a] sm:$0xff] }
 0x696   :  { %v13980_v15 = vpop.f32.mrf.mxu0  ;;  %v13858_v12 = vpop.f32.mrf.mxu1  ;;  %14321 = vmatmul.mubr.f32.gmra.mxu1 %v9574_v45  ;;  %v20309_v45 = vld [vmem:[#allocation44_spill] sm:$0xff] }
 0x697   :  { %20304 = vst [vmem:[#allocation65_spill] sm:$0xff] %v18173_v17  ;;  %v18176_v58 = vadd.f32 %v13980_v15, %v7951_v44  ;;  %v7955_v22 = vadd.f32 %v13858_v12, %v20306_v6  ;;  %14323 = vmatprep.mubr.f32.mxu1 %v9575_v43  ;;  %v20310_v43 = vld [vmem:[#allocation73_spill] sm:$0xff] }
 0x698   :  { %v8344_v23 = vpop.f32.mrf.mxu0  ;;  %v7835_v10 = vpop.f32.mrf.mxu1 }
 0x699   :  { %v18179_v1 = vadd.f32 %v8344_v23, %v7950_v5  ;;  %v7954_v32 = vadd.f32 %v7835_v10, %v20308_v62  ;;  %v9578_v5 = vld [vmem:[#allocation2 + $0x142] sm:$0xff]  ;;  %v9579_v10 = vld [vmem:[#allocation2 + $0x152] sm:$0xff] }
 0x69a   :  { %v13983_v61 = vpop.f32.mrf.mxu0  ;;  %v13861_v17 = vpop.f32.mrf.mxu1  ;;  %14324 = vmatmul.mubr.f32.gmra.mxu1 %v9576_v39 }
 0x69b   :  { %20307 = vst [vmem:[#allocation42_spill] sm:$0xff] %v18179_v1  ;;  %v18182_v27 = vadd.f32 %v13983_v61, %v7953_v8  ;;  %v7957_v29 = vadd.f32 %v13861_v17, %v20309_v45  ;;  %14326 = vmatprep.mubr.f32.mxu1 %v9577_v54 }
 0x69c   :  { %v8354_v44 = vpop.f32.mrf.mxu0  ;;  %v7845_v15 = vpop.f32.mrf.mxu1 }
 0x69d   :  { %v18185_v12 = vadd.f32 %v8354_v44, %v7952_v3  ;;  %v7956_v6 = vadd.f32 %v7845_v15, %v20310_v43  ;;  %v9580_v3 = vld [vmem:[#allocation2 + $0x15a] sm:$0xff]  ;;  %v9581_v15 = vld [vmem:[#allocation2 + $0x16a] sm:$0xff] }
 0x69e   :  { %v13986_v23 = vpop.f32.mrf.mxu0  ;;  %v13864_v1 = vpop.f32.mrf.mxu1  ;;  %14327 = vmatmul.mubr.f32.gmra.mxu1 %v9578_v5 }
 0x69f   :  { %v18188_v62 = vadd.f32 %v13986_v23, %v7955_v22  ;;  %v7959_v39 = vadd.f32 %v13864_v1, %v18002_v59  ;;  %14329 = vmatprep.mubr.f32.mxu1 %v9579_v10 }
 0x6a0   :  { %v8364_v8 = vpop.f32.mrf.mxu0  ;;  %v7855_v61 = vpop.f32.mrf.mxu1 }
 0x6a1   :  { %v18191_v17 = vadd.f32 %v8364_v8, %v7954_v32  ;;  %v7958_v54 = vadd.f32 %v7855_v61, %v18005_v28  ;;  %v9582_v32 = vld [vmem:[#allocation2 + $0x172] sm:$0xff]  ;;  %v9583_v28 = vld [vmem:[#allocation2 + $0x182] sm:$0xff] }
 0x6a2   :  { %v13989_v45 = vpop.f32.mrf.mxu0  ;;  %v13867_v44 = vpop.f32.mrf.mxu1  ;;  %14330 = vmatmul.mubr.f32.gmra.mxu1 %v9580_v3 }
 0x6a3   :  { %v18194_v43 = vadd.f32 %v13989_v45, %v7957_v29  ;;  %v7961_v5 = vadd.f32 %v13867_v44, %v18008_v49  ;;  %14332 = vmatprep.mubr.f32.mxu1 %v9581_v15  ;;  %v9585_v49 = vld [vmem:[#allocation2 + $0x19a] sm:$0xff]  ;;  %v9584_v15 = vld [vmem:[#allocation2 + $0x18a] sm:$0xff] }
 0x6a4   :  { %v8374_v22 = vpop.f32.mrf.mxu0  ;;  %v7865_v23 = vpop.f32.mrf.mxu1 }
 0x6a5   :  { %v18197_v59 = vadd.f32 %v8374_v22, %v7956_v6  ;;  %v7960_v1 = vadd.f32 %v7865_v23, %v18014_v13 }
 0x6a6   :  { %v13992_v10 = vpop.f32.mrf.mxu0  ;;  %v13870_v8 = vpop.f32.mrf.mxu1  ;;  %14333 = vmatmul.mubr.f32.gmra.mxu1 %v9582_v32 }
 0x6a7   :  { %v18200_v61 = vadd.f32 %v13992_v10, %v7959_v39  ;;  %v7963_v3 = vadd.f32 %v13870_v8, %v18018_v25  ;;  %14335 = vmatprep.mubr.f32.mxu1 %v9583_v28  ;;  %v9586_v39 = vld [vmem:[#allocation2 + $0x1a2] sm:$0xff] }
 0x6a8   :  { %v8384_v29 = vpop.f32.mrf.mxu0  ;;  %v7875_v45 = vpop.f32.mrf.mxu1 }
 0x6a9   :  { %v18203_v44 = vadd.f32 %v8384_v29, %v7958_v54  ;;  %v7962_v6 = vadd.f32 %v7875_v45, %v18021_v57  ;;  %v9587_v57 = vld [vmem:[#allocation2 + $0x1e2] sm:$0xff] }
 0x6aa   :  { %v13995_v22 = vpop.f32.mrf.mxu0  ;;  %v13873_v13 = vpop.f32.mrf.mxu1  ;;  %14336 = vmatmul.mubr.f32.gmra.mxu1 %v9584_v15 }
 0x6ab   :  { %v18206_v23 = vadd.f32 %v13995_v22, %v7961_v5  ;;  %v7965_v32 = vadd.f32 %v13873_v13, %v18024_v35  ;;  %14338 = vmatprep.mubr.f32.mxu1 %v9585_v49  ;;  %v9588_v13 = vld [vmem:[#allocation2 + $0x1ea] sm:$0xff] }
 0x6ac   :  { %v8394_v10 = vpop.f32.mrf.mxu0  ;;  %v7885_v25 = vpop.f32.mrf.mxu1 }
 0x6ad   :  { %v18209_v8 = vadd.f32 %v8394_v10, %v7960_v1  ;;  %v7964_v28 = vadd.f32 %v7885_v25, %v18027_v48  ;;  %v9589_v48 = vld [vmem:[#allocation2 + $0x1fa] sm:$0xff] }
 0x6ae   :  { %v13998_v54 = vpop.f32.mrf.mxu0  ;;  %v13876_v29 = vpop.f32.mrf.mxu1  ;;  %14339 = vmatmul.mubr.f32.gmra.mxu1 %v9586_v39 }
 0x6af   :  { %v18212_v45 = vadd.f32 %v13998_v54, %v7963_v3  ;;  %v7967_v15 = vadd.f32 %v13876_v29, %v18030_v4  ;;  %14341 = vmatprep.mubr.f32.mxu1 %v9587_v57  ;;  %v9590_v29 = vld [vmem:[#allocation2 + $0x202] sm:$0xff] }
 0x6b0   :  { %v8404_v5 = vpop.f32.mrf.mxu0  ;;  %v7895_v22 = vpop.f32.mrf.mxu1 }
 0x6b1   :  { %v18215_v35 = vadd.f32 %v8404_v5, %v7962_v6  ;;  %v7966_v49 = vadd.f32 %v7895_v22, %v18033_v47  ;;  %v9591_v5 = vld [vmem:[#allocation2 + $0x212] sm:$0xff] }
 0x6b2   :  { %v14001_v1 = vpop.f32.mrf.mxu0  ;;  %v14039_v10 = vpop.f32.mrf.mxu1  ;;  %14342 = vmatmul.mubr.f32.gmra.mxu1 %v9588_v13 }
 0x6b3   :  { %v18218_v25 = vadd.f32 %v14001_v1, %v7965_v32  ;;  %v18221_v39 = vadd.f32 %v14039_v10, %v18036_v38  ;;  %14344 = vmatprep.mubr.f32.mxu1 %v9589_v48 }
 0x6b4   :  { %v8414_v3 = vpop.f32.mrf.mxu0  ;;  %v8643_v4 = vpop.f32.mrf.mxu1 }
 0x6b5   :  { %v18223_v54 = vadd.f32 %v8414_v3, %v7964_v28  ;;  %v18226_v6 = vadd.f32 %v8643_v4, %v18039_v37  ;;  %v9592_v37 = vld [vmem:[#allocation2 + $0x21a] sm:$0xff]  ;;  %v9593_v3 = vld [vmem:[#allocation2 + $0x22a] sm:$0xff] }
 0x6b6   :  { %v14004_v47 = vpop.f32.mrf.mxu0  ;;  %v14042_v57 = vpop.f32.mrf.mxu1  ;;  %14345 = vmatmul.mubr.f32.gmra.mxu1 %v9590_v29 }
 0x6b7   :  { %v18228_v22 = vadd.f32 %v14004_v47, %v7967_v15  ;;  %v18231_v32 = vadd.f32 %v14042_v57, %v18042_v40  ;;  %14347 = vmatprep.mubr.f32.mxu1 %v9591_v5  ;;  %v9595_v57 = vld [vmem:[#allocation2 + $0x242] sm:$0xff] }
 0x6b8   :  { %v8424_v38 = vpop.f32.mrf.mxu0  ;;  %v8653_v13 = vpop.f32.mrf.mxu1 }
 0x6b9   :  { %v18233_v1 = vadd.f32 %v8424_v38, %v7966_v49  ;;  %v18236_v28 = vadd.f32 %v8653_v13, %v18045_v24  ;;  %v9594_v49 = vld [vmem:[#allocation2 + $0x232] sm:$0xff] }
 0x6ba   :  { %v18238_v10 = vpop.f32.mrf.mxu0  ;;  %v14045_v48 = vpop.f32.mrf.mxu1  ;;  %14348 = vmatmul.mubr.f32.gmra.mxu1 %v9592_v37  ;;  %v9596_v37 = vld [vmem:[#allocation2 + $0x24a] sm:$0xff] }
 0x6bb   :  { %v18241_v15 = vadd.f32 %v14045_v48, %v18048_v31  ;;  %14350 = vmatprep.mubr.f32.mxu1 %v9593_v3 }
 0x6bc   :  { %v18243_v40 = vpop.f32.mrf.mxu0  ;;  %v8663_v4 = vpop.f32.mrf.mxu1 }
 0x6bd   :  { %v18246_v29 = vadd.f32 %v8663_v4, %v18051_v63  ;;  %v9597_v63 = vld [vmem:[#allocation2 + $0x25a] sm:$0xff] }
 0x6be   :  { %v18248_v47 = vpop.f32.mrf.mxu0  ;;  %v14048_v24 = vpop.f32.mrf.mxu1  ;;  %14351 = vmatmul.mubr.f32.gmra.mxu1 %v9594_v49 }
 0x6bf   :  { %v18251_v5 = vadd.f32 %v14048_v24, %v18054_v0  ;;  %14353 = vmatprep.mubr.f32.mxu1 %v9595_v57  ;;  %v9598_v24 = vld [vmem:[#allocation2 + $0x262] sm:$0xff] }
 0x6c0   :  { %v18253_v38 = vpop.f32.mrf.mxu0  ;;  %v8673_v31 = vpop.f32.mrf.mxu1 }
 0x6c1   :  { %20311 = vst [vmem:[#allocation43_spill] sm:$0xff] %v18251_v5  ;;  %v18256_v13 = vadd.f32 %v8673_v31, %v18057_v41  ;;  %v9599_v5 = vld [vmem:[#allocation2 + $0x272] sm:$0xff] }
 0x6c2   :  { %v14051_v48 = vpop.f32.mrf.mxu1  ;;  %14354 = vmatmul.mubr.f32.gmra.mxu1 %v9596_v37  ;;  %v18261_v4 = vpop.f32.mrf.mxu0 }
 0x6c3   :  { %20312 = vst [vmem:[#allocation67_spill] sm:$0xff] %v18256_v13  ;;  %v18259_v3 = vadd.f32 %v14051_v48, %v18060_v51  ;;  %14356 = vmatprep.mubr.f32.mxu1 %v9597_v63  ;;  %20314 = vst [vmem:[#allocation69_spill] sm:$0xff] %v18261_v4  ;;  %v20317_v51 = vld [vmem:[#allocation57_spill] sm:$0xff]  ;;  %v9601_v13 = vld [vmem:[#allocation2 + $0x28a] sm:$0xff] }
 0x6c4   :  { %v8683_v49 = vpop.f32.mrf.mxu1  ;;  %v18269_v31 = vpop.f32.mrf.mxu0  ;;  %v9600_v63 = vld [vmem:[#allocation2 + $0x27a] sm:$0xff]  ;;  %v9603_v4 = vld [vmem:[#allocation2 + $0x2a2] sm:$0xff] }
 0x6c5   :  { %20313 = vst [vmem:[#allocation45_spill] sm:$0xff] %v18259_v3  ;;  %v18264_v0 = vadd.f32 %v8683_v49, %v18063_v9  ;;  %v20319_v9 = vld [vmem:[#allocation60_spill] sm:$0xff] }
 0x6c6   :  { %v14054_v57 = vpop.f32.mrf.mxu1  ;;  %14357 = vmatmul.mubr.f32.gmra.mxu1 %v9598_v24  ;;  %v18277_v24 = vpop.f32.mrf.mxu0 }
 0x6c7   :  { %20315 = vst [vmem:[#allocation46_spill] sm:$0xff] %v18264_v0  ;;  %v18267_v41 = vadd.f32 %v14054_v57, %v18066_v18  ;;  %14359 = vmatprep.mubr.f32.mxu1 %v9599_v5  ;;  %20321 = vst [vmem:[#allocation48_spill] sm:$0xff] %v18277_v24  ;;  %v20322_v18 = vld [vmem:[#allocation58_spill] sm:$0xff]  ;;  %v9602_v5 = vld [vmem:[#allocation2 + $0x292] sm:$0xff] }
 0x6c8   :  { %v8693_v37 = vpop.f32.mrf.mxu1  ;;  %v9605_v24 = vld [vmem:[#allocation2 + $0x2ba] sm:$0xff] }
 0x6c9   :  { %20316 = vst [vmem:[#allocation47_spill] sm:$0xff] %v18267_v41  ;;  %v18272_v48 = vadd.f32 %v8693_v37, %v20317_v51  ;;  %v20324_v37 = vld [vmem:[#allocation34_spill] sm:$0xff] }
 0x6ca   :  { %v14057_v3 = vpop.f32.mrf.mxu1  ;;  %14360 = vmatmul.mubr.f32.gmra.mxu1 %v9600_v63  ;;  %v18285_v63 = vpop.f32.mrf.mxu0 }
 0x6cb   :  { %20318 = vst [vmem:[#allocation70_spill] sm:$0xff] %v18272_v48  ;;  %v18275_v49 = vadd.f32 %v14057_v3, %v20319_v9  ;;  %14362 = vmatprep.mubr.f32.mxu1 %v9601_v13  ;;  %20326 = vst [vmem:[#allocation77_spill] sm:$0xff] %v18285_v63  ;;  %v20327_v3 = vld [vmem:[#allocation35_spill] sm:$0xff] }
 0x6cc   :  { %v8703_v0 = vpop.f32.mrf.mxu1  ;;  %v9604_v13 = vld [vmem:[#allocation2 + $0x2aa] sm:$0xff]  ;;  %v9607_v63 = vld [vmem:[#allocation2 + $0x2d2] sm:$0xff] }
 0x6cd   :  { %20320 = vst [vmem:[#allocation32_spill] sm:$0xff] %v18275_v49  ;;  %v18280_v57 = vadd.f32 %v8703_v0, %v20322_v18  ;;  %v20328_v0 = vld [vmem:[#allocation59_spill] sm:$0xff] }
 0x6ce   :  { %v14060_v41 = vpop.f32.mrf.mxu1  ;;  %14363 = vmatmul.mubr.f32.gmra.mxu1 %v9602_v5  ;;  %v18293_v5 = vpop.f32.mrf.mxu0 }
 0x6cf   :  { %20323 = vst [vmem:[#allocation72_spill] sm:$0xff] %v18280_v57  ;;  %v18283_v51 = vadd.f32 %v14060_v41, %v20324_v37  ;;  %14365 = vmatprep.mubr.f32.mxu1 %v9603_v4  ;;  %v20330_v41 = vld [vmem:[#allocation37_spill] sm:$0xff] }
 0x6d0   :  { %v8713_v48 = vpop.f32.mrf.mxu1  ;;  %v9606_v4 = vld [vmem:[#allocation2 + $0x2c2] sm:$0xff] }
 0x6d1   :  { %20325 = vst [vmem:[#allocation104_spill] sm:$0xff] %v18283_v51  ;;  %v18288_v9 = vadd.f32 %v8713_v48, %v20327_v3  ;;  %v18301_v3 = vpop.f32.mrf.mxu0 }
 0x6d2   :  { %v14063_v49 = vpop.f32.mrf.mxu1  ;;  %14366 = vmatmul.mubr.f32.gmra.mxu1 %v9604_v13 }
 0x6d3   :  { %v18291_v18 = vadd.f32 %v14063_v49, %v20328_v0  ;;  %14368 = vmatprep.mubr.f32.mxu1 %v9605_v24  ;;  %v9608_v24 = vld [vmem:[#allocation2 + $0x2da] sm:$0xff] }
 0x6d4   :  { %v8723_v57 = vpop.f32.mrf.mxu1 }
 0x6d5   :  { %20329 = vst [vmem:[#allocation49_spill] sm:$0xff] %v18291_v18  ;;  %v18296_v37 = vadd.f32 %v8723_v57, %v20330_v41  ;;  %v9609_v18 = vld [vmem:[#allocation2 + $0x2ea] sm:$0xff]  ;;  %v18309_v41 = vpop.f32.mrf.mxu0 }
 0x6d6   :  { %v14066_v51 = vpop.f32.mrf.mxu1  ;;  %14369 = vmatmul.mubr.f32.gmra.mxu1 %v9606_v4 }
 0x6d7   :  { %v18299_v48 = vadd.f32 %v14066_v51, %v18090_v2  ;;  %14371 = vmatprep.mubr.f32.mxu1 %v9607_v63  ;;  %v9610_v51 = vld [vmem:[#allocation2 + $0x2f2] sm:$0xff] }
 0x6d8   :  { %v8733_v13 = vpop.f32.mrf.mxu1 }
 0x6d9   :  { %20331 = vst [vmem:[#allocation50_spill] sm:$0xff] %v18299_v48  ;;  %v18304_v49 = vadd.f32 %v8733_v13, %v18093_v60  ;;  %v9611_v48 = vld [vmem:[#allocation2 + $0x302] sm:$0xff]  ;;  %v18317_v13 = vpop.f32.mrf.mxu0 }
 0x6da   :  { %v14069_v0 = vpop.f32.mrf.mxu1  ;;  %14372 = vmatmul.mubr.f32.gmra.mxu1 %v9608_v24 }
 0x6db   :  { %v18307_v57 = vadd.f32 %v14069_v0, %v18096_v42  ;;  %14374 = vmatprep.mubr.f32.mxu1 %v9609_v18  ;;  %v9612_v18 = vld [vmem:[#allocation2 + $0x30a] sm:$0xff] }
 0x6dc   :  { %v8743_v4 = vpop.f32.mrf.mxu1 }
 0x6dd   :  { %20332 = vst [vmem:[#allocation74_spill] sm:$0xff] %v18307_v57  ;;  %v18312_v2 = vadd.f32 %v8743_v4, %v18099_v7  ;;  %v9613_v57 = vld [vmem:[#allocation2 + $0x31a] sm:$0xff]  ;;  %v18325_v4 = vpop.f32.mrf.mxu0 }
 0x6de   :  { %v14072_v63 = vpop.f32.mrf.mxu1  ;;  %14375 = vmatmul.mubr.f32.gmra.mxu1 %v9610_v51 }
 0x6df   :  { %v18315_v60 = vadd.f32 %v14072_v63, %v18102_v30  ;;  %14377 = vmatprep.mubr.f32.mxu1 %v9611_v48  ;;  %v9614_v48 = vld [vmem:[#allocation2 + $0x322] sm:$0xff] }
 0x6e0   :  { %v8753_v24 = vpop.f32.mrf.mxu1 }
 0x6e1   :  { %20333 = vst [vmem:[#allocation79_spill] sm:$0xff] %v18315_v60  ;;  %v18320_v42 = vadd.f32 %v8753_v24, %v18105_v53  ;;  %v9615_v60 = vld [vmem:[#allocation2 + $0x332] sm:$0xff]  ;;  %v18333_v24 = vpop.f32.mrf.mxu0 }
 0x6e2   :  { %v14075_v0 = vpop.f32.mrf.mxu1  ;;  %14378 = vmatmul.mubr.f32.gmra.mxu1 %v9612_v18 }
 0x6e3   :  { %v18323_v7 = vadd.f32 %v14075_v0, %v18108_v11  ;;  %14380 = vmatprep.mubr.f32.mxu1 %v9613_v57  ;;  %v9617_v11 = vld [vmem:[#allocation2 + $0x34a] sm:$0xff]  ;;  %v9616_v0 = vld [vmem:[#allocation2 + $0x33a] sm:$0xff] }
 0x6e4   :  { %v8763_v51 = vpop.f32.mrf.mxu1 }
 0x6e5   :  { %20334 = vst [vmem:[#allocation51_spill] sm:$0xff] %v18323_v7  ;;  %v18328_v30 = vadd.f32 %v8763_v51, %v18112_v52  ;;  %v9618_v51 = vld [vmem:[#allocation2 + $0x352] sm:$0xff] }
 0x6e6   :  { %v14078_v63 = vpop.f32.mrf.mxu1  ;;  %14381 = vmatmul.mubr.f32.gmra.mxu1 %v9614_v48  ;;  %v18341_v48 = vpop.f32.mrf.mxu0 }
 0x6e7   :  { %v18331_v53 = vadd.f32 %v14078_v63, %v18116_v14  ;;  %14383 = vmatprep.mubr.f32.mxu1 %v9615_v60 }
 0x6e8   :  { %v8773_v18 = vpop.f32.mrf.mxu1 }
 0x6e9   :  { %20335 = vst [vmem:[#allocation52_spill] sm:$0xff] %v18331_v53  ;;  %v18336_v57 = vadd.f32 %v8773_v18, %v18119_v16  ;;  %v18349_v16 = vpop.f32.mrf.mxu0 }
 0x6ea   :  { %v14081_v7 = vpop.f32.mrf.mxu1  ;;  %14384 = vmatmul.mubr.f32.gmra.mxu1 %v9616_v0 }
 0x6eb   :  { %v18339_v52 = vadd.f32 %v14081_v7, %v18122_v46  ;;  %14386 = vmatprep.mubr.f32.mxu1 %v9617_v11  ;;  %v18357_v11 = vpop.f32.mrf.mxu0 }
 0x6ec   :  { %v8783_v14 = vpop.f32.mrf.mxu1 }
 0x6ed   :  { %20336 = vst [vmem:[#allocation76_spill] sm:$0xff] %v18339_v52  ;;  %v18344_v60 = vadd.f32 %v8783_v14, %v18125_v34  ;;  %v18365_v14 = vpop.f32.mrf.mxu0 }
 0x6ee   :  { %v14084_v63 = vpop.f32.mrf.mxu1  ;;  %14387 = vmatmul.mubr.f32.gmra.mxu1 %v9618_v51 }
 0x6ef   :  { %20337 = vst [vmem:[#allocation81_spill] sm:$0xff] %v18344_v60  ;;  %v18347_v53 = vadd.f32 %v14084_v63, %v18128_v50  ;;  %v20358_v60 = vld [vmem:[#allocation65_spill] sm:$0xff] }
 0x6f0   :  { %v8793_v18 = vpop.f32.mrf.mxu1 }
 0x6f1   :  { %20338 = vst [vmem:[#allocation16_spill] sm:$0xff] %v18347_v53  ;;  %v18352_v0 = vadd.f32 %v8793_v18, %v18131_v21  ;;  %v20351_v53 = vld [vmem:[#allocation38_spill] sm:$0xff] }
 0x6f2   :  { %v14087_v46 = vpop.f32.mrf.mxu1 }
 0x6f3   :  { %20339 = vst [vmem:[#allocation33_spill] sm:$0xff] %v18352_v0  ;;  %v18355_v7 = vadd.f32 %v14087_v46, %v18134_v56  ;;  %v18373_v46 = vpop.f32.mrf.mxu0  ;;  %v20355_v0 = vld [vmem:[#allocation63_spill] sm:$0xff] }
 0x6f4   :  { %v8803_v52 = vpop.f32.mrf.mxu1 }
 0x6f5   :  { %20340 = vst [vmem:[#allocation78_spill] sm:$0xff] %v18355_v7  ;;  %v18360_v34 = vadd.f32 %v8803_v52, %v18137_v26 }
 0x6f6   :  { %v14090_v51 = vpop.f32.mrf.mxu1 }
 0x6f7   :  { %20341 = vst [vmem:[#allocation83_spill] sm:$0xff] %v18360_v34  ;;  %v18363_v50 = vadd.f32 %v14090_v51, %v18140_v36  ;;  %v18381_v51 = vpop.f32.mrf.mxu0  ;;  %v20347_v34 = vld [vmem:[#allocation61_spill] sm:$0xff] }
 0x6f8   :  { %v8813_v63 = vpop.f32.mrf.mxu1 }
 0x6f9   :  { %20342 = vst [vmem:[#allocation17_spill] sm:$0xff] %v18363_v50  ;;  %v18368_v21 = vadd.f32 %v8813_v63, %v18143_v33 }
 0x6fa   :  { %v14093_v18 = vpop.f32.mrf.mxu1 }
 0x6fb   :  { %20343 = vst [vmem:[#allocation18_spill] sm:$0xff] %v18368_v21  ;;  %v18371_v56 = vadd.f32 %v14093_v18, %v18146_v55  ;;  %v20349_v21 = vld [vmem:[#allocation66_spill] sm:$0xff]  ;;  %v18389_v18 = vpop.f32.mrf.mxu0 }
 0x6fc   :  { %v8823_v7 = vpop.f32.mrf.mxu1 }
 0x6fd   :  { %20344 = vst [vmem:[#allocation80_spill] sm:$0xff] %v18371_v56  ;;  %v18376_v26 = vadd.f32 %v8823_v7, %v18149_v19 }
 0x6fe   :  { %v14096_v52 = vpop.f32.mrf.mxu1 }
 0x6ff   :  { %20345 = vst [vmem:[#allocation85_spill] sm:$0xff] %v18376_v26  ;;  %v18379_v36 = vadd.f32 %v14096_v52, %v18152_v20  ;;  %v20353_v26 = vld [vmem:[#allocation39_spill] sm:$0xff]  ;;  %v18397_v52 = vpop.f32.mrf.mxu0 }
 0x700   :  { %v8833_v50 = vpop.f32.mrf.mxu1 }
 0x701   :  { %20346 = vst [vmem:[#allocation19_spill] sm:$0xff] %v18379_v36  ;;  %v18384_v33 = vadd.f32 %v8833_v50, %v20347_v34 }
 0x702   :  { %v14099_v63 = vpop.f32.mrf.mxu1 }
 0x703   :  { %20348 = vst [vmem:[#allocation20_spill] sm:$0xff] %v18384_v33  ;;  %v18387_v55 = vadd.f32 %v14099_v63, %v20349_v21  ;;  %v20356_v33 = vld [vmem:[#allocation68_spill] sm:$0xff]  ;;  %v18405_v63 = vpop.f32.mrf.mxu0 }
 0x704   :  { %v8843_v56 = vpop.f32.mrf.mxu1 }
 0x705   :  { %20350 = vst [vmem:[#allocation82_spill] sm:$0xff] %v18387_v55  ;;  %v18392_v19 = vadd.f32 %v8843_v56, %v20351_v53 }
 0x706   :  { %v14102_v7 = vpop.f32.mrf.mxu1 }
 0x707   :  { %20352 = vst [vmem:[#allocation21_spill] sm:$0xff] %v18392_v19  ;;  %v18395_v20 = vadd.f32 %v14102_v7, %v20353_v26  ;;  %v18413_v7 = vpop.f32.mrf.mxu0  ;;  %v20360_v19 = vld [vmem:[#allocation42_spill] sm:$0xff] }
 0x708   :  { %v8853_v36 = vpop.f32.mrf.mxu1 }
 0x709   :  { %20354 = vst [vmem:[#allocation13_spill] sm:$0xff] %v18395_v20  ;;  %v18400_v34 = vadd.f32 %v8853_v36, %v20355_v0 }
 0x70a   :  { %v14105_v50 = vpop.f32.mrf.mxu1 }
 0x70b   :  { %v18403_v21 = vadd.f32 %v14105_v50, %v20356_v33  ;;  %v18421_v50 = vpop.f32.mrf.mxu0 }
 0x70c   :  { %v8863_v55 = vpop.f32.mrf.mxu1 }
 0x70d   :  { %20357 = vst [vmem:[#allocation84_spill] sm:$0xff] %v18403_v21  ;;  %v18408_v53 = vadd.f32 %v8863_v55, %v20358_v60 }
 0x70e   :  { %v14108_v56 = vpop.f32.mrf.mxu1 }
 0x70f   :  { %v18411_v26 = vadd.f32 %v14108_v56, %v18176_v58  ;;  %v18429_v56 = vpop.f32.mrf.mxu0 }
 0x710   :  { %v8873_v20 = vpop.f32.mrf.mxu1 }
 0x711   :  { %20359 = vst [vmem:[#allocation14_spill] sm:$0xff] %v18411_v26  ;;  %v18416_v0 = vadd.f32 %v8873_v20, %v20360_v19 }
 0x712   :  { %v14111_v36 = vpop.f32.mrf.mxu1 }
 0x713   :  { %v18419_v33 = vadd.f32 %v14111_v36, %v18182_v27  ;;  %v18437_v36 = vpop.f32.mrf.mxu0 }
 0x714   :  { %v8883_v21 = vpop.f32.mrf.mxu1 }
 0x715   :  { %20361 = vst [vmem:[#allocation89_spill] sm:$0xff] %v18419_v33  ;;  %v18424_v60 = vadd.f32 %v8883_v21, %v18185_v12 }
 0x716   :  { %v14114_v55 = vpop.f32.mrf.mxu1 }
 0x717   :  { %v18427_v58 = vadd.f32 %v14114_v55, %v18188_v62  ;;  %v18445_v55 = vpop.f32.mrf.mxu0 }
 0x718   :  { %v8893_v26 = vpop.f32.mrf.mxu1 }
 0x719   :  { %20362 = vst [vmem:[#allocation15_spill] sm:$0xff] %v18427_v58  ;;  %v18432_v19 = vadd.f32 %v8893_v26, %v18191_v17 }
 0x71a   :  { %v14117_v20 = vpop.f32.mrf.mxu1 }
 0x71b   :  { %v18435_v27 = vadd.f32 %v14117_v20, %v18194_v43  ;;  %v18453_v20 = vpop.f32.mrf.mxu0 }
 0x71c   :  { %v8903_v33 = vpop.f32.mrf.mxu1 }
 0x71d   :  { %20363 = vst [vmem:[#allocation86_spill] sm:$0xff] %v18435_v27  ;;  %v18440_v12 = vadd.f32 %v8903_v33, %v18197_v59 }
 0x71e   :  { %v14120_v21 = vpop.f32.mrf.mxu1 }
 0x71f   :  { %v18443_v62 = vadd.f32 %v14120_v21, %v18200_v61  ;;  %v18461_v21 = vpop.f32.mrf.mxu0 }
 0x720   :  { %v8913_v58 = vpop.f32.mrf.mxu1 }
 0x721   :  { %20364 = vst [vmem:[#allocation91_spill] sm:$0xff] %v18443_v62  ;;  %v18448_v17 = vadd.f32 %v8913_v58, %v18203_v44 }
 0x722   :  { %v14123_v26 = vpop.f32.mrf.mxu1 }
 0x723   :  { %v18451_v43 = vadd.f32 %v14123_v26, %v18206_v23  ;;  %v18469_v26 = vpop.f32.mrf.mxu0 }
 0x724   :  { %v8923_v27 = vpop.f32.mrf.mxu1 }
 0x725   :  { %20365 = vst [vmem:[#allocation87_spill] sm:$0xff] %v18451_v43  ;;  %v18456_v59 = vadd.f32 %v8923_v27, %v18209_v8 }
 0x726   :  { %v14126_v33 = vpop.f32.mrf.mxu1 }
 0x727   :  { %v18459_v61 = vadd.f32 %v14126_v33, %v18212_v45  ;;  %v18477_v33 = vpop.f32.mrf.mxu0 }
 0x728   :  { %v8933_v62 = vpop.f32.mrf.mxu1 }
 0x729   :  { %20366 = vst [vmem:[#allocation22_spill] sm:$0xff] %v18459_v61  ;;  %v18464_v44 = vadd.f32 %v8933_v62, %v18215_v35 }
 0x72a   :  { %v14129_v58 = vpop.f32.mrf.mxu1 }
 0x72b   :  { %20367 = vst [vmem:[#allocation23_spill] sm:$0xff] %v18464_v44  ;;  %v18467_v23 = vadd.f32 %v14129_v58, %v18218_v25  ;;  %v9491_v25 = vadd.f32 %v18243_v40, %v18226_v6  ;;  %v18484_v58 = vpop.f32.mrf.mxu0  ;;  %v9494_v6 = vadd.f32 %v18248_v47, %v18231_v32 }
 0x72c   :  { %v8943_v43 = vpop.f32.mrf.mxu1 }
 0x72d   :  { %20368 = vst [vmem:[#allocation88_spill] sm:$0xff] %v18467_v23  ;;  %v18472_v8 = vadd.f32 %v8943_v43, %v18223_v54  ;;  %v9492_v54 = vadd.f32 %v18238_v10, %v18221_v39  ;;  %v9495_v10 = vadd.f32 %v18269_v31, %v18246_v29 }
 0x72e   :  { %v14132_v27 = vpop.f32.mrf.mxu1 }
 0x72f   :  { %20369 = vst [vmem:[#allocation93_spill] sm:$0xff] %v18472_v8  ;;  %v18475_v45 = vadd.f32 %v14132_v27, %v18228_v22  ;;  %v9493_v27 = vadd.f32 %v18253_v38, %v18236_v28 }
 0x730   :  { %v8953_v61 = vpop.f32.mrf.mxu1 }
 0x731   :  { %20370 = vst [vmem:[#allocation24_spill] sm:$0xff] %v18475_v45  ;;  %v18480_v35 = vadd.f32 %v8953_v61, %v18233_v1  ;;  %v18494_v1 = vpop.f32.mrf.mxu0 }
 0x732   :  { %v14295_v62 = vpop.f32.mrf.mxu1 }
 0x733   :  { %20371 = vst [vmem:[#allocation53_spill] sm:$0xff] %v18480_v35  ;;  %v18492_v45 = vadd.f32 %v14295_v62, %v9492_v54  ;;  %v18507_v38 = vpop.f32.mrf.mxu0 }
 0x734   :  { %v9701_v23 = vpop.f32.mrf.mxu1 }
 0x735   :  { %v18488_v43 = vadd.f32 %v9701_v23, %v9491_v25  ;;  %20373 = vst [vmem:[#allocation95_spill] sm:$0xff] %v18492_v45  ;;  %v20376_v25 = vld [vmem:[#allocation69_spill] sm:$0xff]  ;;  %v18519_v31 = vpop.f32.mrf.mxu0 }
 0x736   :  { %v14298_v22 = vpop.f32.mrf.mxu1  ;;  %v9496_v54 = vadd.f32 %v20376_v25, %v18241_v15 }
 0x737   :  { %20372 = vst [vmem:[#allocation90_spill] sm:$0xff] %v18488_v43  ;;  %v10084_v40 = vadd.f32 %v18492_v45, %v18488_v43  ;;  %v18504_v23 = vadd.f32 %v14298_v22, %v9494_v6  ;;  %v20379_v45 = vld [vmem:[#allocation77_spill] sm:$0xff]  ;;  %v20380_v6 = vld [vmem:[#allocation43_spill] sm:$0xff] }
 0x738   :  { %v9711_v61 = vpop.f32.mrf.mxu1 }
 0x739   :  { %v18500_v35 = vadd.f32 %v9711_v61, %v9493_v27  ;;  %20375 = vst [vmem:[#allocation54_spill] sm:$0xff] %v18504_v23  ;;  %v20378_v61 = vld [vmem:[#allocation67_spill] sm:$0xff] }
 0x73a   :  { %v14301_v39 = vpop.f32.mrf.mxu1  ;;  %v9497_v43 = vadd.f32 %v20379_v45, %v20378_v61 }
 0x73b   :  { %20374 = vst [vmem:[#allocation25_spill] sm:$0xff] %v18500_v35  ;;  %v10085_v28 = vadd.f32 %v10084_v40, %v18500_v35  ;;  %v18516_v8 = vadd.f32 %v14301_v39, %v9496_v54  ;;  %v20381_v40 = vld [vmem:[#allocation48_spill] sm:$0xff]  ;;  %v18531_v39 = vpop.f32.mrf.mxu0 }
 0x73c   :  { %v9721_v62 = vpop.f32.mrf.mxu1  ;;  %v9498_v35 = vadd.f32 %v20381_v40, %v20380_v6 }
 0x73d   :  { %v10086_v32 = vadd.f32 %v10085_v28, %v18504_v23  ;;  %v18512_v47 = vadd.f32 %v9721_v62, %v9495_v10  ;;  %v20383_v28 = vld [vmem:[#allocation46_spill] sm:$0xff] }
 0x73e   :  { %v14304_v27 = vpop.f32.mrf.mxu1  ;;  %v9499_v62 = vadd.f32 %v18301_v3, %v20383_v28 }
 0x73f   :  { %20377 = vst [vmem:[#allocation92_spill] sm:$0xff] %v18512_v47  ;;  %v10087_v29 = vadd.f32 %v10086_v32, %v18512_v47  ;;  %v18528_v25 = vadd.f32 %v14304_v27, %v9498_v35  ;;  %v20384_v32 = vld [vmem:[#allocation45_spill] sm:$0xff]  ;;  %v18543_v35 = vpop.f32.mrf.mxu0 }
 0x740   :  { %v9731_v22 = vpop.f32.mrf.mxu1  ;;  %v9500_v61 = vadd.f32 %v18293_v5, %v20384_v32 }
 0x741   :  { %v18523_v44 = vadd.f32 %v9731_v22, %v9497_v43  ;;  %v10088_v15 = vadd.f32 %v10087_v29, %v18516_v8  ;;  %v20386_v29 = vld [vmem:[#allocation70_spill] sm:$0xff] }
 0x742   :  { %v14307_v10 = vpop.f32.mrf.mxu1  ;;  %v9501_v6 = vadd.f32 %v18317_v13, %v20386_v29 }
 0x743   :  { %20382 = vst [vmem:[#allocation97_spill] sm:$0xff] %v18523_v44  ;;  %v10089_v45 = vadd.f32 %v10088_v15, %v18523_v44  ;;  %v18540_v40 = vadd.f32 %v14307_v10, %v9500_v61  ;;  %v20387_v15 = vld [vmem:[#allocation47_spill] sm:$0xff]  ;;  %v18555_v10 = vpop.f32.mrf.mxu0 }
 0x744   :  { %v9741_v54 = vpop.f32.mrf.mxu1  ;;  %v9502_v28 = vadd.f32 %v18309_v41, %v20387_v15 }
 0x745   :  { %v18535_v47 = vadd.f32 %v9741_v54, %v9499_v62  ;;  %v10090_v43 = vadd.f32 %v10089_v45, %v18528_v25  ;;  %v20388_v45 = vld [vmem:[#allocation72_spill] sm:$0xff] }
 0x746   :  { %v14310_v22 = vpop.f32.mrf.mxu1  ;;  %v9503_v54 = vadd.f32 %v18333_v24, %v20388_v45 }
 0x747   :  { %20385 = vst [vmem:[#allocation26_spill] sm:$0xff] %v18535_v47  ;;  %v10091_v3 = vadd.f32 %v10090_v43, %v18535_v47  ;;  %v18552_v32 = vadd.f32 %v14310_v22, %v9502_v28  ;;  %v20389_v43 = vld [vmem:[#allocation32_spill] sm:$0xff]  ;;  %v18567_v22 = vpop.f32.mrf.mxu0 }
 0x748   :  { %v9751_v27 = vpop.f32.mrf.mxu1  ;;  %v9504_v29 = vadd.f32 %v18325_v4, %v20389_v43  ;;  %v20390_v28 = vld [vmem:[#allocation104_spill] sm:$0xff]  ;;  %v20391_v43 = vld [vmem:[#allocation49_spill] sm:$0xff] }
 0x749   :  { %v18547_v44 = vadd.f32 %v9751_v27, %v9501_v6  ;;  %v10092_v5 = vadd.f32 %v10091_v3, %v18540_v40  ;;  %v9505_v3 = vadd.f32 %v18349_v16, %v18288_v9  ;;  %v18579_v16 = vpop.f32.mrf.mxu0 }
 0x74a   :  { %v14313_v62 = vpop.f32.mrf.mxu1 }
 0x74b   :  { %v10093_v13 = vadd.f32 %v10092_v5, %v18547_v44  ;;  %v18564_v27 = vadd.f32 %v14313_v62, %v9504_v29  ;;  %v9506_v5 = vadd.f32 %v18341_v48, %v20390_v28  ;;  %v9508_v29 = vadd.f32 %v18357_v11, %v20391_v43  ;;  %v20392_v28 = vld [vmem:[#allocation50_spill] sm:$0xff] }
 0x74c   :  { %v9761_v61 = vpop.f32.mrf.mxu1  ;;  %v20393_v43 = vld [vmem:[#allocation74_spill] sm:$0xff] }
 0x74d   :  { %v18559_v47 = vadd.f32 %v9761_v61, %v9503_v54  ;;  %v10094_v41 = vadd.f32 %v10093_v13, %v18552_v32  ;;  %v9507_v13 = vadd.f32 %v18365_v14, %v18296_v37  ;;  %v18591_v14 = vpop.f32.mrf.mxu0 }
 0x74e   :  { %v14316_v6 = vpop.f32.mrf.mxu1 }
 0x74f   :  { %v10095_v24 = vadd.f32 %v10094_v41, %v18559_v47  ;;  %v18576_v61 = vadd.f32 %v14316_v6, %v9506_v5  ;;  %v9510_v5 = vadd.f32 %v18373_v46, %v20392_v28  ;;  %v20395_v28 = vld [vmem:[#allocation79_spill] sm:$0xff] }
 0x750   :  { %v9771_v15 = vpop.f32.mrf.mxu1 }
 0x751   :  { %v18571_v45 = vadd.f32 %v9771_v15, %v9505_v3  ;;  %v10096_v4 = vadd.f32 %v10095_v24, %v18564_v27  ;;  %v9509_v24 = vadd.f32 %v18381_v51, %v18304_v49  ;;  %v18603_v51 = vpop.f32.mrf.mxu0 }
 0x752   :  { %v14319_v54 = vpop.f32.mrf.mxu1 }
 0x753   :  { %v10097_v9 = vadd.f32 %v10096_v4, %v18571_v45  ;;  %v18588_v15 = vadd.f32 %v14319_v54, %v9508_v29  ;;  %v9512_v29 = vadd.f32 %v18389_v18, %v20393_v43  ;;  %v20397_v43 = vld [vmem:[#allocation51_spill] sm:$0xff] }
 0x754   :  { %v9781_v62 = vpop.f32.mrf.mxu1 }
 0x755   :  { %v18583_v41 = vadd.f32 %v9781_v62, %v9507_v13  ;;  %v10098_v48 = vadd.f32 %v10097_v9, %v18576_v61  ;;  %v9511_v9 = vadd.f32 %v18397_v52, %v18312_v2  ;;  %v18615_v52 = vpop.f32.mrf.mxu0 }
 0x756   :  { %v14322_v3 = vpop.f32.mrf.mxu1 }
 0x757   :  { %v10099_v37 = vadd.f32 %v10098_v48, %v18583_v41  ;;  %v18600_v62 = vadd.f32 %v14322_v3, %v9510_v5  ;;  %v9514_v5 = vadd.f32 %v18405_v63, %v20395_v28  ;;  %v20399_v28 = vld [vmem:[#allocation52_spill] sm:$0xff] }
 0x758   :  { %v9791_v6 = vpop.f32.mrf.mxu1 }
 0x759   :  { %v18595_v4 = vadd.f32 %v9791_v6, %v9509_v24  ;;  %v10100_v11 = vadd.f32 %v10099_v37, %v18588_v15  ;;  %v9513_v37 = vadd.f32 %v18413_v7, %v18320_v42  ;;  %v18627_v7 = vpop.f32.mrf.mxu0 }
 0x75a   :  { %v14325_v13 = vpop.f32.mrf.mxu1 }
 0x75b   :  { %v10101_v49 = vadd.f32 %v10100_v11, %v18595_v4  ;;  %v18612_v6 = vadd.f32 %v14325_v13, %v9512_v29  ;;  %v9516_v29 = vadd.f32 %v18421_v50, %v20397_v43 }
 0x75c   :  { %v9801_v54 = vpop.f32.mrf.mxu1 }
 0x75d   :  { %v18607_v48 = vadd.f32 %v9801_v54, %v9511_v9  ;;  %v10102_v46 = vadd.f32 %v10101_v49, %v18600_v62  ;;  %v9515_v49 = vadd.f32 %v18429_v56, %v18328_v30  ;;  %v18639_v56 = vpop.f32.mrf.mxu0 }
 0x75e   :  { %v14328_v24 = vpop.f32.mrf.mxu1 }
 0x75f   :  { %20394 = vst [vmem:[#allocation27_spill] sm:$0xff] %v18607_v48  ;;  %v10103_v2 = vadd.f32 %v10102_v46, %v18607_v48  ;;  %v18624_v54 = vadd.f32 %v14328_v24, %v9514_v5  ;;  %v9518_v5 = vadd.f32 %v18437_v36, %v20399_v28 }
 0x760   :  { %v9811_v3 = vpop.f32.mrf.mxu1 }
 0x761   :  { %v18619_v11 = vadd.f32 %v9811_v3, %v9513_v37  ;;  %v10104_v18 = vadd.f32 %v10103_v2, %v18612_v6  ;;  %v9517_v2 = vadd.f32 %v18445_v55, %v18336_v57  ;;  %v18651_v55 = vpop.f32.mrf.mxu0 }
 0x762   :  { %v14331_v9 = vpop.f32.mrf.mxu1 }
 0x763   :  { %20396 = vst [vmem:[#allocation94_spill] sm:$0xff] %v18619_v11  ;;  %v10105_v42 = vadd.f32 %v10104_v18, %v18619_v11  ;;  %v18636_v3 = vadd.f32 %v14331_v9, %v9516_v29  ;;  %v20402_v29 = vld [vmem:[#allocation76_spill] sm:$0xff] }
 0x764   :  { %v9821_v13 = vpop.f32.mrf.mxu1 }
 0x765   :  { %v18631_v46 = vadd.f32 %v9821_v13, %v9515_v49  ;;  %v10106_v63 = vadd.f32 %v10105_v42, %v18624_v54  ;;  %v20401_v42 = vld [vmem:[#allocation81_spill] sm:$0xff] }
 0x766   :  { %v14334_v37 = vpop.f32.mrf.mxu1  ;;  %v9519_v13 = vadd.f32 %v18461_v21, %v20401_v42 }
 0x767   :  { %20398 = vst [vmem:[#allocation99_spill] sm:$0xff] %v18631_v46  ;;  %v10107_v30 = vadd.f32 %v10106_v63, %v18631_v46  ;;  %v18648_v43 = vadd.f32 %v14334_v37, %v9518_v5  ;;  %v9520_v63 = vadd.f32 %v18453_v20, %v20402_v29  ;;  %v18663_v37 = vpop.f32.mrf.mxu0 }
 0x768   :  { %v9831_v24 = vpop.f32.mrf.mxu1 }
 0x769   :  { %v18643_v18 = vadd.f32 %v9831_v24, %v9517_v2  ;;  %v10108_v50 = vadd.f32 %v10107_v30, %v18636_v3  ;;  %v20404_v30 = vld [vmem:[#allocation33_spill] sm:$0xff] }
 0x76a   :  { %v14337_v49 = vpop.f32.mrf.mxu1  ;;  %v9521_v24 = vadd.f32 %v18477_v33, %v20404_v30 }
 0x76b   :  { %20400 = vst [vmem:[#allocation28_spill] sm:$0xff] %v18643_v18  ;;  %v10109_v57 = vadd.f32 %v10108_v50, %v18643_v18  ;;  %v18660_v28 = vadd.f32 %v14337_v49, %v9520_v63  ;;  %v20405_v50 = vld [vmem:[#allocation16_spill] sm:$0xff]  ;;  %v18675_v49 = vpop.f32.mrf.mxu0 }
 0x76c   :  { %v9841_v9 = vpop.f32.mrf.mxu1  ;;  %v9522_v42 = vadd.f32 %v18469_v26, %v20405_v50 }
 0x76d   :  { %v18655_v46 = vadd.f32 %v9841_v9, %v9519_v13  ;;  %v10110_v36 = vadd.f32 %v10109_v57, %v18648_v43  ;;  %v20407_v57 = vld [vmem:[#allocation83_spill] sm:$0xff] }
 0x76e   :  { %v14340_v2 = vpop.f32.mrf.mxu1  ;;  %v9523_v9 = vadd.f32 %v18494_v1, %v20407_v57 }
 0x76f   :  { %20403 = vst [vmem:[#allocation55_spill] sm:$0xff] %v18655_v46  ;;  %v10111_v21 = vadd.f32 %v10110_v36, %v18655_v46  ;;  %v18672_v29 = vadd.f32 %v14340_v2, %v9522_v42  ;;  %v20408_v36 = vld [vmem:[#allocation78_spill] sm:$0xff]  ;;  %v9412_v2 = vpop.f32.mrf.mxu0 }
 0x770   :  { %v9851_v5 = vpop.f32.mrf.mxu1  ;;  %v9524_v30 = vadd.f32 %v18484_v58, %v20408_v36 }
 0x771   :  { %v18667_v18 = vadd.f32 %v9851_v5, %v9521_v24  ;;  %v10112_v20 = vadd.f32 %v10111_v21, %v18660_v28  ;;  %v20410_v21 = vld [vmem:[#allocation18_spill] sm:$0xff] }
 0x772   :  { %v14343_v13 = vpop.f32.mrf.mxu1  ;;  %v9525_v5 = vadd.f32 %v18519_v31, %v20410_v21 }
 0x773   :  { %20406 = vst [vmem:[#allocation96_spill] sm:$0xff] %v18667_v18  ;;  %v10113_v33 = vadd.f32 %v10112_v20, %v18667_v18  ;;  %v18684_v50 = vadd.f32 %v14343_v13, %v9524_v30  ;;  %v20411_v20 = vld [vmem:[#allocation17_spill] sm:$0xff]  ;;  %v18697_v13 = vpop.f32.mrf.mxu0 }
 0x774   :  { %v9861_v63 = vpop.f32.mrf.mxu1  ;;  %v9526_v57 = vadd.f32 %v18507_v38, %v20411_v20 }
 0x775   :  { %v18679_v46 = vadd.f32 %v9861_v63, %v9523_v9  ;;  %v10114_v26 = vadd.f32 %v10113_v33, %v18672_v29  ;;  %v20413_v63 = vld [vmem:[#allocation85_spill] sm:$0xff] }
 0x776   :  { %v14346_v24 = vpop.f32.mrf.mxu1  ;;  %v9527_v33 = vadd.f32 %v18543_v35, %v20413_v63 }
 0x777   :  { %20409 = vst [vmem:[#allocation101_spill] sm:$0xff] %v18679_v46  ;;  %v10115_v1 = vadd.f32 %v10114_v26, %v18679_v46  ;;  %v18694_v36 = vadd.f32 %v14346_v24, %v9526_v57  ;;  %v20414_v26 = vld [vmem:[#allocation80_spill] sm:$0xff]  ;;  %v9422_v24 = vpop.f32.mrf.mxu0 }
 0x778   :  { %v9871_v42 = vpop.f32.mrf.mxu1  ;;  %v9528_v21 = vadd.f32 %v18531_v39, %v20414_v26 }
 0x779   :  { %v18689_v18 = vadd.f32 %v9871_v42, %v9525_v5  ;;  %v10116_v58 = vadd.f32 %v10115_v1, %v18684_v50  ;;  %v20416_v1 = vld [vmem:[#allocation20_spill] sm:$0xff] }
 0x77a   :  { %v14349_v9 = vpop.f32.mrf.mxu1  ;;  %v9529_v42 = vadd.f32 %v18567_v22, %v20416_v1 }
 0x77b   :  { %20412 = vst [vmem:[#allocation98_spill] sm:$0xff] %v18689_v18  ;;  %v10117_v31 = vadd.f32 %v10116_v58, %v18689_v18  ;;  %v18706_v20 = vadd.f32 %v14349_v9, %v9528_v21  ;;  %v20417_v58 = vld [vmem:[#allocation19_spill] sm:$0xff]  ;;  %v14245_v9 = vpop.f32.mrf.mxu0 }
 0x77c   :  { %v9881_v30 = vpop.f32.mrf.mxu1  ;;  %v9530_v63 = vadd.f32 %v18555_v10, %v20417_v58 }
 0x77d   :  { %v18701_v46 = vadd.f32 %v9881_v30, %v9527_v33  ;;  %v10118_v38 = vadd.f32 %v10117_v31, %v18694_v36  ;;  %v20418_v30 = vld [vmem:[#allocation21_spill] sm:$0xff] }
 0x77e   :  { %v14352_v5 = vpop.f32.mrf.mxu1  ;;  %v9531_v31 = vadd.f32 %v18591_v14, %v20418_v30 }
 0x77f   :  { %20415 = vst [vmem:[#allocation29_spill] sm:$0xff] %v18701_v46  ;;  %v10119_v35 = vadd.f32 %v10118_v38, %v18701_v46  ;;  %v18716_v26 = vadd.f32 %v14352_v5, %v9530_v63  ;;  %v20419_v38 = vld [vmem:[#allocation82_spill] sm:$0xff]  ;;  %v9432_v5 = vpop.f32.mrf.mxu0  ;;  %v20420_v63 = vld [vmem:[#allocation13_spill] sm:$0xff] }
 0x780   :  { %v9891_v57 = vpop.f32.mrf.mxu1  ;;  %v9532_v1 = vadd.f32 %v18579_v16, %v20419_v38  ;;  %v20421_v38 = vld [vmem:[#allocation84_spill] sm:$0xff] }
 0x781   :  { %v18711_v18 = vadd.f32 %v9891_v57, %v9529_v42  ;;  %v10120_v39 = vadd.f32 %v10119_v35, %v18706_v20  ;;  %v9533_v35 = vadd.f32 %v18615_v52, %v18400_v34  ;;  %v14248_v52 = vpop.f32.mrf.mxu0 }
 0x782   :  { %v14355_v33 = vpop.f32.mrf.mxu1 }
 0x783   :  { %v10121_v22 = vadd.f32 %v10120_v39, %v18711_v18  ;;  %v18726_v57 = vadd.f32 %v14355_v33, %v9532_v1  ;;  %v9534_v39 = vadd.f32 %v18603_v51, %v20420_v63  ;;  %v9536_v1 = vadd.f32 %v18627_v7, %v20421_v38  ;;  %v20423_v63 = vld [vmem:[#allocation14_spill] sm:$0xff]  ;;  %v20424_v38 = vld [vmem:[#allocation89_spill] sm:$0xff] }
 0x784   :  { %v9901_v21 = vpop.f32.mrf.mxu1 }
 0x785   :  { %v18721_v46 = vadd.f32 %v9901_v21, %v9531_v31  ;;  %v10122_v10 = vadd.f32 %v10121_v22, %v18716_v26  ;;  %v9535_v22 = vadd.f32 %v18639_v56, %v18408_v53  ;;  %v9442_v56 = vpop.f32.mrf.mxu0 }
 0x786   :  { %v14358_v42 = vpop.f32.mrf.mxu1 }
 0x787   :  { %v10123_v14 = vadd.f32 %v10122_v10, %v18721_v46  ;;  %v18736_v21 = vadd.f32 %v14358_v42, %v9534_v39  ;;  %v9538_v39 = vadd.f32 %v18651_v55, %v20423_v63  ;;  %v20426_v63 = vld [vmem:[#allocation15_spill] sm:$0xff] }
 0x788   :  { %v9911_v58 = vpop.f32.mrf.mxu1 }
 0x789   :  { %v18731_v30 = vadd.f32 %v9911_v58, %v9533_v35  ;;  %v10124_v16 = vadd.f32 %v10123_v14, %v18726_v57  ;;  %v9537_v14 = vadd.f32 %v18663_v37, %v18416_v0  ;;  %v14251_v37 = vpop.f32.mrf.mxu0 }
 0x78a   :  { %v14361_v31 = vpop.f32.mrf.mxu1 }
 0x78b   :  { %v10125_v34 = vadd.f32 %v10124_v16, %v18731_v30  ;;  %v18746_v58 = vadd.f32 %v14361_v31, %v9536_v1  ;;  %v9540_v1 = vadd.f32 %v18675_v49, %v20424_v38  ;;  %v20428_v38 = vld [vmem:[#allocation86_spill] sm:$0xff] }
 0x78c   :  { %v9921_v33 = vpop.f32.mrf.mxu1 }
 0x78d   :  { %v18741_v10 = vadd.f32 %v9921_v33, %v9535_v22  ;;  %v10126_v51 = vadd.f32 %v10125_v34, %v18736_v21  ;;  %v9539_v34 = vadd.f32 %v9412_v2, %v18424_v60  ;;  %v9452_v2 = vpop.f32.mrf.mxu0 }
 0x78e   :  { %v14364_v35 = vpop.f32.mrf.mxu1 }
 0x78f   :  { %20422 = vst [vmem:[#allocation56_spill] sm:$0xff] %v18741_v10  ;;  %v10127_v53 = vadd.f32 %v10126_v51, %v18741_v10  ;;  %v18755_v33 = vadd.f32 %v14364_v35, %v9538_v39  ;;  %v9542_v39 = vadd.f32 %v18697_v13, %v20426_v63 }
 0x790   :  { %v9931_v42 = vpop.f32.mrf.mxu1 }
 0x791   :  { %v18751_v16 = vadd.f32 %v9931_v42, %v9537_v14  ;;  %v10128_v7 = vadd.f32 %v10127_v53, %v18746_v58  ;;  %v9541_v42 = vadd.f32 %v9422_v24, %v18432_v19  ;;  %v14254_v24 = vpop.f32.mrf.mxu0 }
 0x792   :  { %v14367_v22 = vpop.f32.mrf.mxu1 }
 0x793   :  { %v10129_v0 = vadd.f32 %v10128_v7, %v18751_v16  ;;  %v18764_v53 = vadd.f32 %v14367_v22, %v9540_v1  ;;  %v9544_v1 = vadd.f32 %v14245_v9, %v20428_v38 }
 0x794   :  { %v9941_v31 = vpop.f32.mrf.mxu1 }
 0x795   :  { %v18760_v51 = vadd.f32 %v9941_v31, %v9539_v34  ;;  %v10130_v55 = vadd.f32 %v10129_v0, %v18755_v33  ;;  %v9543_v31 = vadd.f32 %v9432_v5, %v18440_v12  ;;  %v9462_v12 = vpop.f32.mrf.mxu0 }
 0x796   :  { %v14370_v14 = vpop.f32.mrf.mxu1 }
 0x797   :  { %20425 = vst [vmem:[#allocation103_spill] sm:$0xff] %v18760_v51  ;;  %v10131_v60 = vadd.f32 %v10130_v55, %v18760_v51  ;;  %v18773_v0 = vadd.f32 %v14370_v14, %v9542_v39  ;;  %v20431_v14 = vld [vmem:[#allocation91_spill] sm:$0xff] }
 0x798   :  { %v9951_v35 = vpop.f32.mrf.mxu1  ;;  %v9546_v63 = vadd.f32 %v14248_v52, %v20431_v14 }
 0x799   :  { %v18769_v7 = vadd.f32 %v9951_v35, %v9541_v42  ;;  %v10132_v49 = vadd.f32 %v10131_v60, %v18764_v53  ;;  %v9545_v42 = vadd.f32 %v9442_v56, %v18448_v17  ;;  %v14257_v17 = vpop.f32.mrf.mxu0 }
 0x79a   :  { %v14373_v34 = vpop.f32.mrf.mxu1 }
 0x79b   :  { %20427 = vst [vmem:[#allocation100_spill] sm:$0xff] %v18769_v7  ;;  %v10133_v19 = vadd.f32 %v10132_v49, %v18769_v7  ;;  %v18781_v35 = vadd.f32 %v14373_v34, %v9544_v1  ;;  %v20434_v34 = vld [vmem:[#allocation87_spill] sm:$0xff] }
 0x79c   :  { %v9961_v22 = vpop.f32.mrf.mxu1  ;;  %v9548_v38 = vadd.f32 %v14251_v37, %v20434_v34 }
 0x79d   :  { %v18777_v55 = vadd.f32 %v9961_v22, %v9543_v31  ;;  %v10134_v51 = vadd.f32 %v10133_v19, %v18773_v0  ;;  %20430 = vst [vmem:[#allocation30_spill] sm:$0xff] %v18781_v35  ;;  %v9547_v31 = vadd.f32 %v9452_v2, %v18456_v59  ;;  %v9472_v59 = vpop.f32.mrf.mxu0 }
 0x79e   :  { %v14376_v13 = vpop.f32.mrf.mxu1 }
 0x79f   :  { %20429 = vst [vmem:[#allocation102_spill] sm:$0xff] %v18777_v55  ;;  %v10135_v60 = vadd.f32 %v10134_v51, %v18777_v55  ;;  %v18789_v22 = vadd.f32 %v14376_v13, %v9546_v63  ;;  %v20438_v13 = vld [vmem:[#allocation22_spill] sm:$0xff] }
 0x7a0   :  { %v9971_v5 = vpop.f32.mrf.mxu1  ;;  %v9550_v63 = vadd.f32 %v14254_v24, %v20438_v13  ;;  %v20443_v24 = vld [vmem:[#allocation88_spill] sm:$0xff]  ;;  %v20444_v13 = vld [vmem:[#allocation53_spill] sm:$0xff] }
 0x7a1   :  { %v18785_v39 = vadd.f32 %v9971_v5, %v9545_v42  ;;  %v10136_v49 = vadd.f32 %v10135_v60, %v18781_v35  ;;  %20433 = vst [vmem:[#allocation62_spill] sm:$0xff] %v18789_v22  ;;  %v20436_v42 = vld [vmem:[#allocation23_spill] sm:$0xff] }
 0x7a2   :  { %v14379_v9 = vpop.f32.mrf.mxu1  ;;  %v9549_v5 = vadd.f32 %v9462_v12, %v20436_v42  ;;  %v14260_v12 = vpop.f32.mrf.mxu0 }
 0x7a3   :  { %20432 = vst [vmem:[#allocation31_spill] sm:$0xff] %v18785_v39  ;;  %v10137_v19 = vadd.f32 %v10136_v49, %v18785_v39  ;;  %v18797_v14 = vadd.f32 %v14379_v9, %v9548_v38 }
 0x7a4   :  { %v9981_v56 = vpop.f32.mrf.mxu1 }
 0x7a5   :  { %v18793_v51 = vadd.f32 %v9981_v56, %v9547_v31  ;;  %v10138_v1 = vadd.f32 %v10137_v19, %v18789_v22  ;;  %20437 = vst [vmem:[#allocation36_spill] sm:$0xff] %v18797_v14  ;;  %v20440_v31 = vld [vmem:[#allocation93_spill] sm:$0xff] }
 0x7a6   :  { %v14382_v52 = vpop.f32.mrf.mxu1  ;;  %v9551_v56 = vadd.f32 %v9472_v59, %v20440_v31 }
 0x7a7   :  { %20435 = vst [vmem:[#allocation64_spill] sm:$0xff] %v18793_v51  ;;  %v10139_v60 = vadd.f32 %v10138_v1, %v18793_v51  ;;  %v18805_v34 = vadd.f32 %v14382_v52, %v9550_v63  ;;  %v9482_v51 = vpop.f32.mrf.mxu0  ;;  %v20446_v63 = vld [vmem:[#allocation24_spill] sm:$0xff] }
 0x7a8   :  { %v9991_v2 = vpop.f32.mrf.mxu1  ;;  %v9554_v31 = vadd.f32 %v14260_v12, %v20446_v63 }
 0x7a9   :  { %v18801_v49 = vadd.f32 %v9991_v2, %v9549_v5  ;;  %v10140_v39 = vadd.f32 %v10139_v60, %v18797_v14  ;;  %20441 = vst [vmem:[#allocation41_spill] sm:$0xff] %v18805_v34  ;;  %v9552_v5 = vadd.f32 %v14257_v17, %v20443_v24  ;;  %v9553_v14 = vadd.f32 %v9482_v51, %v20444_v13 }
 0x7aa   :  { %v14385_v37 = vpop.f32.mrf.mxu1 }
 0x7ab   :  { %20439 = vst [vmem:[#allocation40_spill] sm:$0xff] %v18801_v49  ;;  %v10141_v19 = vadd.f32 %v10140_v39, %v18801_v49  ;;  %v18814_v59 = vadd.f32 %v14385_v37, %v9552_v5 }
 0x7ac   :  { %v10001_v9 = vpop.f32.mrf.mxu1 }
 0x7ad   :  { %v18808_v38 = vadd.f32 %v10001_v9, %v9551_v56  ;;  %v10142_v1 = vadd.f32 %v10141_v19, %v18805_v34  ;;  %20445 = vst [vmem:[#allocation44_spill] sm:$0xff] %v18814_v59 }
 0x7ae   :  { %v14388_v42 = vpop.f32.mrf.mxu1 }
 0x7af   :  { %20442 = vst [vmem:[#allocation71_spill] sm:$0xff] %v18808_v38  ;;  %v10143_v2 = vadd.f32 %v10142_v1, %v18808_v38  ;;  %v18821_v19 = vadd.f32 %v14388_v42, %v9554_v31  ;;  %v20450_v31 = vld [vmem:[#allocation92_spill] sm:$0xff] }
 0x7b0   :  { %v10011_v60 = vpop.f32.mrf.mxu1 }
 0x7b1   :  { %v18816_v52 = vadd.f32 %v10011_v60, %v9553_v14  ;;  %v10144_v39 = vadd.f32 %v10143_v2, %v18814_v59  ;;  %v20447_v14 = vld [vmem:[#allocation90_spill] sm:$0xff]  ;;  %v20448_v2 = vld [vmem:[#allocation95_spill] sm:$0xff]  ;;  %v20449_v60 = vld [vmem:[#allocation25_spill] sm:$0xff] }
 0x7b3   :  { %v10145_v56 = vadd.f32 %v10144_v39, %v18816_v52 }
 0x7b5   :  { %v10146_v9 = vadd.f32 %v10145_v56, %v18821_v19 }
 0x7b7   :  { %v10147_v17 = vrot.slane %v10146_v9, 4 }
 0x7b9   :  { %v10148_v24 = vadd.f32 %v10147_v17, %v10146_v9 }
 0x7bb   :  { %v10149_v1 = vrot.slane %v10148_v24, 2 }
 0x7bd   :  { %v10150_v38 = vadd.f32 %v10149_v1, %v10148_v24  ;;  %v20451_v1 = vld [vmem:[#allocation97_spill] sm:$0xff] }
 0x7bf   :  { %v10151_v34 = vrot.slane %v10150_v38, 1 }
 0x7c1   :  { %v10152_v51 = vadd.f32 %v10151_v34, %v10150_v38 }
 0x7c3   :  { %v18824_v37 = vmul.f32 0.001953125, %v10152_v51 }
 0x7c5   :  { %v10154_v5 = vsub.f32 %v20447_v14, %v18824_v37  ;;  %v10155_v12 = vsub.f32 %v20448_v2, %v18824_v37  ;;  %v10156_v42 = vsub.f32 %v20449_v60, %v18824_v37  ;;  %v10157_v63 = vsub.f32 %v18504_v23, %v18824_v37  ;;  %v20452_v14 = vld [vmem:[#allocation26_spill] sm:$0xff] }
 0x7c6   :  { %v10158_v56 = vsub.f32 %v20450_v31, %v18824_v37  ;;  %v10159_v9 = vsub.f32 %v18516_v8, %v18824_v37  ;;  %v10160_v51 = vsub.f32 %v20451_v1, %v18824_v37  ;;  %v10162_v31 = vsub.f32 %v20452_v14, %v18824_v37 }
 0x7c7   :  { %v10218_v13 = vmul.f32 %v10154_v5, %v10154_v5  ;;  %v10219_v39 = vmul.f32 %v10155_v12, %v10155_v12  ;;  %v10220_v34 = vmul.f32 %v10156_v42, %v10156_v42  ;;  %v10221_v17 = vmul.f32 %v10157_v63, %v10157_v63 }
 0x7c8   :  { %v10222_v2 = vmul.f32 %v10158_v56, %v10158_v56  ;;  %v10161_v5 = vsub.f32 %v18528_v25, %v18824_v37  ;;  %v10223_v12 = vmul.f32 %v10159_v9, %v10159_v9  ;;  %v10224_v42 = vmul.f32 %v10160_v51, %v10160_v51 }
 0x7c9   :  { %v10282_v38 = vadd.f32 %v10219_v39, %v10218_v13  ;;  %v10163_v39 = vsub.f32 %v18540_v40, %v18824_v37  ;;  %v10226_v56 = vmul.f32 %v10162_v31, %v10162_v31 }
 0x7ca   :  { %v10225_v63 = vmul.f32 %v10161_v5, %v10161_v5 }
 0x7cb   :  { %v10283_v24 = vadd.f32 %v10282_v38, %v10220_v34  ;;  %v10164_v38 = vsub.f32 %v18547_v44, %v18824_v37  ;;  %v10227_v9 = vmul.f32 %v10163_v39, %v10163_v39 }
 0x7cd   :  { %v10284_v60 = vadd.f32 %v10283_v24, %v10221_v17  ;;  %v10165_v24 = vsub.f32 %v18552_v32, %v18824_v37  ;;  %v10228_v51 = vmul.f32 %v10164_v38, %v10164_v38 }
 0x7cf   :  { %v10285_v23 = vadd.f32 %v10284_v60, %v10222_v2  ;;  %v10166_v60 = vsub.f32 %v18559_v47, %v18824_v37  ;;  %v10229_v5 = vmul.f32 %v10165_v24, %v10165_v24 }
 0x7d1   :  { %v10286_v13 = vadd.f32 %v10285_v23, %v10223_v12  ;;  %v10167_v12 = vsub.f32 %v18564_v27, %v18824_v37  ;;  %v10230_v31 = vmul.f32 %v10166_v60, %v10166_v60 }
 0x7d3   :  { %v10287_v34 = vadd.f32 %v10286_v13, %v10224_v42  ;;  %v10168_v13 = vsub.f32 %v18571_v45, %v18824_v37  ;;  %v10231_v39 = vmul.f32 %v10167_v12, %v10167_v12 }
 0x7d5   :  { %v10288_v17 = vadd.f32 %v10287_v34, %v10225_v63  ;;  %v10169_v34 = vsub.f32 %v18576_v61, %v18824_v37  ;;  %v10232_v38 = vmul.f32 %v10168_v13, %v10168_v13 }
 0x7d7   :  { %v10289_v2 = vadd.f32 %v10288_v17, %v10226_v56  ;;  %v10170_v17 = vsub.f32 %v18583_v41, %v18824_v37  ;;  %v10233_v24 = vmul.f32 %v10169_v34, %v10169_v34 }
 0x7d9   :  { %v10290_v23 = vadd.f32 %v10289_v2, %v10227_v9  ;;  %v10171_v2 = vsub.f32 %v18588_v15, %v18824_v37  ;;  %v10234_v60 = vmul.f32 %v10170_v17, %v10170_v17 }
 0x7db   :  { %v10291_v42 = vadd.f32 %v10290_v23, %v10228_v51  ;;  %v10172_v23 = vsub.f32 %v18595_v4, %v18824_v37  ;;  %v10235_v12 = vmul.f32 %v10171_v2, %v10171_v2 }
 0x7dd   :  { %v10292_v63 = vadd.f32 %v10291_v42, %v10229_v5  ;;  %v10173_v42 = vsub.f32 %v18600_v62, %v18824_v37  ;;  %v10236_v13 = vmul.f32 %v10172_v23, %v10172_v23 }
 0x7df   :  { %v10293_v56 = vadd.f32 %v10292_v63, %v10230_v31  ;;  %v10174_v63 = vsub.f32 %v18607_v48, %v18824_v37  ;;  %v10237_v34 = vmul.f32 %v10173_v42, %v10173_v42 }
 0x7e1   :  { %v10294_v9 = vadd.f32 %v10293_v56, %v10231_v39  ;;  %v10175_v56 = vsub.f32 %v18612_v6, %v18824_v37  ;;  %v10238_v17 = vmul.f32 %v10174_v63, %v10174_v63 }
 0x7e3   :  { %v10295_v51 = vadd.f32 %v10294_v9, %v10232_v38  ;;  %v10176_v9 = vsub.f32 %v18619_v11, %v18824_v37  ;;  %v10239_v2 = vmul.f32 %v10175_v56, %v10175_v56 }
 0x7e5   :  { %v10296_v5 = vadd.f32 %v10295_v51, %v10233_v24  ;;  %v10177_v51 = vsub.f32 %v18624_v54, %v18824_v37  ;;  %v10240_v23 = vmul.f32 %v10176_v9, %v10176_v9 }
 0x7e7   :  { %v10297_v31 = vadd.f32 %v10296_v5, %v10234_v60  ;;  %v20453_v5 = vld [vmem:[#allocation99_spill] sm:$0xff]  ;;  %v10241_v42 = vmul.f32 %v10177_v51, %v10177_v51 }
 0x7e8   :  { %v10178_v48 = vsub.f32 %v20453_v5, %v18824_v37 }
 0x7e9   :  { %v10298_v39 = vadd.f32 %v10297_v31, %v10235_v12  ;;  %v10179_v31 = vsub.f32 %v18636_v3, %v18824_v37 }
 0x7ea   :  { %v10242_v63 = vmul.f32 %v10178_v48, %v10178_v48 }
 0x7eb   :  { %v10299_v38 = vadd.f32 %v10298_v39, %v10236_v13  ;;  %v20454_v39 = vld [vmem:[#allocation28_spill] sm:$0xff]  ;;  %v10243_v56 = vmul.f32 %v10179_v31, %v10179_v31 }
 0x7ec   :  { %v10180_v11 = vsub.f32 %v20454_v39, %v18824_v37 }
 0x7ed   :  { %v10300_v24 = vadd.f32 %v10299_v38, %v10237_v34  ;;  %v10181_v38 = vsub.f32 %v18648_v43, %v18824_v37 }
 0x7ee   :  { %v10244_v9 = vmul.f32 %v10180_v11, %v10180_v11 }
 0x7ef   :  { %v10301_v60 = vadd.f32 %v10300_v24, %v10238_v17  ;;  %v20455_v24 = vld [vmem:[#allocation55_spill] sm:$0xff]  ;;  %v10245_v51 = vmul.f32 %v10181_v38, %v10181_v38 }
 0x7f0   :  { %v10182_v5 = vsub.f32 %v20455_v24, %v18824_v37 }
 0x7f1   :  { %v10302_v12 = vadd.f32 %v10301_v60, %v10239_v2  ;;  %v10183_v60 = vsub.f32 %v18660_v28, %v18824_v37 }
 0x7f2   :  { %v10246_v48 = vmul.f32 %v10182_v5, %v10182_v5 }
 0x7f3   :  { %v10303_v13 = vadd.f32 %v10302_v12, %v10240_v23  ;;  %v20456_v12 = vld [vmem:[#allocation96_spill] sm:$0xff]  ;;  %v10247_v31 = vmul.f32 %v10183_v60, %v10183_v60 }
 0x7f4   :  { %v10184_v39 = vsub.f32 %v20456_v12, %v18824_v37 }
 0x7f5   :  { %v10304_v34 = vadd.f32 %v10303_v13, %v10241_v42  ;;  %v10185_v13 = vsub.f32 %v18672_v29, %v18824_v37 }
 0x7f6   :  { %v10248_v11 = vmul.f32 %v10184_v39, %v10184_v39 }
 0x7f7   :  { %v10305_v17 = vadd.f32 %v10304_v34, %v10242_v63  ;;  %v20457_v34 = vld [vmem:[#allocation101_spill] sm:$0xff]  ;;  %v10249_v38 = vmul.f32 %v10185_v13, %v10185_v13 }
 0x7f8   :  { %v10186_v24 = vsub.f32 %v20457_v34, %v18824_v37 }
 0x7f9   :  { %v10306_v2 = vadd.f32 %v10305_v17, %v10243_v56  ;;  %v10187_v17 = vsub.f32 %v18684_v50, %v18824_v37 }
 0x7fa   :  { %v10250_v5 = vmul.f32 %v10186_v24, %v10186_v24 }
 0x7fb   :  { %v10307_v23 = vadd.f32 %v10306_v2, %v10244_v9  ;;  %v20458_v2 = vld [vmem:[#allocation98_spill] sm:$0xff]  ;;  %v10251_v60 = vmul.f32 %v10187_v17, %v10187_v17 }
 0x7fc   :  { %v10188_v12 = vsub.f32 %v20458_v2, %v18824_v37 }
 0x7fd   :  { %v10308_v42 = vadd.f32 %v10307_v23, %v10245_v51  ;;  %v10189_v23 = vsub.f32 %v18694_v36, %v18824_v37 }
 0x7fe   :  { %v10252_v39 = vmul.f32 %v10188_v12, %v10188_v12 }
 0x7ff   :  { %v10309_v63 = vadd.f32 %v10308_v42, %v10246_v48  ;;  %v20459_v42 = vld [vmem:[#allocation29_spill] sm:$0xff]  ;;  %v10253_v13 = vmul.f32 %v10189_v23, %v10189_v23 }
 0x800   :  { %v10190_v34 = vsub.f32 %v20459_v42, %v18824_v37 }
 0x801   :  { %v10310_v56 = vadd.f32 %v10309_v63, %v10247_v31  ;;  %v10191_v63 = vsub.f32 %v18706_v20, %v18824_v37 }
 0x802   :  { %v10254_v24 = vmul.f32 %v10190_v34, %v10190_v34 }
 0x803   :  { %v10311_v9 = vadd.f32 %v10310_v56, %v10248_v11  ;;  %v10192_v56 = vsub.f32 %v18711_v18, %v18824_v37  ;;  %v10255_v17 = vmul.f32 %v10191_v63, %v10191_v63 }
 0x805   :  { %v10312_v51 = vadd.f32 %v10311_v9, %v10249_v38  ;;  %v10193_v9 = vsub.f32 %v18716_v26, %v18824_v37  ;;  %v10256_v12 = vmul.f32 %v10192_v56, %v10192_v56 }
 0x807   :  { %v10313_v48 = vadd.f32 %v10312_v51, %v10250_v5  ;;  %v10194_v51 = vsub.f32 %v18721_v46, %v18824_v37  ;;  %v10257_v23 = vmul.f32 %v10193_v9, %v10193_v9 }
 0x809   :  { %v10314_v31 = vadd.f32 %v10313_v48, %v10251_v60  ;;  %v10195_v48 = vsub.f32 %v18726_v57, %v18824_v37  ;;  %v10258_v34 = vmul.f32 %v10194_v51, %v10194_v51 }
 0x80b   :  { %v10315_v11 = vadd.f32 %v10314_v31, %v10252_v39  ;;  %v10196_v31 = vsub.f32 %v18731_v30, %v18824_v37  ;;  %v10259_v63 = vmul.f32 %v10195_v48, %v10195_v48 }
 0x80d   :  { %v10316_v38 = vadd.f32 %v10315_v11, %v10253_v13  ;;  %v10197_v11 = vsub.f32 %v18736_v21, %v18824_v37  ;;  %v10260_v56 = vmul.f32 %v10196_v31, %v10196_v31 }
 0x80f   :  { %v10317_v5 = vadd.f32 %v10316_v38, %v10254_v24  ;;  %v10198_v38 = vsub.f32 %v18741_v10, %v18824_v37  ;;  %v10261_v9 = vmul.f32 %v10197_v11, %v10197_v11 }
 0x811   :  { %v10318_v60 = vadd.f32 %v10317_v5, %v10255_v17  ;;  %v10199_v5 = vsub.f32 %v18746_v58, %v18824_v37  ;;  %v10262_v51 = vmul.f32 %v10198_v38, %v10198_v38 }
 0x813   :  { %v10319_v39 = vadd.f32 %v10318_v60, %v10256_v12  ;;  %v10200_v60 = vsub.f32 %v18751_v16, %v18824_v37  ;;  %v10263_v48 = vmul.f32 %v10199_v5, %v10199_v5 }
 0x815   :  { %v10320_v13 = vadd.f32 %v10319_v39, %v10257_v23  ;;  %v10201_v39 = vsub.f32 %v18755_v33, %v18824_v37  ;;  %v10264_v31 = vmul.f32 %v10200_v60, %v10200_v60 }
 0x817   :  { %v10321_v24 = vadd.f32 %v10320_v13, %v10258_v34  ;;  %v20460_v13 = vld [vmem:[#allocation103_spill] sm:$0xff]  ;;  %v10265_v11 = vmul.f32 %v10201_v39, %v10201_v39 }
 0x818   :  { %v10202_v10 = vsub.f32 %v20460_v13, %v18824_v37 }
 0x819   :  { %v10322_v17 = vadd.f32 %v10321_v24, %v10259_v63  ;;  %v10203_v24 = vsub.f32 %v18764_v53, %v18824_v37 }
 0x81a   :  { %v10266_v38 = vmul.f32 %v10202_v10, %v10202_v10 }
 0x81b   :  { %v10323_v12 = vadd.f32 %v10322_v17, %v10260_v56  ;;  %v10204_v17 = vsub.f32 %v18769_v7, %v18824_v37  ;;  %v10267_v5 = vmul.f32 %v10203_v24, %v10203_v24 }
 0x81d   :  { %v10324_v23 = vadd.f32 %v10323_v12, %v10261_v9  ;;  %v10205_v12 = vsub.f32 %v18773_v0, %v18824_v37  ;;  %v10268_v60 = vmul.f32 %v10204_v17, %v10204_v17 }
 0x81f   :  { %v10325_v34 = vadd.f32 %v10324_v23, %v10262_v51  ;;  %v10206_v23 = vsub.f32 %v18777_v55, %v18824_v37  ;;  %v10269_v39 = vmul.f32 %v10205_v12, %v10205_v12 }
 0x821   :  { %v10326_v63 = vadd.f32 %v10325_v34, %v10263_v48  ;;  %v10207_v34 = vsub.f32 %v18781_v35, %v18824_v37  ;;  %v10270_v10 = vmul.f32 %v10206_v23, %v10206_v23 }
 0x823   :  { %v10327_v56 = vadd.f32 %v10326_v63, %v10264_v31  ;;  %v20461_v63 = vld [vmem:[#allocation31_spill] sm:$0xff]  ;;  %v10271_v24 = vmul.f32 %v10207_v34, %v10207_v34 }
 0x824   :  { %v10208_v7 = vsub.f32 %v20461_v63, %v18824_v37 }
 0x825   :  { %v10328_v9 = vadd.f32 %v10327_v56, %v10265_v11  ;;  %v10209_v56 = vsub.f32 %v18789_v22, %v18824_v37 }
 0x826   :  { %v10272_v17 = vmul.f32 %v10208_v7, %v10208_v7 }
 0x827   :  { %v10329_v51 = vadd.f32 %v10328_v9, %v10266_v38  ;;  %v20462_v9 = vld [vmem:[#allocation64_spill] sm:$0xff]  ;;  %v10273_v12 = vmul.f32 %v10209_v56, %v10209_v56 }
 0x828   :  { %v10210_v55 = vsub.f32 %v20462_v9, %v18824_v37 }
 0x829   :  { %v10330_v48 = vadd.f32 %v10329_v51, %v10267_v5  ;;  %v20463_v51 = vld [vmem:[#allocation36_spill] sm:$0xff] }
 0x82a   :  { %v10211_v35 = vsub.f32 %v20463_v51, %v18824_v37  ;;  %v10274_v23 = vmul.f32 %v10210_v55, %v10210_v55 }
 0x82b   :  { %v10331_v31 = vadd.f32 %v10330_v48, %v10268_v60  ;;  %v10212_v48 = vsub.f32 %v18801_v49, %v18824_v37 }
 0x82c   :  { %v10275_v34 = vmul.f32 %v10211_v35, %v10211_v35 }
 0x82d   :  { %v10332_v11 = vadd.f32 %v10331_v31, %v10269_v39  ;;  %v20464_v31 = vld [vmem:[#allocation41_spill] sm:$0xff]  ;;  %v10276_v7 = vmul.f32 %v10212_v48, %v10212_v48 }
 0x82e   :  { %v10213_v22 = vsub.f32 %v20464_v31, %v18824_v37 }
 0x82f   :  { %v10333_v38 = vadd.f32 %v10332_v11, %v10270_v10  ;;  %v20465_v11 = vld [vmem:[#allocation71_spill] sm:$0xff] }
 0x830   :  { %v10214_v9 = vsub.f32 %v20465_v11, %v18824_v37  ;;  %v10277_v56 = vmul.f32 %v10213_v22, %v10213_v22 }
 0x831   :  { %v10334_v5 = vadd.f32 %v10333_v38, %v10271_v24  ;;  %v10215_v38 = vsub.f32 %v18814_v59, %v18824_v37 }
 0x832   :  { %v10278_v55 = vmul.f32 %v10214_v9, %v10214_v9  ;;  %v10352_v9 = vld [vmem:[%s19548_s5] sm:$0x1]  ;;  %s14497_s5 = smov [#allocation9]  }
 0x833   :  { %v10335_v60 = vadd.f32 %v10334_v5, %v10272_v17  ;;  %v10216_v5 = vsub.f32 %v18816_v52, %v18824_v37  ;;  %v10279_v35 = vmul.f32 %v10215_v38, %v10215_v38 }
 0x835   :  { %v10336_v39 = vadd.f32 %v10335_v60, %v10273_v12  ;;  %v10217_v60 = vsub.f32 %v18821_v19, %v18824_v37 }
 0x837   :  { %v10337_v10 = vadd.f32 %v10336_v39, %v10274_v23  ;;  %v10280_v39 = vmul.f32 %v10216_v5, %v10216_v5  ;;  %v10281_v11 = vmul.f32 %v10217_v60, %v10217_v60  ;;  %v20469_v60 = vld [vmem:[#allocation25_spill] sm:$0xff] }
 0x839   :  { %v10338_v24 = vadd.f32 %v10337_v10, %v10275_v34 }
 0x83b   :  { %v10339_v17 = vadd.f32 %v10338_v24, %v10276_v7 }
 0x83d   :  { %v10340_v12 = vadd.f32 %v10339_v17, %v10277_v56  ;;  %v20466_v17 = vld [vmem:[#allocation75_spill] sm:$0xff] }
 0x83f   :  { %v10341_v23 = vadd.f32 %v10340_v12, %v10278_v55  ;;  %v20468_v55 = vld [vmem:[#allocation95_spill] sm:$0xff] }
 0x841   :  { %v10342_v31 = vadd.f32 %v10341_v23, %v10279_v35 }
 0x843   :  { %v10343_v48 = vadd.f32 %v10342_v31, %v10280_v39  ;;  %v10356_v31 = vld [vmem:[%s19549_s6] sm:$0x1]  ;;  %v20471_v39 = vld [vmem:[#allocation92_spill] sm:$0xff]  ;;  %s10632_s6 = sshll.u32 %s14497_s5, 4  ;;  %s10633_s6 = int_to_ptr.vmem [resolvable:$true] %s10632_s6 }
 0x844   :  { %s14465_s21 = scalar_lea.vmem %s10633_s6, 8192  ;;  %p14470_p2 = scmp.lt.s32.totalorder %s10633_s6, %s10633_s6 }
 0x845   :  { %v10344_v34 = vadd.f32 %v10343_v48, %v10281_v11  ;;  %p14466_p1 = scmp.ne.s32.totalorder %s10633_s6, %s14465_s21  ;;  %p14471_p3 = scmp.lt.s32.totalorder %s14465_s21, %s14465_s21 }
 0x847   :  { %v10345_v10 = vrot.slane %v10344_v34, 4  ;;  %p14472_p4 = por %p14471_p3, %p14470_p2 }
 0x849   :  { %v10346_v49 = vadd.f32 %v10345_v10, %v10344_v34  ;;  %p14473_p5 = pnand %p14472_p4, %p14466_p1 }
 0x84b   :  { %v10347_v59 = vrot.slane %v10346_v49, 2 }
 0x84d   :  { %v10348_v22 = vadd.f32 %v10347_v59, %v10346_v49 }
 0x84f   :  { %v10349_v7 = vrot.slane %v10348_v22, 1 }
 0x851   :  { %v10350_v24 = vadd.f32 %v10349_v7, %v10348_v22 }
 0x853   :  { %v10351_v51 = vmul.f32 0.001953125, %v10350_v24 }
 0x855   :  { %v10353_v63 = vadd.f32 1e-05, %v10351_v51 }
 0x857   :  { %14398 = vrsqrt.f32 %v10353_v63  ;;  %v20467_v63 = vld [vmem:[#allocation90_spill] sm:$0xff] }
 0x864   :  { %v14399_v38 = vpop.eup %14398 }
 0x865   :  { %v10355_v56 = vmul.f32 %v14399_v38, %v10352_v9 }
 0x867   :  { %v10357_v11 = vmul.f32 %v10355_v56, %v18824_v37  ;;  %v18962_v5 = vrot.slane %v10355_v56, %v20466_v17  ;;  %v20470_v37 = vld [vmem:[#allocation54_spill] sm:$0xff]  ;;  %v20472_v56 = vld [vmem:[#allocation27_spill] sm:$0xff] }
 0x869   :  { %v10358_v49 = vsub.f32 %v10356_v31, %v10357_v11  ;;  %v10427_v59 = vmul.f32 %v18962_v5, %v18816_v52  ;;  %v18968_v51 = vmul.f32 %v18962_v5, %v20467_v63  ;;  %v18972_v12 = vmul.f32 %v18962_v5, %v20468_v55  ;;  %v20473_v31 = vld [vmem:[#allocation94_spill] sm:$0xff]  ;;  %v20474_v11 = vld [vmem:[#allocation99_spill] sm:$0xff] }
 0x86a   :  { %v18976_v35 = vmul.f32 %v18962_v5, %v20469_v60  ;;  %v18980_v23 = vmul.f32 %v18962_v5, %v20470_v37  ;;  %v18984_v48 = vmul.f32 %v18962_v5, %v20471_v39  ;;  %v18988_v52 = vmul.f32 %v18962_v5, %v18516_v8  ;;  %v20476_v63 = vld [vmem:[#allocation55_spill] sm:$0xff]  ;;  %v20477_v60 = vld [vmem:[#allocation96_spill] sm:$0xff]  ;;  %v20478_v39 = vld [vmem:[#allocation101_spill] sm:$0xff] }
 0x86b   :  { %v18991_v34 = vrot.slane %v10358_v49, %v20466_v17  ;;  %v18995_v10 = vmul.f32 %v18962_v5, %v20451_v1  ;;  %v18999_v22 = vmul.f32 %v18962_v5, %v18528_v25  ;;  %v19003_v7 = vmul.f32 %v18962_v5, %v20452_v14  ;;  %v20475_v49 = vld [vmem:[#allocation28_spill] sm:$0xff] }
 0x86c   :  { %v19007_v24 = vmul.f32 %v18962_v5, %v18540_v40  ;;  %v19011_v8 = vmul.f32 %v18962_v5, %v18547_v44  ;;  %v19015_v1 = vmul.f32 %v18962_v5, %v18552_v32  ;;  %v19019_v25 = vmul.f32 %v18962_v5, %v18559_v47 }
 0x86d   :  { %v10497_v9 = vadd.f32 %v18991_v34, %v10427_v59  ;;  %v19024_v14 = vmul.f32 %v18962_v5, %v18564_v27  ;;  %v19028_v40 = vmul.f32 %v18962_v5, %v18571_v45  ;;  %v19032_v44 = vmul.f32 %v18962_v5, %v18576_v61 }
 0x86e   :  { %v19036_v32 = vmul.f32 %v18962_v5, %v18583_v41  ;;  %v19040_v47 = vmul.f32 %v18962_v5, %v18588_v15  ;;  %v19044_v27 = vmul.f32 %v18962_v5, %v18595_v4  ;;  %v19048_v45 = vmul.f32 %v18962_v5, %v18600_v62 }
 0x86f   :  { %v10561_v38 = vmax.f32 %v10497_v9, 0.0  ;;  %v19052_v61 = vmul.f32 %v18962_v5, %v20472_v56  ;;  %v19056_v41 = vmul.f32 %v18962_v5, %v18612_v6  ;;  %v19060_v15 = vmul.f32 %v18962_v5, %v20473_v31  ;;  %v20479_v31 = vld [vmem:[#allocation56_spill] sm:$0xff] }
 0x870   :  { %v19064_v4 = vmul.f32 %v18962_v5, %v18624_v54  ;;  %v19068_v62 = vmul.f32 %v18962_v5, %v20474_v11  ;;  %v19072_v17 = vmul.f32 %v18962_v5, %v18636_v3  ;;  %v19076_v6 = vmul.f32 %v18962_v5, %v20475_v49  ;;  %v20480_v49 = vld [vmem:[#allocation100_spill] sm:$0xff] }
 0x871   :  { %10625 = vst [vmem:[#allocation9 + $0x1f0] sm:$0xff] %v10561_v38  ;;  %v19080_v59 = vmul.f32 %v18962_v5, %v18648_v43  ;;  %v19084_v54 = vmul.f32 %v18962_v5, %v20476_v63  ;;  %v19088_v55 = vmul.f32 %v18962_v5, %v18660_v28  ;;  %v19092_v3 = vmul.f32 %v18962_v5, %v20477_v60  ;;  %v20483_v63 = vld [vmem:[#allocation102_spill] sm:$0xff] }
 0x872   :  { %v19096_v37 = vmul.f32 %v18962_v5, %v18672_v29  ;;  %v19100_v43 = vmul.f32 %v18962_v5, %v20478_v39  ;;  %v19104_v9 = vmul.f32 %v18962_v5, %v18684_v50  ;;  %v19108_v28 = vmul.f32 %v18962_v5, %v20458_v2  ;;  %v20485_v60 = vld [vmem:[#allocation30_spill] sm:$0xff]  ;;  %v20487_v39 = vld [vmem:[#allocation31_spill] sm:$0xff] }
 0x873   :  { %v19112_v38 = vmul.f32 %v18962_v5, %v18694_v36  ;;  %v19116_v29 = vmul.f32 %v18962_v5, %v20459_v42  ;;  %v19120_v56 = vmul.f32 %v18962_v5, %v18706_v20  ;;  %v19124_v50 = vmul.f32 %v18962_v5, %v18711_v18 }
 0x874   :  { %v19128_v2 = vmul.f32 %v18962_v5, %v18716_v26  ;;  %v19132_v36 = vmul.f32 %v18962_v5, %v18721_v46  ;;  %v19136_v42 = vmul.f32 %v18962_v5, %v18726_v57  ;;  %v19140_v20 = vmul.f32 %v18962_v5, %v18731_v30 }
 0x875   :  { %v19144_v18 = vmul.f32 %v18962_v5, %v18736_v21  ;;  %v19148_v26 = vmul.f32 %v18962_v5, %v20479_v31  ;;  %v19152_v46 = vmul.f32 %v18962_v5, %v18746_v58  ;;  %v19156_v57 = vmul.f32 %v18962_v5, %v18751_v16  ;;  %v20489_v31 = vld [vmem:[#allocation62_spill] sm:$0xff] }
 0x876   :  { %v19160_v30 = vmul.f32 %v18962_v5, %v18755_v33  ;;  %v19164_v21 = vmul.f32 %v18962_v5, %v20460_v13  ;;  %v19168_v11 = vmul.f32 %v18962_v5, %v18764_v53  ;;  %v19172_v58 = vmul.f32 %v18962_v5, %v20480_v49 }
 0x877   :  { %v19176_v16 = vmul.f32 %v18962_v5, %v18773_v0  ;;  %v19180_v33 = vmul.f32 %v18962_v5, %v20483_v63  ;;  %v19184_v13 = vmul.f32 %v18962_v5, %v20485_v60  ;;  %v19188_v53 = vmul.f32 %v18962_v5, %v20487_v39 }
 0x878   :  { %20481 = vst [vmem:[#allocation73_spill] sm:$0xff] %v19172_v58  ;;  %v19192_v49 = vmul.f32 %v18962_v5, %v20489_v31  ;;  %v20491_v58 = vld [vmem:[#allocation64_spill] sm:$0xff] }
 0x879   :  { %20482 = vst [vmem:[#allocation57_spill] sm:$0xff] %v19176_v16  ;;  %20484 = vst [vmem:[#allocation60_spill] sm:$0xff] %v19180_v33  ;;  %v19196_v0 = vmul.f32 %v18962_v5, %v20491_v58  ;;  %v20492_v16 = vld [vmem:[#allocation36_spill] sm:$0xff] }
 0x87a   :  { %20486 = vst [vmem:[#allocation58_spill] sm:$0xff] %v19184_v13  ;;  %20488 = vst [vmem:[#allocation34_spill] sm:$0xff] %v19188_v53  ;;  %v19200_v63 = vmul.f32 %v18962_v5, %v20492_v16  ;;  %v20493_v33 = vld [vmem:[#allocation40_spill] sm:$0xff]  ;;  %v20494_v13 = vld [vmem:[#allocation41_spill] sm:$0xff]  ;;  %v19220_v16 = vmul.f32 %v18962_v5, %v18821_v19  ;;  %v19240_v19 = vadd.f32 %v18991_v34, %v18984_v48 }
 0x87b   :  { %20490 = vst [vmem:[#allocation35_spill] sm:$0xff] %v19192_v49  ;;  %v19204_v60 = vmul.f32 %v18962_v5, %v20493_v33  ;;  %v19208_v39 = vmul.f32 %v18962_v5, %v20494_v13  ;;  %v20495_v53 = vld [vmem:[#allocation71_spill] sm:$0xff]  ;;  %v20496_v49 = vld [vmem:[#allocation44_spill] sm:$0xff]  ;;  %v19224_v33 = vadd.f32 %v18991_v34, %v18968_v51  ;;  %v19228_v13 = vadd.f32 %v18991_v34, %v18972_v12 }
 0x87c   :  { %v19212_v31 = vmul.f32 %v18962_v5, %v20495_v53  ;;  %v19216_v58 = vmul.f32 %v18962_v5, %v20496_v49  ;;  %v19232_v53 = vadd.f32 %v18991_v34, %v18976_v35  ;;  %v19236_v49 = vadd.f32 %v18991_v34, %v18980_v23 }
 0x87d   :  { %v19244_v5 = vadd.f32 %v18991_v34, %v18988_v52  ;;  %v19248_v51 = vadd.f32 %v18991_v34, %v18995_v10  ;;  %v19252_v12 = vadd.f32 %v18991_v34, %v18999_v22  ;;  %v19256_v35 = vadd.f32 %v18991_v34, %v19003_v7 }
 0x87e   :  { %v19260_v23 = vadd.f32 %v18991_v34, %v19007_v24  ;;  %v19264_v48 = vadd.f32 %v18991_v34, %v19011_v8  ;;  %v19268_v52 = vadd.f32 %v18991_v34, %v19015_v1  ;;  %v19272_v10 = vadd.f32 %v18991_v34, %v19019_v25 }
 0x87f   :  { %v19276_v22 = vadd.f32 %v18991_v34, %v19024_v14  ;;  %v19280_v7 = vadd.f32 %v18991_v34, %v19028_v40  ;;  %v19284_v24 = vadd.f32 %v18991_v34, %v19032_v44  ;;  %v19288_v8 = vadd.f32 %v18991_v34, %v19036_v32 }
 0x880   :  { %v19292_v1 = vadd.f32 %v18991_v34, %v19040_v47  ;;  %v19296_v25 = vadd.f32 %v18991_v34, %v19044_v27  ;;  %v19300_v14 = vadd.f32 %v18991_v34, %v19048_v45  ;;  %v19304_v40 = vadd.f32 %v18991_v34, %v19052_v61 }
 0x881   :  { %v19308_v44 = vadd.f32 %v18991_v34, %v19056_v41  ;;  %v19312_v32 = vadd.f32 %v18991_v34, %v19060_v15  ;;  %v19316_v47 = vadd.f32 %v18991_v34, %v19064_v4  ;;  %v19320_v27 = vadd.f32 %v18991_v34, %v19068_v62 }
 0x882   :  { %v19324_v45 = vadd.f32 %v18991_v34, %v19072_v17  ;;  %v19328_v61 = vadd.f32 %v18991_v34, %v19076_v6  ;;  %v19332_v41 = vadd.f32 %v18991_v34, %v19080_v59  ;;  %v19336_v15 = vadd.f32 %v18991_v34, %v19084_v54 }
 0x883   :  { %v19340_v4 = vadd.f32 %v18991_v34, %v19088_v55  ;;  %v19344_v62 = vadd.f32 %v18991_v34, %v19092_v3  ;;  %v19348_v17 = vadd.f32 %v18991_v34, %v19096_v37  ;;  %v19352_v6 = vadd.f32 %v18991_v34, %v19100_v43 }
 0x884   :  { %v19356_v59 = vadd.f32 %v18991_v34, %v19104_v9  ;;  %v19360_v54 = vadd.f32 %v18991_v34, %v19108_v28  ;;  %v19364_v55 = vadd.f32 %v18991_v34, %v19112_v38  ;;  %v19368_v3 = vadd.f32 %v18991_v34, %v19116_v29 }
 0x885   :  { %v19372_v37 = vadd.f32 %v18991_v34, %v19120_v56  ;;  %v19376_v43 = vadd.f32 %v18991_v34, %v19124_v50  ;;  %v19380_v9 = vadd.f32 %v18991_v34, %v19128_v2  ;;  %v19384_v28 = vadd.f32 %v18991_v34, %v19132_v36 }
 0x886   :  { %v19388_v38 = vadd.f32 %v18991_v34, %v19136_v42  ;;  %v19392_v29 = vadd.f32 %v18991_v34, %v19140_v20  ;;  %v19396_v56 = vadd.f32 %v18991_v34, %v19144_v18  ;;  %v19400_v50 = vadd.f32 %v18991_v34, %v19148_v26  ;;  %v20502_v26 = vld [vmem:[#allocation73_spill] sm:$0xff] }
 0x887   :  { %v19404_v2 = vadd.f32 %v18991_v34, %v19152_v46  ;;  %v19408_v36 = vadd.f32 %v18991_v34, %v19156_v57  ;;  %v19412_v42 = vadd.f32 %v18991_v34, %v19160_v30  ;;  %v19416_v20 = vadd.f32 %v18991_v34, %v19164_v21 }
 0x888   :  { %v19420_v18 = vadd.f32 %v18991_v34, %v19168_v11  ;;  %v19424_v46 = vadd.f32 %v18991_v34, %v20502_v26 }
 0x889   :  { %20497 = vst [vmem:[#allocation59_spill] sm:$0xff] %v19404_v2  ;;  %20498 = vst [vmem:[#allocation37_spill] sm:$0xff] %v19408_v36  ;;  %v20503_v2 = vld [vmem:[#allocation57_spill] sm:$0xff]  ;;  %v20504_v36 = vld [vmem:[#allocation60_spill] sm:$0xff] }
 0x88a   :  { %20499 = vst [vmem:[#allocation61_spill] sm:$0xff] %v19412_v42  ;;  %20500 = vst [vmem:[#allocation66_spill] sm:$0xff] %v19416_v20  ;;  %v19428_v57 = vadd.f32 %v18991_v34, %v20503_v2  ;;  %v19432_v30 = vadd.f32 %v18991_v34, %v20504_v36  ;;  %v20505_v42 = vld [vmem:[#allocation58_spill] sm:$0xff]  ;;  %v19448_v2 = vadd.f32 %v18991_v34, %v19196_v0 }
 0x88b   :  { %20501 = vst [vmem:[#allocation38_spill] sm:$0xff] %v19420_v18  ;;  %v19436_v21 = vadd.f32 %v18991_v34, %v20505_v42  ;;  %v20506_v20 = vld [vmem:[#allocation34_spill] sm:$0xff]  ;;  %v20507_v18 = vld [vmem:[#allocation35_spill] sm:$0xff]  ;;  %v19452_v36 = vadd.f32 %v18991_v34, %v19200_v63  ;;  %v19456_v42 = vadd.f32 %v18991_v34, %v19204_v60  ;;  %v19468_v0 = vadd.f32 %v18991_v34, %v19216_v58 }
 0x88c   :  { %v19440_v11 = vadd.f32 %v18991_v34, %v20506_v20  ;;  %v19444_v26 = vadd.f32 %v18991_v34, %v20507_v18  ;;  %v19460_v20 = vadd.f32 %v18991_v34, %v19208_v39  ;;  %v19464_v18 = vadd.f32 %v18991_v34, %v19212_v31 }
 0x88d   :  { %20508 = vst [vmem:[#allocation39_spill] sm:$0xff] %v19452_v36  ;;  %20509 = vst [vmem:[#allocation63_spill] sm:$0xff] %v19456_v42  ;;  %v19472_v63 = vadd.f32 %v18991_v34, %v19220_v16  ;;  %v10499_v36 = vmax.f32 %v19224_v33, 0.0  ;;  %v10500_v60 = vmax.f32 %v19228_v13, 0.0  ;;  %v10501_v42 = vmax.f32 %v19232_v53, 0.0 }
 0x88e   :  { %20510 = vst [vmem:[#allocation68_spill] sm:$0xff] %v19460_v20  ;;  %20511 = vst [vmem:[#allocation65_spill] sm:$0xff] %v19464_v18  ;;  %v10502_v39 = vmax.f32 %v19236_v49, 0.0  ;;  %v10503_v20 = vmax.f32 %v19240_v19, 0.0  ;;  %v10504_v31 = vmax.f32 %v19244_v5, 0.0  ;;  %v10505_v18 = vmax.f32 %v19248_v51, 0.0 }
 0x88f   :  { %20512 = vst [vmem:[#allocation42_spill] sm:$0xff] %v19468_v0  ;;  %v10506_v58 = vmax.f32 %v19252_v12, 0.0  ;;  %v10507_v0 = vmax.f32 %v19256_v35, 0.0  ;;  %10563 = vst [vmem:[#allocation9] sm:$0xff] %v10499_v36  ;;  %v10508_v34 = vmax.f32 %v19260_v23, 0.0  ;;  %v10509_v16 = vmax.f32 %v19264_v48, 0.0 }
 0x890   :  { %v10510_v33 = vmax.f32 %v19268_v52, 0.0  ;;  %v10511_v13 = vmax.f32 %v19272_v10, 0.0  ;;  %10564 = vst [vmem:[#allocation9 + $0x8] sm:$0xff] %v10500_v60  ;;  %10565 = vst [vmem:[#allocation9 + $0x10] sm:$0xff] %v10501_v42  ;;  %v10512_v53 = vmax.f32 %v19276_v22, 0.0  ;;  %v10513_v49 = vmax.f32 %v19280_v7, 0.0 }
 0x891   :  { %10566 = vst [vmem:[#allocation9 + $0x18] sm:$0xff] %v10502_v39  ;;  %10567 = vst [vmem:[#allocation9 + $0x20] sm:$0xff] %v10503_v20  ;;  %v10514_v19 = vmax.f32 %v19284_v24, 0.0  ;;  %v10515_v5 = vmax.f32 %v19288_v8, 0.0  ;;  %v10516_v51 = vmax.f32 %v19292_v1, 0.0  ;;  %v10517_v12 = vmax.f32 %v19296_v25, 0.0 }
 0x892   :  { %10568 = vst [vmem:[#allocation9 + $0x28] sm:$0xff] %v10504_v31  ;;  %10569 = vst [vmem:[#allocation9 + $0x30] sm:$0xff] %v10505_v18  ;;  %v10518_v35 = vmax.f32 %v19300_v14, 0.0  ;;  %v10519_v23 = vmax.f32 %v19304_v40, 0.0  ;;  %v10520_v48 = vmax.f32 %v19308_v44, 0.0  ;;  %v10521_v52 = vmax.f32 %v19312_v32, 0.0 }
 0x893   :  { %10570 = vst [vmem:[#allocation9 + $0x38] sm:$0xff] %v10506_v58  ;;  %10571 = vst [vmem:[#allocation9 + $0x40] sm:$0xff] %v10507_v0  ;;  %v10522_v10 = vmax.f32 %v19316_v47, 0.0  ;;  %v10523_v22 = vmax.f32 %v19320_v27, 0.0  ;;  %v10524_v7 = vmax.f32 %v19324_v45, 0.0  ;;  %v10525_v24 = vmax.f32 %v19328_v61, 0.0 }
 0x894   :  { %10572 = vst [vmem:[#allocation9 + $0x48] sm:$0xff] %v10508_v34  ;;  %10573 = vst [vmem:[#allocation9 + $0x50] sm:$0xff] %v10509_v16  ;;  %v10526_v8 = vmax.f32 %v19332_v41, 0.0  ;;  %v10527_v1 = vmax.f32 %v19336_v15, 0.0  ;;  %v10528_v25 = vmax.f32 %v19340_v4, 0.0  ;;  %v10529_v14 = vmax.f32 %v19344_v62, 0.0 }
 0x895   :  { %10574 = vst [vmem:[#allocation9 + $0x58] sm:$0xff] %v10510_v33  ;;  %10575 = vst [vmem:[#allocation9 + $0x60] sm:$0xff] %v10511_v13  ;;  %v10530_v40 = vmax.f32 %v19348_v17, 0.0  ;;  %v10531_v44 = vmax.f32 %v19352_v6, 0.0  ;;  %v10532_v32 = vmax.f32 %v19356_v59, 0.0  ;;  %v10533_v47 = vmax.f32 %v19360_v54, 0.0 }
 0x896   :  { %10576 = vst [vmem:[#allocation9 + $0x68] sm:$0xff] %v10512_v53  ;;  %10577 = vst [vmem:[#allocation9 + $0x70] sm:$0xff] %v10513_v49  ;;  %v10534_v27 = vmax.f32 %v19364_v55, 0.0  ;;  %v10535_v45 = vmax.f32 %v19368_v3, 0.0  ;;  %v10536_v61 = vmax.f32 %v19372_v37, 0.0  ;;  %v10537_v41 = vmax.f32 %v19376_v43, 0.0 }
 0x897   :  { %10578 = vst [vmem:[#allocation9 + $0x78] sm:$0xff] %v10514_v19  ;;  %10579 = vst [vmem:[#allocation9 + $0x80] sm:$0xff] %v10515_v5  ;;  %v10538_v15 = vmax.f32 %v19380_v9, 0.0  ;;  %v10539_v4 = vmax.f32 %v19384_v28, 0.0  ;;  %v10540_v62 = vmax.f32 %v19388_v38, 0.0  ;;  %v10541_v17 = vmax.f32 %v19392_v29, 0.0 }
 0x898   :  { %10580 = vst [vmem:[#allocation9 + $0x88] sm:$0xff] %v10516_v51  ;;  %10581 = vst [vmem:[#allocation9 + $0x90] sm:$0xff] %v10517_v12  ;;  %v10542_v6 = vmax.f32 %v19396_v56, 0.0  ;;  %v10543_v59 = vmax.f32 %v19400_v50, 0.0  ;;  %v20513_v54 = vld [vmem:[#allocation59_spill] sm:$0xff]  ;;  %v20514_v3 = vld [vmem:[#allocation37_spill] sm:$0xff] }
 0x899   :  { %10582 = vst [vmem:[#allocation9 + $0x98] sm:$0xff] %v10518_v35  ;;  %10583 = vst [vmem:[#allocation9 + $0xa0] sm:$0xff] %v10519_v23  ;;  %v10544_v55 = vmax.f32 %v20513_v54, 0.0  ;;  %v10545_v37 = vmax.f32 %v20514_v3, 0.0  ;;  %v20515_v43 = vld [vmem:[#allocation61_spill] sm:$0xff]  ;;  %v20516_v28 = vld [vmem:[#allocation66_spill] sm:$0xff] }
 0x89a   :  { %10584 = vst [vmem:[#allocation9 + $0xa8] sm:$0xff] %v10520_v48  ;;  %10585 = vst [vmem:[#allocation9 + $0xb0] sm:$0xff] %v10521_v52  ;;  %v10546_v9 = vmax.f32 %v20515_v43, 0.0  ;;  %v10547_v36 = vmax.f32 %v20516_v28, 0.0  ;;  %v20517_v38 = vld [vmem:[#allocation38_spill] sm:$0xff]  ;;  %v10549_v56 = vmax.f32 %v19424_v46, 0.0 }
 0x89b   :  { %10586 = vst [vmem:[#allocation9 + $0xb8] sm:$0xff] %v10522_v10  ;;  %10587 = vst [vmem:[#allocation9 + $0xc0] sm:$0xff] %v10523_v22  ;;  %v10548_v29 = vmax.f32 %v20517_v38, 0.0  ;;  %v10550_v50 = vmax.f32 %v19428_v57, 0.0  ;;  %v10551_v42 = vmax.f32 %v19432_v30, 0.0  ;;  %v10552_v20 = vmax.f32 %v19436_v21, 0.0 }
 0x89c   :  { %10588 = vst [vmem:[#allocation9 + $0xc8] sm:$0xff] %v10524_v7  ;;  %10589 = vst [vmem:[#allocation9 + $0xd0] sm:$0xff] %v10525_v24  ;;  %v10553_v18 = vmax.f32 %v19440_v11, 0.0  ;;  %v10554_v0 = vmax.f32 %v19444_v26, 0.0  ;;  %v10555_v60 = vmax.f32 %v19448_v2, 0.0  ;;  %v20518_v46 = vld [vmem:[#allocation39_spill] sm:$0xff] }
 0x89d   :  { %10590 = vst [vmem:[#allocation9 + $0xd8] sm:$0xff] %v10526_v8  ;;  %10591 = vst [vmem:[#allocation9 + $0xe0] sm:$0xff] %v10527_v1  ;;  %v10556_v57 = vmax.f32 %v20518_v46, 0.0  ;;  %v20519_v30 = vld [vmem:[#allocation63_spill] sm:$0xff]  ;;  %v20520_v31 = vld [vmem:[#allocation68_spill] sm:$0xff]  ;;  %v10562_v26 = vmax.f32 %v19472_v63, 0.0 }
 0x89e   :  { %10592 = vst [vmem:[#allocation9 + $0xe8] sm:$0xff] %v10528_v25  ;;  %10593 = vst [vmem:[#allocation9 + $0xf0] sm:$0xff] %v10529_v14  ;;  %v10557_v39 = vmax.f32 %v20519_v30, 0.0  ;;  %v10558_v58 = vmax.f32 %v20520_v31, 0.0  ;;  %v20521_v34 = vld [vmem:[#allocation65_spill] sm:$0xff]  ;;  %v20522_v21 = vld [vmem:[#allocation42_spill] sm:$0xff] }
 0x89f   :  { %10594 = vst [vmem:[#allocation9 + $0xf8] sm:$0xff] %v10530_v40  ;;  %10595 = vst [vmem:[#allocation9 + $0x100] sm:$0xff] %v10531_v44  ;;  %v10559_v16 = vmax.f32 %v20521_v34, 0.0  ;;  %v10560_v11 = vmax.f32 %v20522_v21, 0.0 }
 0x8a0   :  { %10596 = vst [vmem:[#allocation9 + $0x108] sm:$0xff] %v10532_v32  ;;  %10597 = vst [vmem:[#allocation9 + $0x110] sm:$0xff] %v10533_v47 }
 0x8a1   :  { %10598 = vst [vmem:[#allocation9 + $0x118] sm:$0xff] %v10534_v27  ;;  %10599 = vst [vmem:[#allocation9 + $0x120] sm:$0xff] %v10535_v45 }
 0x8a2   :  { %10600 = vst [vmem:[#allocation9 + $0x128] sm:$0xff] %v10536_v61  ;;  %10601 = vst [vmem:[#allocation9 + $0x130] sm:$0xff] %v10537_v41 }
 0x8a3   :  { %10602 = vst [vmem:[#allocation9 + $0x138] sm:$0xff] %v10538_v15  ;;  %10603 = vst [vmem:[#allocation9 + $0x140] sm:$0xff] %v10539_v4 }
 0x8a4   :  { %10604 = vst [vmem:[#allocation9 + $0x148] sm:$0xff] %v10540_v62  ;;  %10605 = vst [vmem:[#allocation9 + $0x150] sm:$0xff] %v10541_v17 }
 0x8a5   :  { %10606 = vst [vmem:[#allocation9 + $0x158] sm:$0xff] %v10542_v6  ;;  %10607 = vst [vmem:[#allocation9 + $0x160] sm:$0xff] %v10543_v59 }
 0x8a6   :  { %10608 = vst [vmem:[#allocation9 + $0x168] sm:$0xff] %v10544_v55  ;;  %10609 = vst [vmem:[#allocation9 + $0x170] sm:$0xff] %v10545_v37 }
 0x8a7   :  { %10610 = vst [vmem:[#allocation9 + $0x178] sm:$0xff] %v10546_v9  ;;  %10611 = vst [vmem:[#allocation9 + $0x180] sm:$0xff] %v10547_v36 }
 0x8a8   :  { %10612 = vst [vmem:[#allocation9 + $0x188] sm:$0xff] %v10548_v29  ;;  %10613 = vst [vmem:[#allocation9 + $0x190] sm:$0xff] %v10549_v56 }
 0x8a9   :  { %10614 = vst [vmem:[#allocation9 + $0x198] sm:$0xff] %v10550_v50  ;;  %10615 = vst [vmem:[#allocation9 + $0x1a0] sm:$0xff] %v10551_v42 }
 0x8aa   :  { %10616 = vst [vmem:[#allocation9 + $0x1a8] sm:$0xff] %v10552_v20  ;;  %10617 = vst [vmem:[#allocation9 + $0x1b0] sm:$0xff] %v10553_v18 }
 0x8ab   :  { %10618 = vst [vmem:[#allocation9 + $0x1b8] sm:$0xff] %v10554_v0  ;;  %10619 = vst [vmem:[#allocation9 + $0x1c0] sm:$0xff] %v10555_v60 }
 0x8ac   :  { %10620 = vst [vmem:[#allocation9 + $0x1c8] sm:$0xff] %v10556_v57  ;;  %10621 = vst [vmem:[#allocation9 + $0x1d0] sm:$0xff] %v10557_v39 }
 0x8ad   :  { %10622 = vst [vmem:[#allocation9 + $0x1d8] sm:$0xff] %v10558_v58  ;;  %10623 = vst [vmem:[#allocation9 + $0x1e0] sm:$0xff] %v10559_v16 }
 0x8ae   :  { %10624 = vst [vmem:[#allocation9 + $0x1e8] sm:$0xff] %v10560_v11  ;;  %10626 = vst [vmem:[#allocation9 + $0x1f8] sm:$0xff] %v10562_v26 }
 0x8af   :  { %14476 = shalt.err (!%p14473_p5)
}
 0x8b0   :  { %10638 = dma.vmem_to_hbm [thread:$0]  %s10633_s6, 8192, %s19550_s7, [#allocation5], %s14493_s29, %s14493_s29, %s14494_s30  }
 0x8b1   :  { %14489 = dma.done.wait [#allocation5], 8192  }
 0x8b2   :  { %14490 = vsyncadd [#allocation5], 4294959104 }
 0x8b3   :  { %10642 = vsyncpa [#allocation4], 1 }
 0x8b4   :  { %10643 = vsyncpa [#allocation7], 1 }
 0x8b5   :  { %10644 = vsyncpa [#allocation5], 1 }

</bundles_post_ra>
